<compile_context>
chip_gen: v5e
topology: v5e:2x2
jax: 0.10.0
libtpu: 0.0.40
codegen_flags: <defaults>
</compile_context>

<pallas_src>
import jax
import jax.numpy as jnp
from jax.experimental import pallas as pl
from jax.experimental.pallas import tpu as pltpu

EPS = 1e-5  # nn.BatchNorm2d default


def bottleneck_kernel(x_ref, w1_ref, g1_ref, be1_ref, w2_ref,
                      g2_ref, be2_ref, w3_ref, b3_ref, o_ref, hp_ref):
    N, H, W, CP = x_ref.shape            # channel-padded, spatially UNpadded input
    _, HP, WP, Cmid = hp_ref.shape       # zero-bordered scratch for the 3x3 conv
    Mi = N * H * W                       # BN population (interior pixels only)
    inv = 1.0 / Mi

    x = x_ref[...]                                       # (N, H, W, CP) f32, residual

    # ---------- conv1: 1x1 as a lane-dense K=CP bf16 matmul over interior pixels ----------
    # (bias b1 omitted: it cancels in the BatchNorm that follows)
    h = jnp.dot(x.reshape(Mi, CP).astype(jnp.bfloat16), w1_ref[...],
                preferred_element_type=jnp.float32)      # (Mi, Cmid) f32

    # ---------- BatchNorm2d #1 (training-mode batch stats, single pass) + ReLU ----------
    s1 = jnp.sum(h, axis=0, keepdims=True)
    ss1 = jnp.sum(h * h, axis=0, keepdims=True)
    mu1 = s1 * inv
    var1 = ss1 * inv - mu1 * mu1
    sc1 = g1_ref[...] * jax.lax.rsqrt(var1 + EPS)
    h = jnp.maximum(h * sc1 + (be1_ref[...] - mu1 * sc1), 0.0)

    # Scatter into a pre-zeroed bf16 scratch; borders stay exactly zero (pad=1 for conv2).
    hp_ref[...] = jnp.zeros_like(hp_ref)
    hp_ref[:, pl.ds(1, H), pl.ds(1, W), :] = h.reshape(N, H, W, Cmid).astype(jnp.bfloat16)

    # ---------- conv2: 3x3 pad=1 as 9 accumulated K=Cmid bf16 dots (f32 accumulator) ----------
    a = jnp.zeros((Mi, Cmid), jnp.float32)
    for dy in range(3):
        for dx in range(3):
            win = hp_ref[:, pl.ds(dy, H), pl.ds(dx, W), :]        # (N, H, W, Cmid) bf16
            a = a + jnp.dot(win.reshape(Mi, Cmid), w2_ref[dy * 3 + dx],
                            preferred_element_type=jnp.float32)

    # ---------- BatchNorm2d #2 (single pass) + ReLU ----------
    s2 = jnp.sum(a, axis=0, keepdims=True)
    ss2 = jnp.sum(a * a, axis=0, keepdims=True)
    mu2 = s2 * inv
    var2 = ss2 * inv - mu2 * mu2
    sc2 = g2_ref[...] * jax.lax.rsqrt(var2 + EPS)
    a = jnp.maximum(a * sc2 + (be2_ref[...] - mu2 * sc2), 0.0)

    # ---------- conv3: 1x1 back to CP lanes (bf16 MXU, f32 acc) + bias + residual ----------
    y = jnp.dot(a.astype(jnp.bfloat16), w3_ref[...],
                preferred_element_type=jnp.float32) + b3_ref[...]
    o_ref[...] = (y.reshape(N, H, W, CP) + x).astype(o_ref.dtype)


def bottleneck_forward(x_nchw, params):
    """x_nchw: (N, 3, H, W) float32 (PyTorch layout). Returns (N, 3, H, W)."""
    N, C, H, W = x_nchw.shape
    (w1, b1, g1, be1, w2, b2, g2, be2, w3, b3) = params   # b1/b2 unused (cancel in BN)
    Cmid = w1.shape[1]

    CPAD = 128                                   # lane-dense channel padding
    HP = H + 2                                   # +1 zero row top/bottom (in-kernel scratch)
    WP = ((W + 2 + 15) // 16) * 16               # round padded width to bf16 sublane tile

    x = jnp.transpose(x_nchw, (0, 2, 3, 1))                              # -> NHWC
    xp = jnp.pad(x, ((0, 0), (0, 0), (0, 0), (0, CPAD - C)))             # (N,H,W,CPAD)
    w1p = jnp.pad(w1, ((0, CPAD - C), (0, 0))).astype(jnp.bfloat16)      # (CPAD, Cmid)
    w2b = w2.astype(jnp.bfloat16)                                        # (9, Cmid, Cmid)
    w3p = jnp.pad(w3, ((0, 0), (0, CPAD - C))).astype(jnp.bfloat16)      # (Cmid, CPAD)
    b3p = jnp.pad(b3, ((0, 0), (0, CPAD - C)))                           # (1, CPAD) f32

    vmem = pl.BlockSpec(memory_space=pltpu.MemorySpace.VMEM)
    out = pl.pallas_call(
        bottleneck_kernel,
        out_shape=jax.ShapeDtypeStruct((N, H, W, CPAD), jnp.float32),
        in_specs=[vmem] * 9,
        out_specs=vmem,
        scratch_shapes=[pltpu.VMEM((N, HP, WP, Cmid), jnp.bfloat16)],
    )(xp, w1p, g1, be1, w2b, g2, be2, w3p, b3p)

    return jnp.transpose(out[..., :C], (0, 3, 1, 2))                     # -> NCHW


# ----------------------------- pure-JAX f32 reference -----------------------------
def ref_forward(x_nhwc, params):
    (w1, b1, g1, be1, w2, b2, g2, be2, w3, b3) = params
    dn = ('NHWC', 'HWIO', 'NHWC')
    hi = jax.lax.Precision.HIGHEST

    def bn(h, g, be):
        mu = jnp.mean(h, axis=(0, 1, 2), keepdims=True)
        var = jnp.mean((h - mu) ** 2, axis=(0, 1, 2), keepdims=True)
        return (h - mu) * jax.lax.rsqrt(var + EPS) * g.reshape(1, 1, 1, -1) \
               + be.reshape(1, 1, 1, -1)

    h = jax.lax.conv_general_dilated(
        x_nhwc, w1.reshape(1, 1, *w1.shape), (1, 1), 'VALID',
        dimension_numbers=dn, precision=hi) + b1.reshape(1, 1, 1, -1)
    h = jnp.maximum(bn(h, g1, be1), 0.0)
    h = jax.lax.conv_general_dilated(
        h, w2.reshape(3, 3, w2.shape[1], w2.shape[2]), (1, 1), 'SAME',
        dimension_numbers=dn, precision=hi) + b2.reshape(1, 1, 1, -1)
    h = jnp.maximum(bn(h, g2, be2), 0.0)
    y = jax.lax.conv_general_dilated(
        h, w3.reshape(1, 1, *w3.shape), (1, 1), 'VALID',
        dimension_numbers=dn, precision=hi) + b3.reshape(1, 1, 1, -1)
    return y + x_nhwc


if __name__ == "__main__":
    Cin, Cmid, N, H, W = 3, 64, 2, 16, 16

    key = jax.random.PRNGKey(0)
    ks = jax.random.split(key, 12)
    # conv1: torch weight (64,3,1,1) stored as (Cin, Cmid); conv2: (64,64,3,3) stored as
    # (9, Cin_mid, Cout_mid) with k = dy*3+dx, w2[k][cin, cout]; conv3: (3,64,1,1) -> (Cmid, Cin)
    w1 = 0.10 * jax.random.normal(ks[0], (Cin, Cmid), jnp.float32)
    b1 = 0.10 * jax.random.normal(ks[1], (1, Cmid), jnp.float32)
    g1 = 1.0 + 0.10 * jax.random.normal(ks[2], (1, Cmid), jnp.float32)
    be1 = 0.10 * jax.random.normal(ks[3], (1, Cmid), jnp.float32)
    w2 = 0.05 * jax.random.normal(ks[4], (9, Cmid, Cmid), jnp.float32)
    b2 = 0.10 * jax.random.normal(ks[5], (1, Cmid), jnp.float32)
    g2 = 1.0 + 0.10 * jax.random.normal(ks[6], (1, Cmid), jnp.float32)
    be2 = 0.10 * jax.random.normal(ks[7], (1, Cmid), jnp.float32)
    w3 = 0.10 * jax.random.normal(ks[8], (Cmid, Cin), jnp.float32)
    b3 = 0.10 * jax.random.normal(ks[9], (1, Cin), jnp.float32)
    params = (w1, b1, g1, be1, w2, b2, g2, be2, w3, b3)

    x_nchw = jax.random.normal(ks[11], (N, Cin, H, W), jnp.float32)

    out = bottleneck_forward(x_nchw, params)
    out = jax.block_until_ready(out)

    ref = ref_forward(jnp.transpose(x_nchw, (0, 2, 3, 1)), params)
    ref = jnp.transpose(ref, (0, 3, 1, 2))

    assert out.shape == x_nchw.shape and out.dtype == jnp.float32
    # Tolerance budgets for bf16 MXU inputs on all three convs (accumulation / BN / residual
    # stay f32); real indexing or normalization bugs produce errors orders of magnitude larger.
    assert jnp.allclose(out, ref, rtol=1e-2, atol=1e-2), \
        f"max abs err {jnp.max(jnp.abs(out - ref))}"

    print("KERNEL_OK")
</pallas_src>

<mosaic_0001>
module attributes {stable_mosaic.version = 11 : i64} {
  func.func @bottleneck_kernel(%arg0: memref<2x16x16x128xf32, #tpu.memory_space<vmem>>, %arg1: memref<128x64xbf16, #tpu.memory_space<vmem>>, %arg2: memref<1x64xf32, #tpu.memory_space<vmem>>, %arg3: memref<1x64xf32, #tpu.memory_space<vmem>>, %arg4: memref<9x64x64xbf16, #tpu.memory_space<vmem>>, %arg5: memref<1x64xf32, #tpu.memory_space<vmem>>, %arg6: memref<1x64xf32, #tpu.memory_space<vmem>>, %arg7: memref<64x128xbf16, #tpu.memory_space<vmem>>, %arg8: memref<1x128xf32, #tpu.memory_space<vmem>>, %arg9: memref<2x16x16x128xf32, #tpu.memory_space<vmem>>, %arg10: memref<2x18x32x64xbf16, #tpu.memory_space<vmem>>) attributes {dimension_semantics = [], scalar_prefetch = 0 : i64, scratch_operands = 1 : i64, tpu.core_type = #tpu.core_type<tc>} {
    %c0 = arith.constant 0 : index
    %c0_0 = arith.constant 0 : index
    %c0_1 = arith.constant 0 : index
    %c0_2 = arith.constant 0 : index
    %0 = vector.load %arg0[%c0, %c0_0, %c0_1, %c0_2] : memref<2x16x16x128xf32, #tpu.memory_space<vmem>>, vector<2x16x16x128xf32>
    %1 = vector.shape_cast %0 : vector<2x16x16x128xf32> to vector<512x128xf32>
    %2 = arith.truncf %1 : vector<512x128xf32> to vector<512x128xbf16>
    %c0_3 = arith.constant 0 : index
    %c0_4 = arith.constant 0 : index
    %3 = vector.load %arg1[%c0_3, %c0_4] : memref<128x64xbf16, #tpu.memory_space<vmem>>, vector<128x64xbf16>
    %cst = arith.constant dense<0.000000e+00> : vector<512x64xf32>
    %4 = tpu.matmul %2, %3, %cst {dimension_numbers = #tpu.dot_dimension_numbers<[1], [0], [0], [1], [0, 0, 1, 1], [], []>} : vector<512x128xbf16>, vector<128x64xbf16>, vector<512x64xf32> -> vector<512x64xf32>
    %cst_5 = arith.constant dense<0.000000e+00> : vector<64xf32>
    %5 = vector.multi_reduction <add>, %4, %cst_5 [0] : vector<512x64xf32> to vector<64xf32>
    %6 = vector.shape_cast %5 : vector<64xf32> to vector<1x64xf32>
    %7 = arith.mulf %4, %4 : vector<512x64xf32>
    %cst_6 = arith.constant dense<0.000000e+00> : vector<64xf32>
    %8 = vector.multi_reduction <add>, %7, %cst_6 [0] : vector<512x64xf32> to vector<64xf32>
    %9 = vector.shape_cast %8 : vector<64xf32> to vector<1x64xf32>
    %cst_7 = arith.constant 0.001953125 : f32
    %10 = vector.broadcast %cst_7 : f32 to vector<1x64xf32>
    %11 = arith.mulf %6, %10 : vector<1x64xf32>
    %cst_8 = arith.constant 0.001953125 : f32
    %12 = vector.broadcast %cst_8 : f32 to vector<1x64xf32>
    %13 = arith.mulf %9, %12 : vector<1x64xf32>
    %14 = arith.mulf %11, %11 : vector<1x64xf32>
    %15 = arith.subf %13, %14 : vector<1x64xf32>
    %c0_9 = arith.constant 0 : index
    %c0_10 = arith.constant 0 : index
    %16 = vector.load %arg2[%c0_9, %c0_10] : memref<1x64xf32, #tpu.memory_space<vmem>>, vector<1x64xf32>
    %cst_11 = arith.constant 9.99999974E-6 : f32
    %17 = vector.broadcast %cst_11 : f32 to vector<1x64xf32>
    %18 = arith.addf %15, %17 : vector<1x64xf32>
    %19 = math.rsqrt %18 : vector<1x64xf32>
    %20 = arith.mulf %16, %19 : vector<1x64xf32>
    %21 = vector.broadcast %20 : vector<1x64xf32> to vector<512x64xf32>
    %22 = arith.mulf %4, %21 : vector<512x64xf32>
    %c0_12 = arith.constant 0 : index
    %c0_13 = arith.constant 0 : index
    %23 = vector.load %arg3[%c0_12, %c0_13] : memref<1x64xf32, #tpu.memory_space<vmem>>, vector<1x64xf32>
    %24 = arith.mulf %11, %20 : vector<1x64xf32>
    %25 = arith.subf %23, %24 : vector<1x64xf32>
    %26 = vector.broadcast %25 : vector<1x64xf32> to vector<512x64xf32>
    %27 = arith.addf %22, %26 : vector<512x64xf32>
    %cst_14 = arith.constant 0.000000e+00 : f32
    %28 = vector.broadcast %cst_14 : f32 to vector<512x64xf32>
    %29 = arith.maximumf %27, %28 : vector<512x64xf32>
    %cst_15 = arith.constant 0.000000e+00 : bf16
    %30 = vector.broadcast %cst_15 : bf16 to vector<2x18x32x64xbf16>
    %c0_16 = arith.constant 0 : index
    %c0_17 = arith.constant 0 : index
    %c0_18 = arith.constant 0 : index
    %c0_19 = arith.constant 0 : index
    %31 = vector.load %arg10[%c0_16, %c0_17, %c0_18, %c0_19] : memref<2x18x32x64xbf16, #tpu.memory_space<vmem>>, vector<2x18x32x64xbf16>
    tpu.vector_store %arg10[%c0_16, %c0_17, %c0_18, %c0_19], %30 {strides = array<i32>} : memref<2x18x32x64xbf16, #tpu.memory_space<vmem>>, vector<2x18x32x64xbf16>,
    %32 = vector.shape_cast %29 : vector<512x64xf32> to vector<2x16x16x64xf32>
    %33 = arith.truncf %32 : vector<2x16x16x64xf32> to vector<2x16x16x64xbf16>
    %c0_20 = arith.constant 0 : index
    %c1 = arith.constant 1 : index
    %c1_21 = arith.constant 1 : index
    %c0_22 = arith.constant 0 : index
    %34 = vector.load %arg10[%c0_20, %c1, %c1_21, %c0_22] : memref<2x18x32x64xbf16, #tpu.memory_space<vmem>>, vector<2x16x16x64xbf16>
    tpu.vector_store %arg10[%c0_20, %c1, %c1_21, %c0_22], %33 {strides = array<i32>} : memref<2x18x32x64xbf16, #tpu.memory_space<vmem>>, vector<2x16x16x64xbf16>,
    %cst_23 = arith.constant 0.000000e+00 : f32
    %35 = vector.broadcast %cst_23 : f32 to vector<512x64xf32>
    %c0_24 = arith.constant 0 : index
    %c0_25 = arith.constant 0 : index
    %c0_26 = arith.constant 0 : index
    %c0_27 = arith.constant 0 : index
    %36 = vector.load %arg10[%c0_24, %c0_25, %c0_26, %c0_27] : memref<2x18x32x64xbf16, #tpu.memory_space<vmem>>, vector<2x16x16x64xbf16>
    %37 = vector.shape_cast %36 : vector<2x16x16x64xbf16> to vector<512x64xbf16>
    %c0_28 = arith.constant 0 : index
    %c0_29 = arith.constant 0 : index
    %c0_30 = arith.constant 0 : index
    %38 = vector.load %arg4[%c0_28, %c0_29, %c0_30] : memref<9x64x64xbf16, #tpu.memory_space<vmem>>, vector<1x64x64xbf16>
    %39 = vector.shape_cast %38 : vector<1x64x64xbf16> to vector<64x64xbf16>
    %cst_31 = arith.constant dense<0.000000e+00> : vector<512x64xf32>
    %40 = tpu.matmul %37, %39, %cst_31 {dimension_numbers = #tpu.dot_dimension_numbers<[1], [0], [0], [1], [0, 0, 1, 1], [], []>} : vector<512x64xbf16>, vector<64x64xbf16>, vector<512x64xf32> -> vector<512x64xf32>
    %41 = arith.addf %35, %40 : vector<512x64xf32>
    %c0_32 = arith.constant 0 : index
    %c0_33 = arith.constant 0 : index
    %c1_34 = arith.constant 1 : index
    %c0_35 = arith.constant 0 : index
    %42 = vector.load %arg10[%c0_32, %c0_33, %c1_34, %c0_35] : memref<2x18x32x64xbf16, #tpu.memory_space<vmem>>, vector<2x16x16x64xbf16>
    %43 = vector.shape_cast %42 : vector<2x16x16x64xbf16> to vector<512x64xbf16>
    %c1_36 = arith.constant 1 : index
    %c0_37 = arith.constant 0 : index
    %c0_38 = arith.constant 0 : index
    %44 = vector.load %arg4[%c1_36, %c0_37, %c0_38] : memref<9x64x64xbf16, #tpu.memory_space<vmem>>, vector<1x64x64xbf16>
    %45 = vector.shape_cast %44 : vector<1x64x64xbf16> to vector<64x64xbf16>
    %cst_39 = arith.constant dense<0.000000e+00> : vector<512x64xf32>
    %46 = tpu.matmul %43, %45, %cst_39 {dimension_numbers = #tpu.dot_dimension_numbers<[1], [0], [0], [1], [0, 0, 1, 1], [], []>} : vector<512x64xbf16>, vector<64x64xbf16>, vector<512x64xf32> -> vector<512x64xf32>
    %47 = arith.addf %41, %46 : vector<512x64xf32>
    %c0_40 = arith.constant 0 : index
    %c0_41 = arith.constant 0 : index
    %c2 = arith.constant 2 : index
    %c0_42 = arith.constant 0 : index
    %48 = vector.load %arg10[%c0_40, %c0_41, %c2, %c0_42] : memref<2x18x32x64xbf16, #tpu.memory_space<vmem>>, vector<2x16x16x64xbf16>
    %49 = vector.shape_cast %48 : vector<2x16x16x64xbf16> to vector<512x64xbf16>
    %c2_43 = arith.constant 2 : index
    %c0_44 = arith.constant 0 : index
    %c0_45 = arith.constant 0 : index
    %50 = vector.load %arg4[%c2_43, %c0_44, %c0_45] : memref<9x64x64xbf16, #tpu.memory_space<vmem>>, vector<1x64x64xbf16>
    %51 = vector.shape_cast %50 : vector<1x64x64xbf16> to vector<64x64xbf16>
    %cst_46 = arith.constant dense<0.000000e+00> : vector<512x64xf32>
    %52 = tpu.matmul %49, %51, %cst_46 {dimension_numbers = #tpu.dot_dimension_numbers<[1], [0], [0], [1], [0, 0, 1, 1], [], []>} : vector<512x64xbf16>, vector<64x64xbf16>, vector<512x64xf32> -> vector<512x64xf32>
    %53 = arith.addf %47, %52 : vector<512x64xf32>
    %c0_47 = arith.constant 0 : index
    %c1_48 = arith.constant 1 : index
    %c0_49 = arith.constant 0 : index
    %c0_50 = arith.constant 0 : index
    %54 = vector.load %arg10[%c0_47, %c1_48, %c0_49, %c0_50] : memref<2x18x32x64xbf16, #tpu.memory_space<vmem>>, vector<2x16x16x64xbf16>
    %55 = vector.shape_cast %54 : vector<2x16x16x64xbf16> to vector<512x64xbf16>
    %c3 = arith.constant 3 : index
    %c0_51 = arith.constant 0 : index
    %c0_52 = arith.constant 0 : index
    %56 = vector.load %arg4[%c3, %c0_51, %c0_52] : memref<9x64x64xbf16, #tpu.memory_space<vmem>>, vector<1x64x64xbf16>
    %57 = vector.shape_cast %56 : vector<1x64x64xbf16> to vector<64x64xbf16>
    %cst_53 = arith.constant dense<0.000000e+00> : vector<512x64xf32>
    %58 = tpu.matmul %55, %57, %cst_53 {dimension_numbers = #tpu.dot_dimension_numbers<[1], [0], [0], [1], [0, 0, 1, 1], [], []>} : vector<512x64xbf16>, vector<64x64xbf16>, vector<512x64xf32> -> vector<512x64xf32>
    %59 = arith.addf %53, %58 : vector<512x64xf32>
    %c0_54 = arith.constant 0 : index
    %c1_55 = arith.constant 1 : index
    %c1_56 = arith.constant 1 : index
    %c0_57 = arith.constant 0 : index
    %60 = vector.load %arg10[%c0_54, %c1_55, %c1_56, %c0_57] : memref<2x18x32x64xbf16, #tpu.memory_space<vmem>>, vector<2x16x16x64xbf16>
    %61 = vector.shape_cast %60 : vector<2x16x16x64xbf16> to vector<512x64xbf16>
    %c4 = arith.constant 4 : index
    %c0_58 = arith.constant 0 : index
    %c0_59 = arith.constant 0 : index
    %62 = vector.load %arg4[%c4, %c0_58, %c0_59] : memref<9x64x64xbf16, #tpu.memory_space<vmem>>, vector<1x64x64xbf16>
    %63 = vector.shape_cast %62 : vector<1x64x64xbf16> to vector<64x64xbf16>
    %cst_60 = arith.constant dense<0.000000e+00> : vector<512x64xf32>
    %64 = tpu.matmul %61, %63, %cst_60 {dimension_numbers = #tpu.dot_dimension_numbers<[1], [0], [0], [1], [0, 0, 1, 1], [], []>} : vector<512x64xbf16>, vector<64x64xbf16>, vector<512x64xf32> -> vector<512x64xf32>
    %65 = arith.addf %59, %64 : vector<512x64xf32>
    %c0_61 = arith.constant 0 : index
    %c1_62 = arith.constant 1 : index
    %c2_63 = arith.constant 2 : index
    %c0_64 = arith.constant 0 : index
    %66 = vector.load %arg10[%c0_61, %c1_62, %c2_63, %c0_64] : memref<2x18x32x64xbf16, #tpu.memory_space<vmem>>, vector<2x16x16x64xbf16>
    %67 = vector.shape_cast %66 : vector<2x16x16x64xbf16> to vector<512x64xbf16>
    %c5 = arith.constant 5 : index
    %c0_65 = arith.constant 0 : index
    %c0_66 = arith.constant 0 : index
    %68 = vector.load %arg4[%c5, %c0_65, %c0_66] : memref<9x64x64xbf16, #tpu.memory_space<vmem>>, vector<1x64x64xbf16>
    %69 = vector.shape_cast %68 : vector<1x64x64xbf16> to vector<64x64xbf16>
    %cst_67 = arith.constant dense<0.000000e+00> : vector<512x64xf32>
    %70 = tpu.matmul %67, %69, %cst_67 {dimension_numbers = #tpu.dot_dimension_numbers<[1], [0], [0], [1], [0, 0, 1, 1], [], []>} : vector<512x64xbf16>, vector<64x64xbf16>, vector<512x64xf32> -> vector<512x64xf32>
    %71 = arith.addf %65, %70 : vector<512x64xf32>
    %c0_68 = arith.constant 0 : index
    %c2_69 = arith.constant 2 : index
    %c0_70 = arith.constant 0 : index
    %c0_71 = arith.constant 0 : index
    %72 = vector.load %arg10[%c0_68, %c2_69, %c0_70, %c0_71] : memref<2x18x32x64xbf16, #tpu.memory_space<vmem>>, vector<2x16x16x64xbf16>
    %73 = vector.shape_cast %72 : vector<2x16x16x64xbf16> to vector<512x64xbf16>
    %c6 = arith.constant 6 : index
    %c0_72 = arith.constant 0 : index
    %c0_73 = arith.constant 0 : index
    %74 = vector.load %arg4[%c6, %c0_72, %c0_73] : memref<9x64x64xbf16, #tpu.memory_space<vmem>>, vector<1x64x64xbf16>
    %75 = vector.shape_cast %74 : vector<1x64x64xbf16> to vector<64x64xbf16>
    %cst_74 = arith.constant dense<0.000000e+00> : vector<512x64xf32>
    %76 = tpu.matmul %73, %75, %cst_74 {dimension_numbers = #tpu.dot_dimension_numbers<[1], [0], [0], [1], [0, 0, 1, 1], [], []>} : vector<512x64xbf16>, vector<64x64xbf16>, vector<512x64xf32> -> vector<512x64xf32>
    %77 = arith.addf %71, %76 : vector<512x64xf32>
    %c0_75 = arith.constant 0 : index
    %c2_76 = arith.constant 2 : index
    %c1_77 = arith.constant 1 : index
    %c0_78 = arith.constant 0 : index
    %78 = vector.load %arg10[%c0_75, %c2_76, %c1_77, %c0_78] : memref<2x18x32x64xbf16, #tpu.memory_space<vmem>>, vector<2x16x16x64xbf16>
    %79 = vector.shape_cast %78 : vector<2x16x16x64xbf16> to vector<512x64xbf16>
    %c7 = arith.constant 7 : index
    %c0_79 = arith.constant 0 : index
    %c0_80 = arith.constant 0 : index
    %80 = vector.load %arg4[%c7, %c0_79, %c0_80] : memref<9x64x64xbf16, #tpu.memory_space<vmem>>, vector<1x64x64xbf16>
    %81 = vector.shape_cast %80 : vector<1x64x64xbf16> to vector<64x64xbf16>
    %cst_81 = arith.constant dense<0.000000e+00> : vector<512x64xf32>
    %82 = tpu.matmul %79, %81, %cst_81 {dimension_numbers = #tpu.dot_dimension_numbers<[1], [0], [0], [1], [0, 0, 1, 1], [], []>} : vector<512x64xbf16>, vector<64x64xbf16>, vector<512x64xf32> -> vector<512x64xf32>
    %83 = arith.addf %77, %82 : vector<512x64xf32>
    %c0_82 = arith.constant 0 : index
    %c2_83 = arith.constant 2 : index
    %c2_84 = arith.constant 2 : index
    %c0_85 = arith.constant 0 : index
    %84 = vector.load %arg10[%c0_82, %c2_83, %c2_84, %c0_85] : memref<2x18x32x64xbf16, #tpu.memory_space<vmem>>, vector<2x16x16x64xbf16>
    %85 = vector.shape_cast %84 : vector<2x16x16x64xbf16> to vector<512x64xbf16>
    %c8 = arith.constant 8 : index
    %c0_86 = arith.constant 0 : index
    %c0_87 = arith.constant 0 : index
    %86 = vector.load %arg4[%c8, %c0_86, %c0_87] : memref<9x64x64xbf16, #tpu.memory_space<vmem>>, vector<1x64x64xbf16>
    %87 = vector.shape_cast %86 : vector<1x64x64xbf16> to vector<64x64xbf16>
    %cst_88 = arith.constant dense<0.000000e+00> : vector<512x64xf32>
    %88 = tpu.matmul %85, %87, %cst_88 {dimension_numbers = #tpu.dot_dimension_numbers<[1], [0], [0], [1], [0, 0, 1, 1], [], []>} : vector<512x64xbf16>, vector<64x64xbf16>, vector<512x64xf32> -> vector<512x64xf32>
    %89 = arith.addf %83, %88 : vector<512x64xf32>
    %cst_89 = arith.constant dense<0.000000e+00> : vector<64xf32>
    %90 = vector.multi_reduction <add>, %89, %cst_89 [0] : vector<512x64xf32> to vector<64xf32>
    %91 = vector.shape_cast %90 : vector<64xf32> to vector<1x64xf32>
    %92 = arith.mulf %89, %89 : vector<512x64xf32>
    %cst_90 = arith.constant dense<0.000000e+00> : vector<64xf32>
    %93 = vector.multi_reduction <add>, %92, %cst_90 [0] : vector<512x64xf32> to vector<64xf32>
    %94 = vector.shape_cast %93 : vector<64xf32> to vector<1x64xf32>
    %cst_91 = arith.constant 0.001953125 : f32
    %95 = vector.broadcast %cst_91 : f32 to vector<1x64xf32>
    %96 = arith.mulf %91, %95 : vector<1x64xf32>
    %cst_92 = arith.constant 0.001953125 : f32
    %97 = vector.broadcast %cst_92 : f32 to vector<1x64xf32>
    %98 = arith.mulf %94, %97 : vector<1x64xf32>
    %99 = arith.mulf %96, %96 : vector<1x64xf32>
    %100 = arith.subf %98, %99 : vector<1x64xf32>
    %c0_93 = arith.constant 0 : index
    %c0_94 = arith.constant 0 : index
    %101 = vector.load %arg5[%c0_93, %c0_94] : memref<1x64xf32, #tpu.memory_space<vmem>>, vector<1x64xf32>
    %cst_95 = arith.constant 9.99999974E-6 : f32
    %102 = vector.broadcast %cst_95 : f32 to vector<1x64xf32>
    %103 = arith.addf %100, %102 : vector<1x64xf32>
    %104 = math.rsqrt %103 : vector<1x64xf32>
    %105 = arith.mulf %101, %104 : vector<1x64xf32>
    %106 = vector.broadcast %105 : vector<1x64xf32> to vector<512x64xf32>
    %107 = arith.mulf %89, %106 : vector<512x64xf32>
    %c0_96 = arith.constant 0 : index
    %c0_97 = arith.constant 0 : index
    %108 = vector.load %arg6[%c0_96, %c0_97] : memref<1x64xf32, #tpu.memory_space<vmem>>, vector<1x64xf32>
    %109 = arith.mulf %96, %105 : vector<1x64xf32>
    %110 = arith.subf %108, %109 : vector<1x64xf32>
    %111 = vector.broadcast %110 : vector<1x64xf32> to vector<512x64xf32>
    %112 = arith.addf %107, %111 : vector<512x64xf32>
    %cst_98 = arith.constant 0.000000e+00 : f32
    %113 = vector.broadcast %cst_98 : f32 to vector<512x64xf32>
    %114 = arith.maximumf %112, %113 : vector<512x64xf32>
    %115 = arith.truncf %114 : vector<512x64xf32> to vector<512x64xbf16>
    %c0_99 = arith.constant 0 : index
    %c0_100 = arith.constant 0 : index
    %116 = vector.load %arg7[%c0_99, %c0_100] : memref<64x128xbf16, #tpu.memory_space<vmem>>, vector<64x128xbf16>
    %cst_101 = arith.constant dense<0.000000e+00> : vector<512x128xf32>
    %117 = tpu.matmul %115, %116, %cst_101 {dimension_numbers = #tpu.dot_dimension_numbers<[1], [0], [0], [1], [0, 0, 1, 1], [], []>} : vector<512x64xbf16>, vector<64x128xbf16>, vector<512x128xf32> -> vector<512x128xf32>
    %c0_102 = arith.constant 0 : index
    %c0_103 = arith.constant 0 : index
    %118 = vector.load %arg8[%c0_102, %c0_103] : memref<1x128xf32, #tpu.memory_space<vmem>>, vector<1x128xf32>
    %119 = vector.broadcast %118 : vector<1x128xf32> to vector<512x128xf32>
    %120 = arith.addf %117, %119 : vector<512x128xf32>
    %121 = vector.shape_cast %120 : vector<512x128xf32> to vector<2x16x16x128xf32>
    %122 = arith.addf %121, %0 : vector<2x16x16x128xf32>
    %c0_104 = arith.constant 0 : index
    %c0_105 = arith.constant 0 : index
    %c0_106 = arith.constant 0 : index
    %c0_107 = arith.constant 0 : index
    %123 = vector.load %arg9[%c0_104, %c0_105, %c0_106, %c0_107] : memref<2x16x16x128xf32, #tpu.memory_space<vmem>>, vector<2x16x16x128xf32>
    tpu.vector_store %arg9[%c0_104, %c0_105, %c0_106, %c0_107], %122 {strides = array<i32>} : memref<2x16x16x128xf32, #tpu.memory_space<vmem>>, vector<2x16x16x128xf32>,
    return
  }
}

</mosaic_0001>

<bundles_post_ra>
// kernel: tpu_custom_call.1
= control target key start
LH: loop header
LB: loop body
LE: loop exit
PB: predicated region body
PF: predicated region fallthrough
CT: control target
= control target key end

     0   :  { %14 = vsyncpa [#allocation4], 0  ;;  %s17267_s0 = inlined_call_operand.hbm [shape: f32[2,16,16,128], index: 0, kind: input, shape index: {}]   ;;  %s17268_s1 = inlined_call_operand.vmem [shape: bf16[128,64], index: 1, kind: input, shape index: {}]   ;;  %s17269_s2 = inlined_call_operand.vmem [shape: f32[1,64], index: 2, kind: input, shape index: {}]   ;;  %s17270_s3 = inlined_call_operand.vmem [shape: f32[1,64], index: 3, kind: input, shape index: {}]   ;;  %s17271_s4 = inlined_call_operand.hbm [shape: bf16[9,64,64], index: 4, kind: input, shape index: {}]   ;;  %s17272_s5 = inlined_call_operand.vmem [shape: f32[1,64], index: 5, kind: input, shape index: {}]   ;;  %s17273_s6 = inlined_call_operand.vmem [shape: f32[1,64], index: 6, kind: input, shape index: {}]   ;;  %s17274_s7 = inlined_call_operand.vmem [shape: bf16[64,128], index: 7, kind: input, shape index: {}]   ;;  %s17275_s8 = inlined_call_operand.vmem [shape: f32[1,128], index: 8, kind: input, shape index: {}]   ;;  %s17276_s9 = inlined_call_operand.hbm [shape: f32[2,16,16,128], index: 9, kind: output, shape index: {}]  }
   0x1   :  { %15 = vsyncpa [#allocation7], 0 }
   0x2   :  { %16 = vsyncpa [#allocation5], 0  ;;  %s21_s11 = sshll.u32 %s17267_s0, 4  ;;  %s12308_s12 = smov [#allocation3]   ;;  %s22_s11 = int_to_ptr.hbm [resolvable:$true] %s21_s11 }
   0x3   :  { %s23_s13 = sshll.u32 %s12308_s12, 4  ;;  %s40_s16 = sshll.u32 %s17271_s4, 4  ;;  %s24_s13 = int_to_ptr.vmem [resolvable:$true] %s23_s13  ;;  %s41_s16 = int_to_ptr.hbm [resolvable:$true] %s40_s16 }
   0x4   :  { %s12309_s17 = smov 128   ;;  %s12310_s18 = smov 8  }
   0x5   :  { %29 = dma.hbm_to_vmem [thread:$0]  %s22_s11, 8192, %s24_s13, [#allocation4], %s12309_s17, %s12309_s17, %s12310_s18  }
   0x6   :  { %s12311_s19 = smov [#allocation6]   ;;  %s12312_s21 = smov 64  }
   0x7   :  { %s42_s20 = sshll.u32 %s12311_s19, 4  ;;  %s12313_s0 = smov 4   ;;  %s43_s20 = int_to_ptr.vmem [resolvable:$true] %s42_s20 }
   0x8   :  { %48 = dma.hbm_to_vmem [thread:$0]  %s41_s16, 4608, %s43_s20, [#allocation7], %s12312_s21, %s12312_s21, %s12313_s0  }
   0x9   :  { %12302 = dma.done.wait [#allocation4], 8192  }
   0xa   :  { %12303 = vsyncadd [#allocation4], 4294959104 }
   0xb   :  { %12304 = dma.done.wait [#allocation7], 4608  }
   0xc   :  { %12305 = vsyncadd [#allocation7], 4294962688  ;;  %vm944_vm0 = vcmask 519168   ;;  %v11990_v0 = vld [vmem:[%s17268_s1 + $0x38] sm:$0xff]  ;;  %v11989_v1 = vld [vmem:[%s17268_s1 + $0x30] sm:$0xff]  ;;  %v12314_v11 = vmov 0  }
   0xd   :  { %226 = vmatpush.bf16.msra.mxu0 %v11990_v0  ;;  %v11988_v2 = vld [vmem:[%s17268_s1 + $0x28] sm:$0xff]  ;;  %v11987_v3 = vld [vmem:[%s17268_s1 + $0x20] sm:$0xff]  ;;  %v11986_v4 = vld [vmem:[%s17268_s1 + $0x18] sm:$0xff]  ;;  %945 = vst.msk [vmem:[#allocation2] sm:$0xf] %vm944_vm0, %v12314_v11  ;;  %vm395_vm1 = vcmask 523264  }
   0xe   :  { %v11985_v5 = vld [vmem:[%s17268_s1 + $0x10] sm:$0xff]  ;;  %v11984_v6 = vld [vmem:[%s17268_s1 + $0x8] sm:$0xff]  ;;  %v11983_v7 = vld [vmem:[%s17268_s1] sm:$0xff]  ;;  %946 = vst.msk [vmem:[#allocation2 + $0x4] sm:$0xf] %vm944_vm0, %v12314_v11  ;;  %vm1804_vm7 = vcmask 516096  }
   0xf   :  { %v66_v8 = vld [vmem:[#allocation3] sm:$0xff]  ;;  %v67_v9 = vld [vmem:[#allocation3 + $0x8] sm:$0xff]  ;;  %947 = vst.msk [vmem:[#allocation2 + $0x8] sm:$0xf] %vm944_vm0, %v12314_v11  ;;  %v68_v12 = vld [vmem:[#allocation3 + $0x10] sm:$0xff]  ;;  %vm3840_vm15 = vcmask 1042432  }
  0x10   :  { %v130_v10 = vpack.c.bf16 %v67_v9, %v66_v8  ;;  %949 = vst.msk [vmem:[#allocation2 + $0x10] sm:$0xf] %vm944_vm0, %v12314_v11  ;;  %v69_v13 = vld [vmem:[#allocation3 + $0x18] sm:$0xff]  ;;  %v70_v15 = vld [vmem:[#allocation3 + $0x20] sm:$0xff]  ;;  %v71_v16 = vld [vmem:[#allocation3 + $0x28] sm:$0xff]  ;;  %s10977_s10 = sshll.u32 %s17276_s9, 4  ;;  %s10978_s10 = int_to_ptr.hbm [resolvable:$true] %s10977_s10 }
  0x11   :  { %227 = vmatpush.bf16.msra.mxu0 %v11989_v1  ;;  %950 = vst.msk [vmem:[#allocation2 + $0x14] sm:$0xf] %vm944_vm0, %v12314_v11  ;;  %v131_v14 = vpack.c.bf16 %v69_v13, %v68_v12  ;;  %v132_v17 = vpack.c.bf16 %v71_v16, %v70_v15  ;;  %v72_v18 = vld [vmem:[#allocation3 + $0x30] sm:$0xff]  ;;  %v73_v19 = vld [vmem:[#allocation3 + $0x38] sm:$0xff]  ;;  %v74_v21 = vld [vmem:[#allocation3 + $0x40] sm:$0xff] }
  0x12   :  { %951 = vst.msk [vmem:[#allocation2 + $0x18] sm:$0xf] %vm944_vm0, %v12314_v11  ;;  %v133_v20 = vpack.c.bf16 %v73_v19, %v72_v18  ;;  %v75_v22 = vld [vmem:[#allocation3 + $0x48] sm:$0xff]  ;;  %v76_v24 = vld [vmem:[#allocation3 + $0x50] sm:$0xff]  ;;  %v77_v25 = vld [vmem:[#allocation3 + $0x58] sm:$0xff] }
  0x13   :  { %953 = vst.msk [vmem:[#allocation2 + $0x20] sm:$0xf] %vm944_vm0, %v12314_v11  ;;  %v134_v23 = vpack.c.bf16 %v75_v22, %v74_v21  ;;  %v135_v26 = vpack.c.bf16 %v77_v25, %v76_v24  ;;  %v78_v27 = vld [vmem:[#allocation3 + $0x60] sm:$0xff]  ;;  %v79_v28 = vld [vmem:[#allocation3 + $0x68] sm:$0xff]  ;;  %v80_v30 = vld [vmem:[#allocation3 + $0x70] sm:$0xff] }
  0x14   :  { %954 = vst.msk [vmem:[#allocation2 + $0x24] sm:$0xf] %vm944_vm0, %v12314_v11  ;;  %v136_v29 = vpack.c.bf16 %v79_v28, %v78_v27  ;;  %v81_v31 = vld [vmem:[#allocation3 + $0x78] sm:$0xff]  ;;  %v82_v33 = vld [vmem:[#allocation3 + $0x80] sm:$0xff]  ;;  %v83_v34 = vld [vmem:[#allocation3 + $0x88] sm:$0xff] }
  0x15   :  { %228 = vmatpush.bf16.msra.mxu0 %v11988_v2  ;;  %955 = vst.msk [vmem:[#allocation2 + $0x28] sm:$0xf] %vm944_vm0, %v12314_v11  ;;  %v137_v32 = vpack.c.bf16 %v81_v31, %v80_v30  ;;  %v138_v35 = vpack.c.bf16 %v83_v34, %v82_v33  ;;  %v84_v38 = vld [vmem:[#allocation3 + $0x90] sm:$0xff]  ;;  %v85_v39 = vld [vmem:[#allocation3 + $0x98] sm:$0xff]  ;;  %v86_v43 = vld [vmem:[#allocation3 + $0xa0] sm:$0xff] }
  0x16   :  { %957 = vst.msk [vmem:[#allocation2 + $0x30] sm:$0xf] %vm944_vm0, %v12314_v11  ;;  %v139_v40 = vpack.c.bf16 %v85_v39, %v84_v38  ;;  %v87_v44 = vld [vmem:[#allocation3 + $0xa8] sm:$0xff]  ;;  %v88_v48 = vld [vmem:[#allocation3 + $0xb0] sm:$0xff]  ;;  %v89_v49 = vld [vmem:[#allocation3 + $0xb8] sm:$0xff] }
  0x17   :  { %958 = vst.msk [vmem:[#allocation2 + $0x34] sm:$0xf] %vm944_vm0, %v12314_v11  ;;  %v140_v45 = vpack.c.bf16 %v87_v44, %v86_v43  ;;  %v141_v50 = vpack.c.bf16 %v89_v49, %v88_v48  ;;  %v90_v53 = vld [vmem:[#allocation3 + $0xc0] sm:$0xff]  ;;  %v91_v54 = vld [vmem:[#allocation3 + $0xc8] sm:$0xff]  ;;  %v92_v58 = vld [vmem:[#allocation3 + $0xd0] sm:$0xff] }
  0x18   :  { %959 = vst.msk [vmem:[#allocation2 + $0x38] sm:$0xf] %vm944_vm0, %v12314_v11  ;;  %v142_v55 = vpack.c.bf16 %v91_v54, %v90_v53  ;;  %v93_v59 = vld [vmem:[#allocation3 + $0xd8] sm:$0xff]  ;;  %v94_v63 = vld [vmem:[#allocation3 + $0xe0] sm:$0xff]  ;;  %v95_v0 = vld [vmem:[#allocation3 + $0xe8] sm:$0xff] }
  0x19   :  { %229 = vmatpush.bf16.msra.mxu0 %v11987_v3  ;;  %961 = vst.msk [vmem:[#allocation2 + $0x40] sm:$0xf] %vm944_vm0, %v12314_v11  ;;  %v143_v60 = vpack.c.bf16 %v93_v59, %v92_v58  ;;  %v144_v1 = vpack.c.bf16 %v95_v0, %v94_v63  ;;  %v98_v9 = vld [vmem:[#allocation3 + $0x100] sm:$0xff]  ;;  %v101_v15 = vld [vmem:[#allocation3 + $0x118] sm:$0xff]  ;;  %v104_v24 = vld [vmem:[#allocation3 + $0x130] sm:$0xff] }
  0x1a   :  { %962 = vst.msk [vmem:[#allocation2 + $0x44] sm:$0xf] %vm944_vm0, %v12314_v11  ;;  %v102_v19 = vld [vmem:[#allocation3 + $0x120] sm:$0xff]  ;;  %v105_v25 = vld [vmem:[#allocation3 + $0x138] sm:$0xff]  ;;  %v107_v30 = vld [vmem:[#allocation3 + $0x148] sm:$0xff] }
  0x1b   :  { %963 = vst.msk [vmem:[#allocation2 + $0x48] sm:$0xf] %vm944_vm0, %v12314_v11  ;;  %v108_v34 = vld [vmem:[#allocation3 + $0x150] sm:$0xff]  ;;  %v110_v43 = vld [vmem:[#allocation3 + $0x160] sm:$0xff]  ;;  %v111_v44 = vld [vmem:[#allocation3 + $0x168] sm:$0xff] }
  0x1c   :  { %965 = vst.msk [vmem:[#allocation2 + $0x50] sm:$0xf] %vm944_vm0, %v12314_v11  ;;  %v113_v53 = vld [vmem:[#allocation3 + $0x178] sm:$0xff]  ;;  %v114_v59 = vld [vmem:[#allocation3 + $0x180] sm:$0xff]  ;;  %vm1153_vm5 = vsmask.f32 256 }
  0x1d   :  { %230 = vmatpush.bf16.msra.mxu0 %v11986_v4  ;;  %966 = vst.msk [vmem:[#allocation2 + $0x54] sm:$0xf] %vm944_vm0, %v12314_v11  ;;  %v96_v4 = vld [vmem:[#allocation3 + $0xf0] sm:$0xff]  ;;  %vm1154_vm6 = vsmask.f32 4368  ;;  %vm13176_vm9 = vmand %vm1804_vm7, %vm1153_vm5 }
  0x1e   :  { %967 = vst.msk [vmem:[#allocation2 + $0x58] sm:$0xf] %vm944_vm0, %v12314_v11  ;;  %vm13164_vm8 = vmor %vm1153_vm5, %vm1154_vm6  ;;  %vm1798_vm10 = vsmask.f32 7938  ;;  %vm2130_vm12 = vsmask.f32 3328 }
  0x1f   :  { %969 = vst.msk [vmem:[#allocation2 + $0x60] sm:$0xf] %vm944_vm0, %v12314_v11  ;;  %vm14067_vm11 = vmand %vm944_vm0, %vm1798_vm10  ;;  %vm2131_vm13 = vsmask.f32 7440 }
  0x20   :  { %970 = vst.msk [vmem:[#allocation2 + $0x64] sm:$0xf] %vm944_vm0, %v12314_v11  ;;  %vm14293_vm14 = vmor %vm2130_vm12, %vm2131_vm13 }
  0x21   :  { %231 = vmatpush.bf16.msra.mxu0 %v11985_v5  ;;  %971 = vst.msk [vmem:[#allocation2 + $0x68] sm:$0xf] %vm944_vm0, %v12314_v11  ;;  %v97_v5 = vld [vmem:[#allocation3 + $0xf8] sm:$0xff] }
  0x22   :  { %973 = vst.msk [vmem:[#allocation2 + $0x70] sm:$0xf] %vm944_vm0, %v12314_v11 }
  0x23   :  { %974 = vst.msk [vmem:[#allocation2 + $0x74] sm:$0xf] %vm944_vm0, %v12314_v11 }
  0x24   :  { %975 = vst.msk [vmem:[#allocation2 + $0x78] sm:$0xf] %vm944_vm0, %v12314_v11 }
  0x25   :  { %232 = vmatpush.bf16.msra.mxu0 %v11984_v6  ;;  %977 = vst.msk [vmem:[#allocation2 + $0x80] sm:$0xf] %vm944_vm0, %v12314_v11  ;;  %v145_v6 = vpack.c.bf16 %v97_v5, %v96_v4  ;;  %v116_v4 = vld [vmem:[#allocation3 + $0x190] sm:$0xff]  ;;  %v117_v5 = vld [vmem:[#allocation3 + $0x198] sm:$0xff] }
  0x26   :  { %978 = vst.msk [vmem:[#allocation2 + $0x84] sm:$0xf] %vm944_vm0, %v12314_v11 }
  0x27   :  { %979 = vst.msk [vmem:[#allocation2 + $0x88] sm:$0xf] %vm944_vm0, %v12314_v11 }
  0x28   :  { %981 = vst.msk [vmem:[#allocation2 + $0x90] sm:$0xf] %vm944_vm0, %v12314_v11 }
  0x29   :  { %233 = vmatpush.bf16.msra.mxu0 %v11983_v7  ;;  %982 = vst.msk [vmem:[#allocation2 + $0x94] sm:$0xf] %vm944_vm0, %v12314_v11 }
  0x2a   :  { %983 = vst.msk [vmem:[#allocation2 + $0x98] sm:$0xf] %vm944_vm0, %v12314_v11 }
  0x2b   :  { %985 = vst.msk [vmem:[#allocation2 + $0xa0] sm:$0xf] %vm944_vm0, %v12314_v11 }
  0x2c   :  { %234 = vmatmul.bf16.vlgmr.msra.gmra.mxu0 %v130_v10  ;;  %986 = vst.msk [vmem:[#allocation2 + $0xa4] sm:$0xf] %vm944_vm0, %v12314_v11  ;;  %v99_v10 = vld [vmem:[#allocation3 + $0x108] sm:$0xff] }
  0x2d   :  { %987 = vst.msk [vmem:[#allocation2 + $0xa8] sm:$0xf] %vm944_vm0, %v12314_v11 }
  0x2e   :  { %989 = vst.msk [vmem:[#allocation2 + $0xb0] sm:$0xf] %vm944_vm0, %v12314_v11 }
  0x2f   :  { %990 = vst.msk [vmem:[#allocation2 + $0xb4] sm:$0xf] %vm944_vm0, %v12314_v11 }
  0x30   :  { %991 = vst.msk [vmem:[#allocation2 + $0xb8] sm:$0xf] %vm944_vm0, %v12314_v11 }
  0x31   :  { %993 = vst.msk [vmem:[#allocation2 + $0xc0] sm:$0xf] %vm944_vm0, %v12314_v11 }
  0x32   :  { %994 = vst.msk [vmem:[#allocation2 + $0xc4] sm:$0xf] %vm944_vm0, %v12314_v11 }
  0x33   :  { %995 = vst.msk [vmem:[#allocation2 + $0xc8] sm:$0xf] %vm944_vm0, %v12314_v11 }
  0x34   :  { %997 = vst.msk [vmem:[#allocation2 + $0xd0] sm:$0xf] %vm944_vm0, %v12314_v11 }
  0x35   :  { %998 = vst.msk [vmem:[#allocation2 + $0xd4] sm:$0xf] %vm944_vm0, %v12314_v11 }
  0x36   :  { %999 = vst.msk [vmem:[#allocation2 + $0xd8] sm:$0xf] %vm944_vm0, %v12314_v11 }
  0x37   :  { %1001 = vst.msk [vmem:[#allocation2 + $0xe0] sm:$0xf] %vm944_vm0, %v12314_v11 }
  0x38   :  { %1002 = vst.msk [vmem:[#allocation2 + $0xe4] sm:$0xf] %vm944_vm0, %v12314_v11 }
  0x39   :  { %1003 = vst.msk [vmem:[#allocation2 + $0xe8] sm:$0xf] %vm944_vm0, %v12314_v11 }
  0x3a   :  { %1005 = vst.msk [vmem:[#allocation2 + $0xf0] sm:$0xf] %vm944_vm0, %v12314_v11 }
  0x3b   :  { %1006 = vst.msk [vmem:[#allocation2 + $0xf4] sm:$0xf] %vm944_vm0, %v12314_v11 }
  0x3c   :  { %239 = vmatmul.bf16.gmra.mxu0 %v131_v14  ;;  %1007 = vst.msk [vmem:[#allocation2 + $0xf8] sm:$0xf] %vm944_vm0, %v12314_v11  ;;  %v100_v14 = vld [vmem:[#allocation3 + $0x110] sm:$0xff] }
  0x3d   :  { %1009 = vst.msk [vmem:[#allocation2 + $0x100] sm:$0xf] %vm944_vm0, %v12314_v11  ;;  %v147_v16 = vpack.c.bf16 %v101_v15, %v100_v14  ;;  %v119_v14 = vld [vmem:[#allocation3 + $0x1a8] sm:$0xff] }
  0x3e   :  { %1010 = vst.msk [vmem:[#allocation2 + $0x104] sm:$0xf] %vm944_vm0, %v12314_v11 }
  0x3f   :  { %1011 = vst.msk [vmem:[#allocation2 + $0x108] sm:$0xf] %vm944_vm0, %v12314_v11 }
  0x40   :  { %1013 = vst.msk [vmem:[#allocation2 + $0x110] sm:$0xf] %vm944_vm0, %v12314_v11 }
  0x41   :  { %1014 = vst.msk [vmem:[#allocation2 + $0x114] sm:$0xf] %vm944_vm0, %v12314_v11 }
  0x42   :  { %1015 = vst.msk [vmem:[#allocation2 + $0x118] sm:$0xf] %vm944_vm0, %v12314_v11 }
  0x43   :  { %1017 = vst.msk [vmem:[#allocation2 + $0x120] sm:$0xf] %vm944_vm0, %v12314_v11 }
  0x44   :  { %1018 = vst.msk [vmem:[#allocation2 + $0x124] sm:$0xf] %vm944_vm0, %v12314_v11 }
  0x45   :  { %1019 = vst.msk [vmem:[#allocation2 + $0x128] sm:$0xf] %vm944_vm0, %v12314_v11 }
  0x46   :  { %1021 = vst.msk [vmem:[#allocation2 + $0x130] sm:$0xf] %vm944_vm0, %v12314_v11 }
  0x47   :  { %1022 = vst.msk [vmem:[#allocation2 + $0x134] sm:$0xf] %vm944_vm0, %v12314_v11 }
  0x48   :  { %1023 = vst.msk [vmem:[#allocation2 + $0x138] sm:$0xf] %vm944_vm0, %v12314_v11 }
  0x49   :  { %1025 = vst.msk [vmem:[#allocation2 + $0x140] sm:$0xf] %vm944_vm0, %v12314_v11 }
  0x4a   :  { %1026 = vst.msk [vmem:[#allocation2 + $0x144] sm:$0xf] %vm944_vm0, %v12314_v11 }
  0x4b   :  { %1027 = vst.msk [vmem:[#allocation2 + $0x148] sm:$0xf] %vm944_vm0, %v12314_v11 }
  0x4c   :  { %244 = vmatmul.bf16.gmra.mxu0 %v132_v17  ;;  %1029 = vst.msk [vmem:[#allocation2 + $0x150] sm:$0xf] %vm944_vm0, %v12314_v11 }
  0x4d   :  { %1030 = vst.msk [vmem:[#allocation2 + $0x154] sm:$0xf] %vm944_vm0, %v12314_v11 }
  0x4e   :  { %1031 = vst.msk [vmem:[#allocation2 + $0x158] sm:$0xf] %vm944_vm0, %v12314_v11 }
  0x4f   :  { %1033 = vst.msk [vmem:[#allocation2 + $0x160] sm:$0xf] %vm944_vm0, %v12314_v11 }
  0x50   :  { %1034 = vst.msk [vmem:[#allocation2 + $0x164] sm:$0xf] %vm944_vm0, %v12314_v11 }
  0x51   :  { %1035 = vst.msk [vmem:[#allocation2 + $0x168] sm:$0xf] %vm944_vm0, %v12314_v11 }
  0x52   :  { %1037 = vst.msk [vmem:[#allocation2 + $0x170] sm:$0xf] %vm944_vm0, %v12314_v11 }
  0x53   :  { %1038 = vst.msk [vmem:[#allocation2 + $0x174] sm:$0xf] %vm944_vm0, %v12314_v11 }
  0x54   :  { %1039 = vst.msk [vmem:[#allocation2 + $0x178] sm:$0xf] %vm944_vm0, %v12314_v11 }
  0x55   :  { %1041 = vst.msk [vmem:[#allocation2 + $0x180] sm:$0xf] %vm944_vm0, %v12314_v11 }
  0x56   :  { %1042 = vst.msk [vmem:[#allocation2 + $0x184] sm:$0xf] %vm944_vm0, %v12314_v11 }
  0x57   :  { %1043 = vst.msk [vmem:[#allocation2 + $0x188] sm:$0xf] %vm944_vm0, %v12314_v11 }
  0x58   :  { %1045 = vst.msk [vmem:[#allocation2 + $0x190] sm:$0xf] %vm944_vm0, %v12314_v11 }
  0x59   :  { %1046 = vst.msk [vmem:[#allocation2 + $0x194] sm:$0xf] %vm944_vm0, %v12314_v11 }
  0x5a   :  { %1047 = vst.msk [vmem:[#allocation2 + $0x198] sm:$0xf] %vm944_vm0, %v12314_v11 }
  0x5b   :  { %1049 = vst.msk [vmem:[#allocation2 + $0x1a0] sm:$0xf] %vm944_vm0, %v12314_v11 }
  0x5c   :  { %249 = vmatmul.bf16.gmra.mxu0 %v133_v20  ;;  %1050 = vst.msk [vmem:[#allocation2 + $0x1a4] sm:$0xf] %vm944_vm0, %v12314_v11  ;;  %v103_v20 = vld [vmem:[#allocation3 + $0x128] sm:$0xff] }
  0x5d   :  { %1051 = vst.msk [vmem:[#allocation2 + $0x1a8] sm:$0xf] %vm944_vm0, %v12314_v11  ;;  %v148_v21 = vpack.c.bf16 %v103_v20, %v102_v19  ;;  %v120_v20 = vld [vmem:[#allocation3 + $0x1b0] sm:$0xff] }
  0x5e   :  { %1053 = vst.msk [vmem:[#allocation2 + $0x1b0] sm:$0xf] %vm944_vm0, %v12314_v11 }
  0x5f   :  { %1054 = vst.msk [vmem:[#allocation2 + $0x1b4] sm:$0xf] %vm944_vm0, %v12314_v11 }
  0x60   :  { %1055 = vst.msk [vmem:[#allocation2 + $0x1b8] sm:$0xf] %vm944_vm0, %v12314_v11 }
  0x61   :  { %1057 = vst.msk [vmem:[#allocation2 + $0x1c0] sm:$0xf] %vm944_vm0, %v12314_v11 }
  0x62   :  { %1058 = vst.msk [vmem:[#allocation2 + $0x1c4] sm:$0xf] %vm944_vm0, %v12314_v11 }
  0x63   :  { %1059 = vst.msk [vmem:[#allocation2 + $0x1c8] sm:$0xf] %vm944_vm0, %v12314_v11 }
  0x64   :  { %1061 = vst.msk [vmem:[#allocation2 + $0x1d0] sm:$0xf] %vm944_vm0, %v12314_v11 }
  0x65   :  { %1062 = vst.msk [vmem:[#allocation2 + $0x1d4] sm:$0xf] %vm944_vm0, %v12314_v11 }
  0x66   :  { %1063 = vst.msk [vmem:[#allocation2 + $0x1d8] sm:$0xf] %vm944_vm0, %v12314_v11 }
  0x67   :  { %1065 = vst.msk [vmem:[#allocation2 + $0x1e0] sm:$0xf] %vm944_vm0, %v12314_v11 }
  0x68   :  { %1066 = vst.msk [vmem:[#allocation2 + $0x1e4] sm:$0xf] %vm944_vm0, %v12314_v11 }
  0x69   :  { %1067 = vst.msk [vmem:[#allocation2 + $0x1e8] sm:$0xf] %vm944_vm0, %v12314_v11 }
  0x6a   :  { %1069 = vst.msk [vmem:[#allocation2 + $0x1f0] sm:$0xf] %vm944_vm0, %v12314_v11 }
  0x6b   :  { %1070 = vst.msk [vmem:[#allocation2 + $0x1f4] sm:$0xf] %vm944_vm0, %v12314_v11 }
  0x6c   :  { %254 = vmatmul.bf16.gmra.mxu0 %v134_v23  ;;  %1071 = vst.msk [vmem:[#allocation2 + $0x1f8] sm:$0xf] %vm944_vm0, %v12314_v11 }
  0x6d   :  { %1073 = vst.msk [vmem:[#allocation2 + $0x200] sm:$0xf] %vm944_vm0, %v12314_v11 }
  0x6e   :  { %1074 = vst.msk [vmem:[#allocation2 + $0x204] sm:$0xf] %vm944_vm0, %v12314_v11 }
  0x6f   :  { %1075 = vst.msk [vmem:[#allocation2 + $0x208] sm:$0xf] %vm944_vm0, %v12314_v11 }
  0x70   :  { %1077 = vst.msk [vmem:[#allocation2 + $0x210] sm:$0xf] %vm944_vm0, %v12314_v11 }
  0x71   :  { %1078 = vst.msk [vmem:[#allocation2 + $0x214] sm:$0xf] %vm944_vm0, %v12314_v11 }
  0x72   :  { %1079 = vst.msk [vmem:[#allocation2 + $0x218] sm:$0xf] %vm944_vm0, %v12314_v11 }
  0x73   :  { %1081 = vst.msk [vmem:[#allocation2 + $0x220] sm:$0xf] %vm944_vm0, %v12314_v11 }
  0x74   :  { %1082 = vst.msk [vmem:[#allocation2 + $0x224] sm:$0xf] %vm944_vm0, %v12314_v11 }
  0x75   :  { %1083 = vst.msk [vmem:[#allocation2 + $0x228] sm:$0xf] %vm944_vm0, %v12314_v11 }
  0x76   :  { %1085 = vst.msk [vmem:[#allocation2 + $0x230] sm:$0xf] %vm944_vm0, %v12314_v11 }
  0x77   :  { %1086 = vst.msk [vmem:[#allocation2 + $0x234] sm:$0xf] %vm944_vm0, %v12314_v11 }
  0x78   :  { %1087 = vst.msk [vmem:[#allocation2 + $0x238] sm:$0xf] %vm944_vm0, %v12314_v11  ;;  %v146_v11 = vpack.c.bf16 %v99_v10, %v98_v9 }
  0x7c   :  { %259 = vmatmul.bf16.gmra.mxu0 %v135_v26  ;;  %v149_v26 = vpack.c.bf16 %v105_v25, %v104_v24 }
  0x8c   :  { %264 = vmatmul.bf16.gmra.mxu0 %v136_v29  ;;  %v106_v29 = vld [vmem:[#allocation3 + $0x140] sm:$0xff] }
  0x8d   :  { %v150_v31 = vpack.c.bf16 %v107_v30, %v106_v29  ;;  %v122_v29 = vld [vmem:[#allocation3 + $0x1c0] sm:$0xff]  ;;  %v123_v30 = vld [vmem:[#allocation3 + $0x1c8] sm:$0xff] }
  0x9c   :  { %269 = vmatmul.bf16.gmra.mxu0 %v137_v32 }
  0xa9   :  { %v12615_v36 = vpop.f32.mrf.mxu0 }
  0xaa   :  { %17408 = vst [vmem:[#allocation12_spill] sm:$0xff] %v12615_v36 }
  0xac   :  { %274 = vmatmul.bf16.gmra.mxu0 %v138_v35  ;;  %v109_v35 = vld [vmem:[#allocation3 + $0x158] sm:$0xff] }
  0xad   :  { %v151_v38 = vpack.c.bf16 %v109_v35, %v108_v34 }
  0xb1   :  { %v12617_v37 = vpop.f32.mrf.mxu0 }
  0xb2   :  { %17409 = vst [vmem:[#allocation13_spill] sm:$0xff] %v12617_v37 }
  0xb9   :  { %v12619_v41 = vpop.f32.mrf.mxu0 }
  0xba   :  { %17410 = vst [vmem:[#allocation14_spill] sm:$0xff] %v12619_v41 }
  0xbc   :  { %279 = vmatmul.bf16.gmra.mxu0 %v139_v40 }
  0xc1   :  { %v12621_v42 = vpop.f32.mrf.mxu0 }
  0xc2   :  { %17411 = vst [vmem:[#allocation15_spill] sm:$0xff] %v12621_v42 }
  0xc9   :  { %v12623_v46 = vpop.f32.mrf.mxu0 }
  0xca   :  { %17412 = vst [vmem:[#allocation16_spill] sm:$0xff] %v12623_v46 }
  0xcc   :  { %284 = vmatmul.bf16.gmra.mxu0 %v140_v45  ;;  %v152_v45 = vpack.c.bf16 %v111_v44, %v110_v43  ;;  %v125_v43 = vld [vmem:[#allocation3 + $0x1d8] sm:$0xff] }
  0xd1   :  { %v12625_v47 = vpop.f32.mrf.mxu0 }
  0xd2   :  { %17413 = vst [vmem:[#allocation17_spill] sm:$0xff] %v12625_v47 }
  0xd9   :  { %v12627_v51 = vpop.f32.mrf.mxu0 }
  0xdc   :  { %289 = vmatmul.bf16.gmra.mxu0 %v141_v50  ;;  %v112_v50 = vld [vmem:[#allocation3 + $0x170] sm:$0xff] }
  0xdd   :  { %v153_v54 = vpack.c.bf16 %v113_v53, %v112_v50  ;;  %v126_v53 = vld [vmem:[#allocation3 + $0x1e0] sm:$0xff] }
  0xe1   :  { %v12629_v52 = vpop.f32.mrf.mxu0 }
  0xe9   :  { %v12631_v56 = vpop.f32.mrf.mxu0 }
  0xec   :  { %294 = vmatmul.bf16.gmra.mxu0 %v142_v55 }
  0xf1   :  { %v12633_v57 = vpop.f32.mrf.mxu0 }
  0xf9   :  { %v12635_v61 = vpop.f32.mrf.mxu0 }
  0xfc   :  { %299 = vmatmul.bf16.gmra.mxu0 %v143_v60  ;;  %v115_v60 = vld [vmem:[#allocation3 + $0x188] sm:$0xff] }
  0xfd   :  { %v154_v63 = vpack.c.bf16 %v115_v60, %v114_v59 }
 0x101   :  { %v12637_v62 = vpop.f32.mrf.mxu0 }
 0x109   :  { %v12639_v2 = vpop.f32.mrf.mxu0 }
 0x10c   :  { %304 = vmatmul.bf16.gmra.mxu0 %v144_v1 }
 0x111   :  { %v12641_v3 = vpop.f32.mrf.mxu0 }
 0x119   :  { %v12643_v7 = vpop.f32.mrf.mxu0 }
 0x11c   :  { %309 = vmatmul.bf16.gmra.mxu0 %v145_v6  ;;  %v155_v6 = vpack.c.bf16 %v117_v5, %v116_v4  ;;  %v128_v4 = vld [vmem:[#allocation3 + $0x1f0] sm:$0xff]  ;;  %v129_v5 = vld [vmem:[#allocation3 + $0x1f8] sm:$0xff] }
 0x121   :  { %v12645_v8 = vpop.f32.mrf.mxu0 }
 0x129   :  { %v12647_v12 = vpop.f32.mrf.mxu0 }
 0x12c   :  { %314 = vmatmul.bf16.gmra.mxu0 %v146_v11  ;;  %v118_v11 = vld [vmem:[#allocation3 + $0x1a0] sm:$0xff] }
 0x12d   :  { %v156_v15 = vpack.c.bf16 %v119_v14, %v118_v11 }
 0x131   :  { %v12649_v13 = vpop.f32.mrf.mxu0 }
 0x139   :  { %v12651_v17 = vpop.f32.mrf.mxu0 }
 0x13c   :  { %319 = vmatmul.bf16.gmra.mxu0 %v147_v16 }
 0x141   :  { %v12653_v18 = vpop.f32.mrf.mxu0 }
 0x149   :  { %v12655_v22 = vpop.f32.mrf.mxu0 }
 0x14a   :  { %17414 = vst [vmem:[#allocation18_spill] sm:$0xff] %v12655_v22 }
 0x14c   :  { %324 = vmatmul.bf16.gmra.mxu0 %v148_v21  ;;  %v121_v21 = vld [vmem:[#allocation3 + $0x1b8] sm:$0xff] }
 0x14d   :  { %v157_v24 = vpack.c.bf16 %v121_v21, %v120_v20  ;;  %v529_v20 = vmul.f32 %v12615_v36, %v12615_v36  ;;  %v397_v21 = vsel %vm395_vm1, %v12617_v37, 0.0 }
 0x151   :  { %v12657_v23 = vpop.f32.mrf.mxu0 }
 0x159   :  { %v12659_v27 = vpop.f32.mrf.mxu0 }
 0x15c   :  { %329 = vmatmul.bf16.gmra.mxu0 %v149_v26 }
 0x161   :  { %v12661_v28 = vpop.f32.mrf.mxu0 }
 0x169   :  { %v12663_v32 = vpop.f32.mrf.mxu0 }
 0x16a   :  { %17415 = vst [vmem:[#allocation19_spill] sm:$0xff] %v12663_v32 }
 0x16c   :  { %334 = vmatmul.bf16.gmra.mxu0 %v150_v31  ;;  %v158_v31 = vpack.c.bf16 %v123_v30, %v122_v29  ;;  %v396_v29 = vsel %vm395_vm1, %v12615_v36, 0.0  ;;  %v548_v36 = vmul.f32 %v12653_v18, %v12653_v18 }
 0x171   :  { %v12665_v33 = vpop.f32.mrf.mxu0 }
 0x179   :  { %v12667_v39 = vpop.f32.mrf.mxu0 }
 0x17c   :  { %339 = vmatmul.bf16.gmra.mxu0 %v151_v38  ;;  %v124_v38 = vld [vmem:[#allocation3 + $0x1d0] sm:$0xff] }
 0x17d   :  { %v159_v44 = vpack.c.bf16 %v125_v43, %v124_v38  ;;  %v532_v38 = vmul.f32 %v12621_v42, %v12621_v42  ;;  %v398_v43 = vadd.f32 %v397_v21, %v396_v29 }
 0x181   :  { %v12669_v40 = vpop.f32.mrf.mxu0 }
 0x189   :  { %v12671_v48 = vpop.f32.mrf.mxu0 }
 0x18a   :  { %17416 = vst [vmem:[#allocation20_spill] sm:$0xff] %v12671_v48 }
 0x18c   :  { %344 = vmatmul.bf16.gmra.mxu0 %v152_v45 }
 0x191   :  { %v12673_v49 = vpop.f32.mrf.mxu0 }
 0x199   :  { %v12675_v55 = vpop.f32.mrf.mxu0 }
 0x19c   :  { %349 = vmatmul.bf16.gmra.mxu0 %v153_v54  ;;  %v127_v54 = vld [vmem:[#allocation3 + $0x1e8] sm:$0xff] }
 0x19d   :  { %v160_v59 = vpack.c.bf16 %v127_v54, %v126_v53  ;;  %v401_v54 = vsel %vm395_vm1, %v12621_v42, 0.0  ;;  %v405_v42 = vsel %vm395_vm1, %v12625_v47, 0.0 }
 0x1a1   :  { %v12677_v58 = vpop.f32.mrf.mxu0 }
 0x1a9   :  { %v12679_v0 = vpop.f32.mrf.mxu0 }
 0x1aa   :  { %17417 = vst [vmem:[#allocation21_spill] sm:$0xff] %v12679_v0 }
 0x1ac   :  { %354 = vmatmul.bf16.gmra.mxu0 %v154_v63 }
 0x1b1   :  { %v12681_v1 = vpop.f32.mrf.mxu0 }
 0x1b9   :  { %v12683_v9 = vpop.f32.mrf.mxu0 }
 0x1bc   :  { %359 = vmatmul.bf16.gmra.mxu0 %v155_v6  ;;  %v161_v6 = vpack.c.bf16 %v129_v5, %v128_v4 }
 0x1c1   :  { %v12685_v10 = vpop.f32.mrf.mxu0 }
 0x1c9   :  { %v12687_v16 = vpop.f32.mrf.mxu0 }
 0x1ca   :  { %17418 = vst [vmem:[#allocation22_spill] sm:$0xff] %v12687_v16 }
 0x1cc   :  { %364 = vmatmul.bf16.gmra.mxu0 %v156_v15  ;;  %v530_v15 = vmul.f32 %v12617_v37, %v12617_v37  ;;  %v544_v37 = vmul.f32 %v12645_v8, %v12645_v8 }
 0x1ce   :  { %v594_v30 = vsel %vm395_vm1, %v530_v15, 0.0  ;;  %v598_v15 = vsel %vm395_vm1, %v532_v38, 0.0 }
 0x1d1   :  { %v12689_v19 = vpop.f32.mrf.mxu0 }
 0x1d9   :  { %v12691_v25 = vpop.f32.mrf.mxu0 }
 0x1dc   :  { %369 = vmatmul.bf16.gmra.mxu0 %v157_v24  ;;  %v531_v24 = vmul.f32 %v12619_v41, %v12619_v41 }
 0x1de   :  { %v596_v53 = vsel %vm395_vm1, %v531_v24, 0.0 }
 0x1e1   :  { %v12693_v26 = vpop.f32.mrf.mxu0 }
 0x1e9   :  { %v12695_v34 = vpop.f32.mrf.mxu0 }
 0x1ea   :  { %17419 = vst [vmem:[#allocation23_spill] sm:$0xff] %v12695_v34 }
 0x1ec   :  { %374 = vmatmul.bf16.gmra.mxu0 %v158_v31  ;;  %v399_v31 = vsel %vm395_vm1, %v12619_v41, 0.0  ;;  %v403_v41 = vsel %vm395_vm1, %v12623_v46, 0.0 }
 0x1ed   :  { %v400_v5 = vadd.f32 %v399_v31, %v398_v43 }
 0x1ef   :  { %v402_v24 = vadd.f32 %v401_v54, %v400_v5  ;;  %v537_v5 = vmul.f32 %v12631_v56, %v12631_v56 }
 0x1f1   :  { %v12697_v35 = vpop.f32.mrf.mxu0  ;;  %v404_v43 = vadd.f32 %v403_v41, %v402_v24  ;;  %v411_v24 = vsel %vm395_vm1, %v12631_v56, 0.0 }
 0x1f3   :  { %v406_v54 = vadd.f32 %v405_v42, %v404_v43  ;;  %v538_v42 = vmul.f32 %v12633_v57, %v12633_v57  ;;  %v413_v43 = vsel %vm395_vm1, %v12633_v57, 0.0 }
 0x1f9   :  { %v12699_v45 = vpop.f32.mrf.mxu0 }
 0x1fc   :  { %379 = vmatmul.bf16.gmra.mxu0 %v159_v44  ;;  %v593_v44 = vsel %vm395_vm1, %v529_v20, 0.0  ;;  %v534_v20 = vmul.f32 %v12625_v47, %v12625_v47  ;;  %v540_v47 = vmul.f32 %v12637_v62, %v12637_v62 }
 0x1fd   :  { %v595_v4 = vadd.f32 %v594_v30, %v593_v44  ;;  %v535_v30 = vmul.f32 %v12627_v51, %v12627_v51  ;;  %v407_v44 = vsel %vm395_vm1, %v12627_v51, 0.0 }
 0x1fe   :  { %v602_v38 = vsel %vm395_vm1, %v534_v20, 0.0 }
 0x1ff   :  { %v597_v21 = vadd.f32 %v596_v53, %v595_v4  ;;  %v409_v4 = vsel %vm395_vm1, %v12629_v52, 0.0 }
 0x201   :  { %v12701_v50 = vpop.f32.mrf.mxu0  ;;  %v599_v31 = vadd.f32 %v598_v15, %v597_v21  ;;  %v408_v15 = vadd.f32 %v407_v44, %v406_v54  ;;  %v415_v54 = vsel %vm395_vm1, %v12635_v61, 0.0 }
 0x209   :  { %v12703_v60 = vpop.f32.mrf.mxu0 }
 0x20a   :  { %17420 = vst [vmem:[#allocation24_spill] sm:$0xff] %v12703_v60 }
 0x20c   :  { %384 = vmatmul.bf16.gmra.mxu0 %v160_v59  ;;  %v533_v59 = vmul.f32 %v12623_v46, %v12623_v46  ;;  %v536_v46 = vmul.f32 %v12629_v52, %v12629_v52 }
 0x20e   :  { %v600_v29 = vsel %vm395_vm1, %v533_v59, 0.0  ;;  %v604_v59 = vsel %vm395_vm1, %v535_v30, 0.0  ;;  %v606_v20 = vsel %vm395_vm1, %v536_v46, 0.0  ;;  %v410_v30 = vadd.f32 %v409_v4, %v408_v15 }
 0x20f   :  { %v601_v53 = vadd.f32 %v600_v29, %v599_v31  ;;  %v608_v31 = vsel %vm395_vm1, %v537_v5, 0.0  ;;  %v610_v46 = vsel %vm395_vm1, %v538_v42, 0.0  ;;  %v417_v15 = vsel %vm395_vm1, %v12637_v62, 0.0 }
 0x210   :  { %v412_v44 = vadd.f32 %v411_v24, %v410_v30  ;;  %v614_v42 = vsel %vm395_vm1, %v540_v47, 0.0  ;;  %v419_v30 = vsel %vm395_vm1, %v12639_v2, 0.0 }
 0x211   :  { %v12705_v63 = vpop.f32.mrf.mxu0  ;;  %v603_v41 = vadd.f32 %v602_v38, %v601_v53  ;;  %v539_v38 = vmul.f32 %v12635_v61, %v12635_v61 }
 0x212   :  { %v414_v4 = vadd.f32 %v413_v43, %v412_v44 }
 0x213   :  { %v605_v29 = vadd.f32 %v604_v59, %v603_v41  ;;  %v612_v5 = vsel %vm395_vm1, %v539_v38, 0.0  ;;  %v541_v41 = vmul.f32 %v12639_v2, %v12639_v2 }
 0x214   :  { %v416_v24 = vadd.f32 %v415_v54, %v414_v4  ;;  %v423_v4 = vsel %vm395_vm1, %v12643_v7, 0.0 }
 0x215   :  { %v607_v53 = vadd.f32 %v606_v20, %v605_v29  ;;  %v616_v44 = vsel %vm395_vm1, %v541_v41, 0.0 }
 0x216   :  { %v418_v38 = vadd.f32 %v417_v15, %v416_v24  ;;  %v425_v24 = vsel %vm395_vm1, %v12645_v8, 0.0 }
 0x217   :  { %v609_v59 = vadd.f32 %v608_v31, %v607_v53  ;;  %v542_v31 = vmul.f32 %v12641_v3, %v12641_v3  ;;  %v421_v53 = vsel %vm395_vm1, %v12641_v3, 0.0 }
 0x218   :  { %v420_v54 = vadd.f32 %v419_v30, %v418_v38  ;;  %v427_v38 = vsel %vm395_vm1, %v12647_v12, 0.0 }
 0x219   :  { %v12707_v11 = vpop.f32.mrf.mxu0  ;;  %v611_v20 = vadd.f32 %v610_v46, %v609_v59  ;;  %v543_v46 = vmul.f32 %v12643_v7, %v12643_v7  ;;  %v618_v47 = vsel %vm395_vm1, %v542_v31, 0.0  ;;  %v622_v31 = vsel %vm395_vm1, %v544_v37, 0.0 }
 0x21a   :  { %v422_v15 = vadd.f32 %v421_v53, %v420_v54 }
 0x21b   :  { %v613_v43 = vadd.f32 %v612_v5, %v611_v20  ;;  %v620_v41 = vsel %vm395_vm1, %v543_v46, 0.0  ;;  %v545_v20 = vmul.f32 %v12647_v12, %v12647_v12 }
 0x21c   :  { %389 = vmatmul.bf16.gmra.mxu0 %v161_v6  ;;  %v424_v30 = vadd.f32 %v423_v4, %v422_v15  ;;  %v431_v15 = vsel %vm395_vm1, %v12651_v17, 0.0 }
 0x21d   :  { %v615_v59 = vadd.f32 %v614_v42, %v613_v43  ;;  %v624_v54 = vsel %vm395_vm1, %v545_v20, 0.0 }
 0x21e   :  { %v426_v46 = vadd.f32 %v425_v24, %v424_v30  ;;  %v433_v30 = vsel %vm395_vm1, %v12653_v18, 0.0 }
 0x21f   :  { %v617_v5 = vadd.f32 %v616_v44, %v615_v59  ;;  %v546_v44 = vmul.f32 %v12649_v13, %v12649_v13  ;;  %v429_v59 = vsel %vm395_vm1, %v12649_v13, 0.0 }
 0x220   :  { %v428_v4 = vadd.f32 %v427_v38, %v426_v46  ;;  %v435_v46 = vsel %vm395_vm1, %v12655_v22, 0.0 }
 0x221   :  { %v12709_v14 = vpop.f32.mrf.mxu0  ;;  %v619_v42 = vadd.f32 %v618_v47, %v617_v5  ;;  %v547_v47 = vmul.f32 %v12651_v17, %v12651_v17  ;;  %v626_v37 = vsel %vm395_vm1, %v546_v44, 0.0  ;;  %v630_v44 = vsel %vm395_vm1, %v548_v36, 0.0 }
 0x222   :  { %v430_v24 = vadd.f32 %v429_v59, %v428_v4 }
 0x223   :  { %v621_v53 = vadd.f32 %v620_v41, %v619_v42  ;;  %v628_v20 = vsel %vm395_vm1, %v547_v47, 0.0  ;;  %v549_v42 = vmul.f32 %v12655_v22, %v12655_v22  ;;  %v552_v22 = vmul.f32 %v12661_v28, %v12661_v28 }
 0x224   :  { %v432_v38 = vadd.f32 %v431_v15, %v430_v24  ;;  %v439_v24 = vsel %vm395_vm1, %v12659_v27, 0.0 }
 0x225   :  { %v623_v5 = vadd.f32 %v622_v31, %v621_v53  ;;  %v632_v4 = vsel %vm395_vm1, %v549_v42, 0.0 }
 0x226   :  { %v434_v47 = vadd.f32 %v433_v30, %v432_v38  ;;  %v441_v38 = vsel %vm395_vm1, %v12661_v28, 0.0 }
 0x227   :  { %v625_v41 = vadd.f32 %v624_v54, %v623_v5  ;;  %v550_v54 = vmul.f32 %v12657_v23, %v12657_v23  ;;  %v437_v5 = vsel %vm395_vm1, %v12657_v23, 0.0 }
 0x228   :  { %v436_v15 = vadd.f32 %v435_v46, %v434_v47  ;;  %v443_v47 = vsel %vm395_vm1, %v12663_v32, 0.0 }
 0x229   :  { %v12732_v6 = vpop.f32.mrf.mxu0  ;;  %v627_v31 = vadd.f32 %v626_v37, %v625_v41  ;;  %v551_v37 = vmul.f32 %v12659_v27, %v12659_v27  ;;  %v634_v36 = vsel %vm395_vm1, %v550_v54, 0.0  ;;  %v638_v54 = vsel %vm395_vm1, %v552_v22, 0.0 }
 0x22a   :  { %17421 = vst [vmem:[#allocation25_spill] sm:$0xff] %v12732_v6  ;;  %v438_v30 = vadd.f32 %v437_v5, %v436_v15 }
 0x22b   :  { %v629_v59 = vadd.f32 %v628_v20, %v627_v31  ;;  %v636_v42 = vsel %vm395_vm1, %v551_v37, 0.0  ;;  %v553_v31 = vmul.f32 %v12663_v32, %v12663_v32  ;;  %v556_v32 = vmul.f32 %v12669_v40, %v12669_v40 }
 0x22c   :  { %v440_v46 = vadd.f32 %v439_v24, %v438_v30  ;;  %v447_v30 = vsel %vm395_vm1, %v12667_v39, 0.0 }
 0x22d   :  { %v631_v41 = vadd.f32 %v630_v44, %v629_v59  ;;  %v640_v15 = vsel %vm395_vm1, %v553_v31, 0.0 }
 0x22e   :  { %v442_v37 = vadd.f32 %v441_v38, %v440_v46  ;;  %v449_v46 = vsel %vm395_vm1, %v12669_v40, 0.0 }
 0x22f   :  { %v633_v20 = vadd.f32 %v632_v4, %v631_v41  ;;  %v554_v4 = vmul.f32 %v12665_v33, %v12665_v33  ;;  %v445_v41 = vsel %vm395_vm1, %v12665_v33, 0.0 }
 0x230   :  { %v444_v24 = vadd.f32 %v443_v47, %v442_v37  ;;  %v451_v37 = vsel %vm395_vm1, %v12671_v48, 0.0 }
 0x231   :  { %v12754_v21 = vpop.f32.mrf.mxu0  ;;  %v635_v44 = vadd.f32 %v634_v36, %v633_v20  ;;  %v555_v36 = vmul.f32 %v12667_v39, %v12667_v39  ;;  %v642_v22 = vsel %vm395_vm1, %v554_v4, 0.0  ;;  %v646_v4 = vsel %vm395_vm1, %v556_v32, 0.0 }
 0x232   :  { %v446_v38 = vadd.f32 %v445_v41, %v444_v24 }
 0x233   :  { %v637_v5 = vadd.f32 %v636_v42, %v635_v44  ;;  %v644_v31 = vsel %vm395_vm1, %v555_v36, 0.0  ;;  %v557_v44 = vmul.f32 %v12671_v48, %v12671_v48  ;;  %v560_v48 = vmul.f32 %v12677_v58, %v12677_v58 }
 0x234   :  { %v448_v47 = vadd.f32 %v447_v30, %v446_v38  ;;  %v455_v38 = vsel %vm395_vm1, %v12675_v55, 0.0 }
 0x235   :  { %v639_v20 = vadd.f32 %v638_v54, %v637_v5  ;;  %v648_v24 = vsel %vm395_vm1, %v557_v44, 0.0 }
 0x236   :  { %v450_v36 = vadd.f32 %v449_v46, %v448_v47  ;;  %v457_v47 = vsel %vm395_vm1, %v12677_v58, 0.0 }
 0x237   :  { %v641_v42 = vadd.f32 %v640_v15, %v639_v20  ;;  %v558_v15 = vmul.f32 %v12673_v49, %v12673_v49  ;;  %v453_v20 = vsel %vm395_vm1, %v12673_v49, 0.0 }
 0x238   :  { %v452_v30 = vadd.f32 %v451_v37, %v450_v36  ;;  %v459_v36 = vsel %vm395_vm1, %v12679_v0, 0.0 }
 0x239   :  { %v12776_v29 = vpop.f32.mrf.mxu0  ;;  %v643_v54 = vadd.f32 %v642_v22, %v641_v42  ;;  %v559_v22 = vmul.f32 %v12675_v55, %v12675_v55  ;;  %v650_v32 = vsel %vm395_vm1, %v558_v15, 0.0  ;;  %v654_v15 = vsel %vm395_vm1, %v560_v48, 0.0 }
 0x23a   :  { %v454_v46 = vadd.f32 %v453_v20, %v452_v30 }
 0x23b   :  { %v645_v41 = vadd.f32 %v644_v31, %v643_v54  ;;  %v652_v44 = vsel %vm395_vm1, %v559_v22, 0.0  ;;  %v561_v54 = vmul.f32 %v12679_v0, %v12679_v0  ;;  %v564_v0 = vmul.f32 %v12685_v10, %v12685_v10 }
 0x23c   :  { %v456_v37 = vadd.f32 %v455_v38, %v454_v46  ;;  %v463_v46 = vsel %vm395_vm1, %v12683_v9, 0.0 }
 0x23d   :  { %v647_v42 = vadd.f32 %v646_v4, %v645_v41  ;;  %v656_v30 = vsel %vm395_vm1, %v561_v54, 0.0 }
 0x23e   :  { %v458_v22 = vadd.f32 %v457_v47, %v456_v37  ;;  %v465_v37 = vsel %vm395_vm1, %v12685_v10, 0.0 }
 0x23f   :  { %v649_v31 = vadd.f32 %v648_v24, %v647_v42  ;;  %v562_v24 = vmul.f32 %v12681_v1, %v12681_v1  ;;  %v461_v42 = vsel %vm395_vm1, %v12681_v1, 0.0 }
 0x240   :  { %v460_v38 = vadd.f32 %v459_v36, %v458_v22  ;;  %v467_v22 = vsel %vm395_vm1, %v12687_v16, 0.0 }
 0x241   :  { %v12798_v43 = vpop.f32.mrf.mxu0  ;;  %v651_v4 = vadd.f32 %v650_v32, %v649_v31  ;;  %v563_v32 = vmul.f32 %v12683_v9, %v12683_v9  ;;  %v658_v48 = vsel %vm395_vm1, %v562_v24, 0.0  ;;  %v662_v24 = vsel %vm395_vm1, %v564_v0, 0.0 }
 0x242   :  { %v462_v47 = vadd.f32 %v461_v42, %v460_v38 }
 0x243   :  { %v653_v20 = vadd.f32 %v652_v44, %v651_v4  ;;  %v660_v54 = vsel %vm395_vm1, %v563_v32, 0.0  ;;  %v565_v4 = vmul.f32 %v12687_v16, %v12687_v16  ;;  %v568_v16 = vmul.f32 %v12693_v26, %v12693_v26 }
 0x244   :  { %v464_v36 = vadd.f32 %v463_v46, %v462_v47  ;;  %v471_v47 = vsel %vm395_vm1, %v12691_v25, 0.0 }
 0x245   :  { %v655_v31 = vadd.f32 %v654_v15, %v653_v20  ;;  %v664_v38 = vsel %vm395_vm1, %v565_v4, 0.0 }
 0x246   :  { %v466_v32 = vadd.f32 %v465_v37, %v464_v36  ;;  %v473_v36 = vsel %vm395_vm1, %v12693_v26, 0.0 }
 0x247   :  { %v657_v44 = vadd.f32 %v656_v30, %v655_v31  ;;  %v566_v30 = vmul.f32 %v12689_v19, %v12689_v19  ;;  %v469_v31 = vsel %vm395_vm1, %v12689_v19, 0.0 }
 0x248   :  { %v468_v46 = vadd.f32 %v467_v22, %v466_v32  ;;  %v475_v32 = vsel %vm395_vm1, %v12695_v34, 0.0 }
 0x249   :  { %v12820_v53 = vpop.f32.mrf.mxu0  ;;  %v659_v15 = vadd.f32 %v658_v48, %v657_v44  ;;  %v567_v48 = vmul.f32 %v12691_v25, %v12691_v25  ;;  %v666_v0 = vsel %vm395_vm1, %v566_v30, 0.0  ;;  %v670_v30 = vsel %vm395_vm1, %v568_v16, 0.0 }
 0x24a   :  { %17422 = vst [vmem:[#allocation26_spill] sm:$0xff] %v12820_v53  ;;  %v470_v37 = vadd.f32 %v469_v31, %v468_v46 }
 0x24b   :  { %v661_v42 = vadd.f32 %v660_v54, %v659_v15  ;;  %v668_v4 = vsel %vm395_vm1, %v567_v48, 0.0  ;;  %v569_v15 = vmul.f32 %v12695_v34, %v12695_v34  ;;  %v572_v34 = vmul.f32 %v12701_v50, %v12701_v50 }
 0x24c   :  { %v472_v22 = vadd.f32 %v471_v47, %v470_v37  ;;  %v479_v37 = vsel %vm395_vm1, %v12699_v45, 0.0 }
 0x24d   :  { %v663_v44 = vadd.f32 %v662_v24, %v661_v42  ;;  %v672_v46 = vsel %vm395_vm1, %v569_v15, 0.0 }
 0x24e   :  { %v474_v48 = vadd.f32 %v473_v36, %v472_v22  ;;  %v481_v22 = vsel %vm395_vm1, %v12701_v50, 0.0 }
 0x24f   :  { %v665_v54 = vadd.f32 %v664_v38, %v663_v44  ;;  %v570_v38 = vmul.f32 %v12697_v35, %v12697_v35  ;;  %v477_v44 = vsel %vm395_vm1, %v12697_v35, 0.0 }
 0x250   :  { %v476_v47 = vadd.f32 %v475_v32, %v474_v48  ;;  %v483_v48 = vsel %vm395_vm1, %v12703_v60, 0.0 }
 0x251   :  { %v12842_v59 = vpop.f32.mrf.mxu0  ;;  %v667_v24 = vadd.f32 %v666_v0, %v665_v54  ;;  %v571_v0 = vmul.f32 %v12699_v45, %v12699_v45  ;;  %v674_v16 = vsel %vm395_vm1, %v570_v38, 0.0  ;;  %v678_v38 = vsel %vm395_vm1, %v572_v34, 0.0 }
 0x252   :  { %17423 = vst [vmem:[#allocation27_spill] sm:$0xff] %v12842_v59  ;;  %v478_v36 = vadd.f32 %v477_v44, %v476_v47 }
 0x253   :  { %v669_v31 = vadd.f32 %v668_v4, %v667_v24  ;;  %v676_v15 = vsel %vm395_vm1, %v571_v0, 0.0  ;;  %v573_v24 = vmul.f32 %v12703_v60, %v12703_v60  ;;  %v576_v60 = vmul.f32 %v12709_v14, %v12709_v14 }
 0x254   :  { %v480_v32 = vadd.f32 %v479_v37, %v478_v36  ;;  %v487_v36 = vsel %vm395_vm1, %v12707_v11, 0.0 }
 0x255   :  { %v671_v54 = vadd.f32 %v670_v30, %v669_v31  ;;  %v680_v47 = vsel %vm395_vm1, %v573_v24, 0.0 }
 0x256   :  { %v482_v0 = vadd.f32 %v481_v22, %v480_v32  ;;  %v489_v32 = vsel %vm395_vm1, %v12709_v14, 0.0 }
 0x257   :  { %v673_v4 = vadd.f32 %v672_v46, %v671_v54  ;;  %v574_v46 = vmul.f32 %v12705_v63, %v12705_v63  ;;  %v485_v54 = vsel %vm395_vm1, %v12705_v63, 0.0 }
 0x258   :  { %v484_v37 = vadd.f32 %v483_v48, %v482_v0  ;;  %v491_v0 = vsel %vm395_vm1, %v12732_v6, 0.0 }
 0x259   :  { %v12864_v5 = vpop.f32.mrf.mxu0  ;;  %v675_v30 = vadd.f32 %v674_v16, %v673_v4  ;;  %v575_v16 = vmul.f32 %v12707_v11, %v12707_v11  ;;  %v682_v34 = vsel %vm395_vm1, %v574_v46, 0.0  ;;  %v686_v46 = vsel %vm395_vm1, %v576_v60, 0.0 }
 0x25a   :  { %17424 = vst [vmem:[#allocation28_spill] sm:$0xff] %v12864_v5  ;;  %v486_v22 = vadd.f32 %v485_v54, %v484_v37 }
 0x25b   :  { %v677_v44 = vadd.f32 %v676_v15, %v675_v30  ;;  %v684_v24 = vsel %vm395_vm1, %v575_v16, 0.0  ;;  %v577_v30 = vmul.f32 %v12732_v6, %v12732_v6  ;;  %v580_v6 = vmul.f32 %v12798_v43, %v12798_v43 }
 0x25c   :  { %v488_v48 = vadd.f32 %v487_v36, %v486_v22  ;;  %v495_v22 = vsel %vm395_vm1, %v12776_v29, 0.0 }
 0x25d   :  { %v679_v4 = vadd.f32 %v678_v38, %v677_v44  ;;  %v688_v37 = vsel %vm395_vm1, %v577_v30, 0.0 }
 0x25e   :  { %v490_v16 = vadd.f32 %v489_v32, %v488_v48  ;;  %v497_v48 = vsel %vm395_vm1, %v12798_v43, 0.0 }
 0x25f   :  { %v681_v15 = vadd.f32 %v680_v47, %v679_v4  ;;  %v578_v47 = vmul.f32 %v12754_v21, %v12754_v21  ;;  %v493_v4 = vsel %vm395_vm1, %v12754_v21, 0.0 }
 0x260   :  { %v492_v36 = vadd.f32 %v491_v0, %v490_v16  ;;  %v499_v16 = vsel %vm395_vm1, %v12820_v53, 0.0 }
 0x261   :  { %v12886_v41 = vpop.f32.mrf.mxu0  ;;  %v683_v38 = vadd.f32 %v682_v34, %v681_v15  ;;  %v579_v34 = vmul.f32 %v12776_v29, %v12776_v29  ;;  %v690_v60 = vsel %vm395_vm1, %v578_v47, 0.0  ;;  %v694_v47 = vsel %vm395_vm1, %v580_v6, 0.0 }
 0x262   :  { %17425 = vst [vmem:[#allocation29_spill] sm:$0xff] %v12886_v41  ;;  %v494_v32 = vadd.f32 %v493_v4, %v492_v36 }
 0x263   :  { %v685_v54 = vadd.f32 %v684_v24, %v683_v38  ;;  %v692_v30 = vsel %vm395_vm1, %v579_v34, 0.0  ;;  %v581_v38 = vmul.f32 %v12820_v53, %v12820_v53  ;;  %v584_v53 = vmul.f32 %v12886_v41, %v12886_v41 }
 0x264   :  { %v496_v0 = vadd.f32 %v495_v22, %v494_v32  ;;  %v503_v32 = vsel %vm395_vm1, %v12864_v5, 0.0 }
 0x265   :  { %v687_v15 = vadd.f32 %v686_v46, %v685_v54  ;;  %v696_v36 = vsel %vm395_vm1, %v581_v38, 0.0 }
 0x266   :  { %v498_v34 = vadd.f32 %v497_v48, %v496_v0  ;;  %v505_v0 = vsel %vm395_vm1, %v12886_v41, 0.0 }
 0x267   :  { %v689_v24 = vadd.f32 %v688_v37, %v687_v15  ;;  %v582_v37 = vmul.f32 %v12842_v59, %v12842_v59  ;;  %v501_v15 = vsel %vm395_vm1, %v12842_v59, 0.0 }
 0x268   :  { %v500_v22 = vadd.f32 %v499_v16, %v498_v34 }
 0x269   :  { %v12908_v20 = vpop.f32.mrf.mxu0  ;;  %v691_v46 = vadd.f32 %v690_v60, %v689_v24  ;;  %v583_v60 = vmul.f32 %v12864_v5, %v12864_v5  ;;  %v698_v6 = vsel %vm395_vm1, %v582_v37, 0.0  ;;  %v702_v37 = vsel %vm395_vm1, %v584_v53, 0.0 }
 0x26a   :  { %17426 = vst [vmem:[#allocation30_spill] sm:$0xff] %v12908_v20  ;;  %v502_v48 = vadd.f32 %v501_v15, %v500_v22  ;;  %v507_v34 = vsel %vm395_vm1, %v12908_v20, 0.0 }
 0x26b   :  { %v693_v4 = vadd.f32 %v692_v30, %v691_v46  ;;  %v700_v38 = vsel %vm395_vm1, %v583_v60, 0.0  ;;  %v585_v46 = vmul.f32 %v12908_v20, %v12908_v20 }
 0x26c   :  { %v504_v16 = vadd.f32 %v503_v32, %v502_v48 }
 0x26d   :  { %v695_v24 = vadd.f32 %v694_v47, %v693_v4  ;;  %v704_v22 = vsel %vm395_vm1, %v585_v46, 0.0 }
 0x26e   :  { %v506_v60 = vadd.f32 %v505_v0, %v504_v16 }
 0x26f   :  { %v697_v30 = vadd.f32 %v696_v36, %v695_v24 }
 0x270   :  { %v508_v32 = vadd.f32 %v507_v34, %v506_v60 }
 0x271   :  { %v12930_v42 = vpop.f32.mrf.mxu0  ;;  %v699_v47 = vadd.f32 %v698_v6, %v697_v30 }
 0x272   :  { %17427 = vst [vmem:[#allocation31_spill] sm:$0xff] %v12930_v42  ;;  %v586_v36 = vmul.f32 %v12930_v42, %v12930_v42  ;;  %v509_v24 = vsel %vm395_vm1, %v12930_v42, 0.0 }
 0x273   :  { %v701_v15 = vadd.f32 %v700_v38, %v699_v47  ;;  %v510_v0 = vadd.f32 %v509_v24, %v508_v32 }
 0x274   :  { %v706_v53 = vsel %vm395_vm1, %v586_v36, 0.0 }
 0x275   :  { %v703_v30 = vadd.f32 %v702_v37, %v701_v15 }
 0x277   :  { %v705_v38 = vadd.f32 %v704_v22, %v703_v30 }
 0x279   :  { %v12952_v31 = vpop.f32.mrf.mxu0  ;;  %v707_v37 = vadd.f32 %v706_v53, %v705_v38 }
 0x27a   :  { %17428 = vst [vmem:[#allocation32_spill] sm:$0xff] %v12952_v31  ;;  %v587_v6 = vmul.f32 %v12952_v31, %v12952_v31  ;;  %v511_v48 = vsel %vm395_vm1, %v12952_v31, 0.0 }
 0x27b   :  { %v512_v34 = vadd.f32 %v511_v48, %v510_v0 }
 0x27c   :  { %v708_v46 = vsel %vm395_vm1, %v587_v6, 0.0 }
 0x27d   :  { %v709_v24 = vadd.f32 %v708_v46, %v707_v37 }
 0x281   :  { %v12974_v44 = vpop.f32.mrf.mxu0 }
 0x282   :  { %17429 = vst [vmem:[#allocation33_spill] sm:$0xff] %v12974_v44  ;;  %v588_v20 = vmul.f32 %v12974_v44, %v12974_v44  ;;  %v513_v16 = vsel %vm395_vm1, %v12974_v44, 0.0 }
 0x283   :  { %v514_v32 = vadd.f32 %v513_v16, %v512_v34 }
 0x284   :  { %v710_v36 = vsel %vm395_vm1, %v588_v20, 0.0 }
 0x285   :  { %v711_v48 = vadd.f32 %v710_v36, %v709_v24 }
 0x289   :  { %v12996_v54 = vpop.f32.mrf.mxu0 }
 0x28a   :  { %17430 = vst [vmem:[#allocation34_spill] sm:$0xff] %v12996_v54  ;;  %v589_v47 = vmul.f32 %v12996_v54, %v12996_v54  ;;  %v515_v60 = vsel %vm395_vm1, %v12996_v54, 0.0 }
 0x28b   :  { %v516_v31 = vadd.f32 %v515_v60, %v514_v32 }
 0x28c   :  { %v712_v6 = vsel %vm395_vm1, %v589_v47, 0.0 }
 0x28d   :  { %v713_v38 = vadd.f32 %v712_v6, %v711_v48 }
 0x291   :  { %v13018_v4 = vpop.f32.mrf.mxu0 }
 0x292   :  { %17431 = vst [vmem:[#allocation35_spill] sm:$0xff] %v13018_v4  ;;  %v590_v22 = vmul.f32 %v13018_v4, %v13018_v4  ;;  %v517_v30 = vsel %vm395_vm1, %v13018_v4, 0.0 }
 0x293   :  { %v518_v0 = vadd.f32 %v517_v30, %v516_v31 }
 0x294   :  { %v714_v53 = vsel %vm395_vm1, %v590_v22, 0.0 }
 0x295   :  { %v715_v41 = vadd.f32 %v714_v53, %v713_v38 }
 0x299   :  { %v390_v15 = vpop.f32.mrf.mxu0 }
 0x29a   :  { %v591_v44 = vmul.f32 %v390_v15, %v390_v15  ;;  %v519_v20 = vsel %vm395_vm1, %v390_v15, 0.0 }
 0x29b   :  { %v520_v42 = vadd.f32 %v519_v20, %v518_v0 }
 0x29c   :  { %v716_v54 = vsel %vm395_vm1, %v591_v44, 0.0 }
 0x29d   :  { %v717_v34 = vadd.f32 %v716_v54, %v715_v41 }
 0x2a1   :  { %v392_v46 = vpop.f32.mrf.mxu0 }
 0x2a2   :  { %v521_v16 = vsel %vm395_vm1, %v392_v46, 0.0  ;;  %v592_v47 = vmul.f32 %v392_v46, %v392_v46 }
 0x2a3   :  { %v522_v37 = vadd.f32 %v521_v16, %v520_v42 }
 0x2a4   :  { %v718_v4 = vsel %vm395_vm1, %v592_v47, 0.0 }
 0x2a5   :  { %v523_v60 = vrot.slane %v522_v37, 4  ;;  %v719_v36 = vadd.f32 %v718_v4, %v717_v34 }
 0x2a7   :  { %v524_v24 = vadd.f32 %v523_v60, %v522_v37  ;;  %v720_v22 = vrot.slane %v719_v36, 4  ;;  %v730_v37 = vld [vmem:[%s17269_s2] sm:$0x1] }
 0x2a9   :  { %v525_v32 = vrot.slane %v524_v24, 2  ;;  %v721_v5 = vadd.f32 %v720_v22, %v719_v36 }
 0x2ab   :  { %v526_v6 = vadd.f32 %v525_v32, %v524_v24  ;;  %v722_v31 = vrot.slane %v721_v5, 2 }
 0x2ad   :  { %v527_v30 = vrot.slane %v526_v6, 1  ;;  %v723_v44 = vadd.f32 %v722_v31, %v721_v5 }
 0x2af   :  { %v528_v48 = vadd.f32 %v527_v30, %v526_v6  ;;  %v724_v53 = vrot.slane %v723_v44, 1 }
 0x2b1   :  { %v725_v20 = vadd.f32 %v724_v53, %v723_v44  ;;  %v726_v38 = vmul.f32 0.001953125, %v528_v48 }
 0x2b3   :  { %v727_v0 = vmul.f32 0.001953125, %v725_v20  ;;  %v728_v59 = vmul.f32 %v726_v38, %v726_v38 }
 0x2b5   :  { %v729_v41 = vsub.f32 %v727_v0, %v728_v59  ;;  %v810_v59 = vld [vmem:[%s17270_s3] sm:$0x1] }
 0x2b7   :  { %v731_v42 = vadd.f32 1e-05, %v729_v41 }
 0x2b9   :  { %12148 = vrsqrt.f32 %v731_v42  ;;  %vm738_vm3 = vweird.f32 %v731_v42 }
 0x2bf   :  { %v12149_v54 = vpop.eup %12148 }
 0x2c0   :  { %v733_v16 = vmul.f32 %v12149_v54, %v731_v42  ;;  %vm739_vm2 = vweird.f32 %v12149_v54 }
 0x2c1   :  { %vm740_vm4 = vmor %vm738_vm3, %vm739_vm2  ;;  %vm3841_vm2 = vcmask 1046532  }
 0x2c2   :  { %v734_v4 = vmul.f32 %v12149_v54, %v733_v16  ;;  %vm14386_vm3 = vmor %vm3840_vm15, %vm3841_vm2 }
 0x2c4   :  { %v735_v47 = vmul.f32 0.5, %v734_v4 }
 0x2c6   :  { %v736_v34 = vsub.f32 1.5, %v735_v47 }
 0x2c8   :  { %v737_v5 = vmul.f32 %v12149_v54, %v736_v34 }
 0x2ca   :  { %v741_v60 = vsel %vm740_vm4, %v12149_v54, %v737_v5  ;;  %v17435_v5 = vld [vmem:[#allocation20_spill] sm:$0xff] }
 0x2cb   :  { %v742_v36 = vmul.f32 %v741_v60, %v730_v37  ;;  %v17436_v60 = vmov 0 }
 0x2cc   :  { %v17437_v60 = vsel %vm13164_vm8, 4294967295, %v17436_v60 }
 0x2cd   :  { %v13059_v24 = vperm.slane %v742_v36, 0  ;;  %v811_v22 = vmul.f32 %v742_v36, %v726_v38 }
 0x2cf   :  { %v812_v32 = vsub.f32 %v810_v59, %v811_v22  ;;  %v808_v6 = vmul.f32 %v13059_v24, %v390_v15  ;;  %v809_v31 = vmul.f32 %v13059_v24, %v392_v46  ;;  %v13069_v53 = vmul.f32 %v13059_v24, %v12627_v51  ;;  %v2023_v22 = vld [vmem:[#allocation2 + $0x228] sm:$0x1] }
 0x2d0   :  { %v13073_v20 = vmul.f32 %v13059_v24, %v12629_v52  ;;  %v13077_v15 = vmul.f32 %v13059_v24, %v12631_v56  ;;  %v13081_v46 = vmul.f32 %v13059_v24, %v12633_v57  ;;  %v13085_v38 = vmul.f32 %v13059_v24, %v12635_v61 }
 0x2d1   :  { %v13063_v30 = vperm.slane %v812_v32, 0  ;;  %v13089_v51 = vmul.f32 %v13059_v24, %v12637_v62  ;;  %v13093_v52 = vmul.f32 %v13059_v24, %v12639_v2  ;;  %v13097_v56 = vmul.f32 %v13059_v24, %v12641_v3 }
 0x2d2   :  { %v13101_v57 = vmul.f32 %v13059_v24, %v12643_v7  ;;  %v13105_v61 = vmul.f32 %v13059_v24, %v12645_v8  ;;  %v13109_v62 = vmul.f32 %v13059_v24, %v12647_v12  ;;  %v13115_v54 = vmul.f32 %v13059_v24, %v12649_v13  ;;  %v17433_v8 = vld [vmem:[#allocation18_spill] sm:$0xff] }
 0x2d3   :  { %v878_v44 = vadd.f32 %v13063_v30, %v808_v6  ;;  %v879_v48 = vadd.f32 %v13063_v30, %v809_v31  ;;  %v13119_v3 = vmul.f32 %v13059_v24, %v12651_v17  ;;  %v13123_v7 = vmul.f32 %v13059_v24, %v12653_v18  ;;  %v17434_v18 = vld [vmem:[#allocation19_spill] sm:$0xff]  ;;  %17438 = vst [vmem:[#allocation18_spill] sm:$0xff] %v17437_v60  ;;  %v17443_v31 = vld [vmem:[#allocation21_spill] sm:$0xff]  ;;  %v17457_v60 = vld [vmem:[#allocation34_spill] sm:$0xff] }
 0x2d4   :  { %v13127_v16 = vmul.f32 %v13059_v24, %v17433_v8  ;;  %v13131_v12 = vmul.f32 %v13059_v24, %v12657_v23  ;;  %v13135_v13 = vmul.f32 %v13059_v24, %v12659_v27  ;;  %v13140_v47 = vmul.f32 %v13059_v24, %v12661_v28 }
 0x2d5   :  { %v942_v0 = vmax.f32 %v878_v44, 0.0  ;;  %v943_v41 = vmax.f32 %v879_v48, 0.0  ;;  %v13144_v34 = vmul.f32 %v13059_v24, %v17434_v18  ;;  %v13148_v37 = vmul.f32 %v13059_v24, %v12665_v33 }
 0x2d6   :  { %v13152_v23 = vmul.f32 %v13059_v24, %v12667_v39  ;;  %v13156_v27 = vmul.f32 %v13059_v24, %v12669_v40  ;;  %v13160_v28 = vmul.f32 %v13059_v24, %v17435_v5  ;;  %v13172_v39 = vmul.f32 %v13059_v24, %v12673_v49  ;;  %v17446_v5 = vld [vmem:[#allocation23_spill] sm:$0xff] }
 0x2d7   :  { %v13111_v42 = vpack.c.bf16 %v942_v0, %v942_v0  ;;  %v1152_v2 = vpack.c.bf16 %v943_v41, %v943_v41  ;;  %v17440_v40 = vmov 0  ;;  %v13182_v32 = vmul.f32 %v13059_v24, %v12675_v55 }
 0x2d8   :  { %v17441_v40 = vsel %vm13176_vm9, 4294967295, %v17440_v40  ;;  %v13186_v6 = vmul.f32 %v13059_v24, %v12677_v58  ;;  %v13190_v44 = vmul.f32 %v13059_v24, %v17443_v31  ;;  %v13194_v49 = vmul.f32 %v13059_v24, %v12681_v1  ;;  %v17445_v58 = vld [vmem:[#allocation22_spill] sm:$0xff] }
 0x2d9   :  { %17432 = vst [vmem:[#allocation36_spill] sm:$0xff] %v13111_v42  ;;  %v1684_v4 = vshrl.u32 %v13111_v42, 16  ;;  %v1692_v17 = vshrl.u32 %v1152_v2, 16  ;;  %v1695_v59 = vshll.u32 %v1152_v2, 16  ;;  %v780_v55 = vmul.f32 %v13059_v24, %v12683_v9  ;;  %v17455_v42 = vld [vmem:[#allocation32_spill] sm:$0xff] }
 0x2da   :  { %17442 = vst [vmem:[#allocation20_spill] sm:$0xff] %v17441_v40  ;;  %v781_v2 = vmul.f32 %v13059_v24, %v12685_v10  ;;  %v782_v8 = vmul.f32 %v13059_v24, %v17445_v58  ;;  %v784_v1 = vmul.f32 %v13059_v24, %v12691_v25  ;;  %v785_v9 = vmul.f32 %v13059_v24, %v12693_v26  ;;  %v17449_v58 = vld [vmem:[#allocation26_spill] sm:$0xff]  ;;  %v17456_v40 = vld [vmem:[#allocation33_spill] sm:$0xff] }
 0x2db   :  { %v13168_v33 = vrot.slane %v1684_v4, 7  ;;  %v1694_v36 = vrot.slane %v1692_v17, 7  ;;  %17444 = vst [vmem:[#allocation21_spill] sm:$0xff] %v13194_v49  ;;  %v783_v4 = vmul.f32 %v13059_v24, %v12689_v19  ;;  %v786_v10 = vmul.f32 %v13059_v24, %v17446_v5  ;;  %v17452_v5 = vld [vmem:[#allocation29_spill] sm:$0xff]  ;;  %v17458_v49 = vld [vmem:[#allocation35_spill] sm:$0xff] }
 0x2dc   :  { %v787_v19 = vmul.f32 %v13059_v24, %v12697_v35  ;;  %v788_v25 = vmul.f32 %v13059_v24, %v12699_v45  ;;  %v791_v26 = vmul.f32 %v13059_v24, %v12705_v63  ;;  %v792_v31 = vmul.f32 %v13059_v24, %v12707_v11  ;;  %v17448_v35 = vld [vmem:[#allocation25_spill] sm:$0xff] }
 0x2dd   :  { %17439 = vst [vmem:[#allocation19_spill] sm:$0xff] %v13168_v33  ;;  %v1690_v48 = vrot.slane %v13168_v33, 4  ;;  %v1697_v0 = vor.u32 %v1695_v59, %v1694_v36  ;;  %v1699_v41 = vrot.slane %v1694_v36, 4  ;;  %v789_v36 = vmul.f32 %v13059_v24, %v12701_v50  ;;  %v17447_v59 = vld [vmem:[#allocation24_spill] sm:$0xff]  ;;  %v17454_v33 = vld [vmem:[#allocation31_spill] sm:$0xff] }
 0x2de   :  { %v795_v45 = vmul.f32 %v13059_v24, %v12754_v21  ;;  %v796_v50 = vmul.f32 %v13059_v24, %v12776_v29  ;;  %v798_v63 = vmul.f32 %v13059_v24, %v17449_v58  ;;  %v803_v29 = vmul.f32 %v13059_v24, %v17454_v33 }
 0x2df   :  { %v1698_v17 = vsel %vm13164_vm8, %v1690_v48, %v1697_v0  ;;  %v2024_v18 = vsel %vm13176_vm9, %v1699_v41, %v2023_v22  ;;  %v790_v22 = vmul.f32 %v13059_v24, %v17447_v59  ;;  %v793_v48 = vmul.f32 %v13059_v24, %v12709_v14 }
 0x2e0   :  { %2022 = vst.msk [vmem:[#allocation2 + $0x224] sm:$0xf] %vm944_vm0, %v1698_v17  ;;  %v794_v0 = vmul.f32 %v13059_v24, %v17448_v35  ;;  %v797_v41 = vmul.f32 %v13059_v24, %v12798_v43  ;;  %v17450_v17 = vld [vmem:[#allocation27_spill] sm:$0xff]  ;;  %v801_v59 = vmul.f32 %v13059_v24, %v17452_v5  ;;  %v17453_v35 = vld [vmem:[#allocation30_spill] sm:$0xff]  ;;  %v804_v43 = vmul.f32 %v13059_v24, %v17455_v42 }
 0x2e1   :  { %2025 = vst [vmem:[#allocation2 + $0x228] sm:$0x1] %v2024_v18  ;;  %v799_v11 = vmul.f32 %v13059_v24, %v17450_v17  ;;  %v17451_v18 = vld [vmem:[#allocation28_spill] sm:$0xff]  ;;  %v802_v21 = vmul.f32 %v13059_v24, %v17453_v35  ;;  %v805_v58 = vmul.f32 %v13059_v24, %v17456_v40  ;;  %v806_v17 = vmul.f32 %v13059_v24, %v17457_v60 }
 0x2e2   :  { %v800_v14 = vmul.f32 %v13059_v24, %v17451_v18  ;;  %v807_v18 = vmul.f32 %v13059_v24, %v17458_v49  ;;  %v13260_v5 = vadd.f32 %v13063_v30, %v13069_v53  ;;  %v13264_v35 = vadd.f32 %v13063_v30, %v13073_v20  ;;  %v17460_v40 = vld [vmem:[#allocation21_spill] sm:$0xff] }
 0x2e3   :  { %v13268_v42 = vadd.f32 %v13063_v30, %v13077_v15  ;;  %v13272_v33 = vadd.f32 %v13063_v30, %v13081_v46  ;;  %v13276_v60 = vadd.f32 %v13063_v30, %v13085_v38  ;;  %v13280_v53 = vadd.f32 %v13063_v30, %v13089_v51 }
 0x2e4   :  { %v13284_v20 = vadd.f32 %v13063_v30, %v13093_v52  ;;  %v13288_v15 = vadd.f32 %v13063_v30, %v13097_v56  ;;  %v13292_v46 = vadd.f32 %v13063_v30, %v13101_v57  ;;  %v13296_v38 = vadd.f32 %v13063_v30, %v13105_v61 }
 0x2e5   :  { %v13300_v51 = vadd.f32 %v13063_v30, %v13109_v62  ;;  %v13304_v52 = vadd.f32 %v13063_v30, %v13115_v54  ;;  %v13308_v56 = vadd.f32 %v13063_v30, %v13119_v3  ;;  %v13312_v57 = vadd.f32 %v13063_v30, %v13123_v7 }
 0x2e6   :  { %v13316_v61 = vadd.f32 %v13063_v30, %v13127_v16  ;;  %v13320_v62 = vadd.f32 %v13063_v30, %v13131_v12  ;;  %v13324_v54 = vadd.f32 %v13063_v30, %v13135_v13  ;;  %v13328_v3 = vadd.f32 %v13063_v30, %v13140_v47 }
 0x2e7   :  { %v13332_v7 = vadd.f32 %v13063_v30, %v13144_v34  ;;  %v13336_v16 = vadd.f32 %v13063_v30, %v13148_v37  ;;  %v13340_v12 = vadd.f32 %v13063_v30, %v13152_v23  ;;  %v13344_v13 = vadd.f32 %v13063_v30, %v13156_v27 }
 0x2e8   :  { %v13348_v47 = vadd.f32 %v13063_v30, %v13160_v28  ;;  %v13352_v34 = vadd.f32 %v13063_v30, %v13172_v39  ;;  %v13356_v37 = vadd.f32 %v13063_v30, %v13182_v32  ;;  %v13360_v23 = vadd.f32 %v13063_v30, %v13186_v6 }
 0x2e9   :  { %v13364_v27 = vadd.f32 %v13063_v30, %v13190_v44  ;;  %v13368_v28 = vadd.f32 %v13063_v30, %v17460_v40  ;;  %v13371_v49 = vadd.f32 %v13063_v30, %v780_v55  ;;  %v13374_v39 = vadd.f32 %v13063_v30, %v781_v2 }
 0x2ea   :  { %17459 = vst [vmem:[#allocation22_spill] sm:$0xff] %v13360_v23  ;;  %v13377_v32 = vadd.f32 %v13063_v30, %v782_v8  ;;  %v13380_v6 = vadd.f32 %v13063_v30, %v783_v4  ;;  %v13383_v23 = vadd.f32 %v13063_v30, %v784_v1  ;;  %v13386_v44 = vadd.f32 %v13063_v30, %v785_v9 }
 0x2eb   :  { %v13389_v40 = vadd.f32 %v13063_v30, %v786_v10  ;;  %v13392_v55 = vadd.f32 %v13063_v30, %v787_v19  ;;  %v13395_v2 = vadd.f32 %v13063_v30, %v788_v25  ;;  %v13398_v8 = vadd.f32 %v13063_v30, %v789_v36 }
 0x2ec   :  { %v13401_v4 = vadd.f32 %v13063_v30, %v790_v22  ;;  %v13404_v1 = vadd.f32 %v13063_v30, %v791_v26  ;;  %v13407_v9 = vadd.f32 %v13063_v30, %v792_v31  ;;  %v13410_v10 = vadd.f32 %v13063_v30, %v793_v48 }
 0x2ed   :  { %17461 = vst [vmem:[#allocation23_spill] sm:$0xff] %v13398_v8  ;;  %v13413_v19 = vadd.f32 %v13063_v30, %v794_v0  ;;  %v13416_v25 = vadd.f32 %v13063_v30, %v795_v45  ;;  %v13419_v36 = vadd.f32 %v13063_v30, %v796_v50  ;;  %v13422_v22 = vadd.f32 %v13063_v30, %v797_v41 }
 0x2ee   :  { %17462 = vst [vmem:[#allocation24_spill] sm:$0xff] %v13401_v4  ;;  %v13425_v26 = vadd.f32 %v13063_v30, %v798_v63  ;;  %v13428_v31 = vadd.f32 %v13063_v30, %v799_v11  ;;  %v13431_v48 = vadd.f32 %v13063_v30, %v800_v14  ;;  %v13434_v0 = vadd.f32 %v13063_v30, %v801_v59  ;;  %v17480_v59 = vld [vmem:[#allocation12_spill] sm:$0xff] }
 0x2ef   :  { %17463 = vst [vmem:[#allocation25_spill] sm:$0xff] %v13404_v1  ;;  %v13437_v45 = vadd.f32 %v13063_v30, %v802_v21  ;;  %v13440_v50 = vadd.f32 %v13063_v30, %v803_v29  ;;  %v13443_v41 = vadd.f32 %v13063_v30, %v804_v43  ;;  %v13446_v63 = vadd.f32 %v13063_v30, %v805_v58  ;;  %v17481_v21 = vld [vmem:[#allocation13_spill] sm:$0xff]  ;;  %v17482_v29 = vld [vmem:[#allocation14_spill] sm:$0xff]  ;;  %v17483_v43 = vld [vmem:[#allocation15_spill] sm:$0xff] }
 0x2f0   :  { %17464 = vst [vmem:[#allocation26_spill] sm:$0xff] %v13407_v9  ;;  %v13449_v11 = vadd.f32 %v13063_v30, %v806_v17  ;;  %v13452_v14 = vadd.f32 %v13063_v30, %v807_v18  ;;  %v17484_v58 = vld [vmem:[#allocation16_spill] sm:$0xff]  ;;  %v17485_v17 = vld [vmem:[#allocation17_spill] sm:$0xff] }
 0x2f1   :  { %17465 = vst [vmem:[#allocation27_spill] sm:$0xff] %v13410_v10 }
 0x2f2   :  { %17466 = vst [vmem:[#allocation28_spill] sm:$0xff] %v13413_v19 }
 0x2f3   :  { %17467 = vst [vmem:[#allocation29_spill] sm:$0xff] %v13416_v25 }
 0x2f4   :  { %17468 = vst [vmem:[#allocation30_spill] sm:$0xff] %v13419_v36 }
 0x2f5   :  { %17469 = vst [vmem:[#allocation31_spill] sm:$0xff] %v13422_v22 }
 0x2f6   :  { %17470 = vst [vmem:[#allocation32_spill] sm:$0xff] %v13425_v26 }
 0x2f7   :  { %17471 = vst [vmem:[#allocation33_spill] sm:$0xff] %v13428_v31 }
 0x2f8   :  { %17472 = vst [vmem:[#allocation34_spill] sm:$0xff] %v13431_v48  ;;  %v888_v48 = vmax.f32 %v13268_v42, 0.0  ;;  %v898_v42 = vmax.f32 %v13308_v56, 0.0  ;;  %v908_v56 = vmax.f32 %v13348_v47, 0.0 }
 0x2f9   :  { %17473 = vst [vmem:[#allocation35_spill] sm:$0xff] %v13434_v0  ;;  %v746_v0 = vmul.f32 %v13059_v24, %v17480_v59 }
 0x2fa   :  { %17474 = vst [vmem:[#allocation21_spill] sm:$0xff] %v13437_v45  ;;  %v747_v45 = vmul.f32 %v13059_v24, %v17481_v21 }
 0x2fb   :  { %17475 = vst [vmem:[#allocation37_spill] sm:$0xff] %v13440_v50  ;;  %v748_v50 = vmul.f32 %v13059_v24, %v17482_v29  ;;  %v13467_v18 = vadd.f32 %v13063_v30, %v746_v0 }
 0x2fc   :  { %17476 = vst [vmem:[#allocation38_spill] sm:$0xff] %v13443_v41  ;;  %v749_v41 = vmul.f32 %v13059_v24, %v17483_v43  ;;  %v13470_v59 = vadd.f32 %v13063_v30, %v747_v45 }
 0x2fd   :  { %17477 = vst [vmem:[#allocation39_spill] sm:$0xff] %v13446_v63  ;;  %v750_v63 = vmul.f32 %v13059_v24, %v17484_v58  ;;  %v13473_v21 = vadd.f32 %v13063_v30, %v748_v50 }
 0x2fe   :  { %17478 = vst [vmem:[#allocation40_spill] sm:$0xff] %v13449_v11  ;;  %v751_v11 = vmul.f32 %v13059_v24, %v17485_v17  ;;  %v13476_v29 = vadd.f32 %v13063_v30, %v749_v41  ;;  %v880_v24 = vmax.f32 %v13467_v18, 0.0  ;;  %v881_v0 = vmax.f32 %v13470_v59, 0.0 }
 0x2ff   :  { %17479 = vst [vmem:[#allocation41_spill] sm:$0xff] %v13452_v14  ;;  %v13479_v43 = vadd.f32 %v13063_v30, %v750_v63  ;;  %v882_v17 = vmax.f32 %v13473_v21, 0.0  ;;  %v886_v41 = vmax.f32 %v13260_v5, 0.0  ;;  %v887_v63 = vmax.f32 %v13264_v35, 0.0  ;;  %v17487_v8 = vld [vmem:[#allocation34_spill] sm:$0xff] }
 0x300   :  { %v13482_v58 = vadd.f32 %v13063_v30, %v751_v11  ;;  %v883_v45 = vmax.f32 %v13476_v29, 0.0  ;;  %v889_v30 = vmax.f32 %v13272_v33, 0.0  ;;  %v890_v11 = vmax.f32 %v13276_v60, 0.0  ;;  %v17488_v4 = vld [vmem:[#allocation35_spill] sm:$0xff] }
 0x301   :  { %v884_v50 = vmax.f32 %v13479_v43, 0.0  ;;  %v891_v18 = vmax.f32 %v13280_v53, 0.0  ;;  %v892_v59 = vmax.f32 %v13284_v20, 0.0  ;;  %v893_v21 = vmax.f32 %v13288_v15, 0.0 }
 0x302   :  { %v885_v14 = vmax.f32 %v13482_v58, 0.0  ;;  %v894_v29 = vmax.f32 %v13292_v46, 0.0  ;;  %v895_v43 = vmax.f32 %v13296_v38, 0.0  ;;  %v896_v5 = vmax.f32 %v13300_v51, 0.0  ;;  %v17486_v58 = vld [vmem:[#allocation22_spill] sm:$0xff] }
 0x303   :  { %v897_v35 = vmax.f32 %v13304_v52, 0.0  ;;  %v899_v33 = vmax.f32 %v13312_v57, 0.0  ;;  %v900_v60 = vmax.f32 %v13316_v61, 0.0  ;;  %v901_v53 = vmax.f32 %v13320_v62, 0.0 }
 0x304   :  { %v902_v20 = vmax.f32 %v13324_v54, 0.0  ;;  %v903_v15 = vmax.f32 %v13328_v3, 0.0  ;;  %v904_v46 = vmax.f32 %v13332_v7, 0.0  ;;  %v905_v38 = vmax.f32 %v13336_v16, 0.0 }
 0x305   :  { %v906_v51 = vmax.f32 %v13340_v12, 0.0  ;;  %v907_v52 = vmax.f32 %v13344_v13, 0.0  ;;  %v909_v57 = vmax.f32 %v13352_v34, 0.0  ;;  %v910_v61 = vmax.f32 %v13356_v37, 0.0 }
 0x306   :  { %v1089_v36 = vpack.c.bf16 %v880_v24, %v880_v24  ;;  %v1090_v62 = vpack.c.bf16 %v881_v0, %v881_v0  ;;  %v1091_v22 = vpack.c.bf16 %v882_v17, %v882_v17  ;;  %v1092_v54 = vpack.c.bf16 %v883_v45, %v883_v45 }
 0x307   :  { %v1093_v26 = vpack.c.bf16 %v884_v50, %v884_v50  ;;  %v1094_v3 = vpack.c.bf16 %v885_v14, %v885_v14  ;;  %v13545_v31 = vpack.c.bf16 %v886_v41, %v886_v41  ;;  %v13547_v7 = vpack.c.bf16 %v887_v63, %v887_v63 }
 0x308   :  { %v13549_v16 = vpack.c.bf16 %v888_v48, %v888_v48  ;;  %v13551_v12 = vpack.c.bf16 %v889_v30, %v889_v30  ;;  %v13553_v13 = vpack.c.bf16 %v890_v11, %v890_v11  ;;  %v13555_v47 = vpack.c.bf16 %v891_v18, %v891_v18 }
 0x309   :  { %v13557_v34 = vpack.c.bf16 %v892_v59, %v892_v59  ;;  %v13559_v24 = vpack.c.bf16 %v893_v21, %v893_v21  ;;  %v13561_v0 = vpack.c.bf16 %v894_v29, %v894_v29  ;;  %v13563_v17 = vpack.c.bf16 %v895_v43, %v895_v43 }
 0x30a   :  { %v13565_v14 = vpack.c.bf16 %v896_v5, %v896_v5  ;;  %v13567_v45 = vpack.c.bf16 %v897_v35, %v897_v35  ;;  %v13569_v48 = vpack.c.bf16 %v898_v42, %v898_v42  ;;  %v13571_v50 = vpack.c.bf16 %v899_v33, %v899_v33 }
 0x30b   :  { %v13573_v41 = vpack.c.bf16 %v900_v60, %v900_v60  ;;  %v13575_v63 = vpack.c.bf16 %v901_v53, %v901_v53  ;;  %v13577_v30 = vpack.c.bf16 %v902_v20, %v902_v20  ;;  %v13579_v11 = vpack.c.bf16 %v903_v15, %v903_v15 }
 0x30c   :  { %v13581_v18 = vpack.c.bf16 %v904_v46, %v904_v46  ;;  %v13583_v59 = vpack.c.bf16 %v905_v38, %v905_v38  ;;  %v13585_v21 = vpack.c.bf16 %v906_v51, %v906_v51  ;;  %v13587_v29 = vpack.c.bf16 %v907_v52, %v907_v52 }
 0x30d   :  { %v13589_v43 = vpack.c.bf16 %v908_v56, %v908_v56  ;;  %v13591_v5 = vpack.c.bf16 %v909_v57, %v909_v57  ;;  %v13593_v35 = vpack.c.bf16 %v910_v61, %v910_v61  ;;  %v1157_v42 = vshrl.u32 %v1089_v36, 16 }
 0x30e   :  { %v1165_v33 = vshrl.u32 %v1090_v62, 16  ;;  %v1160_v60 = vshll.u32 %v1089_v36, 16  ;;  %v1168_v53 = vshll.u32 %v1090_v62, 16  ;;  %v1174_v20 = vshrl.u32 %v1091_v22, 16 }
 0x30f   :  { %v1182_v15 = vshrl.u32 %v1092_v54, 16  ;;  %v1159_v46 = vrot.slane %v1157_v42, 7  ;;  %v1177_v38 = vshll.u32 %v1091_v22, 16  ;;  %v1191_v51 = vshrl.u32 %v1093_v26, 16 }
 0x310   :  { %v13595_v37 = vrot.slane %v1165_v33, 7  ;;  %v1176_v25 = vrot.slane %v1174_v20, 7  ;;  %v1185_v56 = vshll.u32 %v1092_v54, 16  ;;  %v1199_v19 = vshrl.u32 %v1094_v3, 16 }
 0x311   :  { %v13597_v52 = vrot.slane %v1182_v15, 7  ;;  %v17494_v57 = vmax.f32 %v17486_v58, 0.0  ;;  %v13604_v10 = vor.u32 %v1160_v60, %v1159_v46  ;;  %v1163_v36 = vrot.slane %v1159_v46, 4 }
 0x312   :  { %v1170_v62 = vor.u32 %v1168_v53, %v13595_v37  ;;  %v13607_v42 = vor.u32 %v1177_v38, %v1176_v25  ;;  %v1180_v33 = vrot.slane %v1176_v25, 4  ;;  %v1194_v20 = vshll.u32 %v1093_v26, 16 }
 0x313   :  { %v13602_v61 = vpack.c.bf16 %v17494_v57, %v17494_v57  ;;  %v1187_v22 = vor.u32 %v1185_v56, %v13597_v52  ;;  %v1193_v9 = vrot.slane %v1191_v51, 7  ;;  %v13612_v1 = vrot.slane %v1199_v19, 7 }
 0x314   :  { %v1171_v54 = vsel %vm13164_vm8, %v1163_v36, %v1170_v62  ;;  %v1202_v58 = vshll.u32 %v1094_v3, 16  ;;  %v17496_v57 = vmax.f32 %v13364_v27, 0.0  ;;  %v1208_v25 = vshrl.u32 %v13545_v31, 16 }
 0x315   :  { %v1188_v53 = vsel %vm13164_vm8, %v1180_v33, %v1187_v22  ;;  %v1216_v46 = vshrl.u32 %v13547_v7, 16  ;;  %1803 = vst.msk [vmem:[#allocation2 + $0x14] sm:$0xf] %vm944_vm0, %v1171_v54  ;;  %v13624_v26 = vor.u32 %v1194_v20, %v1193_v9  ;;  %v1197_v38 = vrot.slane %v1193_v9, 4 }
 0x316   :  { %v13617_v60 = vpack.c.bf16 %v17496_v57, %v17496_v57  ;;  %v1204_v19 = vor.u32 %v1202_v58, %v13612_v1  ;;  %v1211_v3 = vshll.u32 %v13545_v31, 16  ;;  %1812 = vst.msk [vmem:[#allocation2 + $0x24] sm:$0xf] %vm944_vm0, %v1188_v53  ;;  %v1210_v27 = vrot.slane %v1208_v25, 7 }
 0x317   :  { %v13629_v51 = vrot.slane %v1216_v46, 7  ;;  %v1219_v56 = vshll.u32 %v13547_v7, 16  ;;  %v1225_v36 = vshrl.u32 %v13549_v16, 16  ;;  %v17497_v62 = vmax.f32 %v13368_v28, 0.0 }
 0x318   :  { %v17498_v9 = vmax.f32 %v13371_v49, 0.0  ;;  %v1205_v31 = vsel %vm13164_vm8, %v1197_v38, %v1204_v19  ;;  %v1233_v20 = vshrl.u32 %v13551_v12, 16  ;;  %v13646_v54 = vor.u32 %v1211_v3, %v1210_v27 }
 0x319   :  { %v13636_v33 = vpack.c.bf16 %v17497_v62, %v17497_v62  ;;  %v1214_v7 = vrot.slane %v1210_v27, 4  ;;  %v1221_v58 = vor.u32 %v1219_v56, %v13629_v51  ;;  %v1228_v28 = vshll.u32 %v13549_v16, 16  ;;  %1819 = vst.msk [vmem:[#allocation2 + $0x34] sm:$0xf] %vm944_vm0, %v1205_v31 }
 0x31a   :  { %v13641_v22 = vpack.c.bf16 %v17498_v9, %v17498_v9  ;;  %v1227_v57 = vrot.slane %v1225_v36, 7  ;;  %v13651_v53 = vrot.slane %v1233_v20, 7  ;;  %v1236_v49 = vshll.u32 %v13551_v12, 16 }
 0x31b   :  { %v1242_v25 = vshrl.u32 %v13553_v13, 16  ;;  %v17499_v46 = vmax.f32 %v13374_v39, 0.0  ;;  %v1222_v19 = vsel %vm13164_vm8, %v1214_v7, %v1221_v58  ;;  %v1250_v3 = vshrl.u32 %v13555_v47, 16 }
 0x31c   :  { %v1259_v16 = vshrl.u32 %v13557_v34, 16  ;;  %v13664_v27 = vor.u32 %v1228_v28, %v1227_v57  ;;  %v1231_v56 = vrot.slane %v1227_v57, 4  ;;  %v1238_v36 = vor.u32 %v1236_v49, %v13651_v53  ;;  %1826 = vst.msk [vmem:[#allocation2 + $0x44] sm:$0xf] %vm944_vm0, %v1222_v19 }
 0x31d   :  { %v13658_v38 = vpack.c.bf16 %v17499_v46, %v17499_v46  ;;  %v1245_v12 = vshll.u32 %v13553_v13, 16  ;;  %v1244_v39 = vrot.slane %v1242_v25, 7  ;;  %v13669_v62 = vrot.slane %v1250_v3, 7 }
 0x31e   :  { %v1253_v9 = vshll.u32 %v13555_v47, 16  ;;  %v1261_v31 = vrot.slane %v1259_v16, 7  ;;  %v1239_v20 = vsel %vm13164_vm8, %v1231_v56, %v1238_v36  ;;  %v1262_v7 = vshll.u32 %v13557_v34, 16 }
 0x31f   :  { %v1267_v58 = vshrl.u32 %v13559_v24, 16  ;;  %v1276_v28 = vshrl.u32 %v13561_v0, 16  ;;  %v13677_v57 = vor.u32 %v1245_v12, %v1244_v39  ;;  %v1248_v13 = vrot.slane %v1244_v39, 4  ;;  %1833 = vst.msk [vmem:[#allocation2 + $0x54] sm:$0xf] %vm944_vm0, %v1239_v20 }
 0x320   :  { %v1255_v49 = vor.u32 %v1253_v9, %v13669_v62  ;;  %v1270_v25 = vshll.u32 %v13559_v24, 16  ;;  %v13682_v47 = vor.u32 %v1262_v7, %v1261_v31  ;;  %v1265_v46 = vrot.slane %v1261_v31, 4 }
 0x321   :  { %v13684_v19 = vrot.slane %v1267_v58, 7  ;;  %v1278_v3 = vrot.slane %v1276_v28, 7  ;;  %v17500_v34 = vmax.f32 %v13377_v32, 0.0  ;;  %v1279_v36 = vshll.u32 %v13561_v0, 16 }
 0x322   :  { %v1256_v56 = vsel %vm13164_vm8, %v1248_v13, %v1255_v49  ;;  %v1284_v24 = vshrl.u32 %v13563_v17, 16  ;;  %v17501_v12 = vmax.f32 %v13380_v6, 0.0  ;;  %v1287_v31 = vshll.u32 %v13563_v17, 16 }
 0x323   :  { %v13689_v16 = vpack.c.bf16 %v17500_v34, %v17500_v34  ;;  %v1272_v9 = vor.u32 %v1270_v25, %v13684_v19  ;;  %v1293_v32 = vshrl.u32 %v13565_v14, 16  ;;  %1840 = vst.msk [vmem:[#allocation2 + $0x64] sm:$0xf] %vm944_vm0, %v1256_v56  ;;  %v13704_v20 = vor.u32 %v1279_v36, %v1278_v3 }
 0x324   :  { %v13698_v39 = vpack.c.bf16 %v17501_v12, %v17501_v12  ;;  %v1282_v7 = vrot.slane %v1278_v3, 4  ;;  %v13706_v58 = vrot.slane %v1284_v24, 7  ;;  %v1301_v0 = vshrl.u32 %v13567_v45, 16 }
 0x325   :  { %v1273_v6 = vsel %vm13164_vm8, %v1265_v46, %v1272_v9  ;;  %v1295_v28 = vrot.slane %v1293_v32, 7  ;;  %v1296_v13 = vshll.u32 %v13565_v14, 16  ;;  %v1310_v49 = vshrl.u32 %v13569_v48, 16 }
 0x326   :  { %v1289_v17 = vor.u32 %v1287_v31, %v13706_v58  ;;  %v13714_v25 = vrot.slane %v1301_v0, 7  ;;  %v1304_v34 = vshll.u32 %v13567_v45, 16  ;;  %v1313_v3 = vshll.u32 %v13569_v48, 16  ;;  %1847 = vst.msk [vmem:[#allocation2 + $0x74] sm:$0xf] %vm944_vm0, %v1273_v6 }
 0x327   :  { %v13719_v56 = vor.u32 %v1296_v13, %v1295_v28  ;;  %v1299_v36 = vrot.slane %v1295_v28, 4  ;;  %v1312_v24 = vrot.slane %v1310_v49, 7  ;;  %v1318_v46 = vshrl.u32 %v13571_v50, 16 }
 0x328   :  { %v17502_v14 = vmax.f32 %v13383_v23, 0.0  ;;  %v1290_v9 = vsel %vm13164_vm8, %v1282_v7, %v1289_v17  ;;  %v1306_v45 = vor.u32 %v1304_v34, %v13714_v25  ;;  %v1321_v48 = vshll.u32 %v13571_v50, 16 }
 0x329   :  { %v13731_v31 = vor.u32 %v1313_v3, %v1312_v24  ;;  %v1316_v32 = vrot.slane %v1312_v24, 4  ;;  %v13733_v0 = vrot.slane %v1318_v46, 7  ;;  %v1327_v6 = vshrl.u32 %v13573_v41, 16  ;;  %1854 = vst.msk [vmem:[#allocation2 + $0x84] sm:$0xf] %vm944_vm0, %v1290_v9 }
 0x32a   :  { %v13725_v12 = vpack.c.bf16 %v17502_v14, %v17502_v14  ;;  %v17503_v23 = vmax.f32 %v13386_v44, 0.0  ;;  %v17504_v7 = vmax.f32 %v13389_v40, 0.0  ;;  %v1307_v50 = vsel %vm13164_vm8, %v1299_v36, %v1306_v45 }
 0x32b   :  { %v1335_v49 = vshrl.u32 %v13575_v63, 16  ;;  %v1323_v17 = vor.u32 %v1321_v48, %v13733_v0  ;;  %v1329_v34 = vrot.slane %v1327_v6, 7  ;;  %v1330_v3 = vshll.u32 %v13573_v41, 16  ;;  %1861 = vst.msk [vmem:[#allocation2 + $0x94] sm:$0xf] %vm944_vm0, %v1307_v50 }
 0x32c   :  { %v13740_v28 = vpack.c.bf16 %v17503_v23, %v17503_v23  ;;  %v13745_v13 = vpack.c.bf16 %v17504_v7, %v17504_v7  ;;  %v1344_v44 = vshrl.u32 %v13577_v30, 16  ;;  %v1338_v40 = vshll.u32 %v13575_v63, 16 }
 0x32d   :  { %v13754_v24 = vrot.slane %v1335_v49, 7  ;;  %v1347_v46 = vshll.u32 %v13577_v30, 16  ;;  %v1352_v14 = vshrl.u32 %v13579_v11, 16  ;;  %v1324_v36 = vsel %vm13164_vm8, %v1316_v32, %v1323_v17 }
 0x32e   :  { %v13761_v9 = vor.u32 %v1330_v3, %v1329_v34  ;;  %v1333_v45 = vrot.slane %v1329_v34, 4  ;;  %v1346_v48 = vrot.slane %v1344_v44, 7  ;;  %v1355_v23 = vshll.u32 %v13579_v11, 16  ;;  %1868 = vst.msk [vmem:[#allocation2 + $0xa4] sm:$0xf] %vm944_vm0, %v1324_v36 }
 0x32f   :  { %v1340_v41 = vor.u32 %v1338_v40, %v13754_v24  ;;  %v13764_v6 = vrot.slane %v1352_v14, 7  ;;  %v1361_v7 = vshrl.u32 %v13581_v18, 16  ;;  %v17505_v63 = vmax.f32 %v13392_v55, 0.0 }
 0x330   :  { %v13774_v32 = vor.u32 %v1347_v46, %v1346_v48  ;;  %v1350_v50 = vrot.slane %v1346_v48, 4  ;;  %v1369_v49 = vshrl.u32 %v13583_v59, 16  ;;  %v1364_v3 = vshll.u32 %v13581_v18, 16 }
 0x331   :  { %v13772_v30 = vpack.c.bf16 %v17505_v63, %v17505_v63  ;;  %v1341_v17 = vsel %vm13164_vm8, %v1333_v45, %v1340_v41  ;;  %v1357_v34 = vor.u32 %v1355_v23, %v13764_v6  ;;  %v1363_v11 = vrot.slane %v1361_v7, 7 }
 0x332   :  { %v17506_v44 = vmax.f32 %v13395_v2, 0.0  ;;  %v13786_v40 = vrot.slane %v1369_v49, 7  ;;  %v1372_v46 = vshll.u32 %v13583_v59, 16  ;;  %v1378_v14 = vshrl.u32 %v13585_v21, 16  ;;  %1875 = vst.msk [vmem:[#allocation2 + $0xb4] sm:$0xf] %vm944_vm0, %v1341_v17 }
 0x333   :  { %v1358_v36 = vsel %vm13164_vm8, %v1350_v50, %v1357_v34  ;;  %v13793_v45 = vor.u32 %v1364_v3, %v1363_v11  ;;  %v1367_v48 = vrot.slane %v1363_v11, 4  ;;  %v1386_v18 = vshrl.u32 %v13587_v29, 16  ;;  %v17508_v2 = vld [vmem:[#allocation23_spill] sm:$0xff] }
 0x334   :  { %v13784_v55 = vpack.c.bf16 %v17506_v44, %v17506_v44  ;;  %v17509_v41 = vmax.f32 %v17508_v2, 0.0  ;;  %v1374_v7 = vor.u32 %v1372_v46, %v13786_v40  ;;  %v1380_v59 = vrot.slane %v1378_v14, 7  ;;  %1882 = vst.msk [vmem:[#allocation2 + $0xc4] sm:$0xf] %vm944_vm0, %v1358_v36 }
 0x335   :  { %17507 = vst [vmem:[#allocation12_spill] sm:$0xff] %v13793_v45  ;;  %v1381_v63 = vshll.u32 %v13585_v21, 16  ;;  %v13804_v49 = vrot.slane %v1386_v18, 7  ;;  %v1389_v50 = vshll.u32 %v13587_v29, 16  ;;  %v1395_v17 = vshrl.u32 %v13589_v43, 16  ;;  %v17511_v29 = vld [vmem:[#allocation24_spill] sm:$0xff] }
 0x336   :  { %v13799_v23 = vpack.c.bf16 %v17509_v41, %v17509_v41  ;;  %v1403_v34 = vshrl.u32 %v13591_v5, 16  ;;  %v1375_v11 = vsel %vm13164_vm8, %v1367_v48, %v1374_v7  ;;  %v1384_v44 = vrot.slane %v1380_v59, 4 }
 0x337   :  { %v13811_v3 = vor.u32 %v1381_v63, %v1380_v59  ;;  %v1398_v46 = vshll.u32 %v13589_v43, 16  ;;  %v1391_v21 = vor.u32 %v1389_v50, %v13804_v49  ;;  %v1397_v14 = vrot.slane %v1395_v17, 7  ;;  %1889 = vst.msk [vmem:[#allocation2 + $0xd4] sm:$0xf] %vm944_vm0, %v1375_v11 }
 0x338   :  { %v13815_v36 = vrot.slane %v1403_v34, 7  ;;  %v1406_v18 = vshll.u32 %v13591_v5, 16  ;;  %v17512_v2 = vmax.f32 %v17511_v29, 0.0  ;;  %v1412_v48 = vshrl.u32 %v13593_v35, 16 }
 0x339   :  { %17510 = vst [vmem:[#allocation13_spill] sm:$0xff] %v13811_v3  ;;  %v1415_v7 = vshll.u32 %v13593_v35, 16  ;;  %v1420_v43 = vshrl.u32 %v13602_v61, 16  ;;  %v1392_v59 = vsel %vm13164_vm8, %v1384_v44, %v1391_v21  ;;  %v13829_v63 = vor.u32 %v1398_v46, %v1397_v14  ;;  %v17514_v35 = vld [vmem:[#allocation25_spill] sm:$0xff]  ;;  %v17516_v44 = vld [vmem:[#allocation26_spill] sm:$0xff] }
 0x33a   :  { %v13822_v41 = vpack.c.bf16 %v17512_v2, %v17512_v2  ;;  %v1401_v50 = vrot.slane %v1397_v14, 4  ;;  %v1408_v5 = vor.u32 %v1406_v18, %v13815_v36  ;;  %v1414_v17 = vrot.slane %v1412_v48, 7  ;;  %1896 = vst.msk [vmem:[#allocation2 + $0xe4] sm:$0xf] %vm944_vm0, %v1392_v59 }
 0x33b   :  { %17513 = vst [vmem:[#allocation14_spill] sm:$0xff] %v13829_v63  ;;  %v13832_v34 = vrot.slane %v1420_v43, 7  ;;  %v1423_v11 = vshll.u32 %v13602_v61, 16  ;;  %v1429_v29 = vshrl.u32 %v13617_v60, 16  ;;  %v17515_v2 = vmax.f32 %v17514_v35, 0.0  ;;  %v17519_v63 = vld [vmem:[#allocation27_spill] sm:$0xff] }
 0x33c   :  { %v17517_v46 = vmax.f32 %v17516_v44, 0.0  ;;  %v1409_v14 = vsel %vm13164_vm8, %v1401_v50, %v1408_v5  ;;  %v1437_v18 = vshrl.u32 %v13636_v33, 16  ;;  %v13850_v61 = vor.u32 %v1415_v7, %v1414_v17 }
 0x33d   :  { %v13840_v3 = vpack.c.bf16 %v17515_v2, %v17515_v2  ;;  %v1418_v48 = vrot.slane %v1414_v17, 4  ;;  %v1425_v43 = vor.u32 %v1423_v11, %v13832_v34  ;;  %v1432_v59 = vshll.u32 %v13617_v60, 16  ;;  %1903 = vst.msk [vmem:[#allocation2 + $0xf4] sm:$0xf] %vm944_vm0, %v1409_v14 }
 0x33e   :  { %v13845_v21 = vpack.c.bf16 %v17517_v46, %v17517_v46  ;;  %17518 = vst [vmem:[#allocation15_spill] sm:$0xff] %v13850_v61  ;;  %v1431_v35 = vrot.slane %v1429_v29, 7  ;;  %v13855_v2 = vrot.slane %v1437_v18, 7  ;;  %v1440_v44 = vshll.u32 %v13636_v33, 16 }
 0x33f   :  { %v1446_v46 = vshrl.u32 %v13641_v22, 16  ;;  %v17520_v50 = vmax.f32 %v17519_v63, 0.0  ;;  %v1426_v7 = vsel %vm13164_vm8, %v1418_v48, %v1425_v43  ;;  %v1454_v17 = vshrl.u32 %v13658_v38, 16 }
 0x340   :  { %v1463_v60 = vshrl.u32 %v13689_v16, 16  ;;  %v13868_v11 = vor.u32 %v1432_v59, %v1431_v35  ;;  %v1435_v29 = vrot.slane %v1431_v35, 4  ;;  %v1442_v14 = vor.u32 %v1440_v44, %v13855_v2  ;;  %1910 = vst.msk [vmem:[#allocation2 + $0x104] sm:$0xf] %vm944_vm0, %v1426_v7 }
 0x341   :  { %v13862_v5 = vpack.c.bf16 %v17520_v50, %v17520_v50  ;;  %v1449_v33 = vshll.u32 %v13641_v22, 16  ;;  %v1448_v63 = vrot.slane %v1446_v46, 7  ;;  %v13873_v18 = vrot.slane %v1454_v17, 7 }
 0x342   :  { %17521 = vst [vmem:[#allocation16_spill] sm:$0xff] %v13868_v11  ;;  %v1457_v50 = vshll.u32 %v13658_v38, 16  ;;  %v1465_v61 = vrot.slane %v1463_v60, 7  ;;  %v1443_v48 = vsel %vm13164_vm8, %v1435_v29, %v1442_v14  ;;  %v1466_v43 = vshll.u32 %v13689_v16, 16  ;;  %v17524_v16 = vld [vmem:[#allocation28_spill] sm:$0xff] }
 0x343   :  { %v1471_v59 = vshrl.u32 %v13698_v39, 16  ;;  %v1480_v35 = vshrl.u32 %v13725_v12, 16  ;;  %v13881_v44 = vor.u32 %v1449_v33, %v1448_v63  ;;  %v1452_v22 = vrot.slane %v1448_v63, 4  ;;  %1917 = vst.msk [vmem:[#allocation2 + $0x134] sm:$0xf] %vm944_vm0, %v1443_v48 }
 0x344   :  { %v1459_v7 = vor.u32 %v1457_v50, %v13873_v18  ;;  %v1474_v46 = vshll.u32 %v13698_v39, 16  ;;  %v13886_v38 = vor.u32 %v1466_v43, %v1465_v61  ;;  %v1469_v17 = vrot.slane %v1465_v61, 4  ;;  %v17526_v50 = vld [vmem:[#allocation29_spill] sm:$0xff] }
 0x345   :  { %17522 = vst [vmem:[#allocation17_spill] sm:$0xff] %v13881_v44  ;;  %v13888_v60 = vrot.slane %v1471_v59, 7  ;;  %v1482_v29 = vrot.slane %v1480_v35, 7  ;;  %v17525_v14 = vmax.f32 %v17524_v16, 0.0  ;;  %v1483_v63 = vshll.u32 %v13725_v12, 16 }
 0x346   :  { %17523 = vst [vmem:[#allocation22_spill] sm:$0xff] %v13886_v38  ;;  %v1460_v33 = vsel %vm13164_vm8, %v1452_v22, %v1459_v7  ;;  %v1488_v39 = vshrl.u32 %v13740_v28, 16  ;;  %v17527_v48 = vmax.f32 %v17526_v50, 0.0  ;;  %v1491_v59 = vshll.u32 %v13740_v28, 16 }
 0x347   :  { %v13893_v11 = vpack.c.bf16 %v17525_v14, %v17525_v14  ;;  %v1476_v61 = vor.u32 %v1474_v46, %v13888_v60  ;;  %v1497_v35 = vshrl.u32 %v13745_v13, 16  ;;  %1924 = vst.msk [vmem:[#allocation2 + $0x144] sm:$0xf] %vm944_vm0, %v1460_v33  ;;  %v13908_v16 = vor.u32 %v1483_v63, %v1482_v29 }
 0x348   :  { %v13902_v43 = vpack.c.bf16 %v17527_v48, %v17527_v48  ;;  %v1486_v22 = vrot.slane %v1482_v29, 4  ;;  %v13910_v7 = vrot.slane %v1488_v39, 7  ;;  %v1505_v12 = vshrl.u32 %v13772_v30, 16 }
 0x349   :  { %17528 = vst [vmem:[#allocation34_spill] sm:$0xff] %v13908_v16  ;;  %v1477_v14 = vsel %vm13164_vm8, %v1469_v17, %v1476_v61  ;;  %v1499_v50 = vrot.slane %v1497_v35, 7  ;;  %v1500_v48 = vshll.u32 %v13745_v13, 16  ;;  %v1514_v46 = vshrl.u32 %v13784_v55, 16  ;;  %v17530_v61 = vld [vmem:[#allocation30_spill] sm:$0xff] }
 0x34a   :  { %v1493_v28 = vor.u32 %v1491_v59, %v13910_v7  ;;  %v13918_v38 = vrot.slane %v1505_v12, 7  ;;  %v1508_v33 = vshll.u32 %v13772_v30, 16  ;;  %v1517_v29 = vshll.u32 %v13784_v55, 16  ;;  %1931 = vst.msk [vmem:[#allocation2 + $0x154] sm:$0xf] %vm944_vm0, %v1477_v14 }
 0x34b   :  { %v13923_v63 = vor.u32 %v1500_v48, %v1499_v50  ;;  %v1503_v39 = vrot.slane %v1499_v50, 4  ;;  %v1516_v16 = vrot.slane %v1514_v46, 7  ;;  %v1522_v17 = vshrl.u32 %v13799_v23, 16  ;;  %v17533_v46 = vld [vmem:[#allocation31_spill] sm:$0xff] }
 0x34c   :  { %v17531_v13 = vmax.f32 %v17530_v61, 0.0  ;;  %v1494_v59 = vsel %vm13164_vm8, %v1486_v22, %v1493_v28  ;;  %v1510_v30 = vor.u32 %v1508_v33, %v13918_v38  ;;  %v1525_v55 = vshll.u32 %v13799_v23, 16 }
 0x34d   :  { %17529 = vst [vmem:[#allocation35_spill] sm:$0xff] %v13923_v63  ;;  %v13935_v12 = vor.u32 %v1517_v29, %v1516_v16  ;;  %v1520_v14 = vrot.slane %v1516_v16, 4  ;;  %v13937_v48 = vrot.slane %v1522_v17, 7  ;;  %v1531_v50 = vshrl.u32 %v13822_v41, 16  ;;  %v17535_v63 = vld [vmem:[#allocation32_spill] sm:$0xff] }
 0x34e   :  { %v13929_v35 = vpack.c.bf16 %v17531_v13, %v17531_v13  ;;  %1938 = vst.msk [vmem:[#allocation2 + $0x164] sm:$0xf] %vm944_vm0, %v1494_v59  ;;  %v17534_v61 = vmax.f32 %v17533_v46, 0.0  ;;  %v17536_v44 = vmax.f32 %v17535_v63, 0.0  ;;  %v1511_v23 = vsel %vm13164_vm8, %v1503_v39, %v1510_v30 }
 0x34f   :  { %17532 = vst [vmem:[#allocation18_spill] sm:$0xff] %v13935_v12  ;;  %v1539_v16 = vshrl.u32 %v13840_v3, 16  ;;  %v1527_v28 = vor.u32 %v1525_v55, %v13937_v48  ;;  %v1533_v33 = vrot.slane %v1531_v50, 7  ;;  %v1534_v29 = vshll.u32 %v13822_v41, 16 }
 0x350   :  { %v1140_v13 = vpack.c.bf16 %v17534_v61, %v17534_v61  ;;  %v13947_v22 = vpack.c.bf16 %v17536_v44, %v17536_v44  ;;  %v1548_v17 = vshrl.u32 %v13845_v21, 16  ;;  %1945 = vst.msk [vmem:[#allocation2 + $0x174] sm:$0xf] %vm944_vm0, %v1511_v23  ;;  %v1542_v63 = vshll.u32 %v13840_v3, 16  ;;  %v17538_v3 = vld [vmem:[#allocation33_spill] sm:$0xff] }
 0x351   :  { %v13956_v59 = vrot.slane %v1539_v16, 7  ;;  %v1551_v44 = vshll.u32 %v13845_v21, 16  ;;  %v1556_v46 = vshrl.u32 %v13862_v5, 16  ;;  %v1528_v39 = vsel %vm13164_vm8, %v1520_v14, %v1527_v28 }
 0x352   :  { %v13963_v30 = vor.u32 %v1534_v29, %v1533_v33  ;;  %v1537_v55 = vrot.slane %v1533_v33, 4  ;;  %v1550_v50 = vrot.slane %v1548_v17, 7  ;;  %v1559_v23 = vshll.u32 %v13862_v5, 16  ;;  %1952 = vst.msk [vmem:[#allocation2 + $0x184] sm:$0xf] %vm944_vm0, %v1528_v39 }
 0x353   :  { %v1544_v41 = vor.u32 %v1542_v63, %v13956_v59  ;;  %v13966_v61 = vrot.slane %v1556_v46, 7  ;;  %v1565_v16 = vshrl.u32 %v13893_v11, 16  ;;  %v17539_v21 = vmax.f32 %v17538_v3, 0.0  ;;  %v17541_v63 = vld [vmem:[#allocation41_spill] sm:$0xff] }
 0x354   :  { %17537 = vst [vmem:[#allocation23_spill] sm:$0xff] %v13963_v30  ;;  %v13974_v45 = vor.u32 %v1551_v44, %v1550_v50  ;;  %v1554_v14 = vrot.slane %v1550_v50, 4  ;;  %v1573_v28 = vshrl.u32 %v13902_v43, 16  ;;  %v1568_v5 = vshll.u32 %v13893_v11, 16 }
 0x355   :  { %v1142_v12 = vpack.c.bf16 %v17539_v21, %v17539_v21  ;;  %v1545_v33 = vsel %vm13164_vm8, %v1537_v55, %v1544_v41  ;;  %v1561_v29 = vor.u32 %v1559_v23, %v13966_v61  ;;  %v1567_v17 = vrot.slane %v1565_v16, 7 }
 0x356   :  { %17540 = vst [vmem:[#allocation24_spill] sm:$0xff] %v13974_v45  ;;  %v941_v46 = vmax.f32 %v17541_v63, 0.0  ;;  %v13982_v39 = vrot.slane %v1573_v28, 7  ;;  %v1576_v3 = vshll.u32 %v13902_v43, 16  ;;  %v1582_v44 = vshrl.u32 %v13929_v35, 16 }
 0x357   :  { %1959 = vst.msk [vmem:[#allocation2 + $0x194] sm:$0xf] %vm944_vm0, %v1545_v33  ;;  %v1562_v50 = vsel %vm13164_vm8, %v1554_v14, %v1561_v29  ;;  %v13989_v21 = vor.u32 %v1568_v5, %v1567_v17  ;;  %v1571_v55 = vrot.slane %v1567_v17, 4  ;;  %v1590_v41 = vshrl.u32 %v1140_v13, 16 }
 0x358   :  { %v17543_v23 = vmax.f32 %v17487_v8, 0.0  ;;  %v17545_v16 = vmax.f32 %v17488_v4, 0.0  ;;  %v1578_v28 = vor.u32 %v1576_v3, %v13982_v39  ;;  %v14000_v63 = vrot.slane %v1582_v44, 7  ;;  %1966 = vst.msk [vmem:[#allocation2 + $0x1a4] sm:$0xf] %vm944_vm0, %v1562_v50  ;;  %v17548_v8 = vld [vmem:[#allocation21_spill] sm:$0xff] }
 0x359   :  { %17542 = vst [vmem:[#allocation25_spill] sm:$0xff] %v13989_v21  ;;  %v14003_v14 = vrot.slane %v1590_v41, 7  ;;  %v1593_v33 = vshll.u32 %v1140_v13, 16  ;;  %v1599_v29 = vshrl.u32 %v13947_v22, 16  ;;  %v1607_v17 = vshrl.u32 %v1142_v12, 16  ;;  %v17551_v4 = vld [vmem:[#allocation37_spill] sm:$0xff] }
 0x35a   :  { %v13994_v11 = vpack.c.bf16 %v17543_v23, %v17543_v23  ;;  %v1144_v43 = vpack.c.bf16 %v17545_v16, %v17545_v16  ;;  %17546 = vst [vmem:[#allocation27_spill] sm:$0xff] %v14000_v63  ;;  %v17549_v5 = vmax.f32 %v17548_v8, 0.0  ;;  %v17552_v21 = vmax.f32 %v17551_v4, 0.0  ;;  %v17554_v8 = vld [vmem:[#allocation38_spill] sm:$0xff] }
 0x35b   :  { %17547 = vst [vmem:[#allocation28_spill] sm:$0xff] %v14003_v14  ;;  %v1579_v3 = vsel %vm13164_vm8, %v1571_v55, %v1578_v28  ;;  %v1588_v44 = vrot.slane %v14000_v63, 4  ;;  %v1595_v50 = vor.u32 %v1593_v33, %v14003_v14  ;;  %v14018_v13 = vrot.slane %v1599_v29, 7  ;;  %v17559_v33 = vld [vmem:[#allocation40_spill] sm:$0xff] }
 0x35c   :  { %17544 = vst [vmem:[#allocation26_spill] sm:$0xff] %v13994_v11  ;;  %v14009_v23 = vpack.c.bf16 %v17549_v5, %v17549_v5  ;;  %v1146_v16 = vpack.c.bf16 %v17552_v21, %v17552_v21  ;;  %v14020_v41 = vrot.slane %v1607_v17, 7  ;;  %v1610_v45 = vshll.u32 %v1142_v12, 16  ;;  %v17557_v21 = vld [vmem:[#allocation39_spill] sm:$0xff] }
 0x35d   :  { %17553 = vst [vmem:[#allocation30_spill] sm:$0xff] %v14018_v13  ;;  %v17555_v5 = vmax.f32 %v17554_v8, 0.0  ;;  %v17558_v30 = vmax.f32 %v17557_v21, 0.0  ;;  %v1616_v28 = vshrl.u32 %v13994_v11, 16  ;;  %v1624_v63 = vshrl.u32 %v1144_v43, 16 }
 0x35e   :  { %17550 = vst [vmem:[#allocation29_spill] sm:$0xff] %v14009_v23  ;;  %v17560_v29 = vmax.f32 %v17559_v33, 0.0  ;;  %v1596_v12 = vsel %vm13164_vm8, %v1588_v44, %v1595_v50  ;;  %v1612_v8 = vor.u32 %v1610_v45, %v14020_v41  ;;  %v1633_v11 = vshrl.u32 %v14009_v23, 16 }
 0x35f   :  { %1973 = vst.msk [vmem:[#allocation2 + $0x1b4] sm:$0xf] %vm944_vm0, %v1579_v3  ;;  %v14026_v4 = vpack.c.bf16 %v17555_v5, %v17555_v5  ;;  %v1148_v55 = vpack.c.bf16 %v17558_v30, %v17558_v30  ;;  %v1605_v3 = vrot.slane %v14018_v13, 4  ;;  %v14041_v5 = vrot.slane %v1616_v28, 7  ;;  %v1806_v13 = vld [vmem:[#allocation2 + $0x18] sm:$0x1] }
 0x360   :  { %v14035_v17 = vpack.c.bf16 %v17560_v29, %v17560_v29  ;;  %v14043_v21 = vrot.slane %v1624_v63, 7  ;;  %v1627_v30 = vshll.u32 %v1144_v43, 16  ;;  %1980 = vst.msk [vmem:[#allocation2 + $0x1c4] sm:$0xf] %vm944_vm0, %v1596_v12  ;;  %v1641_v29 = vshrl.u32 %v1146_v16, 16 }
 0x361   :  { %17556 = vst [vmem:[#allocation31_spill] sm:$0xff] %v14026_v4  ;;  %v1613_v33 = vsel %vm13164_vm8, %v1605_v3, %v1612_v8  ;;  %v1150_v14 = vpack.c.bf16 %v941_v46, %v941_v46  ;;  %v1622_v44 = vrot.slane %v14041_v5, 4  ;;  %v14052_v45 = vrot.slane %v1633_v11, 7  ;;  %v1800_v12 = vld [vmem:[#allocation2 + $0x10] sm:$0xf] }
 0x362   :  { %17561 = vst [vmem:[#allocation32_spill] sm:$0xff] %v14035_v17  ;;  %v1629_v50 = vor.u32 %v1627_v30, %v14043_v21  ;;  %v14054_v63 = vrot.slane %v1641_v29, 7  ;;  %v1644_v43 = vshll.u32 %v1146_v16, 16  ;;  %v1650_v28 = vshrl.u32 %v14026_v4, 16  ;;  %v1809_v29 = vld [vmem:[#allocation2 + $0x20] sm:$0xf] }
 0x363   :  { %17562 = vst [vmem:[#allocation33_spill] sm:$0xff] %v14041_v5  ;;  %v1658_v8 = vshrl.u32 %v1148_v55, 16  ;;  %v1667_v46 = vshrl.u32 %v14035_v17, 16  ;;  %v1172_v5 = vrot.slane %v13595_v37, 4  ;;  %v1189_v30 = vrot.slane %v13597_v52, 4 }
 0x364   :  { %17563 = vst [vmem:[#allocation41_spill] sm:$0xff] %v14043_v21  ;;  %v1630_v3 = vsel %vm13164_vm8, %v1622_v44, %v1629_v50  ;;  %v1639_v11 = vrot.slane %v14052_v45, 4  ;;  %v14071_v44 = vrot.slane %v1650_v28, 7  ;;  %v1661_v37 = vshll.u32 %v1148_v55, 16  ;;  %v1813_v52 = vld [vmem:[#allocation2 + $0x28] sm:$0x1] }
 0x365   :  { %1987 = vst.msk [vmem:[#allocation2 + $0x1d4] sm:$0xf] %vm944_vm0, %v1613_v33  ;;  %v1646_v33 = vor.u32 %v1644_v43, %v14054_v63  ;;  %v14073_v50 = vrot.slane %v1658_v8, 7  ;;  %v14075_v17 = vrot.slane %v1667_v46, 7  ;;  %v1206_v4 = vrot.slane %v13612_v1, 4 }
 0x366   :  { %17564 = vst [vmem:[#allocation21_spill] sm:$0xff] %v14052_v45  ;;  %v1816_v45 = vld [vmem:[#allocation2 + $0x30] sm:$0xf]  ;;  %v1656_v23 = vrot.slane %v14071_v44, 4  ;;  %v1820_v8 = vld [vmem:[#allocation2 + $0x38] sm:$0x1] }
 0x367   :  { %17565 = vst [vmem:[#allocation37_spill] sm:$0xff] %v14054_v63  ;;  %v1647_v43 = vsel %vm13164_vm8, %v1639_v11, %v1646_v33  ;;  %v1223_v63 = vrot.slane %v13629_v51, 4  ;;  %v1663_v28 = vor.u32 %v1661_v37, %v14073_v50  ;;  %v1673_v55 = vrot.slane %v14075_v17, 4  ;;  %v1823_v33 = vld [vmem:[#allocation2 + $0x40] sm:$0xf] }
 0x368   :  { %1994 = vst.msk [vmem:[#allocation2 + $0x1e4] sm:$0xf] %vm944_vm0, %v1630_v3  ;;  %v1675_v3 = vshrl.u32 %v1150_v14, 16  ;;  %v1678_v21 = vshll.u32 %v1150_v14, 16  ;;  %v1801_v11 = vsel %vm14067_vm11, %v13604_v10, %v1800_v12  ;;  %v1807_v37 = vsel %vm13176_vm9, %v1172_v5, %v1806_v13  ;;  %v1834_v5 = vld [vmem:[#allocation2 + $0x58] sm:$0x1] }
 0x369   :  { %17568 = vst [vmem:[#allocation38_spill] sm:$0xff] %v14075_v17  ;;  %v14092_v1 = vsel %vm13164_vm8, %v1656_v23, %v1663_v28  ;;  %v1814_v14 = vsel %vm13176_vm9, %v1189_v30, %v1813_v52  ;;  %v1817_v10 = vsel %vm14067_vm11, %v13624_v26, %v1816_v45  ;;  %v1830_v23 = vld [vmem:[#allocation2 + $0x50] sm:$0xf]  ;;  %v1240_v12 = vrot.slane %v13651_v53, 4  ;;  %v1837_v30 = vld [vmem:[#allocation2 + $0x60] sm:$0xf] }
 0x36a   :  { %2001 = vst.msk [vmem:[#allocation2 + $0x1f4] sm:$0xf] %vm944_vm0, %v1647_v43  ;;  %v14085_v46 = vrot.slane %v1675_v3, 7  ;;  %v1810_v43 = vsel %vm14067_vm11, %v13607_v42, %v1809_v29  ;;  %v1827_v3 = vld [vmem:[#allocation2 + $0x48] sm:$0x1]  ;;  %v1821_v13 = vsel %vm13176_vm9, %v1206_v4, %v1820_v8  ;;  %v1257_v26 = vrot.slane %v13669_v62, 4 }
 0x36b   :  { %1802 = vst [vmem:[#allocation2 + $0x10] sm:$0xf] %v1801_v11  ;;  %v1828_v53 = vsel %vm13176_vm9, %v1223_v63, %v1827_v3  ;;  %v1841_v45 = vld [vmem:[#allocation2 + $0x68] sm:$0x1]  ;;  %v1831_v15 = vsel %vm14067_vm11, %v13664_v27, %v1830_v23  ;;  %v1844_v4 = vld [vmem:[#allocation2 + $0x70] sm:$0xf]  ;;  %v1838_v62 = vsel %vm14067_vm11, %v13677_v57, %v1837_v30 }
 0x36c   :  { %v1680_v17 = vor.u32 %v1678_v21, %v14085_v46  ;;  %1808 = vst [vmem:[#allocation2 + $0x18] sm:$0x1] %v1807_v37  ;;  %v1824_v21 = vsel %vm14067_vm11, %v13646_v54, %v1823_v33  ;;  %v1835_v54 = vsel %vm13176_vm9, %v1240_v12, %v1834_v5  ;;  %v1848_v29 = vld [vmem:[#allocation2 + $0x78] sm:$0x1]  ;;  %v1851_v63 = vld [vmem:[#allocation2 + $0x80] sm:$0xf]  ;;  %v1842_v27 = vsel %vm13176_vm9, %v1257_v26, %v1841_v45 }
 0x36d   :  { %1811 = vst [vmem:[#allocation2 + $0x20] sm:$0xf] %v1810_v43  ;;  %v1291_v52 = vrot.slane %v13706_v58, 4  ;;  %v1855_v28 = vld [vmem:[#allocation2 + $0x88] sm:$0x1]  ;;  %v1852_v58 = vsel %vm14067_vm11, %v13704_v20, %v1851_v63  ;;  %v1325_v43 = vrot.slane %v13733_v0, 4 }
 0x36e   :  { %v14110_v42 = vsel %vm13164_vm8, %v1673_v55, %v1680_v17  ;;  %1815 = vst [vmem:[#allocation2 + $0x28] sm:$0x1] %v1814_v14  ;;  %v1274_v17 = vrot.slane %v13684_v19, 4  ;;  %v1845_v19 = vsel %vm14067_vm11, %v13682_v47, %v1844_v4  ;;  %v1858_v8 = vld [vmem:[#allocation2 + $0x90] sm:$0xf]  ;;  %v1308_v55 = vrot.slane %v13714_v25, 4 }
 0x36f   :  { %1818 = vst [vmem:[#allocation2 + $0x30] sm:$0xf] %v1817_v10  ;;  %v1862_v11 = vld [vmem:[#allocation2 + $0x98] sm:$0x1]  ;;  %v1865_v33 = vld [vmem:[#allocation2 + $0xa0] sm:$0xf]  ;;  %v1856_v47 = vsel %vm13176_vm9, %v1291_v52, %v1855_v28  ;;  %v1859_v3 = vsel %vm14067_vm11, %v13719_v56, %v1858_v8 }
 0x370   :  { %1822 = vst [vmem:[#allocation2 + $0x38] sm:$0x1] %v1821_v13  ;;  %v1849_v57 = vsel %vm13176_vm9, %v1274_v17, %v1848_v29  ;;  %v1869_v37 = vld [vmem:[#allocation2 + $0xa8] sm:$0x1]  ;;  %v1872_v14 = vld [vmem:[#allocation2 + $0xb0] sm:$0xf]  ;;  %v1863_v0 = vsel %vm13176_vm9, %v1308_v55, %v1862_v11  ;;  %v1866_v56 = vsel %vm14067_vm11, %v13731_v31, %v1865_v33 }
 0x371   :  { %1825 = vst [vmem:[#allocation2 + $0x40] sm:$0xf] %v1824_v21  ;;  %v1876_v25 = vld [vmem:[#allocation2 + $0xb8] sm:$0x1]  ;;  %v1879_v10 = vld [vmem:[#allocation2 + $0xc0] sm:$0xf]  ;;  %v1873_v31 = vsel %vm14067_vm11, %v13761_v9, %v1872_v14 }
 0x372   :  { %1829 = vst [vmem:[#allocation2 + $0x48] sm:$0x1] %v1828_v53  ;;  %v17570_v23 = vld [vmem:[#allocation36_spill] sm:$0xff]  ;;  %v1342_v13 = vrot.slane %v13754_v24, 4  ;;  %v1359_v20 = vrot.slane %v13764_v6, 4  ;;  %v1376_v21 = vrot.slane %v13786_v40, 4  ;;  %v1870_v40 = vsel %vm13176_vm9, %v1325_v43, %v1869_v37 }
 0x373   :  { %1832 = vst [vmem:[#allocation2 + $0x50] sm:$0xf] %v1831_v15  ;;  %v1687_v12 = vshll.u32 %v17570_v23, 16  ;;  %v1883_v5 = vld [vmem:[#allocation2 + $0xc8] sm:$0x1]  ;;  %v1393_v30 = vrot.slane %v13804_v49, 4  ;;  %v1880_v9 = vsel %vm14067_vm11, %v13774_v32, %v1879_v10 }
 0x374   :  { %1836 = vst [vmem:[#allocation2 + $0x58] sm:$0x1] %v1835_v54  ;;  %v1410_v26 = vrot.slane %v13815_v36, 4  ;;  %v1886_v53 = vld [vmem:[#allocation2 + $0xd0] sm:$0xf]  ;;  %v1427_v24 = vrot.slane %v13832_v34, 4 }
 0x375   :  { %1839 = vst [vmem:[#allocation2 + $0x60] sm:$0xf] %v1838_v62  ;;  %v1444_v6 = vrot.slane %v13855_v2, 4  ;;  %v1461_v45 = vrot.slane %v13873_v18, 4  ;;  %v1890_v15 = vld [vmem:[#allocation2 + $0xd8] sm:$0x1] }
 0x376   :  { %1843 = vst [vmem:[#allocation2 + $0x68] sm:$0x1] %v1842_v27  ;;  %v1478_v4 = vrot.slane %v13888_v60, 4  ;;  %v1495_v17 = vrot.slane %v13910_v7, 4  ;;  %v1893_v29 = vld [vmem:[#allocation2 + $0xe0] sm:$0xf]  ;;  %v1877_v27 = vsel %vm13176_vm9, %v1342_v13, %v1876_v25  ;;  %v1891_v25 = vsel %vm13176_vm9, %v1376_v21, %v1890_v15 }
 0x377   :  { %1846 = vst [vmem:[#allocation2 + $0x70] sm:$0xf] %v1845_v19  ;;  %v1585_v52 = vshll.u32 %v13929_v35, 16  ;;  %v1897_v28 = vld [vmem:[#allocation2 + $0xe8] sm:$0x1]  ;;  %v1602_v55 = vshll.u32 %v13947_v22, 16 }
 0x378   :  { %1850 = vst [vmem:[#allocation2 + $0x78] sm:$0x1] %v1849_v57  ;;  %v14178_v57 = vld [vmem:[#allocation2 + $0xf0] sm:$0xf]  ;;  %v17571_v11 = vld [vmem:[#allocation27_spill] sm:$0xff]  ;;  %v17572_v33 = vld [vmem:[#allocation28_spill] sm:$0xff] }
 0x379   :  { %1853 = vst [vmem:[#allocation2 + $0x80] sm:$0xf] %v1852_v58  ;;  %v14181_v35 = vor.u32 %v1585_v52, %v17571_v11  ;;  %v17573_v37 = vld [vmem:[#allocation26_spill] sm:$0xff]  ;;  %v12030_v14 = vld [vmem:[#allocation6 + $0x38] sm:$0xff]  ;;  %v17575_v32 = vld [vmem:[#allocation29_spill] sm:$0xff]  ;;  %v17595_v7 = vrot.slane %v13918_v38, 4 }
 0x37a   :  { %1857 = vst [vmem:[#allocation2 + $0x88] sm:$0x1] %v1856_v47  ;;  %v1619_v43 = vshll.u32 %v17573_v37, 16  ;;  %v1884_v47 = vsel %vm13176_vm9, %v1359_v20, %v1883_v5  ;;  %v1904_v22 = vld [vmem:[#allocation2 + $0xf8] sm:$0x1]  ;;  %v1636_v10 = vshll.u32 %v17575_v32, 16  ;;  %3130 = vmatpush.bf16.msrb.mxu0 %v12030_v14  ;;  %12127 = vmatpush.bf16.msra.mxu1 %v12030_v14 }
 0x37b   :  { %1860 = vst [vmem:[#allocation2 + $0x90] sm:$0xf] %v1859_v3  ;;  %v17574_v3 = vld [vmem:[#allocation41_spill] sm:$0xff]  ;;  %v17578_v11 = vld [vmem:[#allocation31_spill] sm:$0xff]  ;;  %v17579_v20 = vld [vmem:[#allocation32_spill] sm:$0xff] }
 0x37c   :  { %1864 = vst [vmem:[#allocation2 + $0x98] sm:$0x1] %v1863_v0  ;;  %v17576_v0 = vld [vmem:[#allocation12_spill] sm:$0xff]  ;;  %v17577_v52 = vld [vmem:[#allocation37_spill] sm:$0xff]  ;;  %v1653_v37 = vshll.u32 %v17578_v11, 16  ;;  %v1670_v5 = vshll.u32 %v17579_v20, 16 }
 0x37d   :  { %1867 = vst [vmem:[#allocation2 + $0xa0] sm:$0xf] %v1866_v56  ;;  %v1887_v56 = vsel %vm14067_vm11, %v17576_v0, %v1886_v53  ;;  %v1911_v32 = vld [vmem:[#allocation2 + $0x108] sm:$0x1]  ;;  %v2026_v20 = vld [vmem:[#allocation2] sm:$0xf] }
 0x37e   :  { %1871 = vst [vmem:[#allocation2 + $0xa8] sm:$0x1] %v1870_v40  ;;  %v14193_v40 = vld [vmem:[#allocation2 + $0x100] sm:$0xf]  ;;  %v17581_v58 = vld [vmem:[#allocation33_spill] sm:$0xff]  ;;  %v14230_v19 = vor.u32 %v1653_v37, %v14071_v44  ;;  %v17585_v23 = vld [vmem:[#allocation14_spill] sm:$0xff] }
 0x37f   :  { %1874 = vst [vmem:[#allocation2 + $0xb0] sm:$0xf] %v1873_v31  ;;  %v14204_v53 = vor.u32 %v1619_v43, %v17581_v58  ;;  %v17582_v0 = vld [vmem:[#allocation21_spill] sm:$0xff]  ;;  %v2027_v31 = vld [vmem:[#allocation2 + $0x4] sm:$0xf]  ;;  %v1898_v43 = vsel %vm13176_vm9, %v1393_v30, %v1897_v28  ;;  %v1901_v49 = vsel %vm14067_vm11, %v17585_v23, %v14178_v57  ;;  %v17586_v23 = vld [vmem:[#allocation38_spill] sm:$0xff] }
 0x380   :  { %1878 = vst [vmem:[#allocation2 + $0xb8] sm:$0x1] %v1877_v27  ;;  %v17580_v27 = vld [vmem:[#allocation30_spill] sm:$0xff]  ;;  %v14207_v8 = vor.u32 %v1636_v10, %v17582_v0  ;;  %v17583_v11 = vld [vmem:[#allocation13_spill] sm:$0xff]  ;;  %v1918_v15 = vld [vmem:[#allocation2 + $0x138] sm:$0x1]  ;;  %v14249_v63 = vor.u32 %v1670_v5, %v17586_v23  ;;  %v1912_v5 = vsel %vm13176_vm9, %v1427_v24, %v1911_v32 }
 0x381   :  { %1881 = vst [vmem:[#allocation2 + $0xc0] sm:$0xf] %v1880_v9  ;;  %v14201_v13 = vor.u32 %v1602_v55, %v17580_v27  ;;  %v1894_v9 = vsel %vm14067_vm11, %v17583_v11, %v1893_v29  ;;  %v14212_v21 = vld [vmem:[#allocation2 + $0x130] sm:$0xf]  ;;  %v14214_v14 = vld [vmem:[#allocation2 + $0x140] sm:$0xf]  ;;  %v1919_v34 = vsel %vm13176_vm9, %v1444_v6, %v1918_v15 }
 0x382   :  { %1885 = vst [vmem:[#allocation2 + $0xc8] sm:$0x1] %v1884_v47  ;;  %v17584_v55 = vld [vmem:[#allocation19_spill] sm:$0xff]  ;;  %v12029_v47 = vld [vmem:[#allocation6 + $0x30] sm:$0xff]  ;;  %v2134_v10 = vshrl.u32 %v2026_v20, 16  ;;  %v2137_v27 = vshll.u32 %v2026_v20, 16  ;;  %v1905_v20 = vsel %vm13176_vm9, %v1410_v26, %v1904_v22 }
 0x383   :  { %v14219_v58 = vor.u32 %v1687_v12, %v17584_v55  ;;  %1888 = vst [vmem:[#allocation2 + $0xd0] sm:$0xf] %v1887_v56  ;;  %v14225_v29 = vld [vmem:[#allocation6 + $0x18] sm:$0xff]  ;;  %v1925_v0 = vld [vmem:[#allocation2 + $0x148] sm:$0x1]  ;;  %v2143_v12 = vshll.u32 %v2027_v31, 16  ;;  %3131 = vmatpush.bf16.msrb.mxu0 %v12029_v47  ;;  %12128 = vmatpush.bf16.msra.mxu1 %v12029_v47 }
 0x384   :  { %v14227_v11 = vld [vmem:[#allocation2 + $0x220] sm:$0xf]  ;;  %1892 = vst [vmem:[#allocation2 + $0xd8] sm:$0x1] %v1891_v25  ;;  %v2147_v56 = vshrl.u32 %v2027_v31, 16  ;;  %12131 = vmatpush.bf16.msra.mxu2 %v14225_v29  ;;  %v2136_v44 = vrot.slane %v2134_v10, 4 }
 0x385   :  { %v14236_v30 = vld [vmem:[#allocation2 + $0x150] sm:$0xf]  ;;  %1895 = vst [vmem:[#allocation2 + $0xe0] sm:$0xf] %v1894_v9  ;;  %v2139_v25 = vrot.slane %v2137_v27, 5  ;;  %v17587_v36 = vld [vmem:[#allocation15_spill] sm:$0xff] }
 0x386   :  { %v1932_v37 = vld [vmem:[#allocation2 + $0x158] sm:$0x1]  ;;  %v14244_v55 = vld [vmem:[#allocation2 + $0x160] sm:$0xf]  ;;  %v1939_v57 = vld [vmem:[#allocation2 + $0x168] sm:$0x1]  ;;  %v1908_v26 = vsel %vm14067_vm11, %v17587_v36, %v14193_v40 }
 0x387   :  { %v14246_v31 = vld [vmem:[#allocation2 + $0x170] sm:$0xf]  ;;  %1899 = vst [vmem:[#allocation2 + $0xe8] sm:$0x1] %v1898_v43  ;;  %v2098_v22 = vld [vmem:[#allocation2 + $0x8] sm:$0x1]  ;;  %v2140_v54 = vor.u32 %v2139_v25, %v2136_v44 }
 0x388   :  { %v2145_v9 = vrot.slane %v2143_v12, 5  ;;  %v2149_v28 = vrot.slane %v2147_v56, 4  ;;  %v1946_v10 = vld [vmem:[#allocation2 + $0x178] sm:$0x1]  ;;  %v14255_v27 = vld [vmem:[#allocation2 + $0x180] sm:$0xf] }
 0x389   :  { %1902 = vst [vmem:[#allocation2 + $0xf0] sm:$0xf] %v1901_v49  ;;  %v12028_v43 = vld [vmem:[#allocation6 + $0x28] sm:$0xff]  ;;  %v14262_v23 = vld [vmem:[#allocation6 + $0x10] sm:$0xff]  ;;  %v2153_v40 = vshll.u32 %v2098_v22, 16  ;;  %v17588_v47 = vld [vmem:[#allocation16_spill] sm:$0xff]  ;;  %v1933_v22 = vsel %vm13176_vm9, %v1478_v4, %v1932_v37 }
 0x38a   :  { %v1953_v36 = vld [vmem:[#allocation2 + $0x188] sm:$0x1]  ;;  %v14264_v12 = vld [vmem:[#allocation2 + $0x190] sm:$0xf]  ;;  %1906 = vst [vmem:[#allocation2 + $0xf8] sm:$0x1] %v1905_v20  ;;  %v1915_v56 = vsel %vm14067_vm11, %v17588_v47, %v14212_v21  ;;  %v2150_v49 = vor.u32 %v2149_v28, %v2145_v9  ;;  %v1926_v21 = vsel %vm13176_vm9, %v1461_v45, %v1925_v0  ;;  %3132 = vmatpush.bf16.msrb.mxu0 %v12028_v43 }
 0x38b   :  { %v17589_v24 = vld [vmem:[#allocation17_spill] sm:$0xff]  ;;  %v1960_v44 = vld [vmem:[#allocation2 + $0x198] sm:$0x1]  ;;  %v14278_v25 = vld [vmem:[#allocation2 + $0x1a0] sm:$0xf]  ;;  %12132 = vmatpush.bf16.msra.mxu2 %v14262_v23  ;;  %v2141_v45 = vrot.slane %v2140_v54, 4  ;;  %12129 = vmatpush.bf16.msra.mxu1 %v12028_v43  ;;  %v1940_v54 = vsel %vm13176_vm9, %v1495_v17, %v1939_v57  ;;  %v1947_v17 = vsel %vm13176_vm9, %v17595_v7, %v1946_v10 }
 0x38c   :  { %v1922_v32 = vsel %vm14067_vm11, %v17589_v24, %v14214_v14  ;;  %v1967_v20 = vld [vmem:[#allocation2 + $0x1a8] sm:$0x1]  ;;  %1909 = vst [vmem:[#allocation2 + $0x100] sm:$0xf] %v1908_v26  ;;  %v17590_v6 = vld [vmem:[#allocation22_spill] sm:$0xff]  ;;  %v2151_v14 = vrot.slane %v2150_v49, 4 }
 0x38d   :  { %1913 = vst [vmem:[#allocation2 + $0x108] sm:$0x1] %v1912_v5  ;;  %v1929_v15 = vsel %vm14067_vm11, %v17590_v6, %v14236_v30  ;;  %v2155_v0 = vrot.slane %v2153_v40, 5  ;;  %v14297_v28 = vld [vmem:[#allocation2 + $0x1b0] sm:$0xf]  ;;  %v17594_v43 = vld [vmem:[#allocation35_spill] sm:$0xff] }
 0x38e   :  { %v1974_v26 = vld [vmem:[#allocation2 + $0x1b8] sm:$0x1]  ;;  %1916 = vst [vmem:[#allocation2 + $0x130] sm:$0xf] %v1915_v56  ;;  %v17593_v5 = vld [vmem:[#allocation34_spill] sm:$0xff]  ;;  %v1943_v40 = vsel %vm14067_vm11, %v17594_v43, %v14246_v31  ;;  %v12027_v47 = vld [vmem:[#allocation6 + $0x20] sm:$0xff]  ;;  %v2146_v31 = vsel %vm14293_vm14, %v2141_v45, %v2145_v9 }
 0x38f   :  { %v1936_v30 = vsel %vm14067_vm11, %v17593_v5, %v14244_v55  ;;  %v14315_v60 = vld [vmem:[#allocation6 + $0x58] sm:$0xff]  ;;  %v14317_v56 = vld [vmem:[#allocation6 + $0x8] sm:$0xff]  ;;  %v14319_v4 = vld [vmem:[#allocation2 + $0x1c0] sm:$0xf]  ;;  %1920 = vst [vmem:[#allocation2 + $0x138] sm:$0x1] %v1919_v34  ;;  %v2156_v49 = vsel %vm14293_vm14, %v2151_v14, %v2155_v0  ;;  %3133 = vmatpush.bf16.msrb.mxu0 %v12027_v47  ;;  %v2910_v5 = vunpack.c.l.b16 %v2146_v31  ;;  %12130 = vmatpush.bf16.msra.mxu1 %v12027_v47 }
 0x390   :  { %v1981_v37 = vld [vmem:[#allocation2 + $0x1c8] sm:$0x1]  ;;  %v14321_v24 = vld [vmem:[#allocation2 + $0x1d0] sm:$0xf]  ;;  %1923 = vst [vmem:[#allocation2 + $0x140] sm:$0xf] %v1922_v32  ;;  %12135 = vmatpush.bf16.msra.mxu3 %v14315_v60  ;;  %v2911_v9 = vunpack.c.l.b16 %v2156_v49  ;;  %12133 = vmatpush.bf16.msra.mxu2 %v14317_v56 }
 0x391   :  { %v17596_v55 = vld [vmem:[#allocation18_spill] sm:$0xff]  ;;  %v17597_v6 = vrot.slane %v13937_v48, 4  ;;  %v17598_v10 = vld [vmem:[#allocation23_spill] sm:$0xff]  ;;  %v14348_v14 = vld [vmem:[#allocation6] sm:$0xff]  ;;  %1927 = vst [vmem:[#allocation2 + $0x148] sm:$0x1] %v1926_v21 }
 0x392   :  { %v14346_v45 = vld [vmem:[#allocation6 + $0x50] sm:$0xff]  ;;  %v1988_v48 = vld [vmem:[#allocation2 + $0x1d8] sm:$0x1]  ;;  %v14352_v0 = vld [vmem:[#allocation2 + $0x1e0] sm:$0xf]  ;;  %v17601_v49 = vrot.slane %v13966_v61, 4 }
 0x393   :  { %v14339_v38 = vsel %vm13176_vm9, %v17597_v6, %v1953_v36  ;;  %v14350_v32 = vld [vmem:[#allocation2 + $0x74] sm:$0xf]  ;;  %v17599_v36 = vrot.slane %v13956_v59, 4  ;;  %v17600_v7 = vld [vmem:[#allocation24_spill] sm:$0xff]  ;;  %v14371_v21 = vld [vmem:[#allocation2 + $0x78] sm:$0x1]  ;;  %3579 = vmatpush.bf16.msra.mxu0 %v14225_v29 }
 0x394   :  { %v14368_v6 = vsel %vm13176_vm9, %v17601_v49, %v1967_v20  ;;  %v3751_v59 = vld [vmem:[#allocation2 + $0x70] sm:$0xe]  ;;  %1930 = vst [vmem:[#allocation2 + $0x150] sm:$0xf] %v1929_v15  ;;  %v14373_v2 = vld [vmem:[#allocation6 + $0x48] sm:$0xff]  ;;  %v12074_v31 = vld [vmem:[#allocation6 + $0x98] sm:$0xff]  ;;  %12136 = vmatpush.bf16.msra.mxu3 %v14346_v45  ;;  %12134 = vmatpush.bf16.msra.mxu2 %v14348_v14 }
 0x395   :  { %v14358_v43 = vsel %vm13176_vm9, %v17599_v36, %v1960_v44  ;;  %v2974_v44 = vpack.c.b16 %v2911_v9, %v2910_v5  ;;  %v11998_v36 = vld [vmem:[#allocation2 + $0x70] sm:$0xff]  ;;  %v11254_v62 = vrot.slane %v3751_v59, 9  ;;  %1934 = vst [vmem:[#allocation2 + $0x158] sm:$0x1] %v1933_v22  ;;  %v17602_v61 = vld [vmem:[#allocation25_spill] sm:$0xff]  ;;  %v17603_v49 = vrot.slane %v13982_v39, 4 }
 0x396   :  { %v3894_v5 = vrot.slane %v14350_v32, 5  ;;  %v3897_v29 = vrot.slane %v14371_v21, 5  ;;  %v2028_v22 = vld [vmem:[#allocation2 + $0x10] sm:$0xf]  ;;  %1937 = vst [vmem:[#allocation2 + $0x160] sm:$0xf] %v1936_v30 }
 0x397   :  { %v14384_v15 = vsel %vm13176_vm9, %v17603_v49, %v1974_v26  ;;  %v17606_v39 = vrot.slane %v17572_v33, 4  ;;  %11039 = vmatmul.msk.bf16.vlgmr.msrb.gmra.mxu0 %vm395_vm1, %v2974_v44  ;;  %v2029_v30 = vld [vmem:[#allocation2 + $0x14] sm:$0xf]  ;;  %v2099_v49 = vld [vmem:[#allocation2 + $0x18] sm:$0x1]  ;;  %v17607_v34 = vrot.slane %v14020_v41, 4  ;;  %11222 = vmatmul.msk.bf16.vlgmr.msra.gmra.mxu2 %vm395_vm1, %v11998_v36 }
 0x398   :  { %1941 = vst [vmem:[#allocation2 + $0x168] sm:$0x1] %v1940_v54  ;;  %v3895_v33 = vsel %vm14386_vm3, %v11254_v62, %v3894_v5  ;;  %v3896_v9 = vrot.slane %v3894_v5, 4  ;;  %v12070_v20 = vld [vmem:[#allocation6 + $0x78] sm:$0xff]  ;;  %v1992_v54 = vsel %vm14067_vm11, %v14204_v53, %v14352_v0  ;;  %6204 = vmatpush.bf16.msrb.mxu2 %v12074_v31  ;;  %v2167_v59 = vshll.u32 %v2029_v30, 16  ;;  %3580 = vmatpush.bf16.msra.mxu0 %v14262_v23  ;;  %v14431_v23 = vld [vmem:[#allocation6 + $0x40] sm:$0xff] }
 0x399   :  { %v14400_v26 = vsel %vm13176_vm9, %v17606_v39, %v1981_v37  ;;  %v2158_v37 = vshrl.u32 %v2028_v22, 16  ;;  %v2161_v39 = vshll.u32 %v2028_v22, 16  ;;  %1944 = vst [vmem:[#allocation2 + $0x170] sm:$0xf] %v1943_v40  ;;  %v14415_v44 = vsel %vm13176_vm9, %v17607_v34, %v1988_v48  ;;  %v2040_v22 = vld [vmem:[#allocation2 + $0x70] sm:$0xf]  ;;  %4882 = vmatpush.bf16.msrb.mxu1 %v12070_v20  ;;  %12137 = vmatpush.bf16.msra.mxu3 %v14373_v2 }
 0x39a   :  { %v2171_v57 = vshrl.u32 %v2029_v30, 16  ;;  %1948 = vst [vmem:[#allocation2 + $0x178] sm:$0x1] %v1947_v17  ;;  %v3898_v62 = vsel %vm14386_vm3, %v3896_v9, %v3897_v29  ;;  %v4090_v40 = vunpack.c.l.b16 %v3895_v33  ;;  %v1995_v34 = vld [vmem:[#allocation2 + $0x1e8] sm:$0x1]  ;;  %v17608_v48 = vsel %vm14067_vm11, %v17596_v55, %v14255_v27 }
 0x39b   :  { %v2160_v41 = vrot.slane %v2158_v37, 4  ;;  %v2163_v5 = vrot.slane %v2161_v39, 5  ;;  %1951 = vst [vmem:[#allocation2 + $0x180] sm:$0xf] %v17608_v48  ;;  %v4091_v17 = vunpack.c.l.b16 %v3898_v62  ;;  %v2169_v31 = vrot.slane %v2167_v59, 5 }
 0x39c   :  { %v2173_v29 = vrot.slane %v2171_v57, 4  ;;  %v2177_v9 = vshll.u32 %v2099_v49, 16  ;;  %v14433_v30 = vld [vmem:[#allocation2 + $0x1f0] sm:$0xf]  ;;  %1955 = vst [vmem:[#allocation2 + $0x188] sm:$0x1] %v14339_v38  ;;  %v17609_v55 = vsel %vm14067_vm11, %v17598_v10, %v14264_v12  ;;  %3581 = vmatpush.bf16.msra.mxu0 %v14317_v56 }
 0x39d   :  { %v2164_v20 = vor.u32 %v2163_v5, %v2160_v41  ;;  %v2302_v33 = vshrl.u32 %v2040_v22, 16  ;;  %v2305_v37 = vshll.u32 %v2040_v22, 16  ;;  %v2311_v27 = vshll.u32 %v14350_v32, 16  ;;  %1958 = vst [vmem:[#allocation2 + $0x190] sm:$0xf] %v17609_v55  ;;  %12138 = vmatpush.bf16.msra.mxu3 %v14431_v23 }
 0x39e   :  { %v4147_v36 = vpack.c.b16 %v4091_v17, %v4090_v40  ;;  %v2174_v39 = vor.u32 %v2173_v29, %v2169_v31  ;;  %v2315_v57 = vshrl.u32 %v14350_v32, 16  ;;  %v2321_v59 = vshll.u32 %v14371_v21, 16  ;;  %v14444_v49 = vld [vmem:[#allocation2 + $0x84] sm:$0xf]  ;;  %v2002_v38 = vld [vmem:[#allocation2 + $0x1f8] sm:$0x1] }
 0x39f   :  { %v14447_v62 = vld [vmem:[#allocation2 + $0x200] sm:$0xf]  ;;  %1962 = vst [vmem:[#allocation2 + $0x198] sm:$0x1] %v14358_v43  ;;  %v2165_v41 = vrot.slane %v2164_v20, 4  ;;  %v2304_v5 = vrot.slane %v2302_v33, 4  ;;  %v17610_v32 = vsel %vm14067_vm11, %v17600_v7, %v14278_v25 }
 0x3a0   :  { %v2307_v22 = vrot.slane %v2305_v37, 5  ;;  %v2313_v12 = vrot.slane %v2311_v27, 5  ;;  %v2009_v10 = vld [vmem:[#allocation2 + $0x208] sm:$0x1]  ;;  %v14450_v40 = vld [vmem:[#allocation2 + $0x210] sm:$0xf]  ;;  %3582 = vmatpush.bf16.msra.mxu0 %v14348_v14  ;;  %11302 = vmatmul.msk.bf16.vlgmr.msra.gmra.mxu3 %vm395_vm1, %v4147_v36 }
 0x3a1   :  { %1965 = vst [vmem:[#allocation2 + $0x1a0] sm:$0xf] %v17610_v32  ;;  %v2175_v56 = vrot.slane %v2174_v39, 4  ;;  %v2179_v21 = vrot.slane %v2177_v9, 5  ;;  %v2317_v48 = vrot.slane %v2315_v57, 4  ;;  %v3901_v43 = vrot.slane %v14444_v49, 5 }
 0x3a2   :  { %1969 = vst [vmem:[#allocation2 + $0x1a8] sm:$0x1] %v14368_v6  ;;  %v17611_v17 = vrot.slane %v17574_v3, 4  ;;  %v2170_v20 = vsel %vm14293_vm14, %v2165_v41, %v2169_v31  ;;  %v2308_v33 = vor.u32 %v2307_v22, %v2304_v5  ;;  %v2323_v25 = vrot.slane %v2321_v59, 5  ;;  %v3752_v7 = vld [vmem:[#allocation2 + $0x80] sm:$0xe] }
 0x3a3   :  { %v17612_v9 = vsel %vm14067_vm11, %v17602_v61, %v14297_v28  ;;  %v1999_v3 = vsel %vm14067_vm11, %v14207_v8, %v14433_v30  ;;  %v2180_v6 = vsel %vm14293_vm14, %v2175_v56, %v2179_v21  ;;  %v2318_v37 = vor.u32 %v2317_v48, %v2313_v12  ;;  %v14477_v31 = vld [vmem:[#allocation2 + $0x88] sm:$0x1]  ;;  %v2030_v27 = vld [vmem:[#allocation2 + $0x20] sm:$0xf]  ;;  %1976 = vst [vmem:[#allocation2 + $0x1b8] sm:$0x1] %v14384_v15 }
 0x3a4   :  { %v1996_v29 = vsel %vm13176_vm9, %v17611_v17, %v1995_v34  ;;  %1972 = vst [vmem:[#allocation2 + $0x1b0] sm:$0xf] %v17612_v9  ;;  %v2912_v34 = vunpack.c.l.b16 %v2170_v20  ;;  %v2913_v28 = vunpack.c.l.b16 %v2180_v6  ;;  %v2309_v61 = vrot.slane %v2308_v33, 4  ;;  %4296 = vmatpush.bf16.msrb.mxu0 %v14315_v60  ;;  %v2031_v57 = vld [vmem:[#allocation2 + $0x24] sm:$0xf] }
 0x3a5   :  { %v11255_v55 = vrot.slane %v3752_v7, 9  ;;  %v3903_v39 = vrot.slane %v3901_v43, 4  ;;  %v17613_v8 = vsel %vm14067_vm11, %v14181_v35, %v14319_v4  ;;  %v17614_v30 = vrot.slane %v17577_v52, 4  ;;  %1983 = vst [vmem:[#allocation2 + $0x1c8] sm:$0x1] %v14400_v26 }
 0x3a6   :  { %1979 = vst [vmem:[#allocation2 + $0x1c0] sm:$0xf] %v17613_v8  ;;  %v2006_v15 = vsel %vm14067_vm11, %v14230_v19, %v14447_v62  ;;  %v2319_v36 = vrot.slane %v2318_v37, 4  ;;  %v2182_v59 = vshrl.u32 %v2030_v27, 16  ;;  %v17615_v60 = vrot.slane %v14073_v50, 4 }
 0x3a7   :  { %v2003_v14 = vsel %vm13176_vm9, %v17614_v30, %v2002_v38  ;;  %v2013_v52 = vsel %vm14067_vm11, %v14249_v63, %v14450_v40  ;;  %v2975_v4 = vpack.c.b16 %v2913_v28, %v2912_v34  ;;  %v2314_v38 = vsel %vm14293_vm14, %v2309_v61, %v2313_v12  ;;  %v2100_v19 = vld [vmem:[#allocation2 + $0x28] sm:$0x1]  ;;  %v2042_v62 = vld [vmem:[#allocation2 + $0x80] sm:$0xf]  ;;  %1990 = vst [vmem:[#allocation2 + $0x1d8] sm:$0x1] %v14415_v44 }
 0x3a8   :  { %v2010_v35 = vsel %vm13176_vm9, %v17615_v60, %v2009_v10  ;;  %v17616_v26 = vsel %vm14067_vm11, %v14201_v13, %v14321_v24  ;;  %v2324_v50 = vsel %vm14293_vm14, %v2319_v36, %v2323_v25  ;;  %v2924_v41 = vunpack.c.l.b16 %v2314_v38  ;;  %4297 = vmatpush.bf16.msrb.mxu0 %v14346_v45  ;;  %1993 = vst [vmem:[#allocation2 + $0x1e0] sm:$0xf] %v1992_v54  ;;  %v11999_v45 = vld [vmem:[#allocation2 + $0x80] sm:$0xff]  ;;  %v2016_v33 = vld [vmem:[#allocation2 + $0x218] sm:$0x1] }
 0x3a9   :  { %1986 = vst [vmem:[#allocation2 + $0x1d0] sm:$0xf] %v17616_v26  ;;  %v3904_v5 = vrot.slane %v14477_v31, 5  ;;  %v2184_v22 = vrot.slane %v2182_v59, 4  ;;  %v2925_v63 = vunpack.c.l.b16 %v2324_v50  ;;  %v2185_v10 = vshll.u32 %v2030_v27, 16  ;;  %11040 = vmatmul.msk.bf16.gmra.mxu0 %vm395_vm1, %v2975_v4  ;;  %11223 = vmatmul.msk.bf16.gmra.mxu2 %vm395_vm1, %v11999_v45 }
 0x3aa   :  { %v2191_v12 = vshll.u32 %v2031_v57, 16  ;;  %v2195_v40 = vshrl.u32 %v2031_v57, 16  ;;  %v2201_v24 = vshll.u32 %v2100_v19, 16  ;;  %v2326_v32 = vshrl.u32 %v2042_v62, 16  ;;  %1997 = vst [vmem:[#allocation2 + $0x1e8] sm:$0x1] %v1996_v29 }
 0x3ab   :  { %v3905_v13 = vsel %vm14386_vm3, %v3903_v39, %v3904_v5  ;;  %v2329_v44 = vshll.u32 %v2042_v62, 16  ;;  %v2981_v56 = vpack.c.b16 %v2925_v63, %v2924_v41  ;;  %v2187_v21 = vrot.slane %v2185_v10, 5  ;;  %2000 = vst [vmem:[#allocation2 + $0x1f0] sm:$0xf] %v1999_v3  ;;  %v14532_v34 = vld [vmem:[#allocation2 + $0x94] sm:$0xf] }
 0x3ac   :  { %v2193_v48 = vrot.slane %v2191_v12, 5  ;;  %v2197_v17 = vrot.slane %v2195_v40, 4  ;;  %v3902_v20 = vsel %vm14386_vm3, %v11255_v55, %v3901_v43  ;;  %v2328_v53 = vrot.slane %v2326_v32, 4  ;;  %2004 = vst [vmem:[#allocation2 + $0x1f8] sm:$0x1] %v2003_v14  ;;  %4298 = vmatpush.bf16.msrb.mxu0 %v14373_v2 }
 0x3ad   :  { %v2331_v0 = vrot.slane %v2329_v44, 5  ;;  %v2335_v54 = vshll.u32 %v14444_v49, 16  ;;  %11046 = vmatmul.msk.bf16.vlgmr.msra.gmra.mxu1 %vm395_vm1, %v2981_v56  ;;  %v2188_v25 = vor.u32 %v2187_v21, %v2184_v22  ;;  %v2339_v29 = vshrl.u32 %v14444_v49, 16  ;;  %2007 = vst [vmem:[#allocation2 + $0x200] sm:$0xf] %v2006_v15 }
 0x3ae   :  { %v2198_v7 = vor.u32 %v2197_v17, %v2193_v48  ;;  %v4093_v9 = vunpack.c.l.b16 %v3905_v13  ;;  %v2203_v3 = vrot.slane %v2201_v24, 5  ;;  %2008 = vst.msk [vmem:[#allocation2 + $0x204] sm:$0xf] %vm944_vm0, %v14092_v1  ;;  %v2345_v61 = vshll.u32 %v14477_v31, 16  ;;  %v3753_v8 = vld [vmem:[#allocation2 + $0x90] sm:$0xe] }
 0x3af   :  { %v2332_v43 = vor.u32 %v2331_v0, %v2328_v53  ;;  %v2337_v6 = vrot.slane %v2335_v54, 5  ;;  %v2189_v37 = vrot.slane %v2188_v25, 4  ;;  %v2341_v28 = vrot.slane %v2339_v29, 4  ;;  %2011 = vst [vmem:[#allocation2 + $0x208] sm:$0x1] %v2010_v35 }
 0x3b0   :  { %v2199_v27 = vrot.slane %v2198_v7, 4  ;;  %v17617_v2 = vrot.slane %v14085_v46, 4  ;;  %v4092_v55 = vunpack.c.l.b16 %v3902_v20  ;;  %2014 = vst [vmem:[#allocation2 + $0x210] sm:$0xf] %v2013_v52  ;;  %v3908_v15 = vrot.slane %v14532_v34, 5  ;;  %4299 = vmatpush.bf16.msrb.mxu0 %v14431_v23 }
 0x3b1   :  { %v2333_v39 = vrot.slane %v2332_v43, 4  ;;  %v2194_v30 = vsel %vm14293_vm14, %v2189_v37, %v2193_v48  ;;  %v2342_v14 = vor.u32 %v2341_v28, %v2337_v6  ;;  %v2032_v31 = vld [vmem:[#allocation2 + $0x30] sm:$0xf]  ;;  %2015 = vst.msk [vmem:[#allocation2 + $0x214] sm:$0xf] %vm944_vm0, %v14110_v42  ;;  %v2347_v60 = vrot.slane %v2345_v61, 5 }
 0x3b2   :  { %v2017_v49 = vsel %vm13176_vm9, %v17617_v2, %v2016_v33  ;;  %v2204_v1 = vsel %vm14293_vm14, %v2199_v27, %v2203_v3  ;;  %v4148_v46 = vpack.c.b16 %v4093_v9, %v4092_v55  ;;  %v14549_v51 = vld [vmem:[#allocation2 + $0x98] sm:$0x1]  ;;  %v2033_v36 = vld [vmem:[#allocation2 + $0x34] sm:$0xf]  ;;  %v11256_v35 = vrot.slane %v3753_v8, 9 }
 0x3b3   :  { %2018 = vst [vmem:[#allocation2 + $0x218] sm:$0x1] %v2017_v49  ;;  %v2338_v57 = vsel %vm14293_vm14, %v2333_v39, %v2337_v6  ;;  %v2343_v59 = vrot.slane %v2342_v14, 4  ;;  %v17618_v52 = vsel %vm14067_vm11, %v14219_v58, %v14227_v11  ;;  %v2914_v23 = vunpack.c.l.b16 %v2194_v30  ;;  %v2044_v19 = vld [vmem:[#allocation2 + $0x90] sm:$0xf] }
 0x3b4   :  { %2021 = vst [vmem:[#allocation2 + $0x220] sm:$0xf] %v17618_v52  ;;  %v2915_v4 = vunpack.c.l.b16 %v2204_v1  ;;  %v2206_v42 = vshrl.u32 %v2032_v31, 16  ;;  %v2209_v38 = vshll.u32 %v2032_v31, 16  ;;  %11303 = vmatmul.msk.bf16.gmra.mxu3 %vm395_vm1, %v4148_v46  ;;  %v3910_v26 = vrot.slane %v3908_v15, 4  ;;  %v12000_v9 = vld [vmem:[#allocation2 + $0x90] sm:$0xff] }
 0x3b5   :  { %v2348_v62 = vsel %vm14293_vm14, %v2343_v59, %v2347_v60  ;;  %v2215_v50 = vshll.u32 %v2033_v36, 16  ;;  %v2219_v41 = vshrl.u32 %v2033_v36, 16  ;;  %v2926_v5 = vunpack.c.l.b16 %v2338_v57  ;;  %v2101_v22 = vld [vmem:[#allocation2 + $0x38] sm:$0x1]  ;;  %v2047_v29 = vld [vmem:[#allocation2 + $0xa4] sm:$0xf] }
 0x3b6   :  { %v3911_v16 = vrot.slane %v14549_v51, 5  ;;  %v2208_v63 = vrot.slane %v2206_v42, 4  ;;  %v2211_v58 = vrot.slane %v2209_v38, 5  ;;  %v2927_v11 = vunpack.c.l.b16 %v2348_v62  ;;  %v2034_v43 = vld [vmem:[#allocation2 + $0x40] sm:$0xf] }
 0x3b7   :  { %v2217_v10 = vrot.slane %v2215_v50, 5  ;;  %v2221_v12 = vrot.slane %v2219_v41, 4  ;;  %v2350_v40 = vshrl.u32 %v2044_v19, 16  ;;  %v2976_v13 = vpack.c.b16 %v2915_v4, %v2914_v23  ;;  %v2035_v27 = vld [vmem:[#allocation2 + $0x44] sm:$0xf] }
 0x3b8   :  { %v2212_v24 = vor.u32 %v2211_v58, %v2208_v63  ;;  %v2353_v32 = vshll.u32 %v2044_v19, 16  ;;  %v2359_v44 = vshll.u32 %v14532_v34, 16  ;;  %v2225_v21 = vshll.u32 %v2101_v22, 16  ;;  %v3754_v38 = vld [vmem:[#allocation2 + $0xa0] sm:$0xe] }
 0x3b9   :  { %v2222_v56 = vor.u32 %v2221_v12, %v2217_v10  ;;  %v2352_v48 = vrot.slane %v2350_v40, 4  ;;  %v2363_v17 = vshrl.u32 %v14532_v34, 16  ;;  %11041 = vmatmul.msk.bf16.gmra.mxu0 %vm395_vm1, %v2976_v13  ;;  %v3909_v45 = vsel %vm14386_vm3, %v11256_v35, %v3908_v15  ;;  %11224 = vmatmul.msk.bf16.gmra.mxu2 %vm395_vm1, %v12000_v9  ;;  %v2046_v15 = vld [vmem:[#allocation2 + $0xa0] sm:$0xf]  ;;  %v2108_v35 = vld [vmem:[#allocation2 + $0xa8] sm:$0x1] }
 0x3ba   :  { %v3912_v20 = vsel %vm14386_vm3, %v3910_v26, %v3911_v16  ;;  %v2355_v53 = vrot.slane %v2353_v32, 5  ;;  %v2361_v0 = vrot.slane %v2359_v44, 5  ;;  %v2982_v54 = vpack.c.b16 %v2927_v11, %v2926_v5  ;;  %v2102_v12 = vld [vmem:[#allocation2 + $0x48] sm:$0x1] }
 0x3bb   :  { %v2213_v33 = vrot.slane %v2212_v24, 4  ;;  %v2223_v25 = vrot.slane %v2222_v56, 4  ;;  %v2365_v7 = vrot.slane %v2363_v17, 4  ;;  %v4095_v6 = vunpack.c.l.b16 %v3912_v20  ;;  %v12001_v20 = vld [vmem:[#allocation2 + $0xa0] sm:$0xff] }
 0x3bc   :  { %v2356_v3 = vor.u32 %v2355_v53, %v2352_v48  ;;  %v2227_v34 = vrot.slane %v2225_v21, 5  ;;  %v4094_v28 = vunpack.c.l.b16 %v3909_v45  ;;  %v2369_v61 = vshll.u32 %v14549_v51, 16  ;;  %v2036_v45 = vld [vmem:[#allocation2 + $0x50] sm:$0xf] }
 0x3bd   :  { %11047 = vmatmul.msk.bf16.gmra.mxu1 %vm395_vm1, %v2982_v54  ;;  %v2366_v37 = vor.u32 %v2365_v7, %v2361_v0  ;;  %v3915_v2 = vrot.slane %v2047_v29, 5  ;;  %v2218_v49 = vsel %vm14293_vm14, %v2213_v33, %v2217_v10  ;;  %v2230_v8 = vshrl.u32 %v2034_v43, 16  ;;  %v2037_v33 = vld [vmem:[#allocation2 + $0x54] sm:$0xf] }
 0x3be   :  { %v2228_v55 = vsel %vm14293_vm14, %v2223_v25, %v2227_v34  ;;  %v2357_v39 = vrot.slane %v2356_v3, 4  ;;  %v2233_v1 = vshll.u32 %v2034_v43, 16  ;;  %v2239_v14 = vshll.u32 %v2035_v27, 16  ;;  %v2049_v3 = vld [vmem:[#allocation2 + $0xb4] sm:$0xf] }
 0x3bf   :  { %v2367_v30 = vrot.slane %v2366_v37, 4  ;;  %v4149_v31 = vpack.c.b16 %v4095_v6, %v4094_v28  ;;  %v2243_v46 = vshrl.u32 %v2035_v27, 16  ;;  %v2916_v36 = vunpack.c.l.b16 %v2218_v49  ;;  %v2048_v28 = vld [vmem:[#allocation2 + $0xb0] sm:$0xf] }
 0x3c0   :  { %v2917_v57 = vunpack.c.l.b16 %v2228_v55  ;;  %v2371_v59 = vrot.slane %v2369_v61, 5  ;;  %v3917_v60 = vrot.slane %v3915_v2, 4  ;;  %v2362_v51 = vsel %vm14293_vm14, %v2357_v39, %v2361_v0 }
 0x3c1   :  { %v2232_v52 = vrot.slane %v2230_v8, 4  ;;  %v2374_v23 = vshrl.u32 %v2046_v15, 16  ;;  %v2377_v4 = vshll.u32 %v2046_v15, 16  ;;  %v2235_v19 = vrot.slane %v2233_v1, 5  ;;  %v3755_v1 = vld [vmem:[#allocation2 + $0xb0] sm:$0xe] }
 0x3c2   :  { %v2372_v42 = vsel %vm14293_vm14, %v2367_v30, %v2371_v59  ;;  %v2241_v62 = vrot.slane %v2239_v14, 5  ;;  %v2383_v26 = vshll.u32 %v2047_v29, 16  ;;  %v2245_v50 = vrot.slane %v2243_v46, 4 }
 0x3c3   :  { %v2376_v41 = vrot.slane %v2374_v23, 4  ;;  %v2379_v5 = vrot.slane %v2377_v4, 5  ;;  %v2387_v16 = vshrl.u32 %v2047_v29, 16  ;;  %v2928_v22 = vunpack.c.l.b16 %v2362_v51  ;;  %v2109_v23 = vld [vmem:[#allocation2 + $0xb8] sm:$0x1] }
 0x3c4   :  { %11304 = vmatmul.msk.bf16.gmra.mxu3 %vm395_vm1, %v4149_v31  ;;  %v2929_v63 = vunpack.c.l.b16 %v2372_v42  ;;  %v11257_v58 = vrot.slane %v3754_v38, 9  ;;  %v3918_v11 = vrot.slane %v2108_v35, 5  ;;  %v2977_v10 = vpack.c.b16 %v2917_v57, %v2916_v36 }
 0x3c5   :  { %v2236_v40 = vor.u32 %v2235_v19, %v2232_v52  ;;  %v2385_v13 = vrot.slane %v2383_v26, 5  ;;  %v2389_v24 = vrot.slane %v2387_v16, 4  ;;  %v2246_v44 = vor.u32 %v2245_v50, %v2241_v62  ;;  %v2103_v19 = vld [vmem:[#allocation2 + $0x58] sm:$0x1] }
 0x3c6   :  { %v3919_v32 = vsel %vm14386_vm3, %v3917_v60, %v3918_v11  ;;  %v2380_v56 = vor.u32 %v2379_v5, %v2376_v41  ;;  %v2983_v21 = vpack.c.b16 %v2929_v63, %v2928_v22  ;;  %v3916_v48 = vsel %vm14386_vm3, %v11257_v58, %v3915_v2 }
 0x3c7   :  { %v2249_v17 = vshll.u32 %v2102_v12, 16  ;;  %v4097_v53 = vunpack.c.l.b16 %v3919_v32  ;;  %v2237_v0 = vrot.slane %v2236_v40, 4  ;;  %v2390_v54 = vor.u32 %v2389_v24, %v2385_v13 }
 0x3c8   :  { %v2247_v25 = vrot.slane %v2246_v44, 4  ;;  %v2381_v7 = vrot.slane %v2380_v56, 4  ;;  %v2393_v29 = vshll.u32 %v2108_v35, 16  ;;  %v4096_v9 = vunpack.c.l.b16 %v3916_v48  ;;  %v2038_v56 = vld [vmem:[#allocation2 + $0x60] sm:$0xf] }
 0x3c9   :  { %11042 = vmatmul.msk.bf16.gmra.mxu0 %vm395_vm1, %v2977_v10  ;;  %11225 = vmatmul.msk.bf16.gmra.mxu2 %vm395_vm1, %v12001_v20  ;;  %v2254_v43 = vshrl.u32 %v2036_v45, 16  ;;  %v2257_v6 = vshll.u32 %v2036_v45, 16  ;;  %v2251_v34 = vrot.slane %v2249_v17, 5  ;;  %v2263_v37 = vshll.u32 %v2037_v33, 16  ;;  %v2039_v48 = vld [vmem:[#allocation2 + $0x64] sm:$0xf] }
 0x3ca   :  { %v2267_v27 = vshrl.u32 %v2037_v33, 16  ;;  %v4150_v61 = vpack.c.b16 %v4097_v53, %v4096_v9  ;;  %v2242_v2 = vsel %vm14293_vm14, %v2237_v0, %v2241_v62  ;;  %v2391_v49 = vrot.slane %v2390_v54, 4  ;;  %v2051_v33 = vld [vmem:[#allocation2 + $0xc4] sm:$0xf] }
 0x3cb   :  { %v2252_v55 = vsel %vm14293_vm14, %v2247_v25, %v2251_v34  ;;  %v2386_v39 = vsel %vm14293_vm14, %v2381_v7, %v2385_v13  ;;  %v2395_v8 = vrot.slane %v2393_v29, 5  ;;  %v3922_v30 = vrot.slane %v2049_v3, 5 }
 0x3cc   :  { %v2256_v14 = vrot.slane %v2254_v43, 4  ;;  %v2259_v15 = vrot.slane %v2257_v6, 5  ;;  %v2398_v31 = vshrl.u32 %v2048_v28, 16  ;;  %v2401_v46 = vshll.u32 %v2048_v28, 16  ;;  %v2050_v6 = vld [vmem:[#allocation2 + $0xc0] sm:$0xf] }
 0x3cd   :  { %11048 = vmatmul.msk.bf16.gmra.mxu1 %vm395_vm1, %v2983_v21  ;;  %v2265_v36 = vrot.slane %v2263_v37, 5  ;;  %v2269_v57 = vrot.slane %v2267_v27, 4  ;;  %v2407_v59 = vshll.u32 %v2049_v3, 16  ;;  %v2411_v60 = vshrl.u32 %v2049_v3, 16  ;;  %v12002_v21 = vld [vmem:[#allocation2 + $0xb0] sm:$0xff] }
 0x3ce   :  { %v2918_v51 = vunpack.c.l.b16 %v2242_v2  ;;  %v2919_v35 = vunpack.c.l.b16 %v2252_v55  ;;  %v2396_v52 = vsel %vm14293_vm14, %v2391_v49, %v2395_v8  ;;  %v11258_v4 = vrot.slane %v3755_v1, 9 }
 0x3cf   :  { %v3924_v42 = vrot.slane %v3922_v30, 4  ;;  %v2930_v38 = vunpack.c.l.b16 %v2386_v39  ;;  %v2260_v62 = vor.u32 %v2259_v15, %v2256_v14  ;;  %v2400_v26 = vrot.slane %v2398_v31, 4  ;;  %v3756_v39 = vld [vmem:[#allocation2 + $0xc0] sm:$0xe] }
 0x3d0   :  { %v2403_v50 = vrot.slane %v2401_v46, 5  ;;  %v2931_v41 = vunpack.c.l.b16 %v2396_v52  ;;  %v2270_v5 = vor.u32 %v2269_v57, %v2265_v36  ;;  %v2409_v16 = vrot.slane %v2407_v59, 5  ;;  %v2110_v57 = vld [vmem:[#allocation2 + $0xc8] sm:$0x1] }
 0x3d1   :  { %v2413_v22 = vrot.slane %v2411_v60, 4  ;;  %v2978_v63 = vpack.c.b16 %v2919_v35, %v2918_v51  ;;  %v3925_v58 = vrot.slane %v2109_v23, 5  ;;  %v2273_v11 = vshll.u32 %v2103_v19, 16  ;;  %v2104_v52 = vld [vmem:[#allocation2 + $0x68] sm:$0x1] }
 0x3d2   :  { %v2261_v12 = vrot.slane %v2260_v62, 4  ;;  %v2404_v40 = vor.u32 %v2403_v50, %v2400_v26  ;;  %v2984_v13 = vpack.c.b16 %v2931_v41, %v2930_v38  ;;  %v3923_v24 = vsel %vm14386_vm3, %v11258_v4, %v3922_v30 }
 0x3d3   :  { %v3926_v10 = vsel %vm14386_vm3, %v3924_v42, %v3925_v58  ;;  %v2271_v32 = vrot.slane %v2270_v5, 4  ;;  %v2414_v44 = vor.u32 %v2413_v22, %v2409_v16  ;;  %v2275_v45 = vrot.slane %v2273_v11, 5  ;;  %v12003_v22 = vld [vmem:[#allocation2 + $0xc0] sm:$0xff] }
 0x3d4   :  { %11305 = vmatmul.msk.bf16.gmra.mxu3 %vm395_vm1, %v4150_v61  ;;  %v4099_v17 = vunpack.c.l.b16 %v3926_v10  ;;  %v2417_v20 = vshll.u32 %v2109_v23, 16  ;;  %v4098_v53 = vunpack.c.l.b16 %v3923_v24  ;;  %v2266_v0 = vsel %vm14293_vm14, %v2261_v12, %v2265_v36  ;;  %v12073_v12 = vld [vmem:[#allocation6 + $0x90] sm:$0xff] }
 0x3d5   :  { %v2405_v54 = vrot.slane %v2404_v40, 4  ;;  %v2278_v25 = vshrl.u32 %v2038_v56, 16  ;;  %v2276_v7 = vsel %vm14293_vm14, %v2271_v32, %v2275_v45  ;;  %v2415_v29 = vrot.slane %v2414_v44, 4  ;;  %v12069_v40 = vld [vmem:[#allocation6 + $0x70] sm:$0xff]  ;;  %6205 = vmatpush.bf16.msrb.mxu2 %v12073_v12 }
 0x3d6   :  { %v2281_v9 = vshll.u32 %v2038_v56, 16  ;;  %v2287_v3 = vshll.u32 %v2039_v48, 16  ;;  %v2291_v43 = vshrl.u32 %v2039_v48, 16  ;;  %v4151_v34 = vpack.c.b16 %v4099_v17, %v4098_v53  ;;  %v2053_v56 = vld [vmem:[#allocation2 + $0xd4] sm:$0xf]  ;;  %4883 = vmatpush.bf16.msrb.mxu1 %v12069_v40 }
 0x3d7   :  { %v2419_v37 = vrot.slane %v2417_v20, 5  ;;  %v3929_v27 = vrot.slane %v2051_v33, 5  ;;  %v2920_v28 = vunpack.c.l.b16 %v2266_v0  ;;  %v2921_v61 = vunpack.c.l.b16 %v2276_v7  ;;  %v2052_v20 = vld [vmem:[#allocation2 + $0xd0] sm:$0xf] }
 0x3d8   :  { %v2410_v2 = vsel %vm14293_vm14, %v2405_v54, %v2409_v16  ;;  %v2280_v49 = vrot.slane %v2278_v25, 4  ;;  %v2283_v8 = vrot.slane %v2281_v9, 5  ;;  %v2289_v30 = vrot.slane %v2287_v3, 5 }
 0x3d9   :  { %11043 = vmatmul.msk.bf16.gmra.mxu0 %vm395_vm1, %v2978_v63  ;;  %11226 = vmatmul.msk.bf16.gmra.mxu2 %vm395_vm1, %v12002_v21  ;;  %v2420_v55 = vsel %vm14293_vm14, %v2415_v29, %v2419_v37  ;;  %v2422_v1 = vshrl.u32 %v2050_v6, 16  ;;  %v2293_v14 = vrot.slane %v2291_v43, 4  ;;  %v2425_v15 = vshll.u32 %v2050_v6, 16 }
 0x3da   :  { %v2431_v31 = vshll.u32 %v2051_v33, 16  ;;  %v2435_v46 = vshrl.u32 %v2051_v33, 16  ;;  %v2979_v36 = vpack.c.b16 %v2921_v61, %v2920_v28  ;;  %v11259_v59 = vrot.slane %v3756_v39, 9  ;;  %v2111_v28 = vld [vmem:[#allocation2 + $0xd8] sm:$0x1] }
 0x3db   :  { %v3931_v60 = vrot.slane %v3929_v27, 4  ;;  %v2932_v51 = vunpack.c.l.b16 %v2410_v2  ;;  %v2933_v35 = vunpack.c.l.b16 %v2420_v55  ;;  %v2284_v23 = vor.u32 %v2283_v8, %v2280_v49  ;;  %v3757_v61 = vld [vmem:[#allocation2 + $0xd0] sm:$0xe] }
 0x3dc   :  { %v2424_v4 = vrot.slane %v2422_v1, 4  ;;  %v2294_v42 = vor.u32 %v2293_v14, %v2289_v30  ;;  %v2427_v38 = vrot.slane %v2425_v15, 5  ;;  %v2433_v19 = vrot.slane %v2431_v31, 5  ;;  %v12004_v15 = vld [vmem:[#allocation2 + $0xd0] sm:$0xff] }
 0x3dd   :  { %11049 = vmatmul.msk.bf16.gmra.mxu1 %vm395_vm1, %v2984_v13  ;;  %v2437_v62 = vrot.slane %v2435_v46, 4  ;;  %v3932_v26 = vrot.slane %v2110_v57, 5  ;;  %v2297_v50 = vshll.u32 %v2104_v52, 16  ;;  %v2985_v41 = vpack.c.b16 %v2933_v35, %v2932_v51  ;;  %v2055_v52 = vld [vmem:[#allocation2 + $0xe4] sm:$0xf] }
 0x3de   :  { %v3930_v5 = vsel %vm14386_vm3, %v11259_v59, %v3929_v27  ;;  %v2285_v63 = vrot.slane %v2284_v23, 4  ;;  %v2295_v58 = vrot.slane %v2294_v42, 4  ;;  %v2428_v11 = vor.u32 %v2427_v38, %v2424_v4  ;;  %v2054_v23 = vld [vmem:[#allocation2 + $0xe0] sm:$0xf] }
 0x3df   :  { %v3933_v16 = vsel %vm14386_vm3, %v3931_v60, %v3932_v26  ;;  %v2438_v10 = vor.u32 %v2437_v62, %v2433_v19  ;;  %v2299_v24 = vrot.slane %v2297_v50, 5  ;;  %v2441_v32 = vshll.u32 %v2110_v57, 16 }
 0x3e0   :  { %v4101_v13 = vunpack.c.l.b16 %v3933_v16  ;;  %v4100_v44 = vunpack.c.l.b16 %v3930_v5  ;;  %v2290_v21 = vsel %vm14293_vm14, %v2285_v63, %v2289_v30  ;;  %v2429_v17 = vrot.slane %v2428_v11, 4  ;;  %v2112_v11 = vld [vmem:[#allocation2 + $0xe8] sm:$0x1] }
 0x3e1   :  { %v2300_v48 = vsel %vm14293_vm14, %v2295_v58, %v2299_v24  ;;  %v2439_v45 = vrot.slane %v2438_v10, 4  ;;  %v2443_v0 = vrot.slane %v2441_v32, 5  ;;  %v3936_v54 = vrot.slane %v2053_v56, 5  ;;  %v3758_v10 = vld [vmem:[#allocation2 + $0xe0] sm:$0xe] }
 0x3e2   :  { %v4152_v53 = vpack.c.b16 %v4101_v13, %v4100_v44  ;;  %v2922_v33 = vunpack.c.l.b16 %v2290_v21  ;;  %v2923_v25 = vunpack.c.l.b16 %v2300_v48  ;;  %v2446_v7 = vshrl.u32 %v2052_v20, 16  ;;  %v12005_v48 = vld [vmem:[#allocation2 + $0xe0] sm:$0xff] }
 0x3e3   :  { %v2449_v29 = vshll.u32 %v2052_v20, 16  ;;  %v2434_v9 = vsel %vm14293_vm14, %v2429_v17, %v2433_v19  ;;  %v2444_v3 = vsel %vm14293_vm14, %v2439_v45, %v2443_v0  ;;  %v2455_v43 = vshll.u32 %v2053_v56, 16 }
 0x3e4   :  { %11306 = vmatmul.msk.bf16.gmra.mxu3 %vm395_vm1, %v4151_v34  ;;  %v2459_v6 = vshrl.u32 %v2053_v56, 16  ;;  %v2980_v34 = vpack.c.b16 %v2923_v25, %v2922_v33  ;;  %v2934_v37 = vunpack.c.l.b16 %v2434_v9  ;;  %v2935_v27 = vunpack.c.l.b16 %v2444_v3 }
 0x3e5   :  { %v3938_v2 = vrot.slane %v3936_v54, 4  ;;  %v2448_v49 = vrot.slane %v2446_v7, 4  ;;  %v2451_v55 = vrot.slane %v2449_v29, 5  ;;  %v2457_v39 = vrot.slane %v2455_v43, 5  ;;  %v2057_v7 = vld [vmem:[#allocation2 + $0xf4] sm:$0xf] }
 0x3e6   :  { %v2461_v8 = vrot.slane %v2459_v6, 4  ;;  %v11260_v30 = vrot.slane %v3757_v61, 9  ;;  %v3939_v1 = vrot.slane %v2111_v28, 5  ;;  %v2986_v14 = vpack.c.b16 %v2935_v27, %v2934_v37  ;;  %v2056_v29 = vld [vmem:[#allocation2 + $0xf0] sm:$0xf] }
 0x3e7   :  { %v2452_v46 = vor.u32 %v2451_v55, %v2448_v49  ;;  %v2465_v59 = vshll.u32 %v2111_v28, 16  ;;  %v3943_v19 = vrot.slane %v2055_v52, 5  ;;  %v2470_v62 = vshrl.u32 %v2054_v23, 16 }
 0x3e8   :  { %v3940_v31 = vsel %vm14386_vm3, %v3938_v2, %v3939_v1  ;;  %v3937_v57 = vsel %vm14386_vm3, %v11260_v30, %v3936_v54  ;;  %v2473_v26 = vshll.u32 %v2054_v23, 16  ;;  %v2479_v5 = vshll.u32 %v2055_v52, 16  ;;  %v3759_v30 = vld [vmem:[#allocation2 + $0xf0] sm:$0xe] }
 0x3e9   :  { %11044 = vmatmul.msk.bf16.gmra.mxu0 %vm395_vm1, %v2979_v36  ;;  %11227 = vmatmul.msk.bf16.gmra.mxu2 %vm395_vm1, %v12003_v22  ;;  %v2462_v36 = vor.u32 %v2461_v8, %v2457_v39  ;;  %v4103_v60 = vunpack.c.l.b16 %v3940_v31  ;;  %v2453_v51 = vrot.slane %v2452_v46, 4  ;;  %v4102_v4 = vunpack.c.l.b16 %v3937_v57  ;;  %v11991_v22 = vld [vmem:[#allocation2] sm:$0xff]  ;;  %v2113_v8 = vld [vmem:[#allocation2 + $0xf8] sm:$0x1] }
 0x3ea   :  { %v2467_v42 = vrot.slane %v2465_v59, 5  ;;  %v2483_v16 = vshrl.u32 %v2055_v52, 16  ;;  %v3945_v12 = vrot.slane %v3943_v19, 4  ;;  %v2472_v40 = vrot.slane %v2470_v62, 4 }
 0x3eb   :  { %v2463_v35 = vrot.slane %v2462_v36, 4  ;;  %v4153_v38 = vpack.c.b16 %v4103_v60, %v4102_v4  ;;  %v2458_v50 = vsel %vm14293_vm14, %v2453_v51, %v2457_v39  ;;  %v2475_v13 = vrot.slane %v2473_v26, 5  ;;  %v12006_v51 = vld [vmem:[#allocation2 + $0xf0] sm:$0xff]  ;;  %v2058_v26 = vld [vmem:[#allocation2 + $0x120] sm:$0xf] }
 0x3ec   :  { %v2936_v63 = vunpack.c.l.b16 %v2458_v50  ;;  %v2481_v24 = vrot.slane %v2479_v5, 5  ;;  %v2485_v32 = vrot.slane %v2483_v16, 4  ;;  %v11261_v44 = vrot.slane %v3758_v10, 9 }
 0x3ed   :  { %11050 = vmatmul.msk.bf16.gmra.mxu1 %vm395_vm1, %v2985_v41  ;;  %v2468_v41 = vsel %vm14293_vm14, %v2463_v35, %v2467_v42  ;;  %v3946_v56 = vrot.slane %v2112_v11, 5  ;;  %v2476_v45 = vor.u32 %v2475_v13, %v2472_v40  ;;  %v2489_v0 = vshll.u32 %v2112_v11, 16  ;;  %v3760_v11 = vld [vmem:[#allocation2 + $0x120] sm:$0xe] }
 0x3ee   :  { %v2937_v58 = vunpack.c.l.b16 %v2468_v41  ;;  %v2486_v20 = vor.u32 %v2485_v32, %v2481_v24  ;;  %v3950_v6 = vrot.slane %v2057_v7, 5  ;;  %v2497_v37 = vshll.u32 %v2056_v29, 16 }
 0x3ef   :  { %v3947_v17 = vsel %vm14386_vm3, %v3945_v12, %v3946_v56  ;;  %v2477_v33 = vrot.slane %v2476_v45, 4  ;;  %v2491_v3 = vrot.slane %v2489_v0, 5  ;;  %v2503_v61 = vshll.u32 %v2057_v7, 16 }
 0x3f0   :  { %v2987_v21 = vpack.c.b16 %v2937_v58, %v2936_v63  ;;  %v4105_v54 = vunpack.c.l.b16 %v3947_v17  ;;  %v2487_v25 = vrot.slane %v2486_v20, 4  ;;  %v2507_v2 = vshrl.u32 %v2057_v7, 16  ;;  %v2114_v63 = vld [vmem:[#allocation2 + $0x128] sm:$0x1]  ;;  %v11993_v7 = vld [vmem:[#allocation2 + $0x20] sm:$0xff] }
 0x3f1   :  { %v2482_v27 = vsel %vm14293_vm14, %v2477_v33, %v2481_v24  ;;  %v3952_v1 = vrot.slane %v3950_v6, 4  ;;  %v2499_v31 = vrot.slane %v2497_v37, 5  ;;  %v2505_v46 = vrot.slane %v2503_v61, 5 }
 0x3f2   :  { %v2492_v28 = vsel %vm14293_vm14, %v2487_v25, %v2491_v3  ;;  %v2938_v55 = vunpack.c.l.b16 %v2482_v27  ;;  %v2509_v36 = vrot.slane %v2507_v2, 4  ;;  %v11262_v57 = vrot.slane %v3759_v30, 9 }
 0x3f3   :  { %v2939_v39 = vunpack.c.l.b16 %v2492_v28  ;;  %v3953_v59 = vrot.slane %v2113_v8, 5  ;;  %v2513_v4 = vshll.u32 %v2113_v8, 16  ;;  %v2518_v10 = vshrl.u32 %v2058_v26, 16 }
 0x3f4   :  { %11307 = vmatmul.msk.bf16.gmra.mxu3 %vm395_vm1, %v4152_v53  ;;  %v3944_v53 = vsel %vm14386_vm3, %v11261_v44, %v3943_v19  ;;  %v2510_v23 = vor.u32 %v2509_v36, %v2505_v46  ;;  %v3951_v42 = vsel %vm14386_vm3, %v11262_v57, %v3950_v6  ;;  %v2521_v12 = vshll.u32 %v2058_v26, 16  ;;  %v2060_v57 = vld [vmem:[#allocation2 + $0x130] sm:$0xf] }
 0x3f5   :  { %v4104_v9 = vunpack.c.l.b16 %v3944_v53  ;;  %v2988_v60 = vpack.c.b16 %v2939_v39, %v2938_v55  ;;  %v3954_v35 = vsel %vm14386_vm3, %v3952_v1, %v3953_v59  ;;  %v4106_v16 = vunpack.c.l.b16 %v3951_v42 }
 0x3f6   :  { %v4107_v62 = vunpack.c.l.b16 %v3954_v35  ;;  %v2511_v41 = vrot.slane %v2510_v23, 4  ;;  %v11263_v56 = vrot.slane %v3760_v11, 9  ;;  %v2520_v17 = vrot.slane %v2518_v10, 4 }
 0x3f7   :  { %v4154_v43 = vpack.c.b16 %v4105_v54, %v4104_v9  ;;  %v2523_v45 = vrot.slane %v2521_v12, 5  ;;  %v2537_v27 = vshll.u32 %v2114_v63, 16  ;;  %v2542_v23 = vshrl.u32 %v2060_v57, 16 }
 0x3f8   :  { %v4155_v24 = vpack.c.b16 %v4107_v62, %v4106_v16 }
 0x3f9   :  { %11045 = vmatmul.msk.bf16.gmra.mxu0 %vm395_vm1, %v2980_v34  ;;  %11228 = vmatmul.msk.bf16.gmra.mxu2 %vm395_vm1, %v12004_v15  ;;  %v2494_v34 = vshrl.u32 %v2056_v29, 16  ;;  %v2539_v1 = vrot.slane %v2537_v27, 5  ;;  %v2544_v11 = vrot.slane %v2542_v23, 4 }
 0x3fb   :  { %v2496_v15 = vrot.slane %v2494_v34, 4  ;;  %v2524_v34 = vor.u32 %v2523_v45, %v2520_v17  ;;  %v12008_v17 = vld [vmem:[#allocation2 + $0x130] sm:$0xff] }
 0x3fd   :  { %11051 = vmatmul.msk.bf16.gmra.mxu1 %vm395_vm1, %v2986_v14  ;;  %v11992_v14 = vld [vmem:[#allocation2 + $0x10] sm:$0xff]  ;;  %v2500_v52 = vor.u32 %v2499_v31, %v2496_v15  ;;  %v2525_v8 = vrot.slane %v2524_v34, 4  ;;  %v2062_v34 = vld [vmem:[#allocation2 + $0x140] sm:$0xf] }
 0x3fe   :  { %v2061_v31 = vld [vmem:[#allocation2 + $0x134] sm:$0xf] }
 0x3ff   :  { %v2501_v50 = vrot.slane %v2500_v52, 4  ;;  %v3964_v52 = vrot.slane %v2061_v31, 5  ;;  %v2551_v42 = vshll.u32 %v2061_v31, 16 }
 0x401   :  { %v2506_v32 = vsel %vm14293_vm14, %v2501_v50, %v2505_v46  ;;  %v2553_v12 = vrot.slane %v2551_v42, 5  ;;  %v11995_v42 = vld [vmem:[#allocation2 + $0x40] sm:$0xff] }
 0x402   :  { %v2940_v54 = vunpack.c.l.b16 %v2506_v32 }
 0x404   :  { %11308 = vmatmul.msk.bf16.gmra.mxu3 %vm395_vm1, %v4153_v38  ;;  %v2059_v38 = vld [vmem:[#allocation2 + $0x124] sm:$0xf] }
 0x405   :  { %v3957_v58 = vrot.slane %v2059_v38, 5  ;;  %v2527_v40 = vshll.u32 %v2059_v38, 16  ;;  %v2531_v13 = vshrl.u32 %v2059_v38, 16  ;;  %v2555_v38 = vshrl.u32 %v2061_v31, 16 }
 0x407   :  { %v2529_v20 = vrot.slane %v2527_v40, 5  ;;  %v2533_v53 = vrot.slane %v2531_v13, 4  ;;  %v3958_v9 = vsel %vm14386_vm3, %v11263_v56, %v3957_v58  ;;  %v2557_v40 = vrot.slane %v2555_v38, 4 }
 0x408   :  { %v4108_v55 = vunpack.c.l.b16 %v3958_v9 }
 0x409   :  { %11215 = vmatmul.msk.bf16.vlgmr.msra.gmra.mxu0 %vm395_vm1, %v11991_v22  ;;  %11229 = vmatmul.msk.bf16.gmra.mxu2 %vm395_vm1, %v12005_v48  ;;  %v2515_v22 = vrot.slane %v2513_v4, 5  ;;  %v3960_v48 = vrot.slane %v2114_v63, 5  ;;  %v2534_v37 = vor.u32 %v2533_v53, %v2529_v20  ;;  %v2545_v4 = vshll.u32 %v2060_v57, 16 }
 0x40b   :  { %v2516_v44 = vsel %vm14293_vm14, %v2511_v41, %v2515_v22  ;;  %v2535_v30 = vrot.slane %v2534_v37, 4  ;;  %v2115_v41 = vld [vmem:[#allocation2 + $0x138] sm:$0x1]  ;;  %v3966_v22 = vrot.slane %v3964_v52, 4  ;;  %v2547_v10 = vrot.slane %v2545_v4, 5 }
 0x40c   :  { %v2941_v33 = vunpack.c.l.b16 %v2516_v44  ;;  %v3967_v44 = vrot.slane %v2115_v41, 5 }
 0x40d   :  { %11052 = vmatmul.msk.bf16.gmra.mxu1 %vm395_vm1, %v2987_v21  ;;  %v3959_v21 = vrot.slane %v3957_v58, 4  ;;  %v11994_v58 = vld [vmem:[#allocation2 + $0x30] sm:$0xff]  ;;  %v2548_v45 = vor.u32 %v2547_v10, %v2544_v11 }
 0x40e   :  { %v2989_v61 = vpack.c.b16 %v2941_v33, %v2940_v54 }
 0x40f   :  { %v3961_v6 = vsel %vm14386_vm3, %v3959_v21, %v3960_v48  ;;  %v3968_v48 = vsel %vm14386_vm3, %v3966_v22, %v3967_v44 }
 0x410   :  { %v4109_v39 = vunpack.c.l.b16 %v3961_v6  ;;  %v4111_v33 = vunpack.c.l.b16 %v3968_v48  ;;  %v2063_v6 = vld [vmem:[#allocation2 + $0x144] sm:$0xf] }
 0x411   :  { %v2575_v31 = vshll.u32 %v2063_v6, 16 }
 0x412   :  { %v4156_v36 = vpack.c.b16 %v4109_v39, %v4108_v55  ;;  %v3971_v39 = vrot.slane %v2063_v6, 5 }
 0x414   :  { %11309 = vmatmul.msk.bf16.gmra.mxu3 %vm395_vm1, %v4154_v43  ;;  %v14653_v49 = vpop.f32.mrf.mxu0  ;;  %v12007_v43 = vld [vmem:[#allocation2 + $0x120] sm:$0xff]  ;;  %v3973_v38 = vrot.slane %v3971_v39, 4 }
 0x419   :  { %11216 = vmatmul.msk.bf16.gmra.mxu0 %vm395_vm1, %v11992_v14  ;;  %11230 = vmatmul.msk.bf16.gmra.mxu2 %vm395_vm1, %v12006_v51  ;;  %v2540_v51 = vsel %vm14293_vm14, %v2535_v30, %v2539_v1  ;;  %v2569_v30 = vshll.u32 %v2062_v34, 16 }
 0x41a   :  { %v3619_v5 = vpop.f32.mrf.mxu2  ;;  %v2943_v50 = vunpack.c.l.b16 %v2540_v51  ;;  %v2116_v51 = vld [vmem:[#allocation2 + $0x148] sm:$0x1] }
 0x41b   :  { %v2571_v23 = vrot.slane %v2569_v30, 5 }
 0x41c   :  { %v14662_v19 = vpop.f32.mrf.mxu0 }
 0x41d   :  { %11053 = vmatmul.msk.bf16.gmra.mxu1 %vm395_vm1, %v2988_v60  ;;  %v2530_v60 = vsel %vm14293_vm14, %v2525_v8, %v2529_v20  ;;  %v2558_v20 = vor.u32 %v2557_v40, %v2553_v12  ;;  %v2566_v8 = vshrl.u32 %v2062_v34, 16 }
 0x41e   :  { %v2942_v26 = vunpack.c.l.b16 %v2530_v60 }
 0x420   :  { %v2990_v13 = vpack.c.b16 %v2943_v50, %v2942_v26  ;;  %v2577_v26 = vrot.slane %v2575_v31, 5 }
 0x422   :  { %v3621_v29 = vpop.f32.mrf.mxu2 }
 0x423   :  { %v4336_v25 = vpop.f32.mrf.mxu3 }
 0x424   :  { %11310 = vmatmul.msk.bf16.gmra.mxu3 %vm395_vm1, %v4155_v24 }
 0x426   :  { %v14669_v0 = vpop.f32.mrf.mxu0 }
 0x429   :  { %11217 = vmatmul.msk.bf16.gmra.mxu0 %vm395_vm1, %v11993_v7  ;;  %11231 = vmatmul.msk.bf16.gmra.mxu2 %vm395_vm1, %v12007_v43  ;;  %v2559_v43 = vrot.slane %v2558_v20, 4 }
 0x42a   :  { %v3170_v3 = vpop.f32.mrf.mxu1 }
 0x42b   :  { %v3620_v28 = vadd.f32 %v3619_v5, %v3170_v3  ;;  %v4338_v15 = vpop.f32.mrf.mxu3  ;;  %v3761_v5 = vld [vmem:[#allocation2 + $0x130] sm:$0xe]  ;;  %v2549_v3 = vrot.slane %v2548_v45, 4  ;;  %v2065_v45 = vld [vmem:[#allocation2 + $0x154] sm:$0xf] }
 0x42c   :  { %v3624_v46 = vpop.f32.mrf.mxu2  ;;  %v11264_v32 = vrot.slane %v3761_v5, 9 }
 0x42d   :  { %v14676_v2 = vadd.f32 %v4336_v25, %v3620_v28  ;;  %11054 = vmatmul.msk.bf16.gmra.mxu1 %vm395_vm1, %v2989_v61  ;;  %v2561_v25 = vshll.u32 %v2115_v41, 16  ;;  %v2554_v1 = vsel %vm14293_vm14, %v2549_v3, %v2553_v12  ;;  %v12009_v12 = vld [vmem:[#allocation2 + $0x140] sm:$0xff] }
 0x42e   :  { %v14680_v14 = vpop.f32.mrf.mxu0  ;;  %v3965_v54 = vsel %vm14386_vm3, %v11264_v32, %v3964_v52  ;;  %v2568_v52 = vrot.slane %v2566_v8, 4  ;;  %v12072_v32 = vld [vmem:[#allocation6 + $0x88] sm:$0xff]  ;;  %v2603_v8 = vshrl.u32 %v2065_v45, 16 }
 0x42f   :  { %v4110_v9 = vunpack.c.l.b16 %v3965_v54  ;;  %v2563_v61 = vrot.slane %v2561_v25, 5  ;;  %6206 = vmatpush.bf16.msrb.mxu2 %v12072_v32 }
 0x430   :  { %v2572_v10 = vor.u32 %v2571_v23, %v2568_v52  ;;  %v11996_v52 = vld [vmem:[#allocation2 + $0x50] sm:$0xff] }
 0x431   :  { %v4157_v28 = vpack.c.b16 %v4111_v33, %v4110_v9  ;;  %v2064_v33 = vld [vmem:[#allocation2 + $0x150] sm:$0xf] }
 0x432   :  { %v3172_v59 = vpop.f32.mrf.mxu1 }
 0x433   :  { %v3622_v35 = vadd.f32 %v3621_v29, %v3172_v59  ;;  %v2944_v59 = vunpack.c.l.b16 %v2554_v1  ;;  %v12068_v1 = vld [vmem:[#allocation6 + $0x68] sm:$0xff] }
 0x434   :  { %11311 = vmatmul.msk.bf16.gmra.mxu3 %vm395_vm1, %v4156_v36  ;;  %v3626_v24 = vpop.f32.mrf.mxu2  ;;  %4884 = vmatpush.bf16.msrb.mxu1 %v12068_v1 }
 0x435   :  { %v14686_v62 = vadd.f32 %v4338_v15, %v3622_v35  ;;  %v2564_v15 = vsel %vm14293_vm14, %v2559_v43, %v2563_v61  ;;  %v3762_v35 = vld [vmem:[#allocation2 + $0x140] sm:$0xe]  ;;  %v3978_v43 = vrot.slane %v2065_v45, 5  ;;  %v3763_v61 = vld [vmem:[#allocation2 + $0x150] sm:$0xe] }
 0x436   :  { %v14689_v16 = vpop.f32.mrf.mxu0  ;;  %v2945_v60 = vunpack.c.l.b16 %v2564_v15  ;;  %v11265_v22 = vrot.slane %v3762_v35, 9  ;;  %v2117_v15 = vld [vmem:[#allocation2 + $0x158] sm:$0x1] }
 0x437   :  { %v4341_v63 = vpop.f32.mrf.mxu3 }
 0x438   :  { %v2991_v11 = vpack.c.b16 %v2945_v60, %v2944_v59  ;;  %v3972_v44 = vsel %vm14386_vm3, %v11265_v22, %v3971_v39  ;;  %v2599_v39 = vshll.u32 %v2065_v45, 16  ;;  %v11266_v60 = vrot.slane %v3763_v61, 9 }
 0x439   :  { %11218 = vmatmul.msk.bf16.gmra.mxu0 %vm395_vm1, %v11994_v58  ;;  %11232 = vmatmul.msk.bf16.gmra.mxu2 %vm395_vm1, %v12008_v17  ;;  %v2573_v17 = vrot.slane %v2572_v10, 4 }
 0x43a   :  { %v3175_v56 = vpop.f32.mrf.mxu1 }
 0x43b   :  { %v3625_v21 = vadd.f32 %v3624_v46, %v3175_v56  ;;  %v2579_v46 = vshrl.u32 %v2063_v6, 16  ;;  %v2585_v56 = vshll.u32 %v2116_v51, 16 }
 0x43c   :  { %v3629_v37 = vpop.f32.mrf.mxu2 }
 0x43d   :  { %v14694_v53 = vadd.f32 %v4341_v63, %v3625_v21  ;;  %11055 = vmatmul.msk.bf16.gmra.mxu1 %vm395_vm1, %v2990_v13  ;;  %v2581_v50 = vrot.slane %v2579_v46, 4  ;;  %v3974_v63 = vrot.slane %v2116_v51, 5  ;;  %v2587_v3 = vrot.slane %v2585_v56, 5 }
 0x43e   :  { %v14700_v7 = vpop.f32.mrf.mxu0  ;;  %v3980_v51 = vrot.slane %v3978_v43, 4 }
 0x43f   :  { %v4343_v29 = vpop.f32.mrf.mxu3  ;;  %v3975_v40 = vsel %vm14386_vm3, %v3973_v38, %v3974_v63  ;;  %v2582_v13 = vor.u32 %v2581_v50, %v2577_v26  ;;  %v2605_v38 = vrot.slane %v2603_v8, 4  ;;  %v12153_v63 = vld [vmem:[#allocation2 + $0x8] sm:$0x1] }
 0x440   :  { %v4113_v48 = vunpack.c.l.b16 %v3975_v40  ;;  %v12010_v40 = vld [vmem:[#allocation2 + $0x150] sm:$0xff] }
 0x441   :  { %v2583_v54 = vrot.slane %v2582_v13, 4  ;;  %v3979_v13 = vsel %vm14386_vm3, %v11266_v60, %v3978_v43 }
 0x442   :  { %v3177_v27 = vpop.f32.mrf.mxu1 }
 0x443   :  { %v3627_v55 = vadd.f32 %v3626_v24, %v3177_v27  ;;  %v2590_v27 = vshrl.u32 %v2064_v33, 16 }
 0x444   :  { %11312 = vmatmul.msk.bf16.gmra.mxu3 %vm395_vm1, %v4157_v28  ;;  %v3631_v41 = vpop.f32.mrf.mxu2  ;;  %v2588_v28 = vsel %vm14293_vm14, %v2583_v54, %v2587_v3 }
 0x445   :  { %v14706_v36 = vadd.f32 %v4343_v29, %v3627_v55  ;;  %v4112_v29 = vunpack.c.l.b16 %v3972_v44  ;;  %v2593_v55 = vshll.u32 %v2064_v33, 16  ;;  %v2947_v59 = vunpack.c.l.b16 %v2588_v28 }
 0x446   :  { %v14709_v57 = vpop.f32.mrf.mxu0  ;;  %v2592_v23 = vrot.slane %v2590_v27, 4 }
 0x447   :  { %v4346_v4 = vpop.f32.mrf.mxu3  ;;  %v4158_v34 = vpack.c.b16 %v4113_v48, %v4112_v29  ;;  %v3744_v48 = vld [vmem:[#allocation2] sm:$0xe]  ;;  %v2067_v29 = vld [vmem:[#allocation2 + $0x164] sm:$0xf] }
 0x448   :  { %v11247_v54 = vrot.slane %v3744_v48, 9  ;;  %v3985_v1 = vrot.slane %v2067_v29, 5 }
 0x449   :  { %11219 = vmatmul.msk.bf16.gmra.mxu0 %vm395_vm1, %v11995_v42  ;;  %11233 = vmatmul.msk.bf16.gmra.mxu2 %vm395_vm1, %v12009_v12  ;;  %v2601_v42 = vrot.slane %v2599_v39, 5 }
 0x44a   :  { %v3180_v5 = vpop.f32.mrf.mxu1 }
 0x44b   :  { %v3630_v58 = vadd.f32 %v3629_v37, %v3180_v5  ;;  %v2578_v37 = vsel %vm14293_vm14, %v2573_v17, %v2577_v26  ;;  %v12152_v26 = vld [vmem:[#allocation2 + $0x4] sm:$0xf]  ;;  %v3981_v5 = vrot.slane %v2117_v15, 5  ;;  %v2606_v44 = vor.u32 %v2605_v38, %v2601_v42 }
 0x44c   :  { %v3634_v25 = vpop.f32.mrf.mxu2  ;;  %v2946_v46 = vunpack.c.l.b16 %v2578_v37  ;;  %v3845_v50 = vrot.slane %v12152_v26, 5 }
 0x44d   :  { %v14714_v24 = vadd.f32 %v4346_v4, %v3630_v58  ;;  %11056 = vmatmul.msk.bf16.gmra.mxu1 %vm395_vm1, %v2991_v11  ;;  %v2595_v4 = vrot.slane %v2593_v55, 5  ;;  %v3848_v58 = vrot.slane %v12153_v63, 5  ;;  %v3982_v12 = vsel %vm14386_vm3, %v3980_v51, %v3981_v5  ;;  %v3764_v5 = vld [vmem:[#allocation2 + $0x160] sm:$0xe] }
 0x44e   :  { %v14720_v21 = vpop.f32.mrf.mxu0  ;;  %v2992_v10 = vpack.c.b16 %v2947_v59, %v2946_v46  ;;  %v3847_v17 = vrot.slane %v3845_v50, 4  ;;  %v4115_v45 = vunpack.c.l.b16 %v3982_v12  ;;  %v3846_v37 = vsel %vm14386_vm3, %v11247_v54, %v3845_v50 }
 0x44f   :  { %v4348_v20 = vpop.f32.mrf.mxu3  ;;  %v2596_v32 = vor.u32 %v2595_v4, %v2592_v23  ;;  %v4076_v61 = vunpack.c.l.b16 %v3846_v37  ;;  %v2627_v23 = vshrl.u32 %v2067_v29, 16 }
 0x451   :  { %v2597_v43 = vrot.slane %v2596_v32, 4  ;;  %v2629_v12 = vrot.slane %v2627_v23, 4  ;;  %v11267_v32 = vrot.slane %v3764_v5, 9  ;;  %v2119_v5 = vld [vmem:[#allocation2 + $0x178] sm:$0x1] }
 0x452   :  { %v3182_v9 = vpop.f32.mrf.mxu1 }
 0x453   :  { %v3632_v6 = vadd.f32 %v3631_v41, %v3182_v9  ;;  %v3849_v9 = vsel %vm14386_vm3, %v3847_v17, %v3848_v58  ;;  %v2602_v51 = vsel %vm14293_vm14, %v2597_v43, %v2601_v42  ;;  %v11997_v58 = vld [vmem:[#allocation2 + $0x60] sm:$0xff] }
 0x454   :  { %11313 = vmatmul.msk.bf16.gmra.mxu3 %vm395_vm1, %v4158_v34  ;;  %v3636_v41 = vpop.f32.mrf.mxu2  ;;  %v2066_v34 = vld [vmem:[#allocation2 + $0x160] sm:$0xf]  ;;  %v4077_v27 = vunpack.c.l.b16 %v3849_v9  ;;  %v2948_v26 = vunpack.c.l.b16 %v2602_v51  ;;  %v3986_v9 = vsel %vm14386_vm3, %v11267_v32, %v3985_v1 }
 0x455   :  { %v14726_v30 = vadd.f32 %v4348_v20, %v3632_v6  ;;  %v2609_v20 = vshll.u32 %v2117_v15, 16  ;;  %v2607_v6 = vrot.slane %v2606_v44, 4  ;;  %v2614_v46 = vshrl.u32 %v2066_v34, 16 }
 0x456   :  { %v14729_v31 = vpop.f32.mrf.mxu0  ;;  %v2617_v59 = vshll.u32 %v2066_v34, 16  ;;  %v14746_v60 = vpack.c.b16 %v4077_v27, %v4076_v61  ;;  %v2069_v34 = vld [vmem:[#allocation2 + $0x174] sm:$0xf]  ;;  %v2068_v61 = vld [vmem:[#allocation2 + $0x170] sm:$0xf] }
 0x457   :  { %17619 = vst [vmem:[#allocation39_spill] sm:$0xff] %v14726_v30  ;;  %v4351_v35 = vpop.f32.mrf.mxu3  ;;  %v2611_v8 = vrot.slane %v2609_v20, 5 }
 0x458   :  { %v2619_v42 = vrot.slane %v2617_v59, 5 }
 0x459   :  { %11220 = vmatmul.msk.bf16.gmra.mxu0 %vm395_vm1, %v11996_v52  ;;  %11234 = vmatmul.msk.bf16.gmra.mxu2 %vm395_vm1, %v12010_v40  ;;  %v2623_v52 = vshll.u32 %v2067_v29, 16 }
 0x45a   :  { %v3185_v22 = vpop.f32.mrf.mxu1 }
 0x45b   :  { %v3635_v11 = vadd.f32 %v3634_v25, %v3185_v22  ;;  %v4114_v25 = vunpack.c.l.b16 %v3979_v13  ;;  %v3987_v22 = vrot.slane %v3985_v1, 4 }
 0x45c   :  { %v3639_v28 = vpop.f32.mrf.mxu2 }
 0x45d   :  { %v14736_v56 = vadd.f32 %v4351_v35, %v3635_v11  ;;  %11057 = vmatmul.msk.bf16.gmra.mxu1 %vm395_vm1, %v2992_v10  ;;  %v4159_v39 = vpack.c.b16 %v4115_v45, %v4114_v25  ;;  %v2612_v35 = vsel %vm14293_vm14, %v2607_v6, %v2611_v8  ;;  %v2616_v11 = vrot.slane %v2614_v46, 4  ;;  %v12011_v45 = vld [vmem:[#allocation2 + $0x160] sm:$0xff] }
 0x45e   :  { %v14740_v33 = vpop.f32.mrf.mxu0  ;;  %v2949_v50 = vunpack.c.l.b16 %v2612_v35  ;;  %v2625_v10 = vrot.slane %v2623_v52, 5  ;;  %v3992_v46 = vrot.slane %v2069_v34, 5  ;;  %v2638_v35 = vshrl.u32 %v2068_v61, 16 }
 0x45f   :  { %17620 = vst [vmem:[#allocation40_spill] sm:$0xff] %v14736_v56  ;;  %v4353_v3 = vpop.f32.mrf.mxu3  ;;  %v2620_v54 = vor.u32 %v2619_v42, %v2616_v11  ;;  %v2641_v52 = vshll.u32 %v2068_v61, 16 }
 0x460   :  { %v2993_v17 = vpack.c.b16 %v2949_v50, %v2948_v26  ;;  %v2630_v25 = vor.u32 %v2629_v12, %v2625_v10  ;;  %v2647_v26 = vshll.u32 %v2069_v34, 16  ;;  %v2651_v50 = vshrl.u32 %v2069_v34, 16  ;;  %v12012_v34 = vld [vmem:[#allocation2 + $0x170] sm:$0xff] }
 0x461   :  { %v2621_v27 = vrot.slane %v2620_v54, 4  ;;  %v2640_v12 = vrot.slane %v2638_v35, 4 }
 0x462   :  { %v3187_v55 = vpop.f32.mrf.mxu1  ;;  %v2653_v32 = vrot.slane %v2651_v50, 4  ;;  %v2071_v50 = vld [vmem:[#allocation2 + $0x184] sm:$0xf] }
 0x463   :  { %v3637_v15 = vadd.f32 %v3636_v41, %v3187_v55  ;;  %v2118_v41 = vld [vmem:[#allocation2 + $0x168] sm:$0x1]  ;;  %v2626_v1 = vsel %vm14293_vm14, %v2621_v27, %v2625_v10  ;;  %v2649_v10 = vrot.slane %v2647_v26, 5  ;;  %v3745_v27 = vld [vmem:[#allocation2 + $0x10] sm:$0xe] }
 0x464   :  { %11314 = vmatmul.msk.bf16.gmra.mxu3 %vm395_vm1, %v4159_v39  ;;  %v3641_v40 = vpop.f32.mrf.mxu2  ;;  %v3988_v44 = vrot.slane %v2118_v41, 5  ;;  %v4116_v39 = vunpack.c.l.b16 %v3986_v9  ;;  %v2950_v11 = vunpack.c.l.b16 %v2626_v1 }
 0x465   :  { %v14752_v4 = vadd.f32 %v4353_v3, %v3637_v15  ;;  %v2633_v3 = vshll.u32 %v2118_v41, 16 }
 0x466   :  { %v14755_v38 = vpop.f32.mrf.mxu0  ;;  %v3989_v20 = vsel %vm14386_vm3, %v3987_v22, %v3988_v44  ;;  %v3765_v22 = vld [vmem:[#allocation2 + $0x170] sm:$0xe] }
 0x467   :  { %17621 = vst [vmem:[#allocation20_spill] sm:$0xff] %v14752_v4  ;;  %v4356_v63 = vpop.f32.mrf.mxu3  ;;  %v4117_v6 = vunpack.c.l.b16 %v3989_v20  ;;  %v2635_v15 = vrot.slane %v2633_v3, 5 }
 0x469   :  { %11221 = vmatmul.msk.bf16.gmra.mxu0 %vm395_vm1, %v11997_v58  ;;  %11235 = vmatmul.msk.bf16.gmra.mxu2 %vm395_vm1, %v12011_v45  ;;  %v4160_v51 = vpack.c.b16 %v4117_v6, %v4116_v39  ;;  %v12154_v45 = vld [vmem:[#allocation2 + $0x14] sm:$0xf] }
 0x46a   :  { %v3190_v13 = vpop.f32.mrf.mxu1  ;;  %v3852_v20 = vrot.slane %v12154_v45, 5 }
 0x46b   :  { %v3640_v48 = vadd.f32 %v3639_v28, %v3190_v13  ;;  %v2631_v28 = vrot.slane %v2630_v25, 4 }
 0x46c   :  { %v3644_v55 = vpop.f32.mrf.mxu2  ;;  %v3854_v39 = vrot.slane %v3852_v20, 4 }
 0x46d   :  { %v14760_v29 = vadd.f32 %v4356_v63, %v3640_v48  ;;  %11058 = vmatmul.msk.bf16.gmra.mxu1 %vm395_vm1, %v2993_v17  ;;  %v2636_v23 = vsel %vm14293_vm14, %v2631_v28, %v2635_v15  ;;  %v3994_v63 = vrot.slane %v3992_v46, 4  ;;  %v11268_v48 = vrot.slane %v3765_v22, 9 }
 0x46e   :  { %v14766_v43 = vpop.f32.mrf.mxu0  ;;  %v2951_v42 = vunpack.c.l.b16 %v2636_v23  ;;  %v3995_v17 = vrot.slane %v2119_v5, 5 }
 0x46f   :  { %17622 = vst [vmem:[#allocation36_spill] sm:$0xff] %v14760_v29  ;;  %v4358_v37 = vpop.f32.mrf.mxu3  ;;  %v3993_v61 = vsel %vm14386_vm3, %v11268_v48, %v3992_v46  ;;  %v3999_v48 = vrot.slane %v2071_v50, 5 }
 0x470   :  { %v2994_v9 = vpack.c.b16 %v2951_v42, %v2950_v11  ;;  %v3996_v3 = vsel %vm14386_vm3, %v3994_v63, %v3995_v17  ;;  %v4118_v23 = vunpack.c.l.b16 %v3993_v61 }
 0x471   :  { %v4001_v61 = vrot.slane %v3999_v48, 4 }
 0x472   :  { %v3192_v8 = vpop.f32.mrf.mxu1 }
 0x473   :  { %v3642_v59 = vadd.f32 %v3641_v40, %v3192_v8  ;;  %v2643_v40 = vrot.slane %v2641_v52, 5  ;;  %v2070_v52 = vld [vmem:[#allocation2 + $0x180] sm:$0xf] }
 0x474   :  { %11315 = vmatmul.msk.bf16.gmra.mxu3 %vm395_vm1, %v4160_v51  ;;  %v3646_v44 = vpop.f32.mrf.mxu2  ;;  %v12155_v51 = vld [vmem:[#allocation2 + $0x18] sm:$0x1] }
 0x475   :  { %v14772_v41 = vadd.f32 %v4358_v37, %v3642_v59  ;;  %v2644_v6 = vor.u32 %v2643_v40, %v2640_v12  ;;  %v2654_v37 = vor.u32 %v2653_v32, %v2649_v10  ;;  %v11248_v59 = vrot.slane %v3745_v27, 9 }
 0x476   :  { %v14775_v58 = vpop.f32.mrf.mxu0  ;;  %v3855_v35 = vrot.slane %v12155_v51, 5  ;;  %v2662_v12 = vshrl.u32 %v2070_v52, 16 }
 0x477   :  { %17623 = vst [vmem:[#allocation27_spill] sm:$0xff] %v14772_v41  ;;  %v4361_v13 = vpop.f32.mrf.mxu3  ;;  %v2645_v15 = vrot.slane %v2644_v6, 4  ;;  %v2655_v26 = vrot.slane %v2654_v37, 4  ;;  %v3853_v32 = vsel %vm14386_vm3, %v11248_v59, %v3852_v20  ;;  %v2120_v6 = vld [vmem:[#allocation2 + $0x188] sm:$0x1]  ;;  %v12017_v41 = vld [vmem:[#allocation2 + $0x1c0] sm:$0xff] }
 0x478   :  { %v3856_v46 = vsel %vm14386_vm3, %v3854_v39, %v3855_v35  ;;  %v4002_v35 = vrot.slane %v2120_v6, 5 }
 0x479   :  { %11295 = vmatmul.msk.bf16.vlgmr.msrb.gmra.mxu0 %vm395_vm1, %v14746_v60  ;;  %11236 = vmatmul.msk.bf16.gmra.mxu2 %vm395_vm1, %v12012_v34  ;;  %v4119_v60 = vunpack.c.l.b16 %v3996_v3  ;;  %v4079_v45 = vunpack.c.l.b16 %v3856_v46  ;;  %v4078_v3 = vunpack.c.l.b16 %v3853_v32  ;;  %v2664_v34 = vrot.slane %v2662_v12, 4 }
 0x47a   :  { %v3195_v54 = vpop.f32.mrf.mxu1 }
 0x47b   :  { %v3645_v25 = vadd.f32 %v3644_v55, %v3195_v54  ;;  %v2657_v55 = vshll.u32 %v2119_v5, 16  ;;  %v4161_v11 = vpack.c.b16 %v4119_v60, %v4118_v23  ;;  %v2665_v5 = vshll.u32 %v2070_v52, 16  ;;  %v12156_v52 = vld [vmem:[#allocation2 + $0x24] sm:$0xf] }
 0x47c   :  { %v3649_v22 = vpop.f32.mrf.mxu2  ;;  %v2671_v54 = vshll.u32 %v2071_v50, 16  ;;  %v4141_v60 = vpack.c.b16 %v4079_v45, %v4078_v3 }
 0x47d   :  { %v14781_v28 = vadd.f32 %v4361_v13, %v3645_v25  ;;  %11059 = vmatmul.msk.bf16.gmra.mxu1 %vm395_vm1, %v2994_v9  ;;  %v2659_v42 = vrot.slane %v2657_v55, 5  ;;  %v2650_v13 = vsel %vm14293_vm14, %v2645_v15, %v2649_v10  ;;  %v2675_v25 = vshrl.u32 %v2071_v50, 16 }
 0x47e   :  { %v14787_v8 = vpop.f32.mrf.mxu0  ;;  %v2667_v37 = vrot.slane %v2665_v5, 5  ;;  %v2952_v27 = vunpack.c.l.b16 %v2650_v13  ;;  %v2673_v55 = vrot.slane %v2671_v54, 5 }
 0x47f   :  { %17624 = vst [vmem:[#allocation28_spill] sm:$0xff] %v14781_v28  ;;  %v4363_v1 = vpop.f32.mrf.mxu3  ;;  %v2660_v17 = vsel %vm14293_vm14, %v2655_v26, %v2659_v42  ;;  %v2677_v15 = vrot.slane %v2675_v25, 4  ;;  %v12013_v42 = vld [vmem:[#allocation2 + $0x180] sm:$0xff]  ;;  %v12157_v25 = vld [vmem:[#allocation2 + $0x28] sm:$0x1] }
 0x480   :  { %v2953_v20 = vunpack.c.l.b16 %v2660_v17  ;;  %v2668_v26 = vor.u32 %v2667_v37, %v2664_v34  ;;  %v3862_v3 = vrot.slane %v12157_v25, 5 }
 0x481   :  { %v2678_v12 = vor.u32 %v2677_v15, %v2673_v55 }
 0x482   :  { %v3197_v63 = vpop.f32.mrf.mxu1  ;;  %v2995_v46 = vpack.c.b16 %v2953_v20, %v2952_v27  ;;  %v2669_v17 = vrot.slane %v2668_v26, 4  ;;  %v2073_v27 = vld [vmem:[#allocation2 + $0x194] sm:$0xf]  ;;  %v2072_v20 = vld [vmem:[#allocation2 + $0x190] sm:$0xf] }
 0x483   :  { %v3647_v40 = vadd.f32 %v3646_v44, %v3197_v63  ;;  %v3766_v44 = vld [vmem:[#allocation2 + $0x180] sm:$0xe]  ;;  %v4003_v63 = vsel %vm14386_vm3, %v4001_v61, %v4002_v35  ;;  %v2679_v37 = vrot.slane %v2678_v12, 4  ;;  %v2689_v26 = vshll.u32 %v2072_v20, 16 }
 0x484   :  { %11316 = vmatmul.msk.bf16.gmra.mxu3 %vm395_vm1, %v4161_v11  ;;  %v3651_v59 = vpop.f32.mrf.mxu2  ;;  %v11269_v51 = vrot.slane %v3766_v44, 9  ;;  %v3746_v11 = vld [vmem:[#allocation2 + $0x20] sm:$0xe]  ;;  %v4121_v32 = vunpack.c.l.b16 %v4003_v63  ;;  %v2674_v15 = vsel %vm14293_vm14, %v2669_v17, %v2673_v55  ;;  %v2695_v63 = vshll.u32 %v2073_v27, 16 }
 0x485   :  { %v14797_v9 = vadd.f32 %v4363_v1, %v3647_v40  ;;  %v3859_v1 = vrot.slane %v12156_v52, 5  ;;  %v11249_v45 = vrot.slane %v3746_v11, 9  ;;  %v4006_v52 = vrot.slane %v2073_v27, 5 }
 0x486   :  { %v14800_v10 = vpop.f32.mrf.mxu0  ;;  %v4000_v40 = vsel %vm14386_vm3, %v11269_v51, %v3999_v48  ;;  %v2699_v11 = vshrl.u32 %v2073_v27, 16  ;;  %v2954_v12 = vunpack.c.l.b16 %v2674_v15 }
 0x487   :  { %17625 = vst [vmem:[#allocation26_spill] sm:$0xff] %v14797_v9  ;;  %v4366_v39 = vpop.f32.mrf.mxu3  ;;  %v3861_v13 = vrot.slane %v3859_v1, 4  ;;  %v4120_v34 = vunpack.c.l.b16 %v4000_v40  ;;  %v3860_v51 = vsel %vm14386_vm3, %v11249_v45, %v3859_v1  ;;  %v2121_v40 = vld [vmem:[#allocation2 + $0x198] sm:$0x1]  ;;  %v4008_v1 = vrot.slane %v4006_v52, 4 }
 0x488   :  { %v4080_v55 = vunpack.c.l.b16 %v3860_v51 }
 0x489   :  { %11296 = vmatmul.msk.bf16.gmra.mxu0 %vm395_vm1, %v4141_v60  ;;  %11237 = vmatmul.msk.bf16.gmra.mxu2 %vm395_vm1, %v12013_v42  ;;  %v3863_v48 = vsel %vm14386_vm3, %v3861_v13, %v3862_v3  ;;  %v4162_v60 = vpack.c.b16 %v4121_v32, %v4120_v34  ;;  %v3767_v13 = vld [vmem:[#allocation2 + $0x190] sm:$0xe]  ;;  %v2697_v3 = vrot.slane %v2695_v63, 5  ;;  %v2701_v34 = vrot.slane %v2699_v11, 4 }
 0x48a   :  { %v3200_v23 = vpop.f32.mrf.mxu1 }
 0x48b   :  { %v3650_v50 = vadd.f32 %v3649_v22, %v3200_v23  ;;  %v2681_v22 = vshll.u32 %v2120_v6, 16  ;;  %v2686_v23 = vshrl.u32 %v2072_v20, 16  ;;  %v11270_v20 = vrot.slane %v3767_v13, 9 }
 0x48c   :  { %v3654_v61 = vpop.f32.mrf.mxu2 }
 0x48d   :  { %v14805_v5 = vadd.f32 %v4366_v39, %v3650_v50  ;;  %11060 = vmatmul.msk.bf16.gmra.mxu1 %vm395_vm1, %v2995_v46  ;;  %v2683_v6 = vrot.slane %v2681_v22, 5  ;;  %v4081_v46 = vunpack.c.l.b16 %v3863_v48  ;;  %v2688_v17 = vrot.slane %v2686_v23, 4  ;;  %v12014_v23 = vld [vmem:[#allocation2 + $0x190] sm:$0xff] }
 0x48e   :  { %v14811_v54 = vpop.f32.mrf.mxu0  ;;  %v2691_v22 = vrot.slane %v2689_v26, 5  ;;  %v4009_v48 = vrot.slane %v2121_v40, 5  ;;  %v2702_v26 = vor.u32 %v2701_v34, %v2697_v3  ;;  %v4007_v63 = vsel %vm14386_vm3, %v11270_v20, %v4006_v52 }
 0x48f   :  { %17626 = vst [vmem:[#allocation41_spill] sm:$0xff] %v14805_v5  ;;  %v4368_v44 = vpop.f32.mrf.mxu3  ;;  %v2684_v50 = vsel %vm14293_vm14, %v2679_v37, %v2683_v6  ;;  %v4142_v25 = vpack.c.b16 %v4081_v46, %v4080_v55  ;;  %v12158_v37 = vld [vmem:[#allocation2 + $0x34] sm:$0xf]  ;;  %v12159_v55 = vld [vmem:[#allocation2 + $0x38] sm:$0x1] }
 0x490   :  { %v3866_v27 = vrot.slane %v12158_v37, 5  ;;  %v4010_v6 = vsel %vm14386_vm3, %v4008_v1, %v4009_v48  ;;  %v2692_v51 = vor.u32 %v2691_v22, %v2688_v17  ;;  %v3869_v13 = vrot.slane %v12159_v55, 5  ;;  %v2075_v17 = vld [vmem:[#allocation2 + $0x1a4] sm:$0xf]  ;;  %v2074_v37 = vld [vmem:[#allocation2 + $0x1a0] sm:$0xf] }
 0x491   :  { %v4123_v11 = vunpack.c.l.b16 %v4010_v6  ;;  %v2719_v55 = vshll.u32 %v2075_v17, 16 }
 0x492   :  { %v3202_v39 = vpop.f32.mrf.mxu1  ;;  %v2693_v1 = vrot.slane %v2692_v51, 4 }
 0x493   :  { %v3652_v35 = vadd.f32 %v3651_v59, %v3202_v39  ;;  %v2955_v59 = vunpack.c.l.b16 %v2684_v50  ;;  %v3868_v50 = vrot.slane %v3866_v27, 4 }
 0x494   :  { %11317 = vmatmul.msk.bf16.gmra.mxu3 %vm395_vm1, %v4162_v60  ;;  %v2698_v6 = vsel %vm14293_vm14, %v2693_v1, %v2697_v3 }
 0x495   :  { %v14821_v42 = vadd.f32 %v4368_v44, %v3652_v35  ;;  %v3656_v44 = vpop.f32.mrf.mxu2  ;;  %v2996_v15 = vpack.c.b16 %v2955_v59, %v2954_v12  ;;  %v3747_v35 = vld [vmem:[#allocation2 + $0x30] sm:$0xe]  ;;  %v3870_v34 = vsel %vm14386_vm3, %v3868_v50, %v3869_v13  ;;  %v2122_v50 = vld [vmem:[#allocation2 + $0x1a8] sm:$0x1]  ;;  %v2723_v13 = vshrl.u32 %v2075_v17, 16 }
 0x496   :  { %v14824_v32 = vpop.f32.mrf.mxu0  ;;  %v11250_v12 = vrot.slane %v3747_v35, 9  ;;  %v4083_v51 = vunpack.c.l.b16 %v3870_v34  ;;  %v3768_v35 = vld [vmem:[#allocation2 + $0x1a0] sm:$0xe]  ;;  %v2956_v3 = vunpack.c.l.b16 %v2698_v6  ;;  %v4016_v34 = vrot.slane %v2122_v50, 5 }
 0x497   :  { %17627 = vst [vmem:[#allocation29_spill] sm:$0xff] %v14821_v42  ;;  %v4371_v45 = vpop.f32.mrf.mxu3  ;;  %v12015_v6 = vld [vmem:[#allocation2 + $0x1a0] sm:$0xff] }
 0x499   :  { %11297 = vmatmul.msk.bf16.gmra.mxu0 %vm395_vm1, %v4142_v25  ;;  %11238 = vmatmul.msk.bf16.gmra.mxu2 %vm395_vm1, %v12014_v23  ;;  %v4122_v25 = vunpack.c.l.b16 %v4007_v63  ;;  %v2710_v23 = vshrl.u32 %v2074_v37, 16  ;;  %v2713_v63 = vshll.u32 %v2074_v37, 16  ;;  %v2725_v37 = vrot.slane %v2723_v13, 4 }
 0x49a   :  { %v3205_v39 = vpop.f32.mrf.mxu1 }
 0x49b   :  { %v3655_v60 = vadd.f32 %v3654_v61, %v3205_v39  ;;  %v2705_v61 = vshll.u32 %v2121_v40, 16  ;;  %v4163_v20 = vpack.c.b16 %v4123_v11, %v4122_v25  ;;  %v3867_v40 = vsel %vm14386_vm3, %v11250_v12, %v3866_v27 }
 0x49c   :  { %v4082_v27 = vunpack.c.l.b16 %v3867_v40 }
 0x49d   :  { %v14829_v46 = vadd.f32 %v4371_v45, %v3655_v60  ;;  %11061 = vmatmul.msk.bf16.gmra.mxu1 %vm395_vm1, %v2996_v15  ;;  %v2703_v45 = vrot.slane %v2702_v26, 4  ;;  %v3659_v48 = vpop.f32.mrf.mxu2  ;;  %v2707_v39 = vrot.slane %v2705_v61, 5  ;;  %v4013_v60 = vrot.slane %v2075_v17, 5  ;;  %v12160_v17 = vld [vmem:[#allocation2 + $0x44] sm:$0xf] }
 0x49e   :  { %v14835_v59 = vpop.f32.mrf.mxu0  ;;  %v11271_v61 = vrot.slane %v3768_v35, 9  ;;  %v4143_v25 = vpack.c.b16 %v4083_v51, %v4082_v27 }
 0x49f   :  { %17628 = vst [vmem:[#allocation12_spill] sm:$0xff] %v14829_v46  ;;  %v4373_v22 = vpop.f32.mrf.mxu3  ;;  %v2708_v26 = vsel %vm14293_vm14, %v2703_v45, %v2707_v39  ;;  %v2712_v46 = vrot.slane %v2710_v23, 4  ;;  %v2715_v45 = vrot.slane %v2713_v63, 5  ;;  %v2721_v39 = vrot.slane %v2719_v55, 5  ;;  %v3748_v63 = vld [vmem:[#allocation2 + $0x40] sm:$0xe] }
 0x4a0   :  { %v2957_v1 = vunpack.c.l.b16 %v2708_v26  ;;  %v4014_v51 = vsel %vm14386_vm3, %v11271_v61, %v4013_v60 }
 0x4a1   :  { %v2716_v26 = vor.u32 %v2715_v45, %v2712_v46  ;;  %v2726_v23 = vor.u32 %v2725_v37, %v2721_v39 }
 0x4a2   :  { %v3207_v52 = vpop.f32.mrf.mxu1  ;;  %v2997_v35 = vpack.c.b16 %v2957_v1, %v2956_v3  ;;  %v12161_v3 = vld [vmem:[#allocation2 + $0x48] sm:$0x1] }
 0x4a3   :  { %v3657_v15 = vadd.f32 %v3656_v44, %v3207_v52  ;;  %v4015_v44 = vrot.slane %v4013_v60, 4  ;;  %v3876_v1 = vrot.slane %v12161_v3, 5  ;;  %v2076_v60 = vld [vmem:[#allocation2 + $0x1b0] sm:$0xf]  ;;  %v2717_v61 = vrot.slane %v2716_v26, 4 }
 0x4a4   :  { %11318 = vmatmul.msk.bf16.gmra.mxu3 %vm395_vm1, %v4163_v20  ;;  %v2727_v45 = vrot.slane %v2726_v23, 4 }
 0x4a5   :  { %v14845_v11 = vadd.f32 %v4373_v22, %v3657_v15  ;;  %v3661_v42 = vpop.f32.mrf.mxu2  ;;  %v3873_v22 = vrot.slane %v12160_v17, 5  ;;  %v4017_v20 = vsel %vm14386_vm3, %v4015_v44, %v4016_v34  ;;  %v11251_v44 = vrot.slane %v3748_v63, 9  ;;  %v2077_v34 = vld [vmem:[#allocation2 + $0x1b4] sm:$0xf] }
 0x4a6   :  { %v14848_v12 = vpop.f32.mrf.mxu0  ;;  %v4125_v13 = vunpack.c.l.b16 %v4017_v20  ;;  %v2743_v63 = vshll.u32 %v2077_v34, 16  ;;  %v2747_v3 = vshrl.u32 %v2077_v34, 16  ;;  %v2722_v26 = vsel %vm14293_vm14, %v2717_v61, %v2721_v39 }
 0x4a7   :  { %17629 = vst [vmem:[#allocation37_spill] sm:$0xff] %v14845_v11  ;;  %v4376_v52 = vpop.f32.mrf.mxu3  ;;  %v3875_v27 = vrot.slane %v3873_v22, 4  ;;  %v2958_v11 = vunpack.c.l.b16 %v2722_v26 }
 0x4a8   :  { %v2745_v61 = vrot.slane %v2743_v63, 5  ;;  %v2749_v5 = vrot.slane %v2747_v3, 4  ;;  %v3749_v3 = vld [vmem:[#allocation2 + $0x50] sm:$0xe] }
 0x4a9   :  { %11298 = vmatmul.msk.bf16.gmra.mxu0 %vm395_vm1, %v4143_v25  ;;  %11239 = vmatmul.msk.bf16.gmra.mxu2 %vm395_vm1, %v12015_v6  ;;  %v2729_v25 = vshll.u32 %v2122_v50, 16  ;;  %v2734_v50 = vshrl.u32 %v2076_v60, 16  ;;  %v2737_v6 = vshll.u32 %v2076_v60, 16 }
 0x4aa   :  { %v3210_v15 = vpop.f32.mrf.mxu1  ;;  %v2750_v63 = vor.u32 %v2749_v5, %v2745_v61 }
 0x4ab   :  { %v3660_v40 = vadd.f32 %v3659_v48, %v3210_v15  ;;  %v4124_v48 = vunpack.c.l.b16 %v4014_v51  ;;  %v3877_v15 = vsel %vm14386_vm3, %v3875_v27, %v3876_v1  ;;  %v3874_v51 = vsel %vm14386_vm3, %v11251_v44, %v3873_v22  ;;  %v12071_v1 = vld [vmem:[#allocation6 + $0x80] sm:$0xff] }
 0x4ac   :  { %v4084_v60 = vunpack.c.l.b16 %v3874_v51  ;;  %v2736_v22 = vrot.slane %v2734_v50, 4  ;;  %v2739_v44 = vrot.slane %v2737_v6, 5  ;;  %6207 = vmatpush.bf16.msrb.mxu2 %v12071_v1 }
 0x4ad   :  { %v14855_v55 = vadd.f32 %v4376_v52, %v3660_v40  ;;  %11062 = vmatmul.msk.bf16.gmra.mxu1 %vm395_vm1, %v2997_v35  ;;  %v3664_v52 = vpop.f32.mrf.mxu2  ;;  %v4164_v37 = vpack.c.b16 %v4125_v13, %v4124_v48  ;;  %v2731_v40 = vrot.slane %v2729_v25, 5  ;;  %v4020_v35 = vrot.slane %v2077_v34, 5  ;;  %v2123_v48 = vld [vmem:[#allocation2 + $0x1b8] sm:$0x1]  ;;  %v3769_v25 = vld [vmem:[#allocation2 + $0x1b0] sm:$0xe] }
 0x4ae   :  { %v14859_v17 = vpop.f32.mrf.mxu0  ;;  %v4085_v13 = vunpack.c.l.b16 %v3877_v15  ;;  %v4023_v15 = vrot.slane %v2123_v48, 5  ;;  %v2740_v6 = vor.u32 %v2739_v44, %v2736_v22  ;;  %v11252_v22 = vrot.slane %v3749_v3, 9  ;;  %v12163_v44 = vld [vmem:[#allocation2 + $0x58] sm:$0x1] }
 0x4af   :  { %17630 = vst [vmem:[#allocation31_spill] sm:$0xff] %v14855_v55  ;;  %v4378_v46 = vpop.f32.mrf.mxu3  ;;  %v2732_v23 = vsel %vm14293_vm14, %v2727_v45, %v2731_v40  ;;  %v12162_v40 = vld [vmem:[#allocation2 + $0x54] sm:$0xf] }
 0x4b0   :  { %v2959_v39 = vunpack.c.l.b16 %v2732_v23  ;;  %v12016_v23 = vld [vmem:[#allocation2 + $0x1b0] sm:$0xff] }
 0x4b2   :  { %v3212_v20 = vpop.f32.mrf.mxu1  ;;  %v2998_v26 = vpack.c.b16 %v2959_v39, %v2958_v11  ;;  %v2078_v39 = vld [vmem:[#allocation2 + $0x1c0] sm:$0xf] }
 0x4b3   :  { %v3662_v55 = vadd.f32 %v3661_v42, %v3212_v20  ;;  %v12067_v42 = vld [vmem:[#allocation6 + $0x60] sm:$0xff]  ;;  %v4022_v20 = vrot.slane %v4020_v35, 4  ;;  %v2761_v3 = vshll.u32 %v2078_v39, 16 }
 0x4b4   :  { %11319 = vmatmul.msk.bf16.gmra.mxu3 %vm395_vm1, %v4164_v37  ;;  %4885 = vmatpush.bf16.msrb.mxu1 %v12067_v42  ;;  %v2753_v42 = vshll.u32 %v2123_v48, 16 }
 0x4b5   :  { %v14869_v27 = vadd.f32 %v4378_v46, %v3662_v55  ;;  %v4144_v55 = vpack.c.b16 %v4085_v13, %v4084_v60  ;;  %v11272_v46 = vrot.slane %v3769_v25, 9  ;;  %v3666_v37 = vpop.f32.mrf.mxu2  ;;  %v4024_v50 = vsel %vm14386_vm3, %v4022_v20, %v4023_v15 }
 0x4b6   :  { %v14872_v34 = vpop.f32.mrf.mxu0  ;;  %v4127_v1 = vunpack.c.l.b16 %v4024_v50  ;;  %v2741_v20 = vrot.slane %v2740_v6, 4  ;;  %v2755_v48 = vrot.slane %v2753_v42, 5 }
 0x4b7   :  { %17631 = vst [vmem:[#allocation32_spill] sm:$0xff] %v14869_v27  ;;  %v4381_v45 = vpop.f32.mrf.mxu3  ;;  %v3880_v27 = vrot.slane %v12162_v40, 5  ;;  %v4021_v13 = vsel %vm14386_vm3, %v11272_v46, %v4020_v35  ;;  %v3883_v35 = vrot.slane %v12163_v44, 5 }
 0x4b8   :  { %v4126_v11 = vunpack.c.l.b16 %v4021_v13 }
 0x4b9   :  { %11299 = vmatmul.msk.bf16.gmra.mxu0 %vm395_vm1, %v4144_v55  ;;  %v3882_v60 = vrot.slane %v3880_v27, 4  ;;  %v12114_v55 = vld [vmem:[#allocation6 + $0xd8] sm:$0xff]  ;;  %11240 = vmatmul.msk.bf16.gmra.mxu2 %vm395_vm1, %v12016_v23 }
 0x4ba   :  { %v3215_v9 = vpop.f32.mrf.mxu1  ;;  %7601 = vmatpush.bf16.msra.mxu0 %v12114_v55  ;;  %v4165_v15 = vpack.c.b16 %v4127_v1, %v4126_v11 }
 0x4bb   :  { %v3665_v51 = vadd.f32 %v3664_v52, %v3215_v9  ;;  %v14883_v9 = vld [vmem:[#allocation2 + $0x1c4] sm:$0xf]  ;;  %v2751_v52 = vrot.slane %v2750_v63, 4  ;;  %v3884_v40 = vsel %vm14386_vm3, %v3882_v60, %v3883_v35  ;;  %v2758_v63 = vshrl.u32 %v2078_v39, 16  ;;  %v12113_v60 = vld [vmem:[#allocation6 + $0xd0] sm:$0xff] }
 0x4bc   :  { %v4027_v50 = vrot.slane %v14883_v9, 5  ;;  %v2767_v1 = vshll.u32 %v14883_v9, 16  ;;  %v2771_v42 = vshrl.u32 %v14883_v9, 16  ;;  %v4087_v55 = vunpack.c.l.b16 %v3884_v40 }
 0x4bd   :  { %v14879_v25 = vadd.f32 %v4381_v45, %v3665_v51  ;;  %11063 = vmatmul.msk.bf16.gmra.mxu1 %vm395_vm1, %v2998_v26  ;;  %v3669_v46 = vpop.f32.mrf.mxu2  ;;  %v2746_v51 = vsel %vm14293_vm14, %v2741_v20, %v2745_v61  ;;  %v3881_v26 = vsel %vm14386_vm3, %v11252_v22, %v3880_v27  ;;  %v2756_v13 = vsel %vm14293_vm14, %v2751_v52, %v2755_v48  ;;  %v2124_v61 = vld [vmem:[#allocation2 + $0x1c8] sm:$0x1] }
 0x4be   :  { %v14885_v5 = vpop.f32.mrf.mxu0  ;;  %7602 = vmatpush.bf16.msra.mxu0 %v12113_v60  ;;  %v12112_v20 = vld [vmem:[#allocation6 + $0xc8] sm:$0xff]  ;;  %v2960_v27 = vunpack.c.l.b16 %v2746_v51  ;;  %v2961_v22 = vunpack.c.l.b16 %v2756_v13  ;;  %v4086_v44 = vunpack.c.l.b16 %v3881_v26  ;;  %v4029_v35 = vrot.slane %v4027_v50, 4 }
 0x4bf   :  { %17632 = vst [vmem:[#allocation30_spill] sm:$0xff] %v14879_v25  ;;  %v4383_v45 = vpop.f32.mrf.mxu3  ;;  %v2760_v52 = vrot.slane %v2758_v63, 4  ;;  %v2763_v48 = vrot.slane %v2761_v3, 5  ;;  %v2773_v9 = vrot.slane %v2771_v42, 4  ;;  %v12111_v42 = vld [vmem:[#allocation6 + $0xc0] sm:$0xff] }
 0x4c0   :  { %v4145_v40 = vpack.c.b16 %v4087_v55, %v4086_v44  ;;  %v2999_v13 = vpack.c.b16 %v2961_v22, %v2960_v27  ;;  %v12165_v27 = vld [vmem:[#allocation2 + $0x68] sm:$0x1] }
 0x4c1   :  { %v2764_v63 = vor.u32 %v2763_v48, %v2760_v52  ;;  %v3890_v22 = vrot.slane %v12165_v27, 5 }
 0x4c2   :  { %v3217_v6 = vpop.f32.mrf.mxu1  ;;  %7603 = vmatpush.bf16.msra.mxu0 %v12112_v20 }
 0x4c3   :  { %v3667_v23 = vadd.f32 %v3666_v37, %v3217_v6  ;;  %v3770_v37 = vld [vmem:[#allocation2 + $0x1c0] sm:$0xe]  ;;  %v2769_v6 = vrot.slane %v2767_v1, 5  ;;  %v2765_v48 = vrot.slane %v2764_v63, 4 }
 0x4c4   :  { %11320 = vmatmul.msk.bf16.gmra.mxu3 %vm395_vm1, %v4165_v15  ;;  %v11273_v28 = vrot.slane %v3770_v37, 9  ;;  %v3750_v1 = vld [vmem:[#allocation2 + $0x60] sm:$0xe]  ;;  %v2777_v37 = vshll.u32 %v2124_v61, 16 }
 0x4c5   :  { %v14898_v11 = vadd.f32 %v4383_v45, %v3667_v23  ;;  %v4030_v45 = vrot.slane %v2124_v61, 5  ;;  %v12164_v23 = vld [vmem:[#allocation2 + $0x64] sm:$0xf]  ;;  %v3671_v15 = vpop.f32.mrf.mxu2  ;;  %v2774_v3 = vor.u32 %v2773_v9, %v2769_v6  ;;  %v2770_v63 = vsel %vm14293_vm14, %v2765_v48, %v2769_v6  ;;  %v3771_v6 = vld [vmem:[#allocation2 + $0x1d0] sm:$0xe] }
 0x4c6   :  { %v14901_v39 = vpop.f32.mrf.mxu0  ;;  %v4028_v20 = vsel %vm14386_vm3, %v11273_v28, %v4027_v50  ;;  %7604 = vmatpush.bf16.msra.mxu0 %v12111_v42  ;;  %v2779_v28 = vrot.slane %v2777_v37, 5  ;;  %v2080_v50 = vld [vmem:[#allocation2 + $0x1d0] sm:$0xf] }
 0x4c7   :  { %17633 = vst [vmem:[#allocation33_spill] sm:$0xff] %v14898_v11  ;;  %v4386_v25 = vpop.f32.mrf.mxu3  ;;  %v3887_v11 = vrot.slane %v12164_v23, 5  ;;  %v4031_v51 = vsel %vm14386_vm3, %v4029_v35, %v4030_v45  ;;  %v2775_v9 = vrot.slane %v2774_v3, 4  ;;  %v4128_v45 = vunpack.c.l.b16 %v4028_v20 }
 0x4c8   :  { %v4129_v35 = vunpack.c.l.b16 %v4031_v51  ;;  %v2782_v42 = vshrl.u32 %v2080_v50, 16  ;;  %v2785_v20 = vshll.u32 %v2080_v50, 16 }
 0x4c9   :  { %11300 = vmatmul.msk.bf16.gmra.mxu0 %vm395_vm1, %v4145_v40  ;;  %v3889_v55 = vrot.slane %v3887_v11, 4  ;;  %11241 = vmatmul.msk.bf16.gmra.mxu2 %vm395_vm1, %v12017_v41  ;;  %v2081_v40 = vld [vmem:[#allocation2 + $0x1d4] sm:$0xf]  ;;  %v2780_v3 = vsel %vm14293_vm14, %v2775_v9, %v2779_v28 }
 0x4ca   :  { %v3220_v60 = vpop.f32.mrf.mxu1  ;;  %v4034_v51 = vrot.slane %v2081_v40, 5  ;;  %v2795_v27 = vshrl.u32 %v2081_v40, 16  ;;  %v2784_v9 = vrot.slane %v2782_v42, 4 }
 0x4cb   :  { %v3670_v26 = vadd.f32 %v3669_v46, %v3220_v60  ;;  %v11253_v46 = vrot.slane %v3750_v1, 9  ;;  %v3891_v23 = vsel %vm14386_vm3, %v3889_v55, %v3890_v22  ;;  %v2791_v55 = vshll.u32 %v2081_v40, 16 }
 0x4cc   :  { %v4089_v1 = vunpack.c.l.b16 %v3891_v23  ;;  %v4036_v48 = vrot.slane %v4034_v51, 4  ;;  %v2787_v23 = vrot.slane %v2785_v20, 5  ;;  %v2797_v50 = vrot.slane %v2795_v27, 4  ;;  %v2083_v27 = vld [vmem:[#allocation2 + $0x1e4] sm:$0xf] }
 0x4cd   :  { %v14906_v44 = vadd.f32 %v4386_v25, %v3670_v26  ;;  %11064 = vmatmul.msk.bf16.gmra.mxu1 %vm395_vm1, %v2999_v13  ;;  %v3674_v60 = vpop.f32.mrf.mxu2  ;;  %v4166_v26 = vpack.c.b16 %v4129_v35, %v4128_v45  ;;  %v3888_v41 = vsel %vm14386_vm3, %v11253_v46, %v3887_v11  ;;  %v2962_v11 = vunpack.c.l.b16 %v2770_v63  ;;  %v2125_v45 = vld [vmem:[#allocation2 + $0x1d8] sm:$0x1] }
 0x4ce   :  { %v14912_v52 = vpop.f32.mrf.mxu0  ;;  %v4088_v35 = vunpack.c.l.b16 %v3888_v41  ;;  %v2793_v28 = vrot.slane %v2791_v55, 5  ;;  %v2801_v20 = vshll.u32 %v2125_v45, 16 }
 0x4cf   :  { %17634 = vst [vmem:[#allocation21_spill] sm:$0xff] %v14906_v44  ;;  %v4388_v25 = vpop.f32.mrf.mxu3 }
 0x4d0   :  { %v4146_v46 = vpack.c.b16 %v4089_v1, %v4088_v35  ;;  %v2798_v1 = vor.u32 %v2797_v50, %v2793_v28  ;;  %v4041_v50 = vrot.slane %v2083_v27, 5 }
 0x4d2   :  { %v3222_v61 = vpop.f32.mrf.mxu1 }
 0x4d3   :  { %v3672_v13 = vadd.f32 %v3671_v15, %v3222_v61  ;;  %v2963_v15 = vunpack.c.l.b16 %v2780_v3  ;;  %v2788_v3 = vor.u32 %v2787_v23, %v2784_v9  ;;  %v2803_v23 = vrot.slane %v2801_v20, 5 }
 0x4d4   :  { %11321 = vmatmul.msk.bf16.gmra.mxu3 %vm395_vm1, %v4166_v26  ;;  %v4037_v26 = vrot.slane %v2125_v45, 5 }
 0x4d5   :  { %v14922_v37 = vadd.f32 %v4388_v25, %v3672_v13  ;;  %v3676_v44 = vpop.f32.mrf.mxu2  ;;  %v11274_v25 = vrot.slane %v3771_v6, 9  ;;  %v3000_v13 = vpack.c.b16 %v2963_v15, %v2962_v11  ;;  %v2789_v15 = vrot.slane %v2788_v3, 4  ;;  %v2082_v6 = vld [vmem:[#allocation2 + $0x1e0] sm:$0xf]  ;;  %v2126_v3 = vld [vmem:[#allocation2 + $0x1e8] sm:$0x1] }
 0x4d6   :  { %v14925_v22 = vpop.f32.mrf.mxu0  ;;  %v4038_v63 = vsel %vm14386_vm3, %v4036_v48, %v4037_v26 }
 0x4d7   :  { %17635 = vst [vmem:[#allocation13_spill] sm:$0xff] %v14922_v37  ;;  %v4391_v61 = vpop.f32.mrf.mxu3  ;;  %v12018_v37 = vld [vmem:[#allocation2 + $0x1d0] sm:$0xff]  ;;  %v4035_v42 = vsel %vm14386_vm3, %v11274_v25, %v4034_v51  ;;  %v2794_v51 = vsel %vm14293_vm14, %v2789_v15, %v2793_v28  ;;  %v2815_v25 = vshll.u32 %v2083_v27, 16  ;;  %v12079_v28 = vld [vmem:[#allocation2 + $0x20] sm:$0xff] }
 0x4d8   :  { %v4130_v9 = vunpack.c.l.b16 %v4035_v42  ;;  %v4043_v42 = vrot.slane %v4041_v50, 4 }
 0x4d9   :  { %11301 = vmatmul.msk.bf16.gmra.mxu0 %vm395_vm1, %v4146_v46  ;;  %11242 = vmatmul.msk.bf16.gmra.mxu2 %vm395_vm1, %v12018_v37  ;;  %v2799_v46 = vrot.slane %v2798_v1, 4  ;;  %v2806_v37 = vshrl.u32 %v2082_v6, 16  ;;  %v3772_v1 = vld [vmem:[#allocation2 + $0x1e0] sm:$0xe]  ;;  %v2817_v15 = vrot.slane %v2815_v25, 5 }
 0x4da   :  { %v3225_v40 = vpop.f32.mrf.mxu1 }
 0x4db   :  { %v3675_v41 = vadd.f32 %v3674_v60, %v3225_v40  ;;  %v4131_v60 = vunpack.c.l.b16 %v4038_v63  ;;  %v2804_v45 = vsel %vm14293_vm14, %v2799_v46, %v2803_v23  ;;  %v11275_v23 = vrot.slane %v3772_v1, 9 }
 0x4dd   :  { %v14930_v35 = vadd.f32 %v4391_v61, %v3675_v41  ;;  %11065 = vmatmul.msk.bf16.gmra.mxu1 %vm395_vm1, %v3000_v13  ;;  %v3679_v48 = vpop.f32.mrf.mxu2  ;;  %v4167_v26 = vpack.c.b16 %v4131_v60, %v4130_v9  ;;  %v2809_v41 = vshll.u32 %v2082_v6, 16  ;;  %v2819_v13 = vshrl.u32 %v2083_v27, 16 }
 0x4de   :  { %v14936_v55 = vpop.f32.mrf.mxu0  ;;  %v2965_v60 = vunpack.c.l.b16 %v2804_v45  ;;  %v2808_v6 = vrot.slane %v2806_v37, 4  ;;  %v4044_v27 = vrot.slane %v2126_v3, 5 }
 0x4df   :  { %17636 = vst [vmem:[#allocation19_spill] sm:$0xff] %v14930_v35  ;;  %v4393_v11 = vpop.f32.mrf.mxu3  ;;  %v2811_v9 = vrot.slane %v2809_v41, 5  ;;  %v2821_v35 = vrot.slane %v2819_v13, 4  ;;  %v4042_v41 = vsel %vm14386_vm3, %v11275_v23, %v4041_v50  ;;  %v2825_v13 = vshll.u32 %v2126_v3, 16 }
 0x4e0   :  { %v3585_v3 = vadd.f32 %v14800_v10, %v14653_v49  ;;  %v12080_v49 = vld [vmem:[#allocation2 + $0x30] sm:$0xff] }
 0x4e1   :  { %v2812_v29 = vor.u32 %v2811_v9, %v2808_v6  ;;  %v2822_v45 = vor.u32 %v2821_v35, %v2817_v15  ;;  %v2084_v9 = vld [vmem:[#allocation2 + $0x1f0] sm:$0xf] }
 0x4e2   :  { %v3227_v61 = vpop.f32.mrf.mxu1  ;;  %v2830_v23 = vshrl.u32 %v2084_v9, 16 }
 0x4e3   :  { %v3677_v40 = vadd.f32 %v3676_v44, %v3227_v61  ;;  %v2964_v44 = vunpack.c.l.b16 %v2794_v51  ;;  %v12019_v51 = vld [vmem:[#allocation2 + $0x1e0] sm:$0xff]  ;;  %v2823_v6 = vrot.slane %v2822_v45, 4 }
 0x4e4   :  { %11322 = vmatmul.msk.bf16.gmra.mxu3 %vm395_vm1, %v4167_v26 }
 0x4e5   :  { %v14942_v63 = vadd.f32 %v4393_v11, %v3677_v40  ;;  %v3681_v46 = vpop.f32.mrf.mxu2  ;;  %v3001_v26 = vpack.c.b16 %v2965_v60, %v2964_v44  ;;  %v2085_v44 = vld [vmem:[#allocation2 + $0x1f4] sm:$0xf] }
 0x4e6   :  { %v14945_v20 = vpop.f32.mrf.mxu0 }
 0x4e7   :  { %17637 = vst [vmem:[#allocation14_spill] sm:$0xff] %v14942_v63  ;;  %v4396_v61 = vpop.f32.mrf.mxu3  ;;  %v4045_v63 = vsel %vm14386_vm3, %v4043_v42, %v4044_v27  ;;  %v4132_v42 = vunpack.c.l.b16 %v4042_v41  ;;  %v2827_v27 = vrot.slane %v2825_v13, 5  ;;  %v2127_v13 = vld [vmem:[#allocation2 + $0x1f8] sm:$0x1] }
 0x4e8   :  { %v4133_v25 = vunpack.c.l.b16 %v4045_v63  ;;  %v2833_v63 = vshll.u32 %v2084_v9, 16 }
 0x4e9   :  { %11775 = vmatmul.msk.bf16.vlgmr.msra.gmra.mxu0 %vm395_vm1, %v12079_v28  ;;  %11243 = vmatmul.msk.bf16.gmra.mxu2 %vm395_vm1, %v12019_v51  ;;  %v2843_v51 = vshrl.u32 %v2085_v44, 16 }
 0x4ea   :  { %v3230_v11 = vpop.f32.mrf.mxu1  ;;  %v4168_v28 = vpack.c.b16 %v4133_v25, %v4132_v42  ;;  %v3773_v42 = vld [vmem:[#allocation2 + $0x1f0] sm:$0xe]  ;;  %v2835_v10 = vrot.slane %v2833_v63, 5 }
 0x4eb   :  { %v3680_v40 = vadd.f32 %v3679_v48, %v3230_v11  ;;  %v2813_v48 = vrot.slane %v2812_v29, 4  ;;  %v4048_v11 = vrot.slane %v2085_v44, 5  ;;  %v2828_v29 = vsel %vm14293_vm14, %v2823_v6, %v2827_v27 }
 0x4ec   :  { %v2845_v6 = vrot.slane %v2843_v51, 4 }
 0x4ed   :  { %v14950_v37 = vadd.f32 %v4396_v61, %v3680_v40  ;;  %11066 = vmatmul.msk.bf16.gmra.mxu1 %vm395_vm1, %v3001_v26  ;;  %v3684_v35 = vpop.f32.mrf.mxu2  ;;  %v2818_v50 = vsel %vm14293_vm14, %v2813_v48, %v2817_v15  ;;  %v2839_v26 = vshll.u32 %v2085_v44, 16  ;;  %v4050_v15 = vrot.slane %v4048_v11, 4 }
 0x4ee   :  { %v14956_v1 = vpop.f32.mrf.mxu0  ;;  %v2966_v25 = vunpack.c.l.b16 %v2818_v50  ;;  %v2832_v48 = vrot.slane %v2830_v23, 4 }
 0x4ef   :  { %17638 = vst [vmem:[#allocation38_spill] sm:$0xff] %v14950_v37  ;;  %v4398_v60 = vpop.f32.mrf.mxu3  ;;  %v2841_v37 = vrot.slane %v2839_v26, 5 }
 0x4f2   :  { %v3232_v61 = vpop.f32.mrf.mxu1 }
 0x4f3   :  { %v3682_v40 = vadd.f32 %v3681_v46, %v3232_v61  ;;  %v2967_v46 = vunpack.c.l.b16 %v2828_v29  ;;  %v3587_v29 = vadd.f32 %v14811_v54, %v14662_v19 }
 0x4f4   :  { %11323 = vmatmul.msk.bf16.gmra.mxu3 %vm395_vm1, %v4168_v28  ;;  %v4051_v28 = vrot.slane %v2127_v13, 5 }
 0x4f5   :  { %v14964_v45 = vadd.f32 %v4398_v60, %v3682_v40  ;;  %v3686_v27 = vpop.f32.mrf.mxu2  ;;  %v11276_v60 = vrot.slane %v3773_v42, 9  ;;  %v3002_v50 = vpack.c.b16 %v2967_v46, %v2966_v25  ;;  %v2087_v46 = vld [vmem:[#allocation2 + $0x204] sm:$0xf] }
 0x4f6   :  { %v4301_v41 = vpop.f32.mrf.mxu0  ;;  %v4052_v23 = vsel %vm14386_vm3, %v4050_v15, %v4051_v28 }
 0x4f7   :  { %17639 = vst [vmem:[#allocation15_spill] sm:$0xff] %v14964_v45  ;;  %v14967_v9 = vadd.f32 %v4301_v41, %v3585_v3  ;;  %v4401_v61 = vpop.f32.mrf.mxu3  ;;  %v12020_v45 = vld [vmem:[#allocation2 + $0x1f0] sm:$0xff]  ;;  %v2836_v3 = vor.u32 %v2835_v10, %v2832_v48  ;;  %v2846_v41 = vor.u32 %v2845_v6, %v2841_v37  ;;  %v4049_v26 = vsel %vm14386_vm3, %v11276_v60, %v4048_v11  ;;  %v2086_v48 = vld [vmem:[#allocation2 + $0x200] sm:$0xf] }
 0x4f8   :  { %v4135_v25 = vunpack.c.l.b16 %v4052_v23  ;;  %v2863_v60 = vshll.u32 %v2087_v46, 16 }
 0x4f9   :  { %11776 = vmatmul.msk.bf16.gmra.mxu0 %vm395_vm1, %v12080_v49  ;;  %11244 = vmatmul.msk.bf16.gmra.mxu2 %vm395_vm1, %v12020_v45  ;;  %v2837_v42 = vrot.slane %v2836_v3, 4  ;;  %v2847_v15 = vrot.slane %v2846_v41, 4  ;;  %v3590_v3 = vadd.f32 %v14824_v32, %v14669_v0  ;;  %v2128_v41 = vld [vmem:[#allocation2 + $0x208] sm:$0x1] }
 0x4fa   :  { %v3235_v44 = vpop.f32.mrf.mxu1 }
 0x4fb   :  { %v3685_v40 = vadd.f32 %v3684_v35, %v3235_v44  ;;  %v2849_v35 = vshll.u32 %v2127_v13, 16  ;;  %v4055_v44 = vrot.slane %v2087_v46, 5  ;;  %v2842_v11 = vsel %vm14293_vm14, %v2837_v42, %v2841_v37 }
 0x4fd   :  { %v14974_v63 = vadd.f32 %v4401_v61, %v3685_v40  ;;  %11067 = vmatmul.msk.bf16.gmra.mxu1 %vm395_vm1, %v3002_v50  ;;  %v3689_v49 = vpop.f32.mrf.mxu2  ;;  %v4134_v61 = vunpack.c.l.b16 %v4049_v26  ;;  %v2851_v6 = vrot.slane %v2849_v35, 5  ;;  %v2854_v40 = vshrl.u32 %v2086_v48, 16 }
 0x4fe   :  { %v4303_v51 = vpop.f32.mrf.mxu0  ;;  %v2857_v50 = vshll.u32 %v2086_v48, 16  ;;  %v4057_v26 = vrot.slane %v4055_v44, 4 }
 0x4ff   :  { %17640 = vst [vmem:[#allocation16_spill] sm:$0xff] %v14974_v63  ;;  %v14980_v19 = vadd.f32 %v4303_v51, %v3587_v29  ;;  %v4403_v54 = vpop.f32.mrf.mxu3  ;;  %v4169_v45 = vpack.c.b16 %v4135_v25, %v4134_v61  ;;  %v2852_v13 = vsel %vm14293_vm14, %v2847_v15, %v2851_v6  ;;  %v2867_v29 = vshrl.u32 %v2087_v46, 16  ;;  %v12081_v61 = vld [vmem:[#allocation2 + $0x40] sm:$0xff]  ;;  %v12082_v63 = vld [vmem:[#allocation2 + $0x50] sm:$0xff] }
 0x500   :  { %v2968_v51 = vunpack.c.l.b16 %v2842_v11  ;;  %v2969_v25 = vunpack.c.l.b16 %v2852_v13  ;;  %v2856_v48 = vrot.slane %v2854_v40, 4  ;;  %v2859_v37 = vrot.slane %v2857_v50, 5  ;;  %v12078_v50 = vld [vmem:[#allocation6 + $0xb8] sm:$0xff]  ;;  %v12021_v13 = vld [vmem:[#allocation2 + $0x200] sm:$0xff] }
 0x501   :  { %v14993_v46 = vrot.slane %v2863_v60, 5  ;;  %7014 = vmatpush.bf16.msrb.mxu3 %v12078_v50  ;;  %v15009_v50 = vld [vmem:[#allocation2 + $0x14] sm:$0xf] }
 0x502   :  { %v3237_v10 = vpop.f32.mrf.mxu1  ;;  %v3003_v32 = vpack.c.b16 %v2969_v25, %v2968_v51  ;;  %v2860_v40 = vor.u32 %v2859_v37, %v2856_v48  ;;  %v2089_v48 = vld [vmem:[#allocation2 + $0x214] sm:$0xf]  ;;  %v2088_v37 = vld [vmem:[#allocation2 + $0x210] sm:$0xf] }
 0x503   :  { %v3687_v28 = vadd.f32 %v3686_v27, %v3237_v10  ;;  %v3774_v27 = vld [vmem:[#allocation2 + $0x200] sm:$0xe] }
 0x504   :  { %11324 = vmatmul.msk.bf16.gmra.mxu3 %vm395_vm1, %v4169_v45  ;;  %v11277_v6 = vrot.slane %v3774_v27, 9  ;;  %v2861_v25 = vrot.slane %v2860_v40, 4  ;;  %v3775_v40 = vld [vmem:[#allocation2 + $0x210] sm:$0xe] }
 0x505   :  { %v14986_v23 = vadd.f32 %v4403_v54, %v3687_v28  ;;  %v2869_v54 = vrot.slane %v2867_v29, 4  ;;  %v3691_v10 = vpop.f32.mrf.mxu2  ;;  %v4058_v28 = vrot.slane %v2128_v41, 5  ;;  %v12077_v29 = vld [vmem:[#allocation6 + $0xb0] sm:$0xff] }
 0x506   :  { %v4306_v35 = vpop.f32.mrf.mxu0  ;;  %v4056_v60 = vsel %vm14386_vm3, %v11277_v6, %v4055_v44  ;;  %7015 = vmatpush.bf16.msrb.mxu3 %v12077_v29  ;;  %v5111_v44 = vld [vmem:[#allocation2 + $0x10] sm:$0xf]  ;;  %v2891_v29 = vshrl.u32 %v2089_v48, 16 }
 0x507   :  { %17641 = vst [vmem:[#allocation17_spill] sm:$0xff] %v14986_v23  ;;  %v14991_v42 = vadd.f32 %v4306_v35, %v3590_v3  ;;  %v4406_v15 = vpop.f32.mrf.mxu3  ;;  %v4059_v11 = vsel %vm14386_vm3, %v4057_v26, %v4058_v28  ;;  %v2870_v3 = vor.u32 %v2869_v54, %v14993_v46  ;;  %v2873_v26 = vshll.u32 %v2128_v41, 16 }
 0x508   :  { %v4137_v27 = vunpack.c.l.b16 %v4059_v11  ;;  %v4136_v54 = vunpack.c.l.b16 %v4056_v60  ;;  %v2866_v11 = vsel %vm14293_vm14, %v2861_v25, %v14993_v46  ;;  %v12076_v60 = vld [vmem:[#allocation6 + $0xa8] sm:$0xff]  ;;  %v3595_v46 = vadd.f32 %v14848_v12, %v14689_v16  ;;  %v2129_v25 = vld [vmem:[#allocation2 + $0x218] sm:$0x1] }
 0x509   :  { %11777 = vmatmul.msk.bf16.gmra.mxu0 %vm395_vm1, %v12081_v61  ;;  %11245 = vmatmul.msk.bf16.gmra.mxu2 %vm395_vm1, %v12021_v13  ;;  %v2871_v28 = vrot.slane %v2870_v3, 4  ;;  %v2881_v13 = vshll.u32 %v2088_v37, 16  ;;  %v2893_v4 = vrot.slane %v2891_v29, 4 }
 0x50a   :  { %v3240_v45 = vpop.f32.mrf.mxu1  ;;  %7016 = vmatpush.bf16.msrb.mxu3 %v12076_v60 }
 0x50b   :  { %v3690_v0 = vadd.f32 %v3689_v49, %v3240_v45  ;;  %v3592_v49 = vadd.f32 %v14835_v59, %v14680_v14  ;;  %v4062_v14 = vrot.slane %v2089_v48, 5  ;;  %v2878_v59 = vshrl.u32 %v2088_v37, 16 }
 0x50c   :  { %v11278_v37 = vrot.slane %v3775_v40, 9  ;;  %v4065_v40 = vrot.slane %v2129_v25, 5 }
 0x50d   :  { %v14999_v35 = vadd.f32 %v4406_v15, %v3690_v0  ;;  %11068 = vmatmul.msk.bf16.gmra.mxu1 %vm395_vm1, %v3003_v32  ;;  %v3694_v45 = vpop.f32.mrf.mxu2  ;;  %v4170_v0 = vpack.c.b16 %v4137_v27, %v4136_v54  ;;  %v2875_v32 = vrot.slane %v2873_v26, 5  ;;  %v5211_v27 = vshll.u32 %v5111_v44, 16 }
 0x50e   :  { %v4308_v51 = vpop.f32.mrf.mxu0  ;;  %v5221_v54 = vshrl.u32 %v15009_v50, 16  ;;  %v2880_v23 = vrot.slane %v2878_v59, 4 }
 0x50f   :  { %17642 = vst [vmem:[#allocation22_spill] sm:$0xff] %v14999_v35  ;;  %v15007_v15 = vadd.f32 %v4308_v51, %v3592_v49  ;;  %v4408_v61 = vpop.f32.mrf.mxu3  ;;  %v2887_v49 = vshll.u32 %v2089_v48, 16  ;;  %v2876_v3 = vsel %vm14293_vm14, %v2871_v28, %v2875_v32  ;;  %v5208_v51 = vshrl.u32 %v5111_v44, 16  ;;  %v12075_v48 = vld [vmem:[#allocation6 + $0xa0] sm:$0xff] }
 0x510   :  { %v4064_v35 = vrot.slane %v4062_v14, 4  ;;  %v2970_v44 = vunpack.c.l.b16 %v2866_v11  ;;  %v2883_v32 = vrot.slane %v2881_v13, 5  ;;  %v5213_v16 = vrot.slane %v5211_v27, 5  ;;  %7017 = vmatpush.bf16.msrb.mxu3 %v12075_v48  ;;  %v15033_v27 = vld [vmem:[#allocation2 + $0x18] sm:$0x1] }
 0x511   :  { %v5210_v56 = vrot.slane %v5208_v51, 4  ;;  %v5223_v59 = vrot.slane %v5221_v54, 4  ;;  %v2897_v48 = vshll.u32 %v2129_v25, 16 }
 0x512   :  { %v3242_v6 = vpop.f32.mrf.mxu1  ;;  %v2884_v29 = vor.u32 %v2883_v32, %v2880_v23 }
 0x513   :  { %v3692_v41 = vadd.f32 %v3691_v10, %v3242_v6  ;;  %v5217_v10 = vshll.u32 %v15009_v50, 16  ;;  %v12122_v6 = vld [vmem:[#allocation6 + $0x118] sm:$0xff] }
 0x514   :  { %11325 = vmatmul.msk.bf16.gmra.mxu3 %vm395_vm1, %v4170_v0  ;;  %9733 = vmatpush.bf16.msra.mxu2 %v12122_v6  ;;  %v4063_v6 = vsel %vm14386_vm3, %v11278_v37, %v4062_v14 }
 0x515   :  { %v15016_v26 = vadd.f32 %v4408_v61, %v3692_v41  ;;  %v2971_v61 = vunpack.c.l.b16 %v2876_v3  ;;  %v15023_v41 = vrot.slane %v2887_v49, 5  ;;  %v3696_v12 = vpop.f32.mrf.mxu2  ;;  %v5219_v30 = vrot.slane %v5217_v10, 5  ;;  %v12022_v3 = vld [vmem:[#allocation2 + $0x210] sm:$0xff] }
 0x516   :  { %v4311_v28 = vpop.f32.mrf.mxu0  ;;  %v4066_v49 = vsel %vm14386_vm3, %v4064_v35, %v4065_v40  ;;  %v5214_v10 = vor.u32 %v5213_v16, %v5210_v56  ;;  %v4138_v23 = vunpack.c.l.b16 %v4063_v6 }
 0x517   :  { %17643 = vst [vmem:[#allocation34_spill] sm:$0xff] %v15016_v26  ;;  %v15025_v0 = vadd.f32 %v4311_v28, %v3595_v46  ;;  %v4411_v26 = vpop.f32.mrf.mxu3  ;;  %v3004_v13 = vpack.c.b16 %v2971_v61, %v2970_v44  ;;  %v2894_v51 = vor.u32 %v2893_v4, %v15023_v41  ;;  %v3597_v46 = vadd.f32 %v14859_v17, %v14700_v7  ;;  %v5114_v61 = vld [vmem:[#allocation2 + $0x20] sm:$0xf] }
 0x518   :  { %v4139_v35 = vunpack.c.l.b16 %v4066_v49  ;;  %v5227_v4 = vshll.u32 %v15033_v27, 16  ;;  %v5215_v44 = vrot.slane %v5214_v10, 4  ;;  %v2899_v17 = vrot.slane %v2897_v48, 5 }
 0x519   :  { %11778 = vmatmul.msk.bf16.gmra.mxu0 %vm395_vm1, %v12082_v63  ;;  %v5224_v63 = vor.u32 %v5223_v59, %v5219_v30  ;;  %11246 = vmatmul.msk.bf16.gmra.mxu2 %vm395_vm1, %v12022_v3  ;;  %v2895_v28 = vrot.slane %v2894_v51, 4  ;;  %v15044_v59 = vld [vmem:[#allocation2 + $0x24] sm:$0xf] }
 0x51a   :  { %v3245_v60 = vpop.f32.mrf.mxu1  ;;  %v4171_v7 = vpack.c.b16 %v4139_v35, %v4138_v23  ;;  %v5220_v6 = vsel %vm14293_vm14, %v5215_v44, %v5219_v30  ;;  %v5245_v10 = vshrl.u32 %v15044_v59, 16 }
 0x51b   :  { %v3695_v11 = vadd.f32 %v3694_v45, %v3245_v60  ;;  %v12118_v45 = vld [vmem:[#allocation6 + $0xf8] sm:$0xff]  ;;  %v5225_v16 = vrot.slane %v5224_v63, 4  ;;  %v5229_v60 = vrot.slane %v5227_v4, 5  ;;  %v2900_v3 = vsel %vm14293_vm14, %v2895_v28, %v2899_v17  ;;  %v6433_v63 = vld [vmem:[#allocation2 + $0x10] sm:$0xe]  ;;  %v12083_v4 = vld [vmem:[#allocation2 + $0x60] sm:$0xff] }
 0x51c   :  { %8923 = vmatpush.bf16.msra.mxu1 %v12118_v45  ;;  %v2973_v35 = vunpack.c.l.b16 %v2900_v3 }
 0x51d   :  { %v15035_v54 = vadd.f32 %v4411_v26, %v3695_v11  ;;  %11069 = vmatmul.msk.bf16.gmra.mxu1 %vm395_vm1, %v3004_v13  ;;  %v2885_v26 = vrot.slane %v2884_v29, 4  ;;  %v3699_v32 = vpop.f32.mrf.mxu2  ;;  %v6563_v11 = vrot.slane %v15009_v50, 5  ;;  %v5232_v13 = vshrl.u32 %v5114_v61, 16 }
 0x51e   :  { %v4313_v14 = vpop.f32.mrf.mxu0  ;;  %v5235_v29 = vshll.u32 %v5114_v61, 16  ;;  %v5241_v50 = vshll.u32 %v15044_v59, 16  ;;  %v11551_v61 = vrot.slane %v6433_v63, 9 }
 0x51f   :  { %v15042_v37 = vadd.f32 %v4313_v14, %v3597_v46  ;;  %v4413_v56 = vpop.f32.mrf.mxu3  ;;  %v2890_v49 = vsel %vm14293_vm14, %v2885_v26, %v15023_v41  ;;  %v3600_v41 = vadd.f32 %v14872_v34, %v14709_v57  ;;  %v6565_v30 = vrot.slane %v6563_v11, 4 }
 0x520   :  { %v2972_v46 = vunpack.c.l.b16 %v2890_v49  ;;  %v5234_v48 = vrot.slane %v5232_v13, 4  ;;  %v5237_v28 = vrot.slane %v5235_v29, 5  ;;  %v5116_v13 = vld [vmem:[#allocation2 + $0x28] sm:$0x1]  ;;  %v3602_v29 = vadd.f32 %v14885_v5, %v14720_v21 }
 0x521   :  { %v6570_v21 = vrot.slane %v15044_v59, 5 }
 0x522   :  { %v3247_v40 = vpop.f32.mrf.mxu1  ;;  %v3005_v17 = vpack.c.b16 %v2973_v35, %v2972_v46  ;;  %v5238_v49 = vor.u32 %v5237_v28, %v5234_v48  ;;  %v5117_v46 = vld [vmem:[#allocation2 + $0x30] sm:$0xf] }
 0x523   :  { %v3697_v25 = vadd.f32 %v3696_v12, %v3247_v40  ;;  %v5230_v12 = vsel %vm14293_vm14, %v5225_v16, %v5229_v60  ;;  %v6566_v16 = vrot.slane %v15033_v27, 5  ;;  %v5243_v40 = vrot.slane %v5241_v50, 5 }
 0x524   :  { %11326 = vmatmul.msk.bf16.gmra.mxu3 %vm395_vm1, %v4171_v7  ;;  %v5985_v26 = vunpack.c.l.b16 %v5230_v12  ;;  %v5247_v7 = vrot.slane %v5245_v10, 4  ;;  %v6564_v27 = vsel %vm14386_vm3, %v11551_v61, %v6563_v11  ;;  %v5251_v50 = vshll.u32 %v5116_v13, 16  ;;  %v15079_v11 = vld [vmem:[#allocation2 + $0x34] sm:$0xf] }
 0x525   :  { %v15054_v51 = vadd.f32 %v4413_v56, %v3697_v25  ;;  %v5984_v56 = vunpack.c.l.b16 %v5220_v6  ;;  %v3701_v44 = vpop.f32.mrf.mxu2  ;;  %v6567_v25 = vsel %vm14386_vm3, %v6565_v30, %v6566_v16  ;;  %v6794_v63 = vunpack.c.l.b16 %v6564_v27 }
 0x526   :  { %v4316_v45 = vpop.f32.mrf.mxu0  ;;  %v5248_v6 = vor.u32 %v5247_v7, %v5243_v40  ;;  %v5256_v5 = vshrl.u32 %v5117_v46, 16  ;;  %v5259_v28 = vshll.u32 %v5117_v46, 16  ;;  %v5265_v7 = vshll.u32 %v15079_v11, 16 }
 0x527   :  { %v15063_v14 = vadd.f32 %v4316_v45, %v3600_v41  ;;  %v4416_v23 = vpop.f32.mrf.mxu3  ;;  %v6048_v60 = vpack.c.b16 %v5985_v26, %v5984_v56  ;;  %v5239_v45 = vrot.slane %v5238_v49, 4  ;;  %v5253_v56 = vrot.slane %v5251_v50, 5  ;;  %v12084_v49 = vld [vmem:[#allocation2 + $0x70] sm:$0xff] }
 0x528   :  { %v5249_v30 = vrot.slane %v5248_v6, 4 }
 0x529   :  { %11779 = vmatmul.msk.bf16.gmra.mxu0 %vm395_vm1, %v12083_v4  ;;  %11519 = vmatmul.msk.bf16.vlgmr.msrb.gmra.mxu2 %vm395_vm1, %v6048_v60  ;;  %v5244_v26 = vsel %vm14293_vm14, %v5239_v45, %v5243_v40  ;;  %v6573_v45 = vrot.slane %v5116_v13, 5 }
 0x52a   :  { %v3250_v57 = vpop.f32.mrf.mxu1  ;;  %v5254_v16 = vsel %vm14293_vm14, %v5249_v30, %v5253_v56  ;;  %v5986_v27 = vunpack.c.l.b16 %v5244_v26 }
 0x52b   :  { %v3700_v34 = vadd.f32 %v3699_v32, %v3250_v57  ;;  %v6795_v32 = vunpack.c.l.b16 %v6567_v25  ;;  %v5269_v57 = vshrl.u32 %v15079_v11, 16  ;;  %v5258_v25 = vrot.slane %v5256_v5, 4 }
 0x52c   :  { %v5987_v6 = vunpack.c.l.b16 %v5254_v16  ;;  %v3607_v5 = vadd.f32 %v14912_v52, %v14740_v33 }
 0x52d   :  { %v15069_v3 = vadd.f32 %v4416_v23, %v3700_v34  ;;  %11070 = vmatmul.msk.bf16.gmra.mxu1 %vm395_vm1, %v3005_v17  ;;  %v3704_v35 = vpop.f32.mrf.mxu2  ;;  %v6858_v23 = vpack.c.b16 %v6795_v32, %v6794_v63  ;;  %v6434_v34 = vld [vmem:[#allocation2 + $0x20] sm:$0xe]  ;;  %v6572_v17 = vrot.slane %v6570_v21, 4  ;;  %v5271_v50 = vrot.slane %v5269_v57, 4 }
 0x52e   :  { %v4318_v12 = vpop.f32.mrf.mxu0  ;;  %v11552_v63 = vrot.slane %v6434_v34, 9  ;;  %v6049_v46 = vpack.c.b16 %v5987_v6, %v5986_v27  ;;  %v6577_v27 = vrot.slane %v15079_v11, 5 }
 0x52f   :  { %v15077_v10 = vadd.f32 %v4318_v12, %v3602_v29  ;;  %v4418_v41 = vpop.f32.mrf.mxu3  ;;  %v5261_v29 = vrot.slane %v5259_v28, 5  ;;  %v5267_v12 = vrot.slane %v5265_v7, 5  ;;  %v6574_v30 = vsel %vm14386_vm3, %v6572_v17, %v6573_v45  ;;  %v5120_v17 = vld [vmem:[#allocation2 + $0x40] sm:$0xf] }
 0x530   :  { %v6571_v13 = vsel %vm14386_vm3, %v11552_v63, %v6570_v21  ;;  %v6797_v26 = vunpack.c.l.b16 %v6574_v30  ;;  %v5280_v6 = vshrl.u32 %v5120_v17, 16  ;;  %v3610_v45 = vadd.f32 %v14925_v22, %v14755_v38  ;;  %v12036_v22 = vld [vmem:[#allocation2 + $0x20] sm:$0xff] }
 0x531   :  { %v5272_v56 = vor.u32 %v5271_v50, %v5267_v12 }
 0x532   :  { %v3252_v48 = vpop.f32.mrf.mxu1 }
 0x533   :  { %v3702_v4 = vadd.f32 %v3701_v44, %v3252_v48  ;;  %v3605_v44 = vadd.f32 %v14901_v39, %v14729_v31  ;;  %v12035_v39 = vld [vmem:[#allocation2 + $0x10] sm:$0xff]  ;;  %v5119_v48 = vld [vmem:[#allocation2 + $0x38] sm:$0x1]  ;;  %v5273_v34 = vrot.slane %v5272_v56, 4 }
 0x534   :  { %11599 = vmatmul.msk.bf16.vlgmr.msrb.gmra.mxu3 %vm395_vm1, %v6858_v23  ;;  %v5262_v23 = vor.u32 %v5261_v29, %v5258_v25  ;;  %v5275_v28 = vshll.u32 %v5119_v48, 16  ;;  %v5283_v29 = vshll.u32 %v5120_v17, 16 }
 0x535   :  { %v15084_v61 = vadd.f32 %v4418_v41, %v3702_v4  ;;  %v3706_v32 = vpop.f32.mrf.mxu2 }
 0x536   :  { %v4321_v59 = vpop.f32.mrf.mxu0  ;;  %v5263_v57 = vrot.slane %v5262_v23, 4  ;;  %v12085_v23 = vld [vmem:[#allocation2 + $0x80] sm:$0xff] }
 0x537   :  { %v15093_v40 = vadd.f32 %v4321_v59, %v3605_v44  ;;  %v4421_v60 = vpop.f32.mrf.mxu3  ;;  %v6796_v59 = vunpack.c.l.b16 %v6571_v13  ;;  %v5285_v13 = vrot.slane %v5283_v29, 5 }
 0x538   :  { %v5268_v21 = vsel %vm14293_vm14, %v5263_v57, %v5267_v12  ;;  %v6579_v12 = vrot.slane %v6577_v27, 4 }
 0x539   :  { %11780 = vmatmul.msk.bf16.gmra.mxu0 %vm395_vm1, %v12084_v49  ;;  %11520 = vmatmul.msk.bf16.gmra.mxu2 %vm395_vm1, %v6049_v46  ;;  %v6859_v52 = vpack.c.b16 %v6797_v26, %v6796_v59  ;;  %v5277_v49 = vrot.slane %v5275_v28, 5  ;;  %v6580_v59 = vrot.slane %v5119_v48, 5 }
 0x53a   :  { %v3255_v41 = vpop.f32.mrf.mxu1 }
 0x53b   :  { %v3705_v31 = vadd.f32 %v3704_v35, %v3255_v41  ;;  %v5278_v41 = vsel %vm14293_vm14, %v5273_v34, %v5277_v49  ;;  %v6581_v17 = vsel %vm14386_vm3, %v6579_v12, %v6580_v59  ;;  %v3615_v59 = vadd.f32 %v14945_v20, %v14775_v58  ;;  %v12037_v20 = vld [vmem:[#allocation2 + $0x30] sm:$0xff] }
 0x53c   :  { %v5989_v56 = vunpack.c.l.b16 %v5278_v41 }
 0x53d   :  { %v15098_v4 = vadd.f32 %v4421_v60, %v3705_v31  ;;  %11471 = vmatmul.msk.bf16.vlgmr.msrb.gmra.mxu1 %vm395_vm1, %v12035_v39  ;;  %v3709_v44 = vpop.f32.mrf.mxu2  ;;  %v15108_v60 = vld [vmem:[#allocation2 + $0x44] sm:$0xf]  ;;  %v5988_v31 = vunpack.c.l.b16 %v5268_v21  ;;  %v6435_v39 = vld [vmem:[#allocation2 + $0x30] sm:$0xe]  ;;  %v3612_v21 = vadd.f32 %v14936_v55, %v14766_v43 }
 0x53e   :  { %v4323_v35 = vpop.f32.mrf.mxu0  ;;  %v5289_v63 = vshll.u32 %v15108_v60, 16  ;;  %v11553_v57 = vrot.slane %v6435_v39, 9  ;;  %v5123_v39 = vld [vmem:[#allocation2 + $0x50] sm:$0xf] }
 0x53f   :  { %v15106_v16 = vadd.f32 %v4323_v35, %v3607_v5  ;;  %v4423_v7 = vpop.f32.mrf.mxu3  ;;  %v5282_v5 = vrot.slane %v5280_v6, 4  ;;  %v6050_v34 = vpack.c.b16 %v5989_v56, %v5988_v31  ;;  %v6799_v6 = vunpack.c.l.b16 %v6581_v17 }
 0x540   :  { %v5291_v26 = vrot.slane %v5289_v63, 5  ;;  %v6578_v48 = vsel %vm14386_vm3, %v11553_v57, %v6577_v27  ;;  %v6584_v56 = vrot.slane %v15108_v60, 5 }
 0x542   :  { %v3257_v25 = vpop.f32.mrf.mxu1 }
 0x543   :  { %v3707_v33 = vadd.f32 %v3706_v32, %v3257_v25  ;;  %v5293_v32 = vshrl.u32 %v15108_v60, 16  ;;  %v5122_v25 = vld [vmem:[#allocation2 + $0x48] sm:$0x1] }
 0x544   :  { %11600 = vmatmul.msk.bf16.gmra.mxu3 %vm395_vm1, %v6859_v52  ;;  %v5299_v29 = vshll.u32 %v5122_v25, 16 }
 0x545   :  { %v15113_v50 = vadd.f32 %v4423_v7, %v3707_v33  ;;  %v3711_v35 = vpop.f32.mrf.mxu2  ;;  %v5295_v28 = vrot.slane %v5293_v32, 4  ;;  %v5286_v33 = vor.u32 %v5285_v13, %v5282_v5  ;;  %v5304_v5 = vshrl.u32 %v5123_v39, 16 }
 0x546   :  { %v4326_v11 = vpop.f32.mrf.mxu0  ;;  %v5307_v13 = vshll.u32 %v5123_v39, 16 }
 0x547   :  { %v15122_v46 = vadd.f32 %v4326_v11, %v3610_v45  ;;  %v4426_v30 = vpop.f32.mrf.mxu3  ;;  %v5296_v49 = vor.u32 %v5295_v28, %v5291_v26  ;;  %v5287_v32 = vrot.slane %v5286_v33, 4  ;;  %v6798_v11 = vunpack.c.l.b16 %v6578_v48  ;;  %v12086_v33 = vld [vmem:[#allocation2 + $0x90] sm:$0xff] }
 0x548   :  { %v5309_v48 = vrot.slane %v5307_v13, 5 }
 0x549   :  { %11781 = vmatmul.msk.bf16.gmra.mxu0 %vm395_vm1, %v12085_v23  ;;  %11521 = vmatmul.msk.bf16.gmra.mxu2 %vm395_vm1, %v6050_v34  ;;  %v5297_v31 = vrot.slane %v5296_v49, 4  ;;  %v6860_v55 = vpack.c.b16 %v6799_v6, %v6798_v11  ;;  %v5301_v23 = vrot.slane %v5299_v29, 5  ;;  %v5292_v27 = vsel %vm14293_vm14, %v5287_v32, %v5291_v26 }
 0x54a   :  { %v3260_v7 = vpop.f32.mrf.mxu1  ;;  %v6586_v26 = vrot.slane %v6584_v56, 4  ;;  %v6587_v11 = vrot.slane %v5122_v25, 5 }
 0x54b   :  { %v3710_v38 = vadd.f32 %v3709_v44, %v3260_v7  ;;  %v5302_v7 = vsel %vm14293_vm14, %v5297_v31, %v5301_v23 }
 0x54c   :  { %v5991_v49 = vunpack.c.l.b16 %v5302_v7  ;;  %v6588_v39 = vsel %vm14386_vm3, %v6586_v26, %v6587_v11 }
 0x54d   :  { %v15127_v52 = vadd.f32 %v4426_v30, %v3710_v38  ;;  %11472 = vmatmul.msk.bf16.gmra.mxu1 %vm395_vm1, %v12036_v22  ;;  %v3714_v45 = vpop.f32.mrf.mxu2  ;;  %v15137_v30 = vld [vmem:[#allocation2 + $0x54] sm:$0xf]  ;;  %v5990_v38 = vunpack.c.l.b16 %v5292_v27  ;;  %v6436_v22 = vld [vmem:[#allocation2 + $0x40] sm:$0xe]  ;;  %v3617_v27 = vadd.f32 %v14956_v1, %v14787_v8 }
 0x54e   :  { %v4328_v44 = vpop.f32.mrf.mxu0  ;;  %v5313_v57 = vshll.u32 %v15137_v30, 16  ;;  %v11554_v32 = vrot.slane %v6436_v22, 9  ;;  %v5126_v22 = vld [vmem:[#allocation2 + $0x60] sm:$0xf] }
 0x54f   :  { %v15135_v41 = vadd.f32 %v4328_v44, %v3612_v21  ;;  %v4428_v63 = vpop.f32.mrf.mxu3  ;;  %v5306_v21 = vrot.slane %v5304_v5, 4  ;;  %v6051_v31 = vpack.c.b16 %v5991_v49, %v5990_v38  ;;  %v6801_v5 = vunpack.c.l.b16 %v6588_v39 }
 0x550   :  { %v5315_v6 = vrot.slane %v5313_v57, 5  ;;  %v6585_v25 = vsel %vm14386_vm3, %v11554_v32, %v6584_v56  ;;  %v6591_v49 = vrot.slane %v15137_v30, 5 }
 0x552   :  { %v3262_v12 = vpop.f32.mrf.mxu1  ;;  %v6593_v39 = vrot.slane %v6591_v49, 4 }
 0x553   :  { %v3712_v43 = vadd.f32 %v3711_v35, %v3262_v12  ;;  %v5317_v35 = vshrl.u32 %v15137_v30, 16  ;;  %v5125_v12 = vld [vmem:[#allocation2 + $0x58] sm:$0x1] }
 0x554   :  { %11601 = vmatmul.msk.bf16.gmra.mxu3 %vm395_vm1, %v6860_v55  ;;  %v5323_v13 = vshll.u32 %v5125_v12, 16 }
 0x555   :  { %v15142_v28 = vadd.f32 %v4428_v63, %v3712_v43  ;;  %v3716_v44 = vpop.f32.mrf.mxu2  ;;  %v5319_v29 = vrot.slane %v5317_v35, 4  ;;  %v5310_v43 = vor.u32 %v5309_v48, %v5306_v21  ;;  %v5328_v21 = vshrl.u32 %v5126_v22, 16 }
 0x556   :  { %v4331_v60 = vpop.f32.mrf.mxu0  ;;  %v5331_v48 = vshll.u32 %v5126_v22, 16 }
 0x557   :  { %v15151_v34 = vadd.f32 %v4331_v60, %v3615_v59  ;;  %v4431_v17 = vpop.f32.mrf.mxu3  ;;  %v5320_v23 = vor.u32 %v5319_v29, %v5315_v6  ;;  %v5311_v35 = vrot.slane %v5310_v43, 4  ;;  %v6800_v60 = vunpack.c.l.b16 %v6585_v25 }
 0x558   :  { %v5330_v43 = vrot.slane %v5328_v21, 4 }
 0x559   :  { %11782 = vmatmul.msk.bf16.gmra.mxu0 %vm395_vm1, %v12086_v33  ;;  %11522 = vmatmul.msk.bf16.gmra.mxu2 %vm395_vm1, %v6051_v31  ;;  %v5321_v38 = vrot.slane %v5320_v23, 4  ;;  %v6861_v1 = vpack.c.b16 %v6801_v5, %v6800_v60  ;;  %v5325_v33 = vrot.slane %v5323_v13, 5  ;;  %v5316_v56 = vsel %vm14293_vm14, %v5311_v35, %v5315_v6  ;;  %v12087_v31 = vld [vmem:[#allocation2 + $0xa0] sm:$0xff] }
 0x55a   :  { %v3265_v63 = vpop.f32.mrf.mxu1  ;;  %v5333_v23 = vrot.slane %v5331_v48, 5  ;;  %v12038_v60 = vld [vmem:[#allocation2 + $0x40] sm:$0xff] }
 0x55b   :  { %v3715_v58 = vadd.f32 %v3714_v45, %v3265_v63  ;;  %v5326_v63 = vsel %vm14293_vm14, %v5321_v38, %v5325_v33 }
 0x55c   :  { %v5993_v30 = vunpack.c.l.b16 %v5326_v63 }
 0x55d   :  { %v15156_v55 = vadd.f32 %v4431_v17, %v3715_v58  ;;  %11473 = vmatmul.msk.bf16.gmra.mxu1 %vm395_vm1, %v12037_v20  ;;  %v3719_v59 = vpop.f32.mrf.mxu2  ;;  %v15166_v17 = vld [vmem:[#allocation2 + $0x64] sm:$0xf]  ;;  %v5992_v58 = vunpack.c.l.b16 %v5316_v56  ;;  %v6437_v20 = vld [vmem:[#allocation2 + $0x50] sm:$0xe] }
 0x55e   :  { %v4333_v45 = vpop.f32.mrf.mxu0  ;;  %v5337_v32 = vshll.u32 %v15166_v17, 16  ;;  %v11555_v13 = vrot.slane %v6437_v20, 9  ;;  %v5129_v20 = vld [vmem:[#allocation2 + $0x70] sm:$0xf] }
 0x55f   :  { %v15164_v7 = vadd.f32 %v4333_v45, %v3617_v27  ;;  %v4433_v57 = vpop.f32.mrf.mxu3  ;;  %v6052_v38 = vpack.c.b16 %v5993_v30, %v5992_v58 }
 0x560   :  { %v5339_v25 = vrot.slane %v5337_v32, 5  ;;  %v6592_v56 = vsel %vm14386_vm3, %v11555_v13, %v6591_v49 }
 0x562   :  { %v3267_v26 = vpop.f32.mrf.mxu1 }
 0x563   :  { %v3717_v8 = vadd.f32 %v3716_v44, %v3267_v26  ;;  %v5341_v44 = vshrl.u32 %v15166_v17, 16  ;;  %v5128_v26 = vld [vmem:[#allocation2 + $0x68] sm:$0x1] }
 0x564   :  { %11602 = vmatmul.msk.bf16.gmra.mxu3 %vm395_vm1, %v6861_v1 }
 0x565   :  { %v15171_v29 = vadd.f32 %v4433_v57, %v3717_v8  ;;  %v3721_v27 = vpop.f32.mrf.mxu2  ;;  %v5343_v45 = vrot.slane %v5341_v44, 4  ;;  %v6594_v57 = vrot.slane %v5125_v12, 5  ;;  %v5334_v8 = vor.u32 %v5333_v23, %v5330_v43 }
 0x566   :  { %v15178_v11 = vpop.f32.mrf.mxu0  ;;  %v6802_v44 = vunpack.c.l.b16 %v6592_v56  ;;  %v6598_v23 = vrot.slane %v15166_v17, 5 }
 0x567   :  { %17644 = vst [vmem:[#allocation35_spill] sm:$0xff] %v15178_v11  ;;  %v4436_v6 = vpop.f32.mrf.mxu3  ;;  %v6595_v22 = vsel %vm14386_vm3, %v6593_v39, %v6594_v57  ;;  %v5344_v33 = vor.u32 %v5343_v45, %v5339_v25  ;;  %v5335_v63 = vrot.slane %v5334_v8, 4  ;;  %v5352_v45 = vshrl.u32 %v5129_v20, 16  ;;  %v12088_v8 = vld [vmem:[#allocation2 + $0xb0] sm:$0xff]  ;;  %v5134_v11 = vld [vmem:[#allocation2 + $0x88] sm:$0x1] }
 0x568   :  { %v6803_v12 = vunpack.c.l.b16 %v6595_v22  ;;  %v6600_v17 = vrot.slane %v6598_v23, 4 }
 0x569   :  { %11783 = vmatmul.msk.bf16.gmra.mxu0 %vm395_vm1, %v12087_v31  ;;  %11523 = vmatmul.msk.bf16.gmra.mxu2 %vm395_vm1, %v6052_v38  ;;  %v5345_v58 = vrot.slane %v5344_v33, 4  ;;  %v15191_v31 = vld [vmem:[#allocation2 + $0x74] sm:$0xf]  ;;  %v5340_v49 = vsel %vm14293_vm14, %v5335_v63, %v5339_v25  ;;  %v6438_v38 = vld [vmem:[#allocation2 + $0x60] sm:$0xe]  ;;  %v5354_v56 = vrot.slane %v5352_v45, 4 }
 0x56a   :  { %v3270_v5 = vpop.f32.mrf.mxu1  ;;  %v6862_v39 = vpack.c.b16 %v6803_v12, %v6802_v44  ;;  %v5994_v25 = vunpack.c.l.b16 %v5340_v49 }
 0x56b   :  { %v3720_v35 = vadd.f32 %v3719_v59, %v3270_v5  ;;  %v5347_v59 = vshll.u32 %v5128_v26, 16  ;;  %v5355_v5 = vshll.u32 %v5129_v20, 16  ;;  %v6601_v20 = vrot.slane %v5128_v26, 5 }
 0x56d   :  { %v15183_v1 = vadd.f32 %v4436_v6, %v3720_v35  ;;  %11474 = vmatmul.msk.bf16.gmra.mxu1 %vm395_vm1, %v12038_v60  ;;  %v3724_v32 = vpop.f32.mrf.mxu2  ;;  %v5349_v43 = vrot.slane %v5347_v59, 5  ;;  %v5361_v35 = vshll.u32 %v15191_v31, 16  ;;  %v5357_v12 = vrot.slane %v5355_v5, 5 }
 0x56e   :  { %v15189_v21 = vpop.f32.mrf.mxu0 }
 0x56f   :  { %17645 = vst [vmem:[#allocation18_spill] sm:$0xff] %v15189_v21  ;;  %v4438_v48 = vpop.f32.mrf.mxu3  ;;  %v5350_v57 = vsel %vm14293_vm14, %v5345_v58, %v5349_v43  ;;  %v11556_v58 = vrot.slane %v6438_v38, 9  ;;  %v6602_v43 = vsel %vm14386_vm3, %v6600_v17, %v6601_v20  ;;  %v5358_v21 = vor.u32 %v5357_v12, %v5354_v56 }
 0x570   :  { %v5995_v33 = vunpack.c.l.b16 %v5350_v57  ;;  %v6805_v26 = vunpack.c.l.b16 %v6602_v43  ;;  %v6439_v43 = vld [vmem:[#allocation2 + $0x70] sm:$0xe] }
 0x571   :  { %v6599_v5 = vsel %vm14386_vm3, %v11556_v58, %v6598_v23 }
 0x572   :  { %v3272_v6 = vpop.f32.mrf.mxu1  ;;  %v6804_v17 = vunpack.c.l.b16 %v6599_v5  ;;  %v12089_v5 = vld [vmem:[#allocation2 + $0xc0] sm:$0xff] }
 0x573   :  { %v3722_v30 = vadd.f32 %v3721_v27, %v3272_v6  ;;  %v5365_v27 = vshrl.u32 %v15191_v31, 16 }
 0x574   :  { %11603 = vmatmul.msk.bf16.gmra.mxu3 %vm395_vm1, %v6862_v39  ;;  %v6053_v39 = vpack.c.b16 %v5995_v33, %v5994_v25  ;;  %v5132_v25 = vld [vmem:[#allocation2 + $0x80] sm:$0xf]  ;;  %v15216_v33 = vld [vmem:[#allocation2 + $0x84] sm:$0xf]  ;;  %v6863_v12 = vpack.c.b16 %v6805_v26, %v6804_v17 }
 0x575   :  { %v15196_v13 = vadd.f32 %v4438_v48, %v3722_v30  ;;  %v3726_v59 = vpop.f32.mrf.mxu2  ;;  %v5363_v48 = vrot.slane %v5361_v35, 5  ;;  %v5367_v63 = vrot.slane %v5365_v27, 4  ;;  %v12039_v30 = vld [vmem:[#allocation2 + $0x50] sm:$0xff]  ;;  %v5359_v27 = vrot.slane %v5358_v21, 4 }
 0x576   :  { %v15203_v60 = vpop.f32.mrf.mxu0  ;;  %v5376_v58 = vshrl.u32 %v5132_v25, 16  ;;  %v5379_v20 = vshll.u32 %v5132_v25, 16 }
 0x577   :  { %17646 = vst [vmem:[#allocation23_spill] sm:$0xff] %v15203_v60  ;;  %v4441_v22 = vpop.f32.mrf.mxu3  ;;  %v5131_v60 = vld [vmem:[#allocation2 + $0x78] sm:$0x1]  ;;  %v5368_v45 = vor.u32 %v5367_v63, %v5363_v48  ;;  %v5364_v23 = vsel %vm14293_vm14, %v5359_v27, %v5363_v48 }
 0x578   :  { %v5996_v48 = vunpack.c.l.b16 %v5364_v23 }
 0x579   :  { %11784 = vmatmul.msk.bf16.gmra.mxu0 %vm395_vm1, %v12088_v8  ;;  %11524 = vmatmul.msk.bf16.gmra.mxu2 %vm395_vm1, %v6053_v39  ;;  %v5369_v8 = vrot.slane %v5368_v45, 4 }
 0x57a   :  { %v3275_v44 = vpop.f32.mrf.mxu1 }
 0x57b   :  { %v3725_v6 = vadd.f32 %v3724_v32, %v3275_v44  ;;  %v5371_v32 = vshll.u32 %v5131_v60, 16  ;;  %v6605_v44 = vrot.slane %v15191_v31, 5 }
 0x57d   :  { %v15208_v49 = vadd.f32 %v4441_v22, %v3725_v6  ;;  %11475 = vmatmul.msk.bf16.gmra.mxu1 %vm395_vm1, %v12039_v30  ;;  %v3729_v38 = vpop.f32.mrf.mxu2  ;;  %v5373_v63 = vrot.slane %v5371_v32, 5  ;;  %v5385_v30 = vshll.u32 %v15216_v33, 16  ;;  %v6607_v31 = vrot.slane %v6605_v44, 4 }
 0x57e   :  { %v15214_v57 = vpop.f32.mrf.mxu0  ;;  %v5378_v32 = vrot.slane %v5376_v58, 4 }
 0x57f   :  { %17647 = vst [vmem:[#allocation24_spill] sm:$0xff] %v15214_v57  ;;  %v4443_v35 = vpop.f32.mrf.mxu3  ;;  %v5374_v21 = vsel %vm14293_vm14, %v5369_v8, %v5373_v63  ;;  %v5387_v17 = vrot.slane %v5385_v30, 5  ;;  %v11557_v8 = vrot.slane %v6439_v43, 9  ;;  %v12040_v63 = vld [vmem:[#allocation2 + $0x60] sm:$0xff] }
 0x580   :  { %v5997_v26 = vunpack.c.l.b16 %v5374_v21 }
 0x582   :  { %v3277_v22 = vpop.f32.mrf.mxu1  ;;  %v6054_v57 = vpack.c.b16 %v5997_v26, %v5996_v48  ;;  %v5135_v48 = vld [vmem:[#allocation2 + $0x90] sm:$0xf]  ;;  %v15241_v26 = vld [vmem:[#allocation2 + $0x94] sm:$0xf] }
 0x583   :  { %v3727_v56 = vadd.f32 %v3726_v59, %v3277_v22  ;;  %v5389_v59 = vshrl.u32 %v15216_v33, 16 }
 0x584   :  { %11604 = vmatmul.msk.bf16.gmra.mxu3 %vm395_vm1, %v6863_v12 }
 0x585   :  { %v15221_v6 = vadd.f32 %v4443_v35, %v3727_v56  ;;  %v5381_v35 = vrot.slane %v5379_v20, 5  ;;  %v3731_v27 = vpop.f32.mrf.mxu2  ;;  %v5391_v25 = vrot.slane %v5389_v59, 4  ;;  %v6608_v56 = vrot.slane %v5131_v60, 5 }
 0x586   :  { %v15228_v39 = vpop.f32.mrf.mxu0  ;;  %v6606_v20 = vsel %vm14386_vm3, %v11557_v8, %v6605_v44 }
 0x587   :  { %17648 = vst [vmem:[#allocation25_spill] sm:$0xff] %v15221_v6  ;;  %v4446_v45 = vpop.f32.mrf.mxu3  ;;  %v5382_v6 = vor.u32 %v5381_v35, %v5378_v32  ;;  %v5392_v58 = vor.u32 %v5391_v25, %v5387_v17 }
 0x588   :  { %17649 = vst [vmem:[#allocation42_spill] sm:$0xff] %v15228_v39  ;;  %v6609_v39 = vsel %vm14386_vm3, %v6607_v31, %v6608_v56  ;;  %v6806_v31 = vunpack.c.l.b16 %v6606_v20  ;;  %v5409_v56 = vshll.u32 %v15241_v26, 16  ;;  %v12090_v20 = vld [vmem:[#allocation2 + $0xd0] sm:$0xff] }
 0x589   :  { %11785 = vmatmul.msk.bf16.gmra.mxu0 %vm395_vm1, %v12089_v5  ;;  %11525 = vmatmul.msk.bf16.gmra.mxu2 %vm395_vm1, %v6054_v57  ;;  %v6807_v60 = vunpack.c.l.b16 %v6609_v39  ;;  %v5383_v59 = vrot.slane %v5382_v6, 4  ;;  %v5393_v5 = vrot.slane %v5392_v58, 4  ;;  %v6612_v57 = vrot.slane %v15216_v33, 5  ;;  %v6440_v33 = vld [vmem:[#allocation2 + $0x80] sm:$0xe] }
 0x58a   :  { %v3280_v22 = vpop.f32.mrf.mxu1  ;;  %v5403_v39 = vshll.u32 %v5135_v48, 16 }
 0x58b   :  { %v3730_v12 = vadd.f32 %v3729_v38, %v3280_v22  ;;  %v5395_v38 = vshll.u32 %v5134_v11, 16  ;;  %v6864_v35 = vpack.c.b16 %v6807_v60, %v6806_v31  ;;  %v5388_v44 = vsel %vm14293_vm14, %v5383_v59, %v5387_v17 }
 0x58c   :  { %v5400_v22 = vshrl.u32 %v5135_v48, 16  ;;  %v6614_v58 = vrot.slane %v6612_v57, 4  ;;  %v5998_v60 = vunpack.c.l.b16 %v5388_v44  ;;  %v5405_v59 = vrot.slane %v5403_v39, 5 }
 0x58d   :  { %v15233_v23 = vadd.f32 %v4446_v45, %v3730_v12  ;;  %11476 = vmatmul.msk.bf16.gmra.mxu1 %vm395_vm1, %v12040_v63  ;;  %v3734_v43 = vpop.f32.mrf.mxu2  ;;  %v5397_v25 = vrot.slane %v5395_v38, 5  ;;  %v12121_v12 = vld [vmem:[#allocation6 + $0x110] sm:$0xff]  ;;  %v5411_v48 = vrot.slane %v5409_v56, 5 }
 0x58e   :  { %v15239_v21 = vpop.f32.mrf.mxu0  ;;  %9734 = vmatpush.bf16.msra.mxu2 %v12121_v12  ;;  %v12117_v56 = vld [vmem:[#allocation6 + $0xf0] sm:$0xff] }
 0x58f   :  { %17650 = vst [vmem:[#allocation43_spill] sm:$0xff] %v15233_v23  ;;  %v4448_v30 = vpop.f32.mrf.mxu3  ;;  %v5398_v6 = vsel %vm14293_vm14, %v5393_v5, %v5397_v25  ;;  %8924 = vmatpush.bf16.msra.mxu1 %v12117_v56 }
 0x590   :  { %17651 = vst [vmem:[#allocation44_spill] sm:$0xff] %v15239_v21  ;;  %v5999_v38 = vunpack.c.l.b16 %v5398_v6  ;;  %v12041_v21 = vld [vmem:[#allocation2 + $0x70] sm:$0xff] }
 0x592   :  { %v3282_v45 = vpop.f32.mrf.mxu1 }
 0x593   :  { %v3732_v32 = vadd.f32 %v3731_v27, %v3282_v45  ;;  %v5413_v27 = vshrl.u32 %v15241_v26, 16 }
 0x594   :  { %11605 = vmatmul.msk.bf16.gmra.mxu3 %vm395_vm1, %v6864_v35  ;;  %v6615_v35 = vrot.slane %v5134_v11, 5 }
 0x595   :  { %v15246_v8 = vadd.f32 %v4448_v30, %v3732_v32  ;;  %v5402_v30 = vrot.slane %v5400_v22, 4  ;;  %v3736_v31 = vpop.f32.mrf.mxu2  ;;  %v5415_v45 = vrot.slane %v5413_v27, 4  ;;  %v11558_v32 = vrot.slane %v6440_v33, 9 }
 0x596   :  { %v15253_v63 = vpop.f32.mrf.mxu0  ;;  %v6616_v12 = vsel %vm14386_vm3, %v6614_v58, %v6615_v35 }
 0x597   :  { %17652 = vst [vmem:[#allocation45_spill] sm:$0xff] %v15246_v8  ;;  %v4451_v17 = vpop.f32.mrf.mxu3  ;;  %v5137_v8 = vld [vmem:[#allocation2 + $0x98] sm:$0x1]  ;;  %v5406_v23 = vor.u32 %v5405_v59, %v5402_v30  ;;  %v5416_v22 = vor.u32 %v5415_v45, %v5411_v48  ;;  %v6613_v39 = vsel %vm14386_vm3, %v11558_v32, %v6612_v57  ;;  %v6809_v11 = vunpack.c.l.b16 %v6616_v12  ;;  %v6441_v12 = vld [vmem:[#allocation2 + $0x90] sm:$0xe] }
 0x598   :  { %17653 = vst [vmem:[#allocation46_spill] sm:$0xff] %v15253_v63  ;;  %v6055_v63 = vpack.c.b16 %v5999_v38, %v5998_v60  ;;  %v6619_v57 = vrot.slane %v15241_v26, 5 }
 0x599   :  { %11786 = vmatmul.msk.bf16.gmra.mxu0 %vm395_vm1, %v12090_v20  ;;  %v5407_v33 = vrot.slane %v5406_v23, 4  ;;  %v6808_v20 = vunpack.c.l.b16 %v6613_v39  ;;  %v5417_v60 = vrot.slane %v5416_v22, 4 }
 0x59a   :  { %v3285_v5 = vpop.f32.mrf.mxu1  ;;  %11526 = vmatmul.msk.bf16.gmra.mxu2 %vm395_vm1, %v6055_v63  ;;  %v6621_v22 = vrot.slane %v6619_v57, 4 }
 0x59b   :  { %v3735_v25 = vadd.f32 %v3734_v43, %v3285_v5  ;;  %v5419_v43 = vshll.u32 %v5137_v8, 16  ;;  %v6865_v63 = vpack.c.b16 %v6809_v11, %v6808_v20  ;;  %v5412_v45 = vsel %vm14293_vm14, %v5407_v33, %v5411_v48  ;;  %v12091_v11 = vld [vmem:[#allocation2 + $0xe0] sm:$0xff] }
 0x59c   :  { %v6000_v48 = vunpack.c.l.b16 %v5412_v45 }
 0x59d   :  { %v15258_v44 = vadd.f32 %v4451_v17, %v3735_v25  ;;  %11477 = vmatmul.msk.bf16.gmra.mxu1 %vm395_vm1, %v12041_v21  ;;  %v3739_v58 = vpop.f32.mrf.mxu2  ;;  %v5138_v17 = vld [vmem:[#allocation2 + $0xa0] sm:$0xf]  ;;  %v15266_v21 = vld [vmem:[#allocation2 + $0xa4] sm:$0xf]  ;;  %v5421_v59 = vrot.slane %v5419_v43, 5 }
 0x59e   :  { %v15264_v6 = vpop.f32.mrf.mxu0  ;;  %v5424_v5 = vshrl.u32 %v5138_v17, 16  ;;  %v5427_v32 = vshll.u32 %v5138_v17, 16  ;;  %v5433_v25 = vshll.u32 %v15266_v21, 16 }
 0x59f   :  { %17654 = vst [vmem:[#allocation47_spill] sm:$0xff] %v15258_v44  ;;  %v4453_v27 = vpop.f32.mrf.mxu3  ;;  %v5422_v23 = vsel %vm14293_vm14, %v5417_v60, %v5421_v59  ;;  %v11559_v60 = vrot.slane %v6441_v12, 9  ;;  %v12042_v59 = vld [vmem:[#allocation2 + $0x80] sm:$0xff] }
 0x5a0   :  { %17655 = vst [vmem:[#allocation48_spill] sm:$0xff] %v15264_v6  ;;  %v6001_v43 = vunpack.c.l.b16 %v5422_v23  ;;  %v5426_v56 = vrot.slane %v5424_v5, 4  ;;  %v5435_v20 = vrot.slane %v5433_v25, 5 }
 0x5a2   :  { %v3287_v38 = vpop.f32.mrf.mxu1  ;;  %v6056_v6 = vpack.c.b16 %v6001_v43, %v6000_v48 }
 0x5a3   :  { %v3737_v30 = vadd.f32 %v3736_v31, %v3287_v38  ;;  %v5437_v31 = vshrl.u32 %v15266_v21, 16 }
 0x5a4   :  { %11606 = vmatmul.msk.bf16.gmra.mxu3 %vm395_vm1, %v6865_v63 }
 0x5a5   :  { %v15271_v35 = vadd.f32 %v4453_v27, %v3737_v30  ;;  %v5429_v27 = vrot.slane %v5427_v32, 5  ;;  %v3741_v33 = vpop.f32.mrf.mxu2  ;;  %v5439_v17 = vrot.slane %v5437_v31, 4  ;;  %v6622_v30 = vrot.slane %v5137_v8, 5 }
 0x5a6   :  { %v15278_v39 = vpop.f32.mrf.mxu0  ;;  %v6620_v32 = vsel %vm14386_vm3, %v11559_v60, %v6619_v57 }
 0x5a7   :  { %17656 = vst [vmem:[#allocation49_spill] sm:$0xff] %v15271_v35  ;;  %v4456_v26 = vpop.f32.mrf.mxu3  ;;  %v5140_v35 = vld [vmem:[#allocation2 + $0xa8] sm:$0x1]  ;;  %v5430_v44 = vor.u32 %v5429_v27, %v5426_v56  ;;  %v5440_v5 = vor.u32 %v5439_v17, %v5435_v20  ;;  %v6810_v12 = vunpack.c.l.b16 %v6620_v32 }
 0x5a8   :  { %17657 = vst [vmem:[#allocation50_spill] sm:$0xff] %v15278_v39  ;;  %v6623_v39 = vsel %vm14386_vm3, %v6621_v22, %v6622_v30  ;;  %v5443_v8 = vshll.u32 %v5140_v35, 16  ;;  %v5141_v22 = vld [vmem:[#allocation2 + $0xb0] sm:$0xf] }
 0x5a9   :  { %11787 = vmatmul.msk.bf16.gmra.mxu0 %vm395_vm1, %v12091_v11  ;;  %v6811_v23 = vunpack.c.l.b16 %v6623_v39  ;;  %v5431_v25 = vrot.slane %v5430_v44, 4  ;;  %v5441_v11 = vrot.slane %v5440_v5, 4  ;;  %v5448_v39 = vshrl.u32 %v5141_v22, 16 }
 0x5aa   :  { %v3290_v38 = vpop.f32.mrf.mxu1  ;;  %11527 = vmatmul.msk.bf16.gmra.mxu2 %vm395_vm1, %v6056_v6  ;;  %v5445_v17 = vrot.slane %v5443_v8, 5  ;;  %v6626_v6 = vrot.slane %v15266_v21, 5  ;;  %v12092_v21 = vld [vmem:[#allocation2 + $0xf0] sm:$0xff] }
 0x5ab   :  { %v3740_v63 = vadd.f32 %v3739_v58, %v3290_v38  ;;  %v6866_v27 = vpack.c.b16 %v6811_v23, %v6810_v12  ;;  %v5436_v57 = vsel %vm14293_vm14, %v5431_v25, %v5435_v20  ;;  %v5451_v38 = vshll.u32 %v5141_v22, 16 }
 0x5ac   :  { %v5446_v60 = vsel %vm14293_vm14, %v5441_v11, %v5445_v17  ;;  %v6002_v32 = vunpack.c.l.b16 %v5436_v57  ;;  %v5450_v20 = vrot.slane %v5448_v39, 4  ;;  %v6629_v11 = vrot.slane %v5140_v35, 5 }
 0x5ad   :  { %v15283_v45 = vadd.f32 %v4456_v26, %v3740_v63  ;;  %11478 = vmatmul.msk.bf16.gmra.mxu1 %vm395_vm1, %v12042_v59  ;;  %v6209_v31 = vpop.f32.mrf.mxu2  ;;  %v15291_v26 = vld [vmem:[#allocation2 + $0xb4] sm:$0xf]  ;;  %v6442_v63 = vld [vmem:[#allocation2 + $0xa0] sm:$0xe]  ;;  %v6628_v59 = vrot.slane %v6626_v6, 4  ;;  %v6003_v23 = vunpack.c.l.b16 %v5446_v60  ;;  %v5453_v8 = vrot.slane %v5451_v38, 5 }
 0x5ae   :  { %v15289_v43 = vpop.f32.mrf.mxu0  ;;  %v5457_v30 = vshll.u32 %v15291_v26, 16  ;;  %v5143_v60 = vld [vmem:[#allocation2 + $0xb8] sm:$0x1] }
 0x5af   :  { %v4458_v58 = vpop.f32.mrf.mxu3  ;;  %17658 = vst [vmem:[#allocation51_spill] sm:$0xff] %v15289_v43  ;;  %v6057_v43 = vpack.c.b16 %v6003_v23, %v6002_v32  ;;  %v6630_v57 = vsel %vm14386_vm3, %v6628_v59, %v6629_v11  ;;  %v5454_v39 = vor.u32 %v5453_v8, %v5450_v20  ;;  %v5144_v11 = vld [vmem:[#allocation2 + $0xc0] sm:$0xf] }
 0x5b1   :  { %v5455_v32 = vrot.slane %v5454_v39, 4 }
 0x5b2   :  { %v3292_v48 = vpop.f32.mrf.mxu1 }
 0x5b3   :  { %v3742_v56 = vadd.f32 %v3741_v33, %v3292_v48  ;;  %v5461_v33 = vshrl.u32 %v15291_v26, 16  ;;  %v11560_v48 = vrot.slane %v6442_v63, 9  ;;  %v5467_v63 = vshll.u32 %v5143_v60, 16 }
 0x5b4   :  { %11607 = vmatmul.msk.bf16.gmra.mxu3 %vm395_vm1, %v6866_v27  ;;  %v12043_v27 = vld [vmem:[#allocation2 + $0x90] sm:$0xff] }
 0x5b5   :  { %v15296_v44 = vadd.f32 %v4458_v58, %v3742_v56  ;;  %v6211_v25 = vpop.f32.mrf.mxu2  ;;  %v5459_v58 = vrot.slane %v5457_v30, 5  ;;  %v5463_v12 = vrot.slane %v5461_v33, 4  ;;  %v6627_v35 = vsel %vm14386_vm3, %v11560_v48, %v6626_v6 }
 0x5b6   :  { %v15305_v17 = vpop.f32.mrf.mxu0  ;;  %v5472_v48 = vshrl.u32 %v5144_v11, 16 }
 0x5b7   :  { %v7019_v5 = vpop.f32.mrf.mxu3  ;;  %17659 = vst [vmem:[#allocation52_spill] sm:$0xff] %v15305_v17  ;;  %v5464_v30 = vor.u32 %v5463_v12, %v5459_v58  ;;  %v5460_v6 = vsel %vm14293_vm14, %v5455_v32, %v5459_v58 }
 0x5b9   :  { %11788 = vmatmul.msk.bf16.gmra.mxu0 %vm395_vm1, %v12092_v21  ;;  %v5465_v59 = vrot.slane %v5464_v30, 4 }
 0x5ba   :  { %v4887_v22 = vpop.f32.mrf.mxu1  ;;  %11528 = vmatmul.msk.bf16.gmra.mxu2 %vm395_vm1, %v6057_v43  ;;  %v5469_v43 = vrot.slane %v5467_v63, 5 }
 0x5bb   :  { %v5047_v56 = vadd.f32 %v4887_v22, %v14967_v9  ;;  %v6813_v9 = vunpack.c.l.b16 %v6630_v57  ;;  %v6812_v22 = vunpack.c.l.b16 %v6627_v35  ;;  %v6443_v35 = vld [vmem:[#allocation2 + $0xb0] sm:$0xe] }
 0x5bc   :  { %v5470_v57 = vsel %vm14293_vm14, %v5465_v59, %v5469_v43  ;;  %v6636_v43 = vrot.slane %v5143_v60, 5 }
 0x5bd   :  { %v6369_v38 = vadd.f32 %v6209_v31, %v5047_v56  ;;  %11479 = vmatmul.msk.bf16.gmra.mxu1 %vm395_vm1, %v12043_v27  ;;  %v6214_v23 = vpop.f32.mrf.mxu2  ;;  %v15315_v31 = vld [vmem:[#allocation2 + $0xc4] sm:$0xf]  ;;  %v6867_v12 = vpack.c.b16 %v6813_v9, %v6812_v22  ;;  %v5475_v56 = vshll.u32 %v5144_v11, 16  ;;  %v6005_v63 = vunpack.c.l.b16 %v5470_v57 }
 0x5be   :  { %v5481_v39 = vshll.u32 %v15315_v31, 16  ;;  %v12093_v9 = vld [vmem:[#allocation2 + $0x100] sm:$0xff]  ;;  %v5474_v22 = vrot.slane %v5472_v48, 4 }
 0x5bf   :  { %v15313_v33 = vadd.f32 %v7019_v5, %v6369_v38  ;;  %v7021_v21 = vpop.f32.mrf.mxu3  ;;  %v6633_v5 = vrot.slane %v15291_v26, 5  ;;  %v5485_v38 = vshrl.u32 %v15315_v31, 16  ;;  %v6004_v26 = vunpack.c.l.b16 %v5460_v6  ;;  %v5146_v6 = vld [vmem:[#allocation2 + $0xc8] sm:$0x1] }
 0x5c0   :  { %v5477_v11 = vrot.slane %v5475_v56, 5 }
 0x5c1   :  { %v6635_v32 = vrot.slane %v6633_v5, 4 }
 0x5c2   :  { %v4889_v20 = vpop.f32.mrf.mxu1  ;;  %v5478_v48 = vor.u32 %v5477_v11, %v5474_v22 }
 0x5c3   :  { %v5048_v8 = vadd.f32 %v4889_v20, %v14980_v19  ;;  %v15326_v19 = vpop.f32.mrf.mxu0  ;;  %v5483_v20 = vrot.slane %v5481_v39, 5  ;;  %v6637_v17 = vsel %vm14386_vm3, %v6635_v32, %v6636_v43 }
 0x5c4   :  { %11608 = vmatmul.msk.bf16.gmra.mxu3 %vm395_vm1, %v6867_v12  ;;  %17660 = vst [vmem:[#allocation53_spill] sm:$0xff] %v15326_v19  ;;  %v11561_v12 = vrot.slane %v6443_v35, 9  ;;  %v6815_v60 = vunpack.c.l.b16 %v6637_v17  ;;  %v5479_v32 = vrot.slane %v5478_v48, 4 }
 0x5c5   :  { %v6370_v27 = vadd.f32 %v6211_v25, %v5048_v8  ;;  %v6216_v25 = vpop.f32.mrf.mxu2  ;;  %v5487_v8 = vrot.slane %v5485_v38, 4 }
 0x5c6   :  { %v6634_v39 = vsel %vm14386_vm3, %v11561_v12, %v6633_v5  ;;  %v6640_v5 = vrot.slane %v15315_v31, 5 }
 0x5c7   :  { %v15328_v30 = vadd.f32 %v7021_v21, %v6370_v27  ;;  %v7024_v58 = vpop.f32.mrf.mxu3  ;;  %v12044_v21 = vld [vmem:[#allocation2 + $0xa0] sm:$0xff]  ;;  %v6058_v27 = vpack.c.b16 %v6005_v63, %v6004_v26  ;;  %v5488_v56 = vor.u32 %v5487_v8, %v5483_v20  ;;  %v6814_v63 = vunpack.c.l.b16 %v6634_v39 }
 0x5c8   :  { %v6444_v39 = vld [vmem:[#allocation2 + $0xc0] sm:$0xe]  ;;  %v6642_v31 = vrot.slane %v6640_v5, 4 }
 0x5c9   :  { %11789 = vmatmul.msk.bf16.gmra.mxu0 %vm395_vm1, %v12093_v9  ;;  %v6868_v8 = vpack.c.b16 %v6815_v60, %v6814_v63 }
 0x5ca   :  { %v4892_v59 = vpop.f32.mrf.mxu1  ;;  %11529 = vmatmul.msk.bf16.gmra.mxu2 %vm395_vm1, %v6058_v27  ;;  %v5484_v27 = vsel %vm14293_vm14, %v5479_v32, %v5483_v20  ;;  %v11562_v32 = vrot.slane %v6444_v39, 9 }
 0x5cb   :  { %v5049_v19 = vadd.f32 %v4892_v59, %v14991_v42  ;;  %v5491_v42 = vshll.u32 %v5146_v6, 16  ;;  %v15340_v35 = vpop.f32.mrf.mxu0  ;;  %v15342_v59 = vld [vmem:[#allocation2 + $0xd4] sm:$0xf] }
 0x5cc   :  { %17661 = vst [vmem:[#allocation54_spill] sm:$0xff] %v15340_v35  ;;  %v5505_v12 = vshll.u32 %v15342_v59, 16  ;;  %v5509_v48 = vshrl.u32 %v15342_v59, 16 }
 0x5cd   :  { %v6371_v57 = vadd.f32 %v6214_v23, %v5049_v19  ;;  %11480 = vmatmul.msk.bf16.gmra.mxu1 %vm395_vm1, %v12044_v21  ;;  %v6219_v26 = vpop.f32.mrf.mxu2  ;;  %v5489_v23 = vrot.slane %v5488_v56, 4  ;;  %v5147_v19 = vld [vmem:[#allocation2 + $0xd0] sm:$0xf]  ;;  %v5493_v43 = vrot.slane %v5491_v42, 5  ;;  %v6006_v42 = vunpack.c.l.b16 %v5484_v27 }
 0x5ce   :  { %v5499_v17 = vshll.u32 %v5147_v19, 16 }
 0x5cf   :  { %v15338_v38 = vadd.f32 %v7024_v58, %v6371_v57  ;;  %v7026_v9 = vpop.f32.mrf.mxu3  ;;  %v5496_v58 = vshrl.u32 %v5147_v19, 16  ;;  %v5494_v57 = vsel %vm14293_vm14, %v5489_v23, %v5493_v43  ;;  %v6643_v23 = vrot.slane %v5146_v6, 5  ;;  %v12045_v43 = vld [vmem:[#allocation2 + $0xb0] sm:$0xff] }
 0x5d0   :  { %v6007_v63 = vunpack.c.l.b16 %v5494_v57  ;;  %v5149_v57 = vld [vmem:[#allocation2 + $0xd8] sm:$0x1] }
 0x5d1   :  { %v5498_v19 = vrot.slane %v5496_v58, 4  ;;  %v6644_v27 = vsel %vm14386_vm3, %v6642_v31, %v6643_v23  ;;  %v5150_v23 = vld [vmem:[#allocation2 + $0xe0] sm:$0xf] }
 0x5d2   :  { %v4894_v22 = vpop.f32.mrf.mxu1  ;;  %v6817_v6 = vunpack.c.l.b16 %v6644_v27 }
 0x5d3   :  { %v5050_v11 = vadd.f32 %v4894_v22, %v15007_v15  ;;  %v12094_v15 = vld [vmem:[#allocation2 + $0x110] sm:$0xff]  ;;  %v15355_v35 = vpop.f32.mrf.mxu0 }
 0x5d4   :  { %11609 = vmatmul.msk.bf16.gmra.mxu3 %vm395_vm1, %v6868_v8  ;;  %v5511_v8 = vrot.slane %v5509_v48, 4  ;;  %17662 = vst [vmem:[#allocation55_spill] sm:$0xff] %v15355_v35  ;;  %v6641_v48 = vsel %vm14386_vm3, %v11562_v32, %v6640_v5  ;;  %v5520_v32 = vshrl.u32 %v5150_v23, 16 }
 0x5d5   :  { %v6372_v21 = vadd.f32 %v6216_v25, %v5050_v11  ;;  %v5501_v25 = vrot.slane %v5499_v17, 5  ;;  %v6221_v22 = vpop.f32.mrf.mxu2  ;;  %v5507_v11 = vrot.slane %v5505_v12, 5 }
 0x5d7   :  { %v15353_v56 = vadd.f32 %v7026_v9, %v6372_v21  ;;  %v7029_v60 = vpop.f32.mrf.mxu3  ;;  %v6059_v21 = vpack.c.b16 %v6007_v63, %v6006_v42  ;;  %v5502_v58 = vor.u32 %v5501_v25, %v5498_v19  ;;  %v5512_v12 = vor.u32 %v5511_v8, %v5507_v11 }
 0x5d9   :  { %11790 = vmatmul.msk.bf16.gmra.mxu0 %vm395_vm1, %v12094_v15  ;;  %v5503_v42 = vrot.slane %v5502_v58, 4  ;;  %v5513_v31 = vrot.slane %v5512_v12, 4 }
 0x5da   :  { %v4897_v20 = vpop.f32.mrf.mxu1  ;;  %11530 = vmatmul.msk.bf16.gmra.mxu2 %vm395_vm1, %v6059_v21  ;;  %v5523_v21 = vshll.u32 %v5150_v23, 16 }
 0x5db   :  { %v5051_v9 = vadd.f32 %v4897_v20, %v15025_v0  ;;  %v5515_v0 = vshll.u32 %v5149_v57, 16  ;;  %v6816_v20 = vunpack.c.l.b16 %v6641_v48  ;;  %v15371_v5 = vpop.f32.mrf.mxu0 }
 0x5dc   :  { %17663 = vst [vmem:[#allocation56_spill] sm:$0xff] %v15371_v5  ;;  %v5525_v23 = vrot.slane %v5523_v21, 5 }
 0x5dd   :  { %v6373_v17 = vadd.f32 %v6219_v26, %v5051_v9  ;;  %11481 = vmatmul.msk.bf16.gmra.mxu1 %vm395_vm1, %v12045_v43  ;;  %v6224_v63 = vpop.f32.mrf.mxu2  ;;  %v15367_v26 = vld [vmem:[#allocation2 + $0xe4] sm:$0xf]  ;;  %v6869_v8 = vpack.c.b16 %v6817_v6, %v6816_v20  ;;  %v5517_v9 = vrot.slane %v5515_v0, 5  ;;  %v6647_v43 = vrot.slane %v15342_v59, 5  ;;  %v6445_v59 = vld [vmem:[#allocation2 + $0xd0] sm:$0xe] }
 0x5de   :  { %v12095_v0 = vld [vmem:[#allocation2 + $0x140] sm:$0xff] }
 0x5df   :  { %v15365_v15 = vadd.f32 %v7029_v60, %v6373_v17  ;;  %v7031_v39 = vpop.f32.mrf.mxu3  ;;  %v5508_v60 = vsel %vm14293_vm14, %v5503_v42, %v5507_v11  ;;  %v5518_v58 = vsel %vm14293_vm14, %v5513_v31, %v5517_v9  ;;  %v5529_v17 = vshll.u32 %v15367_v26, 16 }
 0x5e0   :  { %v6649_v48 = vrot.slane %v6647_v43, 4  ;;  %v6008_v20 = vunpack.c.l.b16 %v5508_v60  ;;  %v6009_v11 = vunpack.c.l.b16 %v5518_v58  ;;  %v5522_v42 = vrot.slane %v5520_v32, 4 }
 0x5e1   :  { %v11563_v31 = vrot.slane %v6445_v59, 9  ;;  %v6650_v9 = vrot.slane %v5149_v57, 5 }
 0x5e2   :  { %v4899_v19 = vpop.f32.mrf.mxu1  ;;  %v5526_v60 = vor.u32 %v5525_v23, %v5522_v42  ;;  %v15394_v42 = vld [vmem:[#allocation2 + $0xf4] sm:$0xf] }
 0x5e3   :  { %v5052_v25 = vadd.f32 %v4899_v19, %v15042_v37  ;;  %v5533_v37 = vshrl.u32 %v15367_v26, 16  ;;  %v5531_v19 = vrot.slane %v5529_v17, 5  ;;  %v6651_v35 = vsel %vm14386_vm3, %v6649_v48, %v6650_v9  ;;  %v15387_v21 = vpop.f32.mrf.mxu0 }
 0x5e4   :  { %11610 = vmatmul.msk.bf16.gmra.mxu3 %vm395_vm1, %v6869_v8  ;;  %17665 = vst [vmem:[#allocation58_spill] sm:$0xff] %v15387_v21  ;;  %v6648_v57 = vsel %vm14386_vm3, %v11563_v31, %v6647_v43  ;;  %v6654_v9 = vrot.slane %v15367_v26, 5  ;;  %v5155_v21 = vld [vmem:[#allocation2 + $0xf8] sm:$0x1] }
 0x5e5   :  { %v6374_v27 = vadd.f32 %v6221_v22, %v5052_v25  ;;  %v6226_v22 = vpop.f32.mrf.mxu2  ;;  %v5535_v25 = vrot.slane %v5533_v37, 4 }
 0x5e7   :  { %v15380_v12 = vadd.f32 %v7031_v39, %v6374_v27  ;;  %v7034_v6 = vpop.f32.mrf.mxu3  ;;  %v12046_v39 = vld [vmem:[#allocation2 + $0xc0] sm:$0xff]  ;;  %v6060_v27 = vpack.c.b16 %v6009_v11, %v6008_v20  ;;  %v5536_v32 = vor.u32 %v5535_v25, %v5531_v19  ;;  %v6818_v20 = vunpack.c.l.b16 %v6648_v57 }
 0x5e9   :  { %17664 = vst [vmem:[#allocation57_spill] sm:$0xff] %v15380_v12  ;;  %11791 = vmatmul.msk.bf16.gmra.mxu0 %vm395_vm1, %v12095_v0  ;;  %v5152_v12 = vld [vmem:[#allocation2 + $0xe8] sm:$0x1]  ;;  %v5527_v0 = vrot.slane %v5526_v60, 4  ;;  %v5537_v11 = vrot.slane %v5536_v32, 4  ;;  %v5557_v60 = vshrl.u32 %v15394_v42, 16 }
 0x5ea   :  { %v4902_v8 = vpop.f32.mrf.mxu1  ;;  %11531 = vmatmul.msk.bf16.gmra.mxu2 %vm395_vm1, %v6060_v27  ;;  %v5539_v37 = vshll.u32 %v5152_v12, 16  ;;  %v5553_v27 = vshll.u32 %v15394_v42, 16  ;;  %v6656_v32 = vrot.slane %v6654_v9, 4 }
 0x5eb   :  { %v5053_v5 = vadd.f32 %v4902_v8, %v15063_v14  ;;  %v6819_v14 = vunpack.c.l.b16 %v6651_v35  ;;  %v5532_v43 = vsel %vm14293_vm14, %v5527_v0, %v5531_v19  ;;  %v15407_v26 = vpop.f32.mrf.mxu0  ;;  %v12096_v19 = vld [vmem:[#allocation2 + $0x150] sm:$0xff] }
 0x5ec   :  { %v5541_v8 = vrot.slane %v5539_v37, 5  ;;  %17666 = vst [vmem:[#allocation59_spill] sm:$0xff] %v15407_v26 }
 0x5ed   :  { %v6375_v58 = vadd.f32 %v6224_v63, %v5053_v5  ;;  %11482 = vmatmul.msk.bf16.gmra.mxu1 %vm395_vm1, %v12046_v39  ;;  %v6229_v48 = vpop.f32.mrf.mxu2  ;;  %v5153_v63 = vld [vmem:[#allocation2 + $0xf0] sm:$0xf]  ;;  %v6870_v25 = vpack.c.b16 %v6819_v14, %v6818_v20  ;;  %v6010_v14 = vunpack.c.l.b16 %v5532_v43 }
 0x5ee   :  { %v5544_v35 = vshrl.u32 %v5153_v63, 16  ;;  %v5542_v39 = vsel %vm14293_vm14, %v5537_v11, %v5541_v8  ;;  %v12047_v8 = vld [vmem:[#allocation2 + $0xd0] sm:$0xff] }
 0x5ef   :  { %v15392_v17 = vadd.f32 %v7034_v6, %v6375_v58  ;;  %v7036_v59 = vpop.f32.mrf.mxu3  ;;  %v5547_v6 = vshll.u32 %v5153_v63, 16  ;;  %v6446_v58 = vld [vmem:[#allocation2 + $0xe0] sm:$0xe]  ;;  %v6011_v37 = vunpack.c.l.b16 %v5542_v39  ;;  %v5555_v63 = vrot.slane %v5553_v27, 5 }
 0x5f1   :  { %v5549_v0 = vrot.slane %v5547_v6, 5 }
 0x5f2   :  { %v4904_v5 = vpop.f32.mrf.mxu1 }
 0x5f3   :  { %v5054_v23 = vadd.f32 %v4904_v5, %v15077_v10  ;;  %v5559_v5 = vrot.slane %v5557_v60, 4 }
 0x5f4   :  { %11611 = vmatmul.msk.bf16.gmra.mxu3 %vm395_vm1, %v6870_v25  ;;  %v6657_v25 = vrot.slane %v5152_v12, 5 }
 0x5f5   :  { %v6376_v31 = vadd.f32 %v6226_v22, %v5054_v23  ;;  %v5546_v22 = vrot.slane %v5544_v35, 4  ;;  %v6231_v20 = vpop.f32.mrf.mxu2  ;;  %v11564_v23 = vrot.slane %v6446_v58, 9  ;;  %v5560_v35 = vor.u32 %v5559_v5, %v5555_v63 }
 0x5f6   :  { %v6658_v26 = vsel %vm14386_vm3, %v6656_v32, %v6657_v25 }
 0x5f7   :  { %v15405_v10 = vadd.f32 %v7036_v59, %v6376_v31  ;;  %v7039_v57 = vpop.f32.mrf.mxu3  ;;  %v6061_v31 = vpack.c.b16 %v6011_v37, %v6010_v14  ;;  %v5550_v43 = vor.u32 %v5549_v0, %v5546_v22  ;;  %v6655_v6 = vsel %vm14386_vm3, %v11564_v23, %v6654_v9  ;;  %v5156_v37 = vld [vmem:[#allocation2 + $0x100] sm:$0xf]  ;;  %v15419_v22 = vpop.f32.mrf.mxu0  ;;  %v15421_v0 = vld [vmem:[#allocation2 + $0x104] sm:$0xf] }
 0x5f8   :  { %v6821_v12 = vunpack.c.l.b16 %v6658_v26  ;;  %v6820_v14 = vunpack.c.l.b16 %v6655_v6  ;;  %v5561_v32 = vrot.slane %v5560_v35, 4  ;;  %17667 = vst [vmem:[#allocation60_spill] sm:$0xff] %v15419_v22  ;;  %v6661_v9 = vrot.slane %v15394_v42, 5  ;;  %v12097_v6 = vld [vmem:[#allocation2 + $0x160] sm:$0xff] }
 0x5f9   :  { %11792 = vmatmul.msk.bf16.gmra.mxu0 %vm395_vm1, %v12096_v19  ;;  %v5551_v58 = vrot.slane %v5550_v43, 4  ;;  %v5571_v23 = vshll.u32 %v5156_v37, 16  ;;  %v5581_v43 = vshrl.u32 %v15421_v0, 16 }
 0x5fa   :  { %v4907_v11 = vpop.f32.mrf.mxu1  ;;  %11532 = vmatmul.msk.bf16.gmra.mxu2 %vm395_vm1, %v6061_v31  ;;  %v5577_v31 = vshll.u32 %v15421_v0, 16  ;;  %v6663_v35 = vrot.slane %v6661_v9, 4 }
 0x5fb   :  { %v5055_v59 = vadd.f32 %v4907_v11, %v15093_v40  ;;  %v5563_v40 = vshll.u32 %v5155_v21, 16  ;;  %v6871_v11 = vpack.c.b16 %v6821_v12, %v6820_v14  ;;  %v5556_v26 = vsel %vm14293_vm14, %v5551_v58, %v5555_v63 }
 0x5fc   :  { %v6012_v12 = vunpack.c.l.b16 %v5556_v26  ;;  %v5573_v58 = vrot.slane %v5571_v23, 5  ;;  %v5579_v14 = vrot.slane %v5577_v31, 5 }
 0x5fd   :  { %v6377_v39 = vadd.f32 %v6229_v48, %v5055_v59  ;;  %11483 = vmatmul.msk.bf16.gmra.mxu1 %vm395_vm1, %v12047_v8  ;;  %v6234_v19 = vpop.f32.mrf.mxu2  ;;  %v5565_v25 = vrot.slane %v5563_v40, 5 }
 0x5ff   :  { %v15417_v27 = vadd.f32 %v7039_v57, %v6377_v39  ;;  %v7041_v60 = vpop.f32.mrf.mxu3  ;;  %v5568_v57 = vshrl.u32 %v5156_v37, 16  ;;  %v5566_v8 = vsel %vm14293_vm14, %v5561_v32, %v5565_v25  ;;  %v6447_v39 = vld [vmem:[#allocation2 + $0xf0] sm:$0xe]  ;;  %v5583_v37 = vrot.slane %v5581_v43, 4  ;;  %v15436_v25 = vpop.f32.mrf.mxu0 }
 0x600   :  { %v6013_v63 = vunpack.c.l.b16 %v5566_v8  ;;  %v11565_v32 = vrot.slane %v6447_v39, 9  ;;  %17668 = vst [vmem:[#allocation61_spill] sm:$0xff] %v15436_v25  ;;  %v5158_v8 = vld [vmem:[#allocation2 + $0x108] sm:$0x1] }
 0x601   :  { %v5570_v40 = vrot.slane %v5568_v57, 4  ;;  %v5584_v31 = vor.u32 %v5583_v37, %v5579_v14  ;;  %v5587_v39 = vshll.u32 %v5158_v8, 16 }
 0x602   :  { %v4909_v48 = vpop.f32.mrf.mxu1 }
 0x603   :  { %v5056_v5 = vadd.f32 %v4909_v48, %v15106_v16  ;;  %v5574_v57 = vor.u32 %v5573_v58, %v5570_v40 }
 0x604   :  { %11612 = vmatmul.msk.bf16.gmra.mxu3 %vm395_vm1, %v6871_v11 }
 0x605   :  { %v6378_v59 = vadd.f32 %v6231_v20, %v5056_v5  ;;  %v6236_v20 = vpop.f32.mrf.mxu2  ;;  %v6664_v5 = vrot.slane %v5155_v21, 5  ;;  %v6662_v21 = vsel %vm14386_vm3, %v11565_v32, %v6661_v9 }
 0x607   :  { %v15432_v16 = vadd.f32 %v7041_v60, %v6378_v59  ;;  %v7044_v42 = vpop.f32.mrf.mxu3  ;;  %v12048_v60 = vld [vmem:[#allocation2 + $0xe0] sm:$0xff]  ;;  %v6062_v59 = vpack.c.b16 %v6013_v63, %v6012_v12  ;;  %v6665_v26 = vsel %vm14386_vm3, %v6663_v35, %v6664_v5  ;;  %v5575_v12 = vrot.slane %v5574_v57, 4  ;;  %v5159_v5 = vld [vmem:[#allocation2 + $0x130] sm:$0xf] }
 0x608   :  { %v5585_v35 = vrot.slane %v5584_v31, 4  ;;  %v5595_v32 = vshll.u32 %v5159_v5, 16 }
 0x609   :  { %11793 = vmatmul.msk.bf16.gmra.mxu0 %vm395_vm1, %v12097_v6  ;;  %v5580_v9 = vsel %vm14293_vm14, %v5575_v12, %v5579_v14 }
 0x60a   :  { %v4912_v48 = vpop.f32.mrf.mxu1  ;;  %11533 = vmatmul.msk.bf16.gmra.mxu2 %vm395_vm1, %v6062_v59  ;;  %v6014_v12 = vunpack.c.l.b16 %v5580_v9  ;;  %v5161_v9 = vld [vmem:[#allocation2 + $0x138] sm:$0x1] }
 0x60b   :  { %v5057_v11 = vadd.f32 %v4912_v48, %v15122_v46  ;;  %v6823_v46 = vunpack.c.l.b16 %v6665_v26  ;;  %v6822_v48 = vunpack.c.l.b16 %v6662_v21 }
 0x60d   :  { %v6379_v23 = vadd.f32 %v6234_v19, %v5057_v11  ;;  %11484 = vmatmul.msk.bf16.gmra.mxu1 %vm395_vm1, %v12048_v60  ;;  %v6239_v63 = vpop.f32.mrf.mxu2  ;;  %v15446_v19 = vld [vmem:[#allocation2 + $0x134] sm:$0xf]  ;;  %v6872_v37 = vpack.c.b16 %v6823_v46, %v6822_v48  ;;  %v5589_v11 = vrot.slane %v5587_v39, 5  ;;  %v6668_v60 = vrot.slane %v15421_v0, 5  ;;  %v6448_v0 = vld [vmem:[#allocation2 + $0x100] sm:$0xe] }
 0x60e   :  { %v5601_v57 = vshll.u32 %v15446_v19, 16  ;;  %v12120_v46 = vld [vmem:[#allocation6 + $0x108] sm:$0xff]  ;;  %v12098_v39 = vld [vmem:[#allocation2 + $0x170] sm:$0xff] }
 0x60f   :  { %v15444_v43 = vadd.f32 %v7044_v42, %v6379_v23  ;;  %v7046_v6 = vpop.f32.mrf.mxu3  ;;  %v5592_v42 = vshrl.u32 %v5159_v5, 16  ;;  %v5590_v26 = vsel %vm14293_vm14, %v5585_v35, %v5589_v11  ;;  %v5605_v23 = vshrl.u32 %v15446_v19, 16  ;;  %9735 = vmatpush.bf16.msra.mxu2 %v12120_v46 }
 0x610   :  { %v6670_v21 = vrot.slane %v6668_v60, 4  ;;  %v5597_v5 = vrot.slane %v5595_v32, 5  ;;  %v11566_v11 = vrot.slane %v6448_v0, 9  ;;  %v12116_v0 = vld [vmem:[#allocation6 + $0xe8] sm:$0xff] }
 0x611   :  { %v5594_v48 = vrot.slane %v5592_v42, 4  ;;  %v5607_v35 = vrot.slane %v5605_v23, 4  ;;  %8925 = vmatpush.bf16.msra.mxu1 %v12116_v0 }
 0x612   :  { %v4914_v40 = vpop.f32.mrf.mxu1 }
 0x613   :  { %v5058_v58 = vadd.f32 %v4914_v40, %v15135_v41  ;;  %v15457_v41 = vpop.f32.mrf.mxu0 }
 0x614   :  { %11613 = vmatmul.msk.bf16.gmra.mxu3 %vm395_vm1, %v6872_v37  ;;  %17669 = vst [vmem:[#allocation62_spill] sm:$0xff] %v15457_v41  ;;  %v6671_v41 = vrot.slane %v5158_v8, 5 }
 0x615   :  { %v6380_v59 = vadd.f32 %v6236_v20, %v5058_v58  ;;  %v6015_v20 = vunpack.c.l.b16 %v5590_v26  ;;  %v6241_v40 = vpop.f32.mrf.mxu2  ;;  %v5603_v58 = vrot.slane %v5601_v57, 5  ;;  %v5598_v26 = vor.u32 %v5597_v5, %v5594_v48  ;;  %v15473_v5 = vld [vmem:[#allocation2 + $0x144] sm:$0xf] }
 0x616   :  { %v6672_v22 = vsel %vm14386_vm3, %v6670_v21, %v6671_v41  ;;  %v6669_v57 = vsel %vm14386_vm3, %v11566_v11, %v6668_v60 }
 0x617   :  { %v15459_v31 = vadd.f32 %v7046_v6, %v6380_v59  ;;  %v7049_v14 = vpop.f32.mrf.mxu3  ;;  %v12049_v59 = vld [vmem:[#allocation2 + $0xf0] sm:$0xff]  ;;  %v6063_v25 = vpack.c.b16 %v6015_v20, %v6014_v12  ;;  %v5608_v32 = vor.u32 %v5607_v35, %v5603_v58  ;;  %v6825_v8 = vunpack.c.l.b16 %v6672_v22  ;;  %v5162_v20 = vld [vmem:[#allocation2 + $0x140] sm:$0xf] }
 0x618   :  { %v5599_v41 = vrot.slane %v5598_v26, 4  ;;  %v6824_v12 = vunpack.c.l.b16 %v6669_v57  ;;  %v6675_v22 = vrot.slane %v15446_v19, 5  ;;  %v5619_v11 = vshll.u32 %v5162_v20, 16 }
 0x619   :  { %11794 = vmatmul.msk.bf16.gmra.mxu0 %vm395_vm1, %v12098_v39  ;;  %v5625_v26 = vshll.u32 %v15473_v5, 16 }
 0x61a   :  { %v4917_v37 = vpop.f32.mrf.mxu1  ;;  %11534 = vmatmul.msk.bf16.gmra.mxu2 %vm395_vm1, %v6063_v25  ;;  %v6873_v60 = vpack.c.b16 %v6825_v8, %v6824_v12  ;;  %v5604_v35 = vsel %vm14293_vm14, %v5599_v41, %v5603_v58  ;;  %v6677_v57 = vrot.slane %v6675_v22, 4  ;;  %v12099_v8 = vld [vmem:[#allocation2 + $0x180] sm:$0xff]  ;;  %v5621_v41 = vrot.slane %v5619_v11, 5 }
 0x61b   :  { %v5059_v6 = vadd.f32 %v4917_v37, %v15151_v34  ;;  %v5611_v34 = vshll.u32 %v5161_v9, 16  ;;  %v15471_v46 = vpop.f32.mrf.mxu0  ;;  %v5616_v37 = vshrl.u32 %v5162_v20, 16  ;;  %v5627_v12 = vrot.slane %v5625_v26, 5 }
 0x61c   :  { %17670 = vst [vmem:[#allocation63_spill] sm:$0xff] %v15471_v46  ;;  %v5167_v46 = vld [vmem:[#allocation2 + $0x158] sm:$0x1] }
 0x61d   :  { %v6381_v42 = vadd.f32 %v6239_v63, %v5059_v6  ;;  %11485 = vmatmul.msk.bf16.gmra.mxu1 %vm395_vm1, %v12049_v59  ;;  %v6244_v21 = vpop.f32.mrf.mxu2  ;;  %v5609_v63 = vrot.slane %v5608_v32, 4  ;;  %v6449_v32 = vld [vmem:[#allocation2 + $0x130] sm:$0xe]  ;;  %v5618_v0 = vrot.slane %v5616_v37, 4 }
 0x61f   :  { %v15469_v23 = vadd.f32 %v7049_v14, %v6381_v42  ;;  %v7051_v39 = vpop.f32.mrf.mxu3  ;;  %v5613_v14 = vrot.slane %v5611_v34, 5  ;;  %v5629_v42 = vshrl.u32 %v15473_v5, 16  ;;  %v6016_v34 = vunpack.c.l.b16 %v5604_v35 }
 0x620   :  { %v5622_v37 = vor.u32 %v5621_v41, %v5618_v0 }
 0x621   :  { %v5614_v59 = vsel %vm14293_vm14, %v5609_v63, %v5613_v14  ;;  %v5631_v20 = vrot.slane %v5629_v42, 4  ;;  %v12050_v14 = vld [vmem:[#allocation2 + $0x100] sm:$0xff] }
 0x622   :  { %v4919_v48 = vpop.f32.mrf.mxu1  ;;  %v6017_v58 = vunpack.c.l.b16 %v5614_v59  ;;  %v5164_v59 = vld [vmem:[#allocation2 + $0x148] sm:$0x1] }
 0x623   :  { %v5060_v25 = vadd.f32 %v4919_v48, %v15164_v7  ;;  %v15486_v48 = vpop.f32.mrf.mxu0  ;;  %v5632_v26 = vor.u32 %v5631_v20, %v5627_v12 }
 0x624   :  { %11614 = vmatmul.msk.bf16.gmra.mxu3 %vm395_vm1, %v6873_v60  ;;  %17671 = vst [vmem:[#allocation64_spill] sm:$0xff] %v15486_v48  ;;  %v6678_v60 = vrot.slane %v5161_v9, 5 }
 0x625   :  { %v6382_v6 = vadd.f32 %v6241_v40, %v5060_v25  ;;  %v6246_v40 = vpop.f32.mrf.mxu2  ;;  %v11567_v25 = vrot.slane %v6449_v32, 9 }
 0x626   :  { %v6679_v35 = vsel %vm14386_vm3, %v6677_v57, %v6678_v60  ;;  %v5633_v57 = vrot.slane %v5632_v26, 4  ;;  %v5165_v60 = vld [vmem:[#allocation2 + $0x150] sm:$0xf] }
 0x627   :  { %v15484_v7 = vadd.f32 %v7051_v39, %v6382_v6  ;;  %v7054_v19 = vpop.f32.mrf.mxu3  ;;  %v6064_v6 = vpack.c.b16 %v6017_v58, %v6016_v34  ;;  %v6676_v42 = vsel %vm14386_vm3, %v11567_v25, %v6675_v22  ;;  %v6827_v9 = vunpack.c.l.b16 %v6679_v35 }
 0x628   :  { %v5623_v34 = vrot.slane %v5622_v37, 4  ;;  %v5640_v25 = vshrl.u32 %v5165_v60, 16 }
 0x629   :  { %11795 = vmatmul.msk.bf16.gmra.mxu0 %vm395_vm1, %v12099_v8 }
 0x62a   :  { %v4922_v63 = vpop.f32.mrf.mxu1  ;;  %11535 = vmatmul.msk.bf16.gmra.mxu2 %vm395_vm1, %v6064_v6  ;;  %v5643_v6 = vshll.u32 %v5165_v60, 16 }
 0x62b   :  { %v5061_v39 = vadd.f32 %v4922_v63, %v14676_v2  ;;  %v5635_v2 = vshll.u32 %v5164_v59, 16  ;;  %v6826_v63 = vunpack.c.l.b16 %v6676_v42  ;;  %v15502_v22 = vpop.f32.mrf.mxu0 }
 0x62c   :  { %17672 = vst [vmem:[#allocation65_spill] sm:$0xff] %v15502_v22  ;;  %v5645_v60 = vrot.slane %v5643_v6, 5 }
 0x62d   :  { %v6383_v11 = vadd.f32 %v6244_v21, %v5061_v39  ;;  %11486 = vmatmul.msk.bf16.gmra.mxu1 %vm395_vm1, %v12050_v14  ;;  %v6249_v58 = vpop.f32.mrf.mxu2  ;;  %v15498_v21 = vld [vmem:[#allocation2 + $0x154] sm:$0xf]  ;;  %v6874_v20 = vpack.c.b16 %v6827_v9, %v6826_v63  ;;  %v5637_v39 = vrot.slane %v5635_v2, 5  ;;  %v6682_v14 = vrot.slane %v15473_v5, 5  ;;  %v6450_v5 = vld [vmem:[#allocation2 + $0x140] sm:$0xe] }
 0x62e   :  { %v12100_v2 = vld [vmem:[#allocation2 + $0x190] sm:$0xff] }
 0x62f   :  { %v15496_v32 = vadd.f32 %v7054_v19, %v6383_v11  ;;  %v7056_v8 = vpop.f32.mrf.mxu3  ;;  %v5628_v19 = vsel %vm14293_vm14, %v5623_v34, %v5627_v12  ;;  %v5638_v37 = vsel %vm14293_vm14, %v5633_v57, %v5637_v39  ;;  %v5649_v11 = vshll.u32 %v15498_v21, 16 }
 0x630   :  { %v6684_v42 = vrot.slane %v6682_v14, 4  ;;  %v6018_v63 = vunpack.c.l.b16 %v5628_v19  ;;  %v6019_v12 = vunpack.c.l.b16 %v5638_v37  ;;  %v5642_v34 = vrot.slane %v5640_v25, 4 }
 0x631   :  { %v11568_v57 = vrot.slane %v6450_v5, 9  ;;  %v6685_v39 = vrot.slane %v5164_v59, 5 }
 0x632   :  { %v4924_v0 = vpop.f32.mrf.mxu1  ;;  %v5646_v19 = vor.u32 %v5645_v60, %v5642_v34  ;;  %v15525_v34 = vld [vmem:[#allocation2 + $0x164] sm:$0xf] }
 0x633   :  { %v5062_v41 = vadd.f32 %v4924_v0, %v14686_v62  ;;  %v5653_v62 = vshrl.u32 %v15498_v21, 16  ;;  %v5651_v0 = vrot.slane %v5649_v11, 5  ;;  %v6686_v48 = vsel %vm14386_vm3, %v6684_v42, %v6685_v39  ;;  %v15518_v6 = vpop.f32.mrf.mxu0 }
 0x634   :  { %11615 = vmatmul.msk.bf16.gmra.mxu3 %vm395_vm1, %v6874_v20  ;;  %17673 = vst [vmem:[#allocation66_spill] sm:$0xff] %v15518_v6  ;;  %v6683_v59 = vsel %vm14386_vm3, %v11568_v57, %v6682_v14  ;;  %v6689_v39 = vrot.slane %v15498_v21, 5  ;;  %v5170_v6 = vld [vmem:[#allocation2 + $0x168] sm:$0x1] }
 0x635   :  { %v6384_v35 = vadd.f32 %v6246_v40, %v5062_v41  ;;  %v6251_v40 = vpop.f32.mrf.mxu2  ;;  %v5655_v41 = vrot.slane %v5653_v62, 4  ;;  %v5659_v62 = vshll.u32 %v5167_v46, 16 }
 0x637   :  { %v15511_v26 = vadd.f32 %v7056_v8, %v6384_v35  ;;  %v7059_v9 = vpop.f32.mrf.mxu3  ;;  %v12051_v8 = vld [vmem:[#allocation2 + $0x130] sm:$0xff]  ;;  %v6065_v35 = vpack.c.b16 %v6019_v12, %v6018_v63  ;;  %v5656_v25 = vor.u32 %v5655_v41, %v5651_v0  ;;  %v6828_v63 = vunpack.c.l.b16 %v6683_v59 }
 0x639   :  { %11796 = vmatmul.msk.bf16.gmra.mxu0 %vm395_vm1, %v12100_v2  ;;  %v5647_v2 = vrot.slane %v5646_v19, 4  ;;  %v5657_v12 = vrot.slane %v5656_v25, 4  ;;  %v5677_v19 = vshrl.u32 %v15525_v34, 16  ;;  %v6691_v25 = vrot.slane %v6689_v39, 4 }
 0x63a   :  { %v4927_v20 = vpop.f32.mrf.mxu1  ;;  %11536 = vmatmul.msk.bf16.gmra.mxu2 %vm395_vm1, %v6065_v35  ;;  %v5673_v35 = vshll.u32 %v15525_v34, 16 }
 0x63b   :  { %v5063_v22 = vadd.f32 %v4927_v20, %v14694_v53  ;;  %v6829_v53 = vunpack.c.l.b16 %v6686_v48  ;;  %v5661_v20 = vrot.slane %v5659_v62, 5  ;;  %v5652_v14 = vsel %vm14293_vm14, %v5647_v2, %v5651_v0  ;;  %v15538_v21 = vpop.f32.mrf.mxu0  ;;  %v12101_v0 = vld [vmem:[#allocation2 + $0x1a0] sm:$0xff] }
 0x63c   :  { %17675 = vst [vmem:[#allocation68_spill] sm:$0xff] %v15538_v21 }
 0x63d   :  { %v6385_v37 = vadd.f32 %v6249_v58, %v5063_v22  ;;  %11487 = vmatmul.msk.bf16.gmra.mxu1 %vm395_vm1, %v12051_v8  ;;  %v6254_v42 = vpop.f32.mrf.mxu2  ;;  %v5168_v58 = vld [vmem:[#allocation2 + $0x160] sm:$0xf]  ;;  %v6875_v41 = vpack.c.b16 %v6829_v53, %v6828_v63  ;;  %v5662_v8 = vsel %vm14293_vm14, %v5657_v12, %v5661_v20  ;;  %v6020_v53 = vunpack.c.l.b16 %v5652_v14 }
 0x63e   :  { %v5664_v48 = vshrl.u32 %v5168_v58, 16  ;;  %v6021_v62 = vunpack.c.l.b16 %v5662_v8  ;;  %v12052_v20 = vld [vmem:[#allocation2 + $0x140] sm:$0xff] }
 0x63f   :  { %v15523_v11 = vadd.f32 %v7059_v9, %v6385_v37  ;;  %v7061_v5 = vpop.f32.mrf.mxu3  ;;  %v5667_v9 = vshll.u32 %v5168_v58, 16  ;;  %v6451_v37 = vld [vmem:[#allocation2 + $0x150] sm:$0xe]  ;;  %v5675_v58 = vrot.slane %v5673_v35, 5 }
 0x641   :  { %v5669_v2 = vrot.slane %v5667_v9, 5 }
 0x642   :  { %v4929_v22 = vpop.f32.mrf.mxu1 }
 0x643   :  { %v5064_v60 = vadd.f32 %v4929_v22, %v14706_v36  ;;  %v5679_v22 = vrot.slane %v5677_v19, 4 }
 0x644   :  { %11616 = vmatmul.msk.bf16.gmra.mxu3 %vm395_vm1, %v6875_v41  ;;  %v6692_v41 = vrot.slane %v5167_v46, 5 }
 0x645   :  { %v6386_v57 = vadd.f32 %v6251_v40, %v5064_v60  ;;  %v5666_v40 = vrot.slane %v5664_v48, 4  ;;  %v6256_v63 = vpop.f32.mrf.mxu2  ;;  %v11569_v60 = vrot.slane %v6451_v37, 9  ;;  %v5680_v48 = vor.u32 %v5679_v22, %v5675_v58  ;;  %v17678_v22 = vld [vmem:[#allocation39_spill] sm:$0xff] }
 0x646   :  { %v6693_v21 = vsel %vm14386_vm3, %v6691_v25, %v6692_v41 }
 0x647   :  { %v15536_v36 = vadd.f32 %v7061_v5, %v6386_v57  ;;  %v7064_v59 = vpop.f32.mrf.mxu3  ;;  %v6066_v57 = vpack.c.b16 %v6021_v62, %v6020_v53  ;;  %v5670_v14 = vor.u32 %v5669_v2, %v5666_v40  ;;  %v6690_v9 = vsel %vm14386_vm3, %v11569_v60, %v6689_v39  ;;  %v5171_v62 = vld [vmem:[#allocation2 + $0x170] sm:$0xf]  ;;  %v15550_v40 = vpop.f32.mrf.mxu0  ;;  %v15552_v2 = vld [vmem:[#allocation2 + $0x174] sm:$0xf] }
 0x648   :  { %v6831_v46 = vunpack.c.l.b16 %v6693_v21  ;;  %v6830_v53 = vunpack.c.l.b16 %v6690_v9  ;;  %v5681_v25 = vrot.slane %v5680_v48, 4  ;;  %17677 = vst [vmem:[#allocation70_spill] sm:$0xff] %v15550_v40  ;;  %v6696_v39 = vrot.slane %v15525_v34, 5  ;;  %v6452_v9 = vld [vmem:[#allocation2 + $0x160] sm:$0xe] }
 0x649   :  { %17674 = vst [vmem:[#allocation67_spill] sm:$0xff] %v15536_v36  ;;  %11797 = vmatmul.msk.bf16.gmra.mxu0 %vm395_vm1, %v12101_v0  ;;  %v5671_v37 = vrot.slane %v5670_v14, 4  ;;  %v5691_v60 = vshll.u32 %v5171_v62, 16  ;;  %v5697_v14 = vshll.u32 %v15552_v2, 16 }
 0x64a   :  { %v4932_v12 = vpop.f32.mrf.mxu1  ;;  %11537 = vmatmul.msk.bf16.gmra.mxu2 %vm395_vm1, %v6066_v57  ;;  %v6876_v41 = vpack.c.b16 %v6831_v46, %v6830_v53  ;;  %v6698_v46 = vrot.slane %v6696_v39, 4 }
 0x64b   :  { %v5065_v5 = vadd.f32 %v4932_v12, %v14714_v24  ;;  %v5683_v24 = vshll.u32 %v5170_v6, 16  ;;  %v5676_v21 = vsel %vm14293_vm14, %v5671_v37, %v5675_v58 }
 0x64c   :  { %v6022_v53 = vunpack.c.l.b16 %v5676_v21 }
 0x64d   :  { %v6387_v8 = vadd.f32 %v6254_v42, %v5065_v5  ;;  %11488 = vmatmul.msk.bf16.gmra.mxu1 %vm395_vm1, %v12052_v20  ;;  %v6259_v0 = vpop.f32.mrf.mxu2  ;;  %v5685_v5 = vrot.slane %v5683_v24, 5  ;;  %v12102_v24 = vld [vmem:[#allocation2 + $0x1b0] sm:$0xff] }
 0x64f   :  { %v15548_v35 = vadd.f32 %v7064_v59, %v6387_v8  ;;  %v7066_v19 = vpop.f32.mrf.mxu3  ;;  %v5688_v59 = vshrl.u32 %v5171_v62, 16  ;;  %v5686_v57 = vsel %vm14293_vm14, %v5681_v25, %v5685_v5  ;;  %v5701_v8 = vshrl.u32 %v15552_v2, 16  ;;  %v17680_v5 = vld [vmem:[#allocation40_spill] sm:$0xff] }
 0x650   :  { %v6023_v58 = vunpack.c.l.b16 %v5686_v57  ;;  %v5693_v62 = vrot.slane %v5691_v60, 5  ;;  %v11570_v25 = vrot.slane %v6452_v9, 9  ;;  %v5173_v57 = vld [vmem:[#allocation2 + $0x178] sm:$0x1] }
 0x651   :  { %17676 = vst [vmem:[#allocation69_spill] sm:$0xff] %v15548_v35  ;;  %v5690_v37 = vrot.slane %v5688_v59, 4  ;;  %v5176_v35 = vld [vmem:[#allocation2 + $0x188] sm:$0x1] }
 0x652   :  { %v4934_v42 = vpop.f32.mrf.mxu1 }
 0x653   :  { %v5066_v12 = vadd.f32 %v4934_v42, %v17678_v22  ;;  %v5699_v42 = vrot.slane %v5697_v14, 5  ;;  %v5703_v22 = vrot.slane %v5701_v8, 4  ;;  %v5694_v59 = vor.u32 %v5693_v62, %v5690_v37 }
 0x654   :  { %11617 = vmatmul.msk.bf16.gmra.mxu3 %vm395_vm1, %v6876_v41  ;;  %v6699_v41 = vrot.slane %v5170_v6, 5  ;;  %v6697_v6 = vsel %vm14386_vm3, %v11570_v25, %v6696_v39 }
 0x655   :  { %v6388_v20 = vadd.f32 %v6256_v63, %v5066_v12  ;;  %v6261_v63 = vpop.f32.mrf.mxu2  ;;  %v5704_v14 = vor.u32 %v5703_v22, %v5699_v42 }
 0x656   :  { %v6700_v21 = vsel %vm14386_vm3, %v6698_v46, %v6699_v41  ;;  %v5174_v41 = vld [vmem:[#allocation2 + $0x180] sm:$0xf] }
 0x657   :  { %v15563_v48 = vadd.f32 %v7066_v19, %v6388_v20  ;;  %v7069_v34 = vpop.f32.mrf.mxu3  ;;  %v12053_v19 = vld [vmem:[#allocation2 + $0x150] sm:$0xff]  ;;  %v15567_v20 = vpop.f32.mrf.mxu0  ;;  %v6833_v9 = vunpack.c.l.b16 %v6700_v21  ;;  %v5705_v46 = vrot.slane %v5704_v14, 4  ;;  %v5715_v25 = vshll.u32 %v5174_v41, 16 }
 0x658   :  { %17681 = vst [vmem:[#allocation40_spill] sm:$0xff] %v15567_v20  ;;  %v6706_v20 = vrot.slane %v5173_v57, 5 }
 0x659   :  { %17679 = vst [vmem:[#allocation39_spill] sm:$0xff] %v15563_v48  ;;  %11798 = vmatmul.msk.bf16.gmra.mxu0 %vm395_vm1, %v12102_v24  ;;  %v6067_v48 = vpack.c.b16 %v6023_v58, %v6022_v53  ;;  %v5707_v24 = vshll.u32 %v5173_v57, 16  ;;  %v5695_v53 = vrot.slane %v5694_v59, 4 }
 0x65a   :  { %v4937_v12 = vpop.f32.mrf.mxu1 }
 0x65b   :  { %v5067_v40 = vadd.f32 %v4937_v12, %v17680_v5  ;;  %11538 = vmatmul.msk.bf16.gmra.mxu2 %vm395_vm1, %v6067_v48  ;;  %v6832_v5 = vunpack.c.l.b16 %v6697_v6  ;;  %v5709_v48 = vrot.slane %v5707_v24, 5  ;;  %v5700_v39 = vsel %vm14293_vm14, %v5695_v53, %v5699_v42  ;;  %v12103_v42 = vld [vmem:[#allocation2 + $0x1c0] sm:$0xff] }
 0x65c   :  { %v6024_v53 = vunpack.c.l.b16 %v5700_v39 }
 0x65d   :  { %v6389_v60 = vadd.f32 %v6259_v0, %v5067_v40  ;;  %11489 = vmatmul.msk.bf16.gmra.mxu1 %vm395_vm1, %v12053_v19  ;;  %v6264_v58 = vpop.f32.mrf.mxu2  ;;  %v15577_v0 = vld [vmem:[#allocation2 + $0x184] sm:$0xf]  ;;  %v6877_v22 = vpack.c.b16 %v6833_v9, %v6832_v5  ;;  %v6703_v19 = vrot.slane %v15552_v2, 5  ;;  %v5710_v59 = vsel %vm14293_vm14, %v5705_v46, %v5709_v48  ;;  %v6453_v2 = vld [vmem:[#allocation2 + $0x170] sm:$0xe] }
 0x65e   :  { %v17683_v40 = vld [vmem:[#allocation20_spill] sm:$0xff]  ;;  %v5725_v14 = vshrl.u32 %v15577_v0, 16  ;;  %v11571_v48 = vrot.slane %v6453_v2, 9 }
 0x65f   :  { %v15575_v8 = vadd.f32 %v7069_v34, %v6389_v60  ;;  %v7071_v12 = vpop.f32.mrf.mxu3  ;;  %v5712_v34 = vshrl.u32 %v5174_v41, 16  ;;  %v5721_v60 = vshll.u32 %v15577_v0, 16  ;;  %v15588_v6 = vpop.f32.mrf.mxu0  ;;  %v6705_v24 = vrot.slane %v6703_v19, 4 }
 0x660   :  { %17684 = vst [vmem:[#allocation20_spill] sm:$0xff] %v15588_v6  ;;  %v6025_v41 = vunpack.c.l.b16 %v5710_v59 }
 0x661   :  { %17682 = vst [vmem:[#allocation71_spill] sm:$0xff] %v15575_v8  ;;  %v17686_v8 = vld [vmem:[#allocation36_spill] sm:$0xff] }
 0x662   :  { %v4939_v37 = vpop.f32.mrf.mxu1 }
 0x663   :  { %v5068_v62 = vadd.f32 %v4939_v37, %v17683_v40  ;;  %v5717_v37 = vrot.slane %v5715_v25, 5  ;;  %v6704_v25 = vsel %vm14386_vm3, %v11571_v48, %v6703_v19 }
 0x664   :  { %11618 = vmatmul.msk.bf16.gmra.mxu3 %vm395_vm1, %v6877_v22  ;;  %v5727_v22 = vrot.slane %v5725_v14, 4 }
 0x665   :  { %v6390_v21 = vadd.f32 %v6261_v63, %v5068_v62  ;;  %v5714_v63 = vrot.slane %v5712_v34, 4  ;;  %v6266_v40 = vpop.f32.mrf.mxu2  ;;  %v5723_v62 = vrot.slane %v5721_v60, 5 }
 0x667   :  { %v15590_v9 = vadd.f32 %v7071_v12, %v6390_v21  ;;  %v7074_v5 = vpop.f32.mrf.mxu3  ;;  %v12054_v12 = vld [vmem:[#allocation2 + $0x160] sm:$0xff]  ;;  %v6068_v21 = vpack.c.b16 %v6025_v41, %v6024_v53  ;;  %v5718_v39 = vor.u32 %v5717_v37, %v5714_v63  ;;  %v5728_v34 = vor.u32 %v5727_v22, %v5723_v62  ;;  %v15602_v14 = vpop.f32.mrf.mxu0  ;;  %v15604_v41 = vld [vmem:[#allocation2 + $0x194] sm:$0xf]  ;;  %v17689_v63 = vld [vmem:[#allocation27_spill] sm:$0xff] }
 0x668   :  { %17688 = vst [vmem:[#allocation73_spill] sm:$0xff] %v15602_v14 }
 0x669   :  { %17685 = vst [vmem:[#allocation72_spill] sm:$0xff] %v15590_v9  ;;  %11799 = vmatmul.msk.bf16.gmra.mxu0 %vm395_vm1, %v12103_v42  ;;  %v6707_v9 = vsel %vm14386_vm3, %v6705_v24, %v6706_v20  ;;  %v5719_v42 = vrot.slane %v5718_v39, 4  ;;  %v6834_v24 = vunpack.c.l.b16 %v6704_v25  ;;  %v5729_v53 = vrot.slane %v5728_v34, 4 }
 0x66a   :  { %v4942_v46 = vpop.f32.mrf.mxu1  ;;  %v6835_v57 = vunpack.c.l.b16 %v6707_v9  ;;  %v6710_v9 = vrot.slane %v15577_v0, 5  ;;  %v5745_v39 = vshll.u32 %v15604_v41, 16 }
 0x66b   :  { %v5069_v6 = vadd.f32 %v4942_v46, %v17686_v8  ;;  %11539 = vmatmul.msk.bf16.gmra.mxu2 %vm395_vm1, %v6068_v21  ;;  %v5731_v8 = vshll.u32 %v5176_v35, 16  ;;  %v5724_v19 = vsel %vm14293_vm14, %v5719_v42, %v5723_v62  ;;  %v12104_v62 = vld [vmem:[#allocation2 + $0x1d0] sm:$0xff] }
 0x66c   :  { %v6878_v22 = vpack.c.b16 %v6835_v57, %v6834_v24  ;;  %v6026_v25 = vunpack.c.l.b16 %v5724_v19  ;;  %v6454_v57 = vld [vmem:[#allocation2 + $0x180] sm:$0xe]  ;;  %v6712_v0 = vrot.slane %v6710_v9, 4  ;;  %v12055_v19 = vld [vmem:[#allocation2 + $0x170] sm:$0xff] }
 0x66d   :  { %v6391_v59 = vadd.f32 %v6264_v58, %v5069_v6  ;;  %11490 = vmatmul.msk.bf16.gmra.mxu1 %vm395_vm1, %v12054_v12  ;;  %v6269_v20 = vpop.f32.mrf.mxu2  ;;  %v5177_v58 = vld [vmem:[#allocation2 + $0x190] sm:$0xf]  ;;  %v5733_v46 = vrot.slane %v5731_v8, 5 }
 0x66e   :  { %v5739_v48 = vshll.u32 %v5177_v58, 16 }
 0x66f   :  { %v15600_v60 = vadd.f32 %v7074_v5, %v6391_v59  ;;  %v7076_v2 = vpop.f32.mrf.mxu3  ;;  %v5736_v5 = vshrl.u32 %v5177_v58, 16  ;;  %v5734_v21 = vsel %vm14293_vm14, %v5729_v53, %v5733_v46  ;;  %v5749_v59 = vshrl.u32 %v15604_v41, 16 }
 0x670   :  { %v6027_v42 = vunpack.c.l.b16 %v5734_v21  ;;  %v5741_v58 = vrot.slane %v5739_v48, 5  ;;  %v6713_v46 = vrot.slane %v5176_v35, 5 }
 0x671   :  { %17687 = vst [vmem:[#allocation36_spill] sm:$0xff] %v15600_v60  ;;  %v5738_v24 = vrot.slane %v5736_v5, 4 }
 0x672   :  { %v4944_v6 = vpop.f32.mrf.mxu1  ;;  %v6069_v14 = vpack.c.b16 %v6027_v42, %v6026_v25  ;;  %v6714_v21 = vsel %vm14386_vm3, %v6712_v0, %v6713_v46  ;;  %v5180_v46 = vld [vmem:[#allocation2 + $0x1a0] sm:$0xf] }
 0x673   :  { %v5070_v37 = vadd.f32 %v4944_v6, %v17689_v63  ;;  %v5747_v6 = vrot.slane %v5745_v39, 5  ;;  %v5751_v63 = vrot.slane %v5749_v59, 4  ;;  %v5742_v5 = vor.u32 %v5741_v58, %v5738_v24  ;;  %v17694_v58 = vld [vmem:[#allocation26_spill] sm:$0xff] }
 0x674   :  { %11619 = vmatmul.msk.bf16.gmra.mxu3 %vm395_vm1, %v6878_v22  ;;  %v11572_v22 = vrot.slane %v6454_v57, 9  ;;  %v6837_v35 = vunpack.c.l.b16 %v6714_v21  ;;  %v5763_v21 = vshll.u32 %v5180_v46, 16 }
 0x675   :  { %v6392_v12 = vadd.f32 %v6266_v40, %v5070_v37  ;;  %v6271_v40 = vpop.f32.mrf.mxu2  ;;  %v15617_v37 = vpop.f32.mrf.mxu0  ;;  %v5752_v39 = vor.u32 %v5751_v63, %v5747_v6  ;;  %v5743_v25 = vrot.slane %v5742_v5, 4 }
 0x676   :  { %17691 = vst [vmem:[#allocation74_spill] sm:$0xff] %v15617_v37  ;;  %v6711_v59 = vsel %vm14386_vm3, %v11572_v22, %v6710_v9  ;;  %v5760_v22 = vshrl.u32 %v5180_v46, 16  ;;  %v5765_v46 = vrot.slane %v5763_v21, 5  ;;  %v17697_v37 = vld [vmem:[#allocation41_spill] sm:$0xff] }
 0x677   :  { %v15615_v34 = vadd.f32 %v7076_v2, %v6392_v12  ;;  %v7079_v8 = vpop.f32.mrf.mxu3  ;;  %v17692_v2 = vld [vmem:[#allocation28_spill] sm:$0xff]  ;;  %v5753_v0 = vrot.slane %v5752_v39, 4  ;;  %v5748_v9 = vsel %vm14293_vm14, %v5743_v25, %v5747_v6 }
 0x678   :  { %v12105_v6 = vld [vmem:[#allocation2 + $0x1e0] sm:$0xff] }
 0x679   :  { %17690 = vst [vmem:[#allocation27_spill] sm:$0xff] %v15615_v34  ;;  %11800 = vmatmul.msk.bf16.gmra.mxu0 %vm395_vm1, %v12104_v62  ;;  %v5179_v34 = vld [vmem:[#allocation2 + $0x198] sm:$0x1] }
 0x67a   :  { %v4947_v53 = vpop.f32.mrf.mxu1  ;;  %v5755_v62 = vshll.u32 %v5179_v34, 16 }
 0x67b   :  { %v5071_v12 = vadd.f32 %v4947_v53, %v17692_v2  ;;  %11540 = vmatmul.msk.bf16.gmra.mxu2 %vm395_vm1, %v6069_v14  ;;  %v6836_v2 = vunpack.c.l.b16 %v6711_v59 }
 0x67c   :  { %v5757_v14 = vrot.slane %v5755_v62, 5  ;;  %v6028_v62 = vunpack.c.l.b16 %v5748_v9 }
 0x67d   :  { %v6393_v48 = vadd.f32 %v6269_v20, %v5071_v12  ;;  %11491 = vmatmul.msk.bf16.gmra.mxu1 %vm395_vm1, %v12055_v19  ;;  %v6274_v42 = vpop.f32.mrf.mxu2  ;;  %v15629_v20 = vld [vmem:[#allocation2 + $0x1a4] sm:$0xf]  ;;  %v6879_v12 = vpack.c.b16 %v6837_v35, %v6836_v2  ;;  %v15632_v19 = vpop.f32.mrf.mxu0  ;;  %v6455_v2 = vld [vmem:[#allocation2 + $0x190] sm:$0xe] }
 0x67e   :  { %17695 = vst [vmem:[#allocation26_spill] sm:$0xff] %v15632_v19  ;;  %v5769_v39 = vshll.u32 %v15629_v20, 16  ;;  %v5773_v59 = vshrl.u32 %v15629_v20, 16 }
 0x67f   :  { %v15627_v57 = vadd.f32 %v7079_v8, %v6393_v48  ;;  %v7081_v53 = vpop.f32.mrf.mxu3  ;;  %v6717_v8 = vrot.slane %v15604_v41, 5  ;;  %v5758_v48 = vsel %vm14293_vm14, %v5753_v0, %v5757_v14  ;;  %v11573_v0 = vrot.slane %v6455_v2, 9 }
 0x680   :  { %v6029_v25 = vunpack.c.l.b16 %v5758_v48  ;;  %v6720_v14 = vrot.slane %v5179_v34, 5 }
 0x681   :  { %17693 = vst [vmem:[#allocation28_spill] sm:$0xff] %v15627_v57  ;;  %v6719_v41 = vrot.slane %v6717_v8, 4  ;;  %v6718_v34 = vsel %vm14386_vm3, %v11573_v0, %v6717_v8 }
 0x682   :  { %v4949_v24 = vpop.f32.mrf.mxu1 }
 0x683   :  { %v5072_v63 = vadd.f32 %v4949_v24, %v17694_v58  ;;  %v5762_v58 = vrot.slane %v5760_v22, 4  ;;  %v6721_v9 = vsel %vm14386_vm3, %v6719_v41, %v6720_v14  ;;  %v15656_v41 = vld [vmem:[#allocation2 + $0x1b4] sm:$0xf] }
 0x684   :  { %11620 = vmatmul.msk.bf16.gmra.mxu3 %vm395_vm1, %v6879_v12  ;;  %v5775_v12 = vrot.slane %v5773_v59, 4 }
 0x685   :  { %v6394_v5 = vadd.f32 %v6271_v40, %v5072_v63  ;;  %v6276_v40 = vpop.f32.mrf.mxu2  ;;  %v5771_v63 = vrot.slane %v5769_v39, 5  ;;  %v5766_v48 = vor.u32 %v5765_v46, %v5762_v58  ;;  %v15649_v21 = vpop.f32.mrf.mxu0  ;;  %v17700_v58 = vld [vmem:[#allocation29_spill] sm:$0xff] }
 0x686   :  { %17698 = vst [vmem:[#allocation41_spill] sm:$0xff] %v15649_v21 }
 0x687   :  { %v15642_v35 = vadd.f32 %v7081_v53, %v6394_v5  ;;  %v7084_v24 = vpop.f32.mrf.mxu3  ;;  %v12056_v53 = vld [vmem:[#allocation2 + $0x180] sm:$0xff]  ;;  %v6070_v5 = vpack.c.b16 %v6029_v25, %v6028_v62  ;;  %v5776_v22 = vor.u32 %v5775_v12, %v5771_v63  ;;  %v5767_v62 = vrot.slane %v5766_v48, 4 }
 0x688   :  { %v5797_v48 = vshrl.u32 %v15656_v41, 16 }
 0x689   :  { %17696 = vst [vmem:[#allocation75_spill] sm:$0xff] %v15642_v35  ;;  %11801 = vmatmul.msk.bf16.gmra.mxu0 %vm395_vm1, %v12105_v6  ;;  %v5182_v35 = vld [vmem:[#allocation2 + $0x1a8] sm:$0x1]  ;;  %v6838_v6 = vunpack.c.l.b16 %v6718_v34  ;;  %v5777_v25 = vrot.slane %v5776_v22, 4  ;;  %v6456_v34 = vld [vmem:[#allocation2 + $0x1a0] sm:$0xe] }
 0x68a   :  { %v4952_v19 = vpop.f32.mrf.mxu1 }
 0x68b   :  { %v5073_v57 = vadd.f32 %v4952_v19, %v17697_v37  ;;  %11541 = vmatmul.msk.bf16.gmra.mxu2 %vm395_vm1, %v6070_v5  ;;  %v6839_v37 = vunpack.c.l.b16 %v6721_v9  ;;  %v5779_v19 = vshll.u32 %v5182_v35, 16  ;;  %v5793_v9 = vshll.u32 %v15656_v41, 16 }
 0x68d   :  { %v6395_v60 = vadd.f32 %v6274_v42, %v5073_v57  ;;  %11492 = vmatmul.msk.bf16.gmra.mxu1 %vm395_vm1, %v12056_v53  ;;  %v6279_v2 = vpop.f32.mrf.mxu2  ;;  %v5183_v57 = vld [vmem:[#allocation2 + $0x1b0] sm:$0xf]  ;;  %v6880_v12 = vpack.c.b16 %v6839_v37, %v6838_v6  ;;  %v5781_v14 = vrot.slane %v5779_v19, 5  ;;  %v6724_v53 = vrot.slane %v15629_v20, 5  ;;  %v12119_v20 = vld [vmem:[#allocation6 + $0x100] sm:$0xff]  ;;  %v15669_v19 = vpop.f32.mrf.mxu0 }
 0x68e   :  { %v5784_v8 = vshrl.u32 %v5183_v57, 16  ;;  %17702 = vst [vmem:[#allocation77_spill] sm:$0xff] %v15669_v19  ;;  %9736 = vmatpush.bf16.msra.mxu2 %v12119_v20  ;;  %v12115_v20 = vld [vmem:[#allocation6 + $0xe0] sm:$0xff] }
 0x68f   :  { %v15654_v39 = vadd.f32 %v7084_v24, %v6395_v60  ;;  %v7086_v59 = vpop.f32.mrf.mxu3  ;;  %v5772_v60 = vsel %vm14293_vm14, %v5767_v62, %v5771_v63  ;;  %v5787_v24 = vshll.u32 %v5183_v57, 16  ;;  %v5782_v5 = vsel %vm14293_vm14, %v5777_v25, %v5781_v14  ;;  %v12106_v62 = vld [vmem:[#allocation2 + $0x1f0] sm:$0xff]  ;;  %8926 = vmatpush.bf16.msra.mxu1 %v12115_v20  ;;  %v12107_v20 = vld [vmem:[#allocation2 + $0x200] sm:$0xff] }
 0x690   :  { %v6726_v37 = vrot.slane %v6724_v53, 4  ;;  %v6030_v6 = vunpack.c.l.b16 %v5772_v60  ;;  %v5786_v57 = vrot.slane %v5784_v8, 4  ;;  %v5799_v25 = vrot.slane %v5797_v48, 4  ;;  %v5185_v60 = vld [vmem:[#allocation2 + $0x1b8] sm:$0x1] }
 0x691   :  { %17699 = vst [vmem:[#allocation76_spill] sm:$0xff] %v15654_v39  ;;  %v6727_v14 = vrot.slane %v5182_v35, 5 }
 0x692   :  { %v4954_v42 = vpop.f32.mrf.mxu1 }
 0x693   :  { %v5074_v46 = vadd.f32 %v4954_v42, %v17700_v58  ;;  %v5789_v42 = vrot.slane %v5787_v24, 5  ;;  %v6728_v19 = vsel %vm14386_vm3, %v6726_v37, %v6727_v14 }
 0x694   :  { %11621 = vmatmul.msk.bf16.gmra.mxu3 %vm395_vm1, %v6880_v12  ;;  %v6841_v35 = vunpack.c.l.b16 %v6728_v19 }
 0x695   :  { %v6396_v0 = vadd.f32 %v6276_v40, %v5074_v46  ;;  %v6031_v40 = vunpack.c.l.b16 %v5782_v5  ;;  %v6281_v58 = vpop.f32.mrf.mxu2  ;;  %v5795_v46 = vrot.slane %v5793_v9, 5  ;;  %v5790_v5 = vor.u32 %v5789_v42, %v5786_v57  ;;  %v15683_v57 = vld [vmem:[#allocation2 + $0x1c4] sm:$0xf] }
 0x697   :  { %v15667_v22 = vadd.f32 %v7086_v59, %v6396_v0  ;;  %v7089_v63 = vpop.f32.mrf.mxu3  ;;  %v11574_v59 = vrot.slane %v6456_v34, 9  ;;  %v17703_v0 = vld [vmem:[#allocation12_spill] sm:$0xff]  ;;  %v6071_v39 = vpack.c.b16 %v6031_v40, %v6030_v6  ;;  %v5800_v24 = vor.u32 %v5799_v25, %v5795_v46 }
 0x698   :  { %v5803_v34 = vshll.u32 %v5185_v60, 16  ;;  %v5791_v6 = vrot.slane %v5790_v5, 4  ;;  %v6731_v25 = vrot.slane %v15656_v41, 5 }
 0x699   :  { %17701 = vst [vmem:[#allocation29_spill] sm:$0xff] %v15667_v22  ;;  %11802 = vmatmul.msk.bf16.gmra.mxu0 %vm395_vm1, %v12106_v62  ;;  %v12057_v22 = vld [vmem:[#allocation2 + $0x190] sm:$0xff]  ;;  %v6725_v9 = vsel %vm14386_vm3, %v11574_v59, %v6724_v53 }
 0x69a   :  { %v4957_v12 = vpop.f32.mrf.mxu1  ;;  %v6840_v37 = vunpack.c.l.b16 %v6725_v9  ;;  %v5796_v19 = vsel %vm14293_vm14, %v5791_v6, %v5795_v46  ;;  %v6733_v41 = vrot.slane %v6731_v25, 4 }
 0x69b   :  { %v5075_v21 = vadd.f32 %v4957_v12, %v17703_v0  ;;  %11542 = vmatmul.msk.bf16.gmra.mxu2 %vm395_vm1, %v6071_v39  ;;  %v5801_v12 = vrot.slane %v5800_v24, 4  ;;  %v17706_v39 = vld [vmem:[#allocation37_spill] sm:$0xff]  ;;  %v5821_v24 = vshrl.u32 %v15683_v57, 16  ;;  %v6032_v46 = vunpack.c.l.b16 %v5796_v19 }
 0x69c   :  { %v6881_v53 = vpack.c.b16 %v6841_v35, %v6840_v37  ;;  %v6457_v35 = vld [vmem:[#allocation2 + $0x1b0] sm:$0xe] }
 0x69d   :  { %v6397_v8 = vadd.f32 %v6279_v2, %v5075_v21  ;;  %11493 = vmatmul.msk.bf16.gmra.mxu1 %vm395_vm1, %v12057_v22  ;;  %v6284_v40 = vpop.f32.mrf.mxu2  ;;  %v5186_v21 = vld [vmem:[#allocation2 + $0x1c0] sm:$0xf]  ;;  %v15681_v2 = vpop.f32.mrf.mxu0 }
 0x69e   :  { %17705 = vst [vmem:[#allocation78_spill] sm:$0xff] %v15681_v2  ;;  %v5808_v59 = vshrl.u32 %v5186_v21, 16  ;;  %v5811_v14 = vshll.u32 %v5186_v21, 16 }
 0x69f   :  { %v15679_v48 = vadd.f32 %v7089_v63, %v6397_v8  ;;  %v7091_v62 = vpop.f32.mrf.mxu3  ;;  %v5805_v63 = vrot.slane %v5803_v34, 5  ;;  %v5817_v8 = vshll.u32 %v15683_v57, 16 }
 0x6a0   :  { %v5810_v21 = vrot.slane %v5808_v59, 4 }
 0x6a1   :  { %17704 = vst [vmem:[#allocation12_spill] sm:$0xff] %v15679_v48  ;;  %v5806_v5 = vsel %vm14293_vm14, %v5801_v12, %v5805_v63  ;;  %v11575_v12 = vrot.slane %v6457_v35, 9  ;;  %v17708_v63 = vld [vmem:[#allocation31_spill] sm:$0xff] }
 0x6a2   :  { %v4959_v22 = vpop.f32.mrf.mxu1  ;;  %v6033_v6 = vunpack.c.l.b16 %v5806_v5  ;;  %v5188_v5 = vld [vmem:[#allocation2 + $0x1c8] sm:$0x1] }
 0x6a3   :  { %v5076_v42 = vadd.f32 %v4959_v22, %v17706_v39  ;;  %v5819_v22 = vrot.slane %v5817_v8, 5  ;;  %v5823_v39 = vrot.slane %v5821_v24, 4  ;;  %v5827_v35 = vshll.u32 %v5188_v5, 16 }
 0x6a4   :  { %11622 = vmatmul.msk.bf16.gmra.mxu3 %vm395_vm1, %v6881_v53  ;;  %v6734_v53 = vrot.slane %v5185_v60, 5  ;;  %v6732_v60 = vsel %vm14386_vm3, %v11575_v12, %v6731_v25 }
 0x6a5   :  { %v6398_v0 = vadd.f32 %v6281_v58, %v5076_v42  ;;  %v6286_v37 = vpop.f32.mrf.mxu2  ;;  %v5813_v58 = vrot.slane %v5811_v14, 5  ;;  %v5824_v14 = vor.u32 %v5823_v39, %v5819_v22 }
 0x6a6   :  { %v6735_v19 = vsel %vm14386_vm3, %v6733_v41, %v6734_v53  ;;  %v5189_v53 = vld [vmem:[#allocation2 + $0x1d0] sm:$0xf] }
 0x6a7   :  { %v15694_v9 = vadd.f32 %v7091_v62, %v6398_v0  ;;  %v7094_v34 = vpop.f32.mrf.mxu3  ;;  %v12058_v62 = vld [vmem:[#allocation2 + $0x1a0] sm:$0xff]  ;;  %v15698_v0 = vpop.f32.mrf.mxu0  ;;  %v5814_v59 = vor.u32 %v5813_v58, %v5810_v21  ;;  %v6843_v24 = vunpack.c.l.b16 %v6735_v19  ;;  %v5825_v41 = vrot.slane %v5824_v14, 4 }
 0x6a8   :  { %17709 = vst [vmem:[#allocation31_spill] sm:$0xff] %v15698_v0  ;;  %v17711_v21 = vld [vmem:[#allocation32_spill] sm:$0xff]  ;;  %v5832_v25 = vshrl.u32 %v5189_v53, 16  ;;  %v17714_v0 = vld [vmem:[#allocation30_spill] sm:$0xff] }
 0x6a9   :  { %17707 = vst [vmem:[#allocation37_spill] sm:$0xff] %v15694_v9  ;;  %11803 = vmatmul.msk.bf16.gmra.mxu0 %vm395_vm1, %v12107_v20  ;;  %v6072_v9 = vpack.c.b16 %v6033_v6, %v6032_v46  ;;  %v6842_v6 = vunpack.c.l.b16 %v6732_v60 }
 0x6aa   :  { %v4962_v42 = vpop.f32.mrf.mxu1 }
 0x6ab   :  { %v5077_v2 = vadd.f32 %v4962_v42, %v17708_v63  ;;  %11543 = vmatmul.msk.bf16.gmra.mxu2 %vm395_vm1, %v6072_v9  ;;  %v5815_v42 = vrot.slane %v5814_v59, 4  ;;  %v6882_v39 = vpack.c.b16 %v6843_v24, %v6842_v6  ;;  %v5829_v9 = vrot.slane %v5827_v35, 5  ;;  %v12108_v6 = vld [vmem:[#allocation2 + $0x210] sm:$0xff] }
 0x6ac   :  { %v6738_v63 = vrot.slane %v15683_v57, 5  ;;  %v6458_v57 = vld [vmem:[#allocation2 + $0x1c0] sm:$0xe] }
 0x6ad   :  { %v6399_v48 = vadd.f32 %v6284_v40, %v5077_v2  ;;  %11494 = vmatmul.msk.bf16.gmra.mxu1 %vm395_vm1, %v12058_v62  ;;  %v6289_v46 = vpop.f32.mrf.mxu2  ;;  %v15708_v40 = vld [vmem:[#allocation2 + $0x1d4] sm:$0xf]  ;;  %v5820_v62 = vsel %vm14293_vm14, %v5815_v42, %v5819_v22  ;;  %v5830_v19 = vsel %vm14293_vm14, %v5825_v41, %v5829_v9  ;;  %v11576_v41 = vrot.slane %v6458_v57, 9 }
 0x6ae   :  { %v5845_v59 = vshrl.u32 %v15708_v40, 16  ;;  %v6740_v24 = vrot.slane %v6738_v63, 4  ;;  %v6741_v9 = vrot.slane %v5188_v5, 5 }
 0x6af   :  { %v15706_v8 = vadd.f32 %v7094_v34, %v6399_v48  ;;  %v7096_v20 = vpop.f32.mrf.mxu3  ;;  %v5835_v48 = vshll.u32 %v5189_v53, 16  ;;  %v5841_v34 = vshll.u32 %v15708_v40, 16  ;;  %v15719_v14 = vpop.f32.mrf.mxu0  ;;  %v6034_v53 = vunpack.c.l.b16 %v5820_v62 }
 0x6b0   :  { %17712 = vst [vmem:[#allocation32_spill] sm:$0xff] %v15719_v14  ;;  %v5847_v22 = vrot.slane %v5845_v59, 4 }
 0x6b1   :  { %17710 = vst [vmem:[#allocation79_spill] sm:$0xff] %v15706_v8  ;;  %v5191_v8 = vld [vmem:[#allocation2 + $0x1d8] sm:$0x1] }
 0x6b2   :  { %v4964_v2 = vpop.f32.mrf.mxu1 }
 0x6b3   :  { %v5078_v58 = vadd.f32 %v4964_v2, %v17711_v21  ;;  %v5834_v2 = vrot.slane %v5832_v25, 4  ;;  %v5837_v21 = vrot.slane %v5835_v48, 5  ;;  %v6739_v48 = vsel %vm14386_vm3, %v11576_v41, %v6738_v63 }
 0x6b4   :  { %11623 = vmatmul.msk.bf16.gmra.mxu3 %vm395_vm1, %v6882_v39  ;;  %v5843_v39 = vrot.slane %v5841_v34, 5  ;;  %v6745_v63 = vrot.slane %v15708_v40, 5 }
 0x6b5   :  { %v6400_v12 = vadd.f32 %v6286_v37, %v5078_v58  ;;  %v6035_v37 = vunpack.c.l.b16 %v5830_v19  ;;  %v6291_v58 = vpop.f32.mrf.mxu2  ;;  %v5838_v62 = vor.u32 %v5837_v21, %v5834_v2  ;;  %v15735_v2 = vld [vmem:[#allocation2 + $0x1e4] sm:$0xf]  ;;  %v17717_v21 = vld [vmem:[#allocation33_spill] sm:$0xff] }
 0x6b6   :  { %v5848_v25 = vor.u32 %v5847_v22, %v5843_v39 }
 0x6b7   :  { %v15721_v60 = vadd.f32 %v7096_v20, %v6400_v12  ;;  %v7099_v35 = vpop.f32.mrf.mxu3  ;;  %v12059_v20 = vld [vmem:[#allocation2 + $0x1b0] sm:$0xff]  ;;  %v6073_v12 = vpack.c.b16 %v6035_v37, %v6034_v53  ;;  %v15733_v59 = vpop.f32.mrf.mxu0  ;;  %v6844_v53 = vunpack.c.l.b16 %v6739_v48 }
 0x6b8   :  { %17716 = vst [vmem:[#allocation81_spill] sm:$0xff] %v15733_v59  ;;  %v5849_v37 = vrot.slane %v5848_v25, 4  ;;  %v6459_v48 = vld [vmem:[#allocation2 + $0x1d0] sm:$0xe]  ;;  %v12060_v59 = vld [vmem:[#allocation2 + $0x1c0] sm:$0xff] }
 0x6b9   :  { %17713 = vst [vmem:[#allocation80_spill] sm:$0xff] %v15721_v60  ;;  %11804 = vmatmul.msk.bf16.gmra.mxu0 %vm395_vm1, %v12108_v6  ;;  %v6742_v60 = vsel %vm14386_vm3, %v6740_v24, %v6741_v9  ;;  %v5839_v6 = vrot.slane %v5838_v62, 4  ;;  %v5865_v62 = vshll.u32 %v15735_v2, 16 }
 0x6ba   :  { %v4967_v42 = vpop.f32.mrf.mxu1  ;;  %v6845_v5 = vunpack.c.l.b16 %v6742_v60 }
 0x6bb   :  { %v5079_v14 = vadd.f32 %v4967_v42, %v17714_v0  ;;  %11544 = vmatmul.msk.bf16.gmra.mxu2 %vm395_vm1, %v6073_v12  ;;  %v5851_v0 = vshll.u32 %v5191_v8, 16  ;;  %v5844_v60 = vsel %vm14293_vm14, %v5839_v6, %v5843_v39 }
 0x6bc   :  { %v6883_v42 = vpack.c.b16 %v6845_v5, %v6844_v53  ;;  %v6747_v5 = vrot.slane %v6745_v63, 4  ;;  %v6036_v53 = vunpack.c.l.b16 %v5844_v60 }
 0x6bd   :  { %v6401_v19 = vadd.f32 %v6289_v46, %v5079_v14  ;;  %11495 = vmatmul.msk.bf16.gmra.mxu1 %vm395_vm1, %v12059_v20  ;;  %v6294_v24 = vpop.f32.mrf.mxu2  ;;  %v5192_v46 = vld [vmem:[#allocation2 + $0x1e0] sm:$0xf]  ;;  %v5853_v9 = vrot.slane %v5851_v0, 5 }
 0x6be   :  { %v5859_v41 = vshll.u32 %v5192_v46, 16  ;;  %v12109_v0 = vld [vmem:[#allocation2 + $0x220] sm:$0xff] }
 0x6bf   :  { %v15731_v34 = vadd.f32 %v7099_v35, %v6401_v19  ;;  %v7101_v57 = vpop.f32.mrf.mxu3  ;;  %v5856_v35 = vshrl.u32 %v5192_v46, 16  ;;  %v5854_v12 = vsel %vm14293_vm14, %v5849_v37, %v5853_v9  ;;  %v5869_v19 = vshrl.u32 %v15735_v2, 16 }
 0x6c0   :  { %v6037_v39 = vunpack.c.l.b16 %v5854_v12  ;;  %v5861_v46 = vrot.slane %v5859_v41, 5  ;;  %v6748_v9 = vrot.slane %v5191_v8, 5  ;;  %v5194_v12 = vld [vmem:[#allocation2 + $0x1e8] sm:$0x1] }
 0x6c1   :  { %17715 = vst [vmem:[#allocation30_spill] sm:$0xff] %v15731_v34  ;;  %v5858_v6 = vrot.slane %v5856_v35, 4 }
 0x6c2   :  { %v4969_v14 = vpop.f32.mrf.mxu1  ;;  %v6749_v60 = vsel %vm14386_vm3, %v6747_v5, %v6748_v9  ;;  %v5195_v9 = vld [vmem:[#allocation2 + $0x1f0] sm:$0xf] }
 0x6c3   :  { %v5080_v22 = vadd.f32 %v4969_v14, %v17717_v21  ;;  %v5867_v14 = vrot.slane %v5865_v62, 5  ;;  %v5871_v21 = vrot.slane %v5869_v19, 4  ;;  %v5862_v35 = vor.u32 %v5861_v46, %v5858_v6 }
 0x6c4   :  { %11624 = vmatmul.msk.bf16.gmra.mxu3 %vm395_vm1, %v6883_v42  ;;  %v11577_v42 = vrot.slane %v6459_v48, 9  ;;  %v6847_v8 = vunpack.c.l.b16 %v6749_v60 }
 0x6c5   :  { %v6402_v20 = vadd.f32 %v6291_v58, %v5080_v22  ;;  %v6296_v58 = vpop.f32.mrf.mxu2  ;;  %v15748_v22 = vpop.f32.mrf.mxu0  ;;  %v5872_v62 = vor.u32 %v5871_v21, %v5867_v14 }
 0x6c6   :  { %17719 = vst [vmem:[#allocation82_spill] sm:$0xff] %v15748_v22  ;;  %v6746_v19 = vsel %vm14386_vm3, %v11577_v42, %v6745_v63  ;;  %v5883_v42 = vshll.u32 %v5195_v9, 16  ;;  %v6755_v22 = vrot.slane %v5194_v12, 5 }
 0x6c7   :  { %v15746_v25 = vadd.f32 %v7101_v57, %v6402_v20  ;;  %v7104_v40 = vpop.f32.mrf.mxu3  ;;  %v17720_v57 = vld [vmem:[#allocation21_spill] sm:$0xff]  ;;  %v5873_v5 = vrot.slane %v5872_v62, 4 }
 0x6c9   :  { %17718 = vst [vmem:[#allocation33_spill] sm:$0xff] %v15746_v25  ;;  %11805 = vmatmul.msk.bf16.gmra.mxu0 %vm395_vm1, %v12109_v0  ;;  %v6074_v25 = vpack.c.b16 %v6037_v39, %v6036_v53  ;;  %v5875_v0 = vshll.u32 %v5194_v12, 16  ;;  %v5863_v53 = vrot.slane %v5862_v35, 4 }
 0x6ca   :  { %v4972_v37 = vpop.f32.mrf.mxu1 }
 0x6cb   :  { %v5081_v20 = vadd.f32 %v4972_v37, %v17720_v57  ;;  %11545 = vmatmul.msk.bf16.gmra.mxu2 %vm395_vm1, %v6074_v25  ;;  %v6846_v57 = vunpack.c.l.b16 %v6746_v19  ;;  %v5877_v25 = vrot.slane %v5875_v0, 5  ;;  %v5868_v63 = vsel %vm14293_vm14, %v5863_v53, %v5867_v14 }
 0x6cc   :  { %v5885_v53 = vrot.slane %v5883_v42, 5 }
 0x6cd   :  { %v6403_v41 = vadd.f32 %v6294_v24, %v5081_v20  ;;  %11496 = vmatmul.msk.bf16.gmra.mxu1 %vm395_vm1, %v12060_v59  ;;  %v6299_v39 = vpop.f32.mrf.mxu2  ;;  %v15760_v24 = vld [vmem:[#allocation2 + $0x1f4] sm:$0xf]  ;;  %v17722_v59 = vld [vmem:[#allocation13_spill] sm:$0xff]  ;;  %v6884_v21 = vpack.c.b16 %v6847_v8, %v6846_v57  ;;  %v6752_v20 = vrot.slane %v15735_v2, 5  ;;  %v5878_v35 = vsel %vm14293_vm14, %v5873_v5, %v5877_v25  ;;  %v6460_v8 = vld [vmem:[#allocation2 + $0x1e0] sm:$0xe] }
 0x6ce   :  { %v5893_v62 = vshrl.u32 %v15760_v24, 16  ;;  %v6038_v57 = vunpack.c.l.b16 %v5868_v63  ;;  %v17724_v5 = vld [vmem:[#allocation19_spill] sm:$0xff] }
 0x6cf   :  { %v15758_v48 = vadd.f32 %v7104_v40, %v6403_v41  ;;  %v7106_v37 = vpop.f32.mrf.mxu3  ;;  %v5880_v40 = vshrl.u32 %v5195_v9, 16  ;;  %v5889_v41 = vshll.u32 %v15760_v24, 16  ;;  %v6754_v0 = vrot.slane %v6752_v20, 4 }
 0x6d1   :  { %17721 = vst [vmem:[#allocation21_spill] sm:$0xff] %v15758_v48  ;;  %v5882_v14 = vrot.slane %v5880_v40, 4  ;;  %v12061_v48 = vld [vmem:[#allocation2 + $0x1d0] sm:$0xff] }
 0x6d2   :  { %v4974_v6 = vpop.f32.mrf.mxu1 }
 0x6d3   :  { %v5082_v46 = vadd.f32 %v4974_v6, %v17722_v59  ;;  %v6039_v6 = vunpack.c.l.b16 %v5878_v35  ;;  %v5895_v59 = vrot.slane %v5893_v62, 4 }
 0x6d4   :  { %11625 = vmatmul.msk.bf16.gmra.mxu3 %vm395_vm1, %v6884_v21  ;;  %v11578_v21 = vrot.slane %v6460_v8, 9 }
 0x6d5   :  { %v6404_v60 = vadd.f32 %v6296_v58, %v5082_v46  ;;  %v6301_v9 = vpop.f32.mrf.mxu2  ;;  %v5891_v58 = vrot.slane %v5889_v41, 5  ;;  %v6075_v34 = vpack.c.b16 %v6039_v6, %v6038_v57 }
 0x6d6   :  { %v6753_v40 = vsel %vm14386_vm3, %v11578_v21, %v6752_v20 }
 0x6d7   :  { %v15771_v19 = vadd.f32 %v7106_v37, %v6404_v60  ;;  %v7109_v2 = vpop.f32.mrf.mxu3  ;;  %v6756_v37 = vsel %vm14386_vm3, %v6754_v0, %v6755_v22  ;;  %v5197_v60 = vld [vmem:[#allocation2 + $0x1f8] sm:$0x1]  ;;  %v5896_v63 = vor.u32 %v5895_v59, %v5891_v58  ;;  %v6848_v57 = vunpack.c.l.b16 %v6753_v40  ;;  %v5198_v0 = vld [vmem:[#allocation2 + $0x200] sm:$0xf] }
 0x6d8   :  { %v6849_v12 = vunpack.c.l.b16 %v6756_v37  ;;  %v5899_v35 = vshll.u32 %v5197_v60, 16  ;;  %v6759_v59 = vrot.slane %v15760_v24, 5  ;;  %v5904_v20 = vshrl.u32 %v5198_v0, 16  ;;  %v6461_v37 = vld [vmem:[#allocation2 + $0x1f0] sm:$0xe] }
 0x6d9   :  { %17723 = vst [vmem:[#allocation13_spill] sm:$0xff] %v15771_v19  ;;  %v5886_v19 = vor.u32 %v5885_v53, %v5882_v14  ;;  %v5897_v22 = vrot.slane %v5896_v63, 4 }
 0x6da   :  { %v4977_v46 = vpop.f32.mrf.mxu1  ;;  %v6885_v53 = vpack.c.b16 %v6849_v12, %v6848_v57  ;;  %v6761_v63 = vrot.slane %v6759_v59, 4 }
 0x6db   :  { %v5083_v25 = vadd.f32 %v4977_v46, %v17724_v5  ;;  %11546 = vmatmul.msk.bf16.gmra.mxu2 %vm395_vm1, %v6075_v34  ;;  %v5887_v62 = vrot.slane %v5886_v19, 4  ;;  %v5901_v34 = vrot.slane %v5899_v35, 5 }
 0x6dd   :  { %v6405_v36 = vadd.f32 %v6299_v39, %v5083_v25  ;;  %11497 = vmatmul.msk.bf16.gmra.mxu1 %vm395_vm1, %v12061_v48  ;;  %v15782_v39 = vld [vmem:[#allocation2 + $0x204] sm:$0xf]  ;;  %v17726_v48 = vld [vmem:[#allocation14_spill] sm:$0xff]  ;;  %v5902_v19 = vsel %vm14293_vm14, %v5897_v22, %v5901_v34 }
 0x6de   :  { %v6304_v8 = vpop.f32.mrf.mxu2  ;;  %v5913_v21 = vshll.u32 %v15782_v39, 16  ;;  %v5917_v5 = vshrl.u32 %v15782_v39, 16  ;;  %v6041_v12 = vunpack.c.l.b16 %v5902_v19  ;;  %v17728_v22 = vld [vmem:[#allocation38_spill] sm:$0xff] }
 0x6df   :  { %v15780_v42 = vadd.f32 %v7109_v2, %v6405_v36  ;;  %v7111_v41 = vpop.f32.mrf.mxu3  ;;  %v5892_v36 = vsel %vm14293_vm14, %v5887_v62, %v5891_v58  ;;  %v5907_v2 = vshll.u32 %v5198_v0, 16  ;;  %v5906_v58 = vrot.slane %v5904_v20, 4 }
 0x6e0   :  { %v6040_v40 = vunpack.c.l.b16 %v5892_v36  ;;  %v5919_v57 = vrot.slane %v5917_v5, 4 }
 0x6e1   :  { %17725 = vst [vmem:[#allocation19_spill] sm:$0xff] %v15780_v42  ;;  %v5909_v35 = vrot.slane %v5907_v2, 5 }
 0x6e2   :  { %v4979_v6 = vpop.f32.mrf.mxu1  ;;  %v6076_v34 = vpack.c.b16 %v6041_v12, %v6040_v40  ;;  %v5201_v12 = vld [vmem:[#allocation2 + $0x210] sm:$0xf] }
 0x6e3   :  { %v5084_v14 = vadd.f32 %v4979_v6, %v17726_v48  ;;  %v11579_v6 = vrot.slane %v6461_v37, 9  ;;  %v6762_v48 = vrot.slane %v5197_v60, 5 }
 0x6e4   :  { %11626 = vmatmul.msk.bf16.gmra.mxu3 %vm395_vm1, %v6885_v53  ;;  %v12062_v53 = vld [vmem:[#allocation2 + $0x1e0] sm:$0xff] }
 0x6e5   :  { %v6406_v46 = vadd.f32 %v6301_v9, %v5084_v14  ;;  %v5915_v9 = vrot.slane %v5913_v21, 5  ;;  %v6760_v20 = vsel %vm14386_vm3, %v11579_v6, %v6759_v59  ;;  %v5931_v6 = vshll.u32 %v5201_v12, 16 }
 0x6e6   :  { %v6306_v62 = vpop.f32.mrf.mxu2  ;;  %v6850_v40 = vunpack.c.l.b16 %v6760_v20 }
 0x6e7   :  { %v15793_v25 = vadd.f32 %v7111_v41, %v6406_v46  ;;  %v7114_v24 = vpop.f32.mrf.mxu3  ;;  %v6763_v41 = vsel %vm14386_vm3, %v6761_v63, %v6762_v48  ;;  %v5200_v46 = vld [vmem:[#allocation2 + $0x208] sm:$0x1]  ;;  %v5920_v36 = vor.u32 %v5919_v57, %v5915_v9 }
 0x6e8   :  { %v6851_v60 = vunpack.c.l.b16 %v6763_v41  ;;  %v5923_v19 = vshll.u32 %v5200_v46, 16  ;;  %v6462_v41 = vld [vmem:[#allocation2 + $0x200] sm:$0xe] }
 0x6e9   :  { %17727 = vst [vmem:[#allocation14_spill] sm:$0xff] %v15793_v25  ;;  %v5910_v25 = vor.u32 %v5909_v35, %v5906_v58  ;;  %v5921_v63 = vrot.slane %v5920_v36, 4  ;;  %v17729_v35 = vld [vmem:[#allocation15_spill] sm:$0xff] }
 0x6ea   :  { %v4982_v0 = vpop.f32.mrf.mxu1  ;;  %v5925_v48 = vrot.slane %v5923_v19, 5 }
 0x6eb   :  { %v5085_v14 = vadd.f32 %v4982_v0, %v17728_v22  ;;  %11547 = vmatmul.msk.bf16.gmra.mxu2 %vm395_vm1, %v6076_v34  ;;  %v5911_v5 = vrot.slane %v5910_v25, 4  ;;  %v6886_v0 = vpack.c.b16 %v6851_v60, %v6850_v40 }
 0x6ec   :  { %v5926_v25 = vsel %vm14293_vm14, %v5921_v63, %v5925_v48  ;;  %v17731_v63 = vld [vmem:[#allocation16_spill] sm:$0xff] }
 0x6ed   :  { %v6407_v42 = vadd.f32 %v6304_v8, %v5085_v14  ;;  %11498 = vmatmul.msk.bf16.gmra.mxu1 %vm395_vm1, %v12062_v53  ;;  %v15804_v8 = vld [vmem:[#allocation2 + $0x214] sm:$0xf]  ;;  %v5916_v59 = vsel %vm14293_vm14, %v5911_v5, %v5915_v9  ;;  %v6043_v9 = vunpack.c.l.b16 %v5926_v25  ;;  %v5933_v5 = vrot.slane %v5931_v6, 5 }
 0x6ee   :  { %v6309_v37 = vpop.f32.mrf.mxu2  ;;  %v5937_v14 = vshll.u32 %v15804_v8, 16  ;;  %v5941_v53 = vshrl.u32 %v15804_v8, 16  ;;  %v6042_v20 = vunpack.c.l.b16 %v5916_v59 }
 0x6ef   :  { %v15802_v2 = vadd.f32 %v7114_v24, %v6407_v42  ;;  %v7116_v21 = vpop.f32.mrf.mxu3  ;;  %v6766_v42 = vrot.slane %v15782_v39, 5  ;;  %v5928_v24 = vshrl.u32 %v5201_v12, 16 }
 0x6f0   :  { %v5943_v40 = vrot.slane %v5941_v53, 4  ;;  %v6077_v48 = vpack.c.b16 %v6043_v9, %v6042_v20 }
 0x6f1   :  { %v6768_v60 = vrot.slane %v6766_v42, 4  ;;  %v5930_v19 = vrot.slane %v5928_v24, 4 }
 0x6f2   :  { %v4984_v58 = vpop.f32.mrf.mxu1 }
 0x6f3   :  { %v5086_v57 = vadd.f32 %v4984_v58, %v17729_v35  ;;  %v11580_v58 = vrot.slane %v6462_v41, 9  ;;  %v6769_v35 = vrot.slane %v5200_v46, 5  ;;  %v5934_v59 = vor.u32 %v5933_v5, %v5930_v19  ;;  %v17733_v5 = vld [vmem:[#allocation17_spill] sm:$0xff] }
 0x6f4   :  { %11627 = vmatmul.msk.bf16.gmra.mxu3 %vm395_vm1, %v6886_v0  ;;  %v12063_v0 = vld [vmem:[#allocation2 + $0x1f0] sm:$0xff] }
 0x6f5   :  { %v6408_v22 = vadd.f32 %v6306_v62, %v5086_v57  ;;  %v5939_v62 = vrot.slane %v5937_v14, 5  ;;  %v6767_v24 = vsel %vm14386_vm3, %v11580_v58, %v6766_v42  ;;  %v5935_v9 = vrot.slane %v5934_v59, 4  ;;  %v6463_v59 = vld [vmem:[#allocation2 + $0x210] sm:$0xe] }
 0x6f6   :  { %v6311_v39 = vpop.f32.mrf.mxu2  ;;  %v6852_v20 = vunpack.c.l.b16 %v6767_v24  ;;  %v6773_v42 = vrot.slane %v15804_v8, 5 }
 0x6f7   :  { %v15815_v34 = vadd.f32 %v7116_v21, %v6408_v22  ;;  %v7119_v36 = vpop.f32.mrf.mxu3  ;;  %v6770_v21 = vsel %vm14386_vm3, %v6768_v60, %v6769_v35  ;;  %v5203_v22 = vld [vmem:[#allocation2 + $0x218] sm:$0x1]  ;;  %v5944_v25 = vor.u32 %v5943_v40, %v5939_v62 }
 0x6f8   :  { %v6853_v46 = vunpack.c.l.b16 %v6770_v21  ;;  %v5947_v14 = vshll.u32 %v5203_v22, 16 }
 0x6f9   :  { %17730 = vst [vmem:[#allocation38_spill] sm:$0xff] %v15815_v34  ;;  %v5945_v60 = vrot.slane %v5944_v25, 4 }
 0x6fa   :  { %v4987_v12 = vpop.f32.mrf.mxu1  ;;  %v6887_v35 = vpack.c.b16 %v6853_v46, %v6852_v20  ;;  %v6775_v46 = vrot.slane %v6773_v42, 4 }
 0x6fb   :  { %v5087_v57 = vadd.f32 %v4987_v12, %v17731_v63  ;;  %11548 = vmatmul.msk.bf16.gmra.mxu2 %vm395_vm1, %v6077_v48  ;;  %v15828_v12 = vld [vmem:[#allocation2 + $0x224] sm:$0xf]  ;;  %v5949_v63 = vrot.slane %v5947_v14, 5 }
 0x6fc   :  { %v5961_v58 = vshll.u32 %v15828_v12, 16  ;;  %v5965_v21 = vshrl.u32 %v15828_v12, 16 }
 0x6fd   :  { %v6409_v34 = vadd.f32 %v6309_v37, %v5087_v57  ;;  %11499 = vmatmul.msk.bf16.gmra.mxu1 %vm395_vm1, %v12063_v0  ;;  %v5204_v37 = vld [vmem:[#allocation2 + $0x220] sm:$0xf]  ;;  %v5940_v0 = vsel %vm14293_vm14, %v5935_v9, %v5939_v62  ;;  %v5950_v48 = vsel %vm14293_vm14, %v5945_v60, %v5949_v63  ;;  %v17735_v62 = vld [vmem:[#allocation22_spill] sm:$0xff] }
 0x6fe   :  { %v6314_v41 = vpop.f32.mrf.mxu2  ;;  %v6044_v24 = vunpack.c.l.b16 %v5940_v0  ;;  %v6045_v8 = vunpack.c.l.b16 %v5950_v48  ;;  %v12064_v60 = vld [vmem:[#allocation2 + $0x200] sm:$0xff]  ;;  %v5206_v0 = vld [vmem:[#allocation2 + $0x228] sm:$0x1] }
 0x6ff   :  { %v15824_v6 = vadd.f32 %v7119_v36, %v6409_v34  ;;  %v15826_v53 = vpop.f32.mrf.mxu3  ;;  %v5952_v34 = vshrl.u32 %v5204_v37, 16  ;;  %v5955_v36 = vshll.u32 %v5204_v37, 16 }
 0x700   :  { %17732 = vst [vmem:[#allocation15_spill] sm:$0xff] %v15826_v53  ;;  %v15841_v53 = vpop.f32.mrf.mxu0  ;;  %v6078_v63 = vpack.c.b16 %v6045_v8, %v6044_v24 }
 0x701   :  { %v5954_v20 = vrot.slane %v5952_v34, 4  ;;  %v5957_v37 = vrot.slane %v5955_v36, 5 }
 0x702   :  { %v4989_v19 = vpop.f32.mrf.mxu1 }
 0x703   :  { %v5088_v40 = vadd.f32 %v4989_v19, %v17733_v5  ;;  %v5967_v19 = vrot.slane %v5965_v21, 4  ;;  %v5958_v34 = vor.u32 %v5957_v37, %v5954_v20 }
 0x704   :  { %11628 = vmatmul.msk.bf16.gmra.mxu3 %vm395_vm1, %v6887_v35  ;;  %v6776_v35 = vrot.slane %v5203_v22, 5 }
 0x705   :  { %v15833_v57 = vadd.f32 %v6311_v39, %v5088_v40  ;;  %v5963_v39 = vrot.slane %v5961_v58, 5  ;;  %v11581_v40 = vrot.slane %v6463_v59, 9  ;;  %v5971_v59 = vshll.u32 %v5206_v0, 16 }
 0x706   :  { %v6316_v14 = vpop.f32.mrf.mxu2 }
 0x707   :  { %17734 = vst [vmem:[#allocation16_spill] sm:$0xff] %v15833_v57  ;;  %v7124_v25 = vpop.f32.mrf.mxu3  ;;  %v6777_v57 = vsel %vm14386_vm3, %v6775_v46, %v6776_v35  ;;  %v5968_v36 = vor.u32 %v5967_v19, %v5963_v39  ;;  %v6774_v22 = vsel %vm14386_vm3, %v11581_v40, %v6773_v42  ;;  %v5959_v46 = vrot.slane %v5958_v34, 4  ;;  %v12110_v19 = vld [vmem:[#allocation2 + $0x230] sm:$0xff]  ;;  %v6464_v40 = vld [vmem:[#allocation2 + $0x220] sm:$0xe] }
 0x708   :  { %v6855_v21 = vunpack.c.l.b16 %v6777_v57  ;;  %v6854_v8 = vunpack.c.l.b16 %v6774_v22  ;;  %v5973_v37 = vrot.slane %v5971_v59, 5  ;;  %v11582_v59 = vrot.slane %v6464_v40, 9 }
 0x709   :  { %v5969_v35 = vrot.slane %v5968_v36, 4  ;;  %v5964_v57 = vsel %vm14293_vm14, %v5959_v46, %v5963_v39 }
 0x70a   :  { %v4992_v5 = vpop.f32.mrf.mxu1  ;;  %v6888_v20 = vpack.c.b16 %v6855_v21, %v6854_v8  ;;  %v6046_v34 = vunpack.c.l.b16 %v5964_v57  ;;  %v7831_v8 = vld [vmem:[#allocation2 + $0x24] sm:$0xf]  ;;  %v9152_v57 = vld [vmem:[#allocation2 + $0x20] sm:$0xe] }
 0x70b   :  { %v5089_v9 = vadd.f32 %v4992_v5, %v17735_v62  ;;  %11549 = vmatmul.msk.bf16.gmra.mxu2 %vm395_vm1, %v6078_v63  ;;  %v17737_v62 = vld [vmem:[#allocation34_spill] sm:$0xff]  ;;  %v15856_v63 = vpop.f32.mrf.mxu0  ;;  %11806 = vmatmul.msk.bf16.gmra.mxu0 %vm395_vm1, %v12110_v19  ;;  %v7832_v19 = vld [vmem:[#allocation2 + $0x28] sm:$0x1] }
 0x70d   :  { %v6411_v48 = vadd.f32 %v6314_v41, %v5089_v9  ;;  %11500 = vmatmul.msk.bf16.gmra.mxu1 %vm395_vm1, %v12064_v60  ;;  %v6780_v60 = vrot.slane %v15828_v12, 5 }
 0x70e   :  { %v6319_v24 = vpop.f32.mrf.mxu2 }
 0x70f   :  { %v15850_v58 = vadd.f32 %v7124_v25, %v6411_v48  ;;  %v15852_v5 = vpop.f32.mrf.mxu3  ;;  %v5974_v25 = vsel %vm14293_vm14, %v5969_v35, %v5973_v37  ;;  %v6782_v22 = vrot.slane %v6780_v60, 4  ;;  %v9282_v35 = vrot.slane %v7831_v8, 5 }
 0x710   :  { %17736 = vst [vmem:[#allocation17_spill] sm:$0xff] %v15852_v5  ;;  %v6047_v36 = vunpack.c.l.b16 %v5974_v25  ;;  %v7830_v25 = vld [vmem:[#allocation2 + $0x20] sm:$0xf] }
 0x712   :  { %v4994_v41 = vpop.f32.mrf.mxu1 }
 0x713   :  { %v5090_v9 = vadd.f32 %v4994_v41, %v17737_v62  ;;  %v12065_v62 = vld [vmem:[#allocation2 + $0x210] sm:$0xff] }
 0x714   :  { %11629 = vmatmul.msk.bf16.gmra.mxu3 %vm395_vm1, %v6888_v20  ;;  %v6781_v20 = vsel %vm14386_vm3, %v11582_v59, %v6780_v60  ;;  %v7936_v60 = vshll.u32 %v7831_v8, 16 }
 0x715   :  { %v15858_v42 = vadd.f32 %v6316_v14, %v5090_v9  ;;  %v6783_v14 = vrot.slane %v5206_v0, 5  ;;  %v6079_v9 = vpack.c.b16 %v6047_v36, %v6046_v34  ;;  %v6856_v34 = vunpack.c.l.b16 %v6781_v20 }
 0x716   :  { %v6321_v12 = vpop.f32.mrf.mxu2  ;;  %v9284_v36 = vrot.slane %v9282_v35, 4 }
 0x717   :  { %v7129_v48 = vpop.f32.mrf.mxu3  ;;  %v6784_v39 = vsel %vm14386_vm3, %v6782_v22, %v6783_v14  ;;  %v11855_v22 = vrot.slane %v9152_v57, 9 }
 0x718   :  { %v6857_v0 = vunpack.c.l.b16 %v6784_v39 }
 0x71a   :  { %v4997_v21 = vpop.f32.mrf.mxu1 }
 0x71b   :  { %v5091_v41 = vadd.f32 %v4997_v21, %v15035_v54  ;;  %11550 = vmatmul.msk.bf16.gmra.mxu2 %vm395_vm1, %v6079_v9  ;;  %v9285_v21 = vrot.slane %v7832_v19, 5  ;;  %v7930_v9 = vshll.u32 %v7830_v25, 16 }
 0x71d   :  { %v6413_v46 = vadd.f32 %v6319_v24, %v5091_v41  ;;  %11501 = vmatmul.msk.bf16.gmra.mxu1 %vm395_vm1, %v12065_v62  ;;  %v6889_v41 = vpack.c.b16 %v6857_v0, %v6856_v34  ;;  %v7927_v62 = vshrl.u32 %v7830_v25, 16  ;;  %v9286_v39 = vsel %vm14386_vm3, %v9284_v36, %v9285_v21 }
 0x71e   :  { %v6324_v40 = vpop.f32.mrf.mxu2  ;;  %v7932_v57 = vrot.slane %v7930_v9, 5  ;;  %v9153_v9 = vld [vmem:[#allocation2 + $0x30] sm:$0xe] }
 0x71f   :  { %v15873_v37 = vadd.f32 %v7129_v48, %v6413_v46  ;;  %v15875_v54 = vpop.f32.mrf.mxu3  ;;  %v7940_v48 = vshrl.u32 %v7831_v8, 16  ;;  %v9283_v46 = vsel %vm14386_vm3, %v11855_v22, %v9282_v35  ;;  %v7929_v20 = vrot.slane %v7927_v62, 4  ;;  %v7834_v8 = vld [vmem:[#allocation2 + $0x34] sm:$0xf] }
 0x720   :  { %17739 = vst [vmem:[#allocation34_spill] sm:$0xff] %v15875_v54  ;;  %v9289_v35 = vrot.slane %v7834_v8, 5  ;;  %v7946_v22 = vshll.u32 %v7832_v19, 16 }
 0x721   :  { %17738 = vst [vmem:[#allocation22_spill] sm:$0xff] %v15873_v37  ;;  %v9514_v37 = vunpack.c.l.b16 %v9286_v39  ;;  %v7942_v0 = vrot.slane %v7940_v48, 4  ;;  %v7835_v39 = vld [vmem:[#allocation2 + $0x38] sm:$0x1] }
 0x722   :  { %v4999_v24 = vpop.f32.mrf.mxu1  ;;  %v9292_v19 = vrot.slane %v7835_v39, 5 }
 0x723   :  { %v5092_v14 = vadd.f32 %v4999_v24, %v15054_v51  ;;  %v7938_v51 = vrot.slane %v7936_v60, 5  ;;  %v9513_v24 = vunpack.c.l.b16 %v9283_v46 }
 0x724   :  { %11630 = vmatmul.msk.bf16.gmra.mxu3 %vm395_vm1, %v6889_v41  ;;  %v7933_v41 = vor.u32 %v7932_v57, %v7929_v20  ;;  %v9291_v20 = vrot.slane %v9289_v35, 4  ;;  %v7948_v57 = vrot.slane %v7946_v22, 5 }
 0x725   :  { %v15878_v59 = vadd.f32 %v6321_v12, %v5092_v14  ;;  %v12066_v14 = vld [vmem:[#allocation2 + $0x220] sm:$0xff]  ;;  %v7943_v5 = vor.u32 %v7942_v0, %v7938_v51 }
 0x726   :  { %v6326_v34 = vpop.f32.mrf.mxu2  ;;  %v7934_v62 = vrot.slane %v7933_v41, 4  ;;  %v9293_v41 = vsel %vm14386_vm3, %v9291_v20, %v9292_v19 }
 0x727   :  { %17740 = vst [vmem:[#allocation83_spill] sm:$0xff] %v15878_v59  ;;  %v7134_v54 = vpop.f32.mrf.mxu3  ;;  %v9577_v59 = vpack.c.b16 %v9514_v37, %v9513_v24  ;;  %v7944_v48 = vrot.slane %v7943_v5, 4  ;;  %v7964_v5 = vshrl.u32 %v7834_v8, 16 }
 0x72a   :  { %v5002_v25 = vpop.f32.mrf.mxu1 }
 0x72b   :  { %v5093_v12 = vadd.f32 %v5002_v25, %v15069_v3  ;;  %11903 = vmatmul.msk.bf16.vlgmr.msra.gmra.mxu2 %vm395_vm1, %v9577_v59  ;;  %v7833_v3 = vld [vmem:[#allocation2 + $0x30] sm:$0xf]  ;;  %v7939_v59 = vsel %vm14293_vm14, %v7934_v62, %v7938_v51  ;;  %v7949_v25 = vsel %vm14293_vm14, %v7944_v48, %v7948_v57  ;;  %v9516_v62 = vunpack.c.l.b16 %v9293_v41  ;;  %v7838_v41 = vld [vmem:[#allocation2 + $0x48] sm:$0x1] }
 0x72c   :  { %v7954_v24 = vshll.u32 %v7833_v3, 16  ;;  %v8704_v22 = vunpack.c.l.b16 %v7949_v25  ;;  %v9154_v25 = vld [vmem:[#allocation2 + $0x40] sm:$0xe] }
 0x72d   :  { %v6415_v36 = vadd.f32 %v6324_v40, %v5093_v12  ;;  %11502 = vmatmul.msk.bf16.gmra.mxu1 %vm395_vm1, %v12066_v14  ;;  %v11856_v40 = vrot.slane %v9153_v9, 9  ;;  %v7960_v12 = vshll.u32 %v7834_v8, 16  ;;  %v7837_v8 = vld [vmem:[#allocation2 + $0x44] sm:$0xf] }
 0x72e   :  { %v6329_v46 = vpop.f32.mrf.mxu2 }
 0x72f   :  { %v15888_v21 = vadd.f32 %v7134_v54, %v6415_v36  ;;  %v15890_v60 = vpop.f32.mrf.mxu3  ;;  %v7951_v54 = vshrl.u32 %v7833_v3, 16  ;;  %v8703_v36 = vunpack.c.l.b16 %v7939_v59 }
 0x730   :  { %17742 = vst [vmem:[#allocation85_spill] sm:$0xff] %v15890_v60  ;;  %v7962_v60 = vrot.slane %v7960_v12, 5 }
 0x731   :  { %17741 = vst [vmem:[#allocation84_spill] sm:$0xff] %v15888_v21  ;;  %v7953_v9 = vrot.slane %v7951_v54, 4  ;;  %v7966_v21 = vrot.slane %v7964_v5, 4 }
 0x732   :  { %v5004_v37 = vpop.f32.mrf.mxu1 }
 0x733   :  { %v5094_v0 = vadd.f32 %v5004_v37, %v15084_v61  ;;  %v9290_v61 = vsel %vm14386_vm3, %v11856_v40, %v9289_v35  ;;  %v7956_v37 = vrot.slane %v7954_v24, 5  ;;  %v7967_v59 = vor.u32 %v7966_v21, %v7962_v60 }
 0x734   :  { %v9515_v57 = vunpack.c.l.b16 %v9290_v61  ;;  %v9296_v35 = vrot.slane %v7837_v8, 5  ;;  %v7970_v40 = vshll.u32 %v7835_v39, 16 }
 0x735   :  { %v15897_v14 = vadd.f32 %v6326_v34, %v5094_v0  ;;  %v8767_v0 = vpack.c.b16 %v8704_v22, %v8703_v36  ;;  %v7957_v20 = vor.u32 %v7956_v37, %v7953_v9  ;;  %v7968_v5 = vrot.slane %v7967_v59, 4 }
 0x736   :  { %v6331_v48 = vpop.f32.mrf.mxu2  ;;  %v9298_v22 = vrot.slane %v9296_v35, 4  ;;  %v7972_v21 = vrot.slane %v7970_v40, 5 }
 0x737   :  { %17743 = vst [vmem:[#allocation86_spill] sm:$0xff] %v15897_v14  ;;  %v7139_v51 = vpop.f32.mrf.mxu3  ;;  %v9578_v14 = vpack.c.b16 %v9516_v62, %v9515_v57  ;;  %v7958_v12 = vrot.slane %v7957_v20, 4  ;;  %v9299_v62 = vrot.slane %v7838_v41, 5  ;;  %v7988_v57 = vshrl.u32 %v7837_v8, 16 }
 0x739   :  { %v7963_v39 = vsel %vm14293_vm14, %v7958_v12, %v7962_v60  ;;  %v7990_v60 = vrot.slane %v7988_v57, 4  ;;  %v7841_v57 = vld [vmem:[#allocation2 + $0x58] sm:$0x1] }
 0x73a   :  { %v5007_v3 = vpop.f32.mrf.mxu1  ;;  %v8705_v20 = vunpack.c.l.b16 %v7963_v39 }
 0x73b   :  { %v5095_v34 = vadd.f32 %v5007_v3, %v15098_v4  ;;  %11904 = vmatmul.msk.bf16.gmra.mxu2 %vm395_vm1, %v9578_v14  ;;  %v7836_v4 = vld [vmem:[#allocation2 + $0x40] sm:$0xf]  ;;  %v7984_v3 = vshll.u32 %v7837_v8, 16  ;;  %v7840_v8 = vld [vmem:[#allocation2 + $0x54] sm:$0xf] }
 0x73c   :  { %v7975_v37 = vshrl.u32 %v7836_v4, 16  ;;  %v7978_v14 = vshll.u32 %v7836_v4, 16 }
 0x73d   :  { %v6417_v19 = vadd.f32 %v6329_v46, %v5095_v34  ;;  %11823 = vmatmul.msk.bf16.vlgmr.msra.gmra.mxu1 %vm395_vm1, %v8767_v0  ;;  %v11857_v46 = vrot.slane %v9154_v25, 9  ;;  %v9300_v0 = vsel %vm14386_vm3, %v9298_v22, %v9299_v62  ;;  %v7986_v4 = vrot.slane %v7984_v3, 5 }
 0x73e   :  { %v6334_v36 = vpop.f32.mrf.mxu2  ;;  %v9518_v40 = vunpack.c.l.b16 %v9300_v0  ;;  %v7980_v25 = vrot.slane %v7978_v14, 5  ;;  %v9155_v14 = vld [vmem:[#allocation2 + $0x50] sm:$0xe] }
 0x73f   :  { %v15906_v54 = vadd.f32 %v7139_v51, %v6417_v19  ;;  %v15908_v24 = vpop.f32.mrf.mxu3  ;;  %v7973_v51 = vsel %vm14293_vm14, %v7968_v5, %v7972_v21  ;;  %v7977_v19 = vrot.slane %v7975_v37, 4  ;;  %v7991_v62 = vor.u32 %v7990_v60, %v7986_v4  ;;  %v7839_v0 = vld [vmem:[#allocation2 + $0x50] sm:$0xf] }
 0x740   :  { %17744 = vst [vmem:[#allocation87_spill] sm:$0xff] %v15908_v24  ;;  %v8706_v59 = vunpack.c.l.b16 %v7973_v51  ;;  %v8002_v60 = vshll.u32 %v7839_v0, 16 }
 0x741   :  { %v7981_v22 = vor.u32 %v7980_v25, %v7977_v19  ;;  %v7992_v3 = vrot.slane %v7991_v62, 4  ;;  %v11858_v19 = vrot.slane %v9155_v14, 9  ;;  %v7999_v25 = vshrl.u32 %v7839_v0, 16 }
 0x742   :  { %v5009_v61 = vpop.f32.mrf.mxu1  ;;  %v8004_v14 = vrot.slane %v8002_v60, 5  ;;  %v9156_v60 = vld [vmem:[#allocation2 + $0x60] sm:$0xe] }
 0x743   :  { %v5096_v9 = vadd.f32 %v5009_v61, %v15113_v50  ;;  %v9297_v50 = vsel %vm14386_vm3, %v11857_v46, %v9296_v35  ;;  %v9303_v35 = vrot.slane %v7840_v8, 5  ;;  %v7994_v46 = vshll.u32 %v7838_v41, 16 }
 0x744   :  { %v9517_v21 = vunpack.c.l.b16 %v9297_v50  ;;  %v7982_v51 = vrot.slane %v7981_v22, 4 }
 0x745   :  { %v15915_v34 = vadd.f32 %v6331_v48, %v5096_v9  ;;  %v8768_v9 = vpack.c.b16 %v8706_v59, %v8705_v20  ;;  %v7996_v59 = vrot.slane %v7994_v46, 5  ;;  %v9304_v62 = vsel %vm14386_vm3, %v11858_v19, %v9303_v35 }
 0x746   :  { %v6336_v12 = vpop.f32.mrf.mxu2  ;;  %v9579_v24 = vpack.c.b16 %v9518_v40, %v9517_v21  ;;  %v9306_v40 = vrot.slane %v7841_v57, 5  ;;  %v8012_v21 = vshrl.u32 %v7840_v8, 16  ;;  %v8018_v19 = vshll.u32 %v7841_v57, 16 }
 0x747   :  { %v7144_v5 = vpop.f32.mrf.mxu3  ;;  %v7997_v41 = vsel %vm14293_vm14, %v7992_v3, %v7996_v59  ;;  %v9519_v3 = vunpack.c.l.b16 %v9304_v62  ;;  %v7843_v59 = vld [vmem:[#allocation2 + $0x64] sm:$0xf] }
 0x748   :  { %v8020_v62 = vrot.slane %v8018_v19, 5 }
 0x74a   :  { %v5012_v61 = vpop.f32.mrf.mxu1 }
 0x74b   :  { %v5097_v48 = vadd.f32 %v5012_v61, %v15127_v52  ;;  %11905 = vmatmul.msk.bf16.gmra.mxu2 %vm395_vm1, %v9579_v24  ;;  %v9305_v52 = vrot.slane %v9303_v35, 4  ;;  %v7987_v24 = vsel %vm14293_vm14, %v7982_v51, %v7986_v4  ;;  %v8014_v4 = vrot.slane %v8012_v21, 4  ;;  %v7844_v21 = vld [vmem:[#allocation2 + $0x68] sm:$0x1] }
 0x74c   :  { %v8707_v22 = vunpack.c.l.b16 %v7987_v24  ;;  %v9310_v24 = vrot.slane %v7843_v59, 5 }
 0x74d   :  { %v6419_v39 = vadd.f32 %v6334_v36, %v5097_v48  ;;  %11824 = vmatmul.msk.bf16.gmra.mxu1 %vm395_vm1, %v8768_v9  ;;  %v9307_v9 = vsel %vm14386_vm3, %v9305_v52, %v9306_v40 }
 0x74e   :  { %v6339_v50 = vpop.f32.mrf.mxu2  ;;  %v9520_v46 = vunpack.c.l.b16 %v9307_v9  ;;  %v7842_v9 = vld [vmem:[#allocation2 + $0x60] sm:$0xf] }
 0x74f   :  { %v15924_v37 = vadd.f32 %v7144_v5, %v6419_v39  ;;  %v15927_v61 = vpop.f32.mrf.mxu3  ;;  %v8008_v5 = vshll.u32 %v7840_v8, 16  ;;  %v8001_v39 = vrot.slane %v7999_v25, 4 }
 0x750   :  { %17745 = vst [vmem:[#allocation88_spill] sm:$0xff] %v15927_v61 }
 0x751   :  { %v8010_v0 = vrot.slane %v8008_v5, 5  ;;  %v8005_v61 = vor.u32 %v8004_v14, %v8001_v39  ;;  %v11859_v39 = vrot.slane %v9156_v60, 9  ;;  %v8023_v14 = vshrl.u32 %v7842_v9, 16 }
 0x752   :  { %v5014_v20 = vpop.f32.mrf.mxu1 }
 0x753   :  { %v5098_v36 = vadd.f32 %v5014_v20, %v15142_v28  ;;  %v8708_v28 = vunpack.c.l.b16 %v7997_v41  ;;  %v8015_v52 = vor.u32 %v8014_v4, %v8010_v0  ;;  %v8006_v41 = vrot.slane %v8005_v61, 4 }
 0x754   :  { %v8026_v4 = vshll.u32 %v7842_v9, 16  ;;  %v8032_v61 = vshll.u32 %v7843_v59, 16 }
 0x755   :  { %v15933_v48 = vadd.f32 %v6336_v12, %v5098_v36  ;;  %v8769_v8 = vpack.c.b16 %v8708_v28, %v8707_v22  ;;  %v9580_v36 = vpack.c.b16 %v9520_v46, %v9519_v3  ;;  %v8016_v5 = vrot.slane %v8015_v52, 4 }
 0x756   :  { %v6341_v51 = vpop.f32.mrf.mxu2  ;;  %v9312_v22 = vrot.slane %v9310_v24, 4  ;;  %v9313_v46 = vrot.slane %v7844_v21, 5  ;;  %v8011_v57 = vsel %vm14293_vm14, %v8006_v41, %v8010_v0  ;;  %v8036_v3 = vshrl.u32 %v7843_v59, 16 }
 0x757   :  { %v7149_v35 = vpop.f32.mrf.mxu3  ;;  %v8028_v19 = vrot.slane %v8026_v4, 5  ;;  %v8034_v60 = vrot.slane %v8032_v61, 5  ;;  %v7845_v61 = vld [vmem:[#allocation2 + $0x70] sm:$0xf] }
 0x758   :  { %v8038_v0 = vrot.slane %v8036_v3, 4 }
 0x75a   :  { %v5017_v20 = vpop.f32.mrf.mxu1 }
 0x75b   :  { %v5099_v12 = vadd.f32 %v5017_v20, %v15156_v55  ;;  %11906 = vmatmul.msk.bf16.gmra.mxu2 %vm395_vm1, %v9580_v36  ;;  %v8021_v20 = vsel %vm14293_vm14, %v8016_v5, %v8020_v62  ;;  %v8709_v36 = vunpack.c.l.b16 %v8011_v57 }
 0x75c   :  { %v8710_v52 = vunpack.c.l.b16 %v8021_v20  ;;  %v7847_v20 = vld [vmem:[#allocation2 + $0x78] sm:$0x1] }
 0x75d   :  { %v6421_v40 = vadd.f32 %v6339_v50, %v5099_v12  ;;  %11825 = vmatmul.msk.bf16.gmra.mxu1 %vm395_vm1, %v8769_v8  ;;  %v9314_v8 = vsel %vm14386_vm3, %v9312_v22, %v9313_v46  ;;  %v8039_v22 = vor.u32 %v8038_v0, %v8034_v60 }
 0x75e   :  { %v6344_v55 = vpop.f32.mrf.mxu2  ;;  %v8770_v59 = vpack.c.b16 %v8710_v52, %v8709_v36 }
 0x75f   :  { %v15942_v25 = vadd.f32 %v7149_v35, %v6421_v40  ;;  %v8025_v40 = vrot.slane %v8023_v14, 4  ;;  %v9522_v35 = vunpack.c.l.b16 %v9314_v8  ;;  %v9157_v14 = vld [vmem:[#allocation2 + $0x70] sm:$0xe]  ;;  %v8040_v57 = vrot.slane %v8039_v22, 4 }
 0x760   :  { %v11860_v52 = vrot.slane %v9157_v14, 9 }
 0x762   :  { %v5019_v28 = vpop.f32.mrf.mxu1 }
 0x763   :  { %v5100_v50 = vadd.f32 %v5019_v28, %v15171_v29  ;;  %v9311_v29 = vsel %vm14386_vm3, %v11859_v39, %v9310_v24  ;;  %v7846_v28 = vld [vmem:[#allocation2 + $0x74] sm:$0xf]  ;;  %v8042_v39 = vshll.u32 %v7844_v21, 16 }
 0x764   :  { %v9521_v5 = vunpack.c.l.b16 %v9311_v29  ;;  %v9317_v24 = vrot.slane %v7846_v28, 5  ;;  %v8056_v0 = vshll.u32 %v7846_v28, 16 }
 0x765   :  { %v15949_v12 = vadd.f32 %v6341_v51, %v5100_v50  ;;  %v8029_v50 = vor.u32 %v8028_v19, %v8025_v40  ;;  %v8044_v36 = vrot.slane %v8042_v39, 5  ;;  %v8047_v40 = vshrl.u32 %v7845_v61, 16 }
 0x766   :  { %v6346_v41 = vpop.f32.mrf.mxu2  ;;  %v9581_v62 = vpack.c.b16 %v9522_v35, %v9521_v5  ;;  %v9319_v8 = vrot.slane %v9317_v24, 4  ;;  %v8050_v35 = vshll.u32 %v7845_v61, 16  ;;  %v8058_v14 = vrot.slane %v8056_v0, 5  ;;  %v7849_v61 = vld [vmem:[#allocation2 + $0x84] sm:$0xf] }
 0x767   :  { %17746 = vst [vmem:[#allocation89_spill] sm:$0xff] %v15949_v12  ;;  %v8030_v4 = vrot.slane %v8029_v50, 4  ;;  %v8045_v21 = vsel %vm14293_vm14, %v8040_v57, %v8044_v36  ;;  %v8049_v50 = vrot.slane %v8047_v40, 4  ;;  %v7850_v40 = vld [vmem:[#allocation2 + $0x88] sm:$0x1] }
 0x768   :  { %v8052_v22 = vrot.slane %v8050_v35, 5  ;;  %v9158_v35 = vld [vmem:[#allocation2 + $0x80] sm:$0xe] }
 0x769   :  { %v8035_v19 = vsel %vm14293_vm14, %v8030_v4, %v8034_v60  ;;  %v7848_v0 = vld [vmem:[#allocation2 + $0x80] sm:$0xf] }
 0x76a   :  { %v5022_v9 = vpop.f32.mrf.mxu1  ;;  %v8053_v36 = vor.u32 %v8052_v22, %v8049_v50  ;;  %v8071_v22 = vshrl.u32 %v7848_v0, 16 }
 0x76b   :  { %v5101_v51 = vadd.f32 %v5022_v9, %v15183_v1  ;;  %11907 = vmatmul.msk.bf16.gmra.mxu2 %vm395_vm1, %v9581_v62  ;;  %v8060_v9 = vshrl.u32 %v7846_v28, 16  ;;  %v8712_v62 = vunpack.c.l.b16 %v8045_v21 }
 0x76d   :  { %v15956_v46 = vadd.f32 %v6344_v55, %v5101_v51  ;;  %11826 = vmatmul.msk.bf16.gmra.mxu1 %vm395_vm1, %v8770_v59  ;;  %v9320_v55 = vrot.slane %v7847_v20, 5  ;;  %v9318_v59 = vsel %vm14386_vm3, %v11860_v52, %v9317_v24  ;;  %v8062_v60 = vrot.slane %v8060_v9, 4 }
 0x76e   :  { %v6349_v3 = vpop.f32.mrf.mxu2  ;;  %v8066_v24 = vshll.u32 %v7847_v20, 16  ;;  %v8054_v52 = vrot.slane %v8053_v36, 4 }
 0x76f   :  { %17747 = vst [vmem:[#allocation90_spill] sm:$0xff] %v15956_v46  ;;  %v9321_v51 = vsel %vm14386_vm3, %v9319_v8, %v9320_v55  ;;  %v8063_v8 = vor.u32 %v8062_v60, %v8058_v14  ;;  %v9324_v55 = vrot.slane %v7849_v61, 5 }
 0x770   :  { %v9524_v39 = vunpack.c.l.b16 %v9321_v51  ;;  %v8068_v51 = vrot.slane %v8066_v24, 5  ;;  %v8073_v24 = vrot.slane %v8071_v22, 4  ;;  %v9159_v22 = vld [vmem:[#allocation2 + $0x90] sm:$0xe] }
 0x771   :  { %v9326_v21 = vrot.slane %v9324_v55, 4 }
 0x772   :  { %v5024_v1 = vpop.f32.mrf.mxu1 }
 0x773   :  { %v5102_v29 = vadd.f32 %v5024_v1, %v15196_v13  ;;  %v8711_v13 = vunpack.c.l.b16 %v8035_v19  ;;  %v9523_v1 = vunpack.c.l.b16 %v9318_v59  ;;  %v8064_v19 = vrot.slane %v8063_v8, 4 }
 0x774   :  { %v11861_v59 = vrot.slane %v9158_v35, 9 }
 0x775   :  { %v15965_v5 = vadd.f32 %v6346_v41, %v5102_v29  ;;  %v8771_v28 = vpack.c.b16 %v8712_v62, %v8711_v13  ;;  %v9582_v29 = vpack.c.b16 %v9524_v39, %v9523_v1  ;;  %v9327_v13 = vrot.slane %v7850_v40, 5  ;;  %v17750_v62 = vld [vmem:[#allocation25_spill] sm:$0xff] }
 0x776   :  { %v6351_v4 = vpop.f32.mrf.mxu2  ;;  %v8074_v39 = vshll.u32 %v7848_v0, 16  ;;  %v8069_v20 = vsel %vm14293_vm14, %v8064_v19, %v8068_v51  ;;  %v8084_v1 = vshrl.u32 %v7849_v61, 16  ;;  %v7852_v51 = vld [vmem:[#allocation2 + $0x94] sm:$0xf] }
 0x777   :  { %17748 = vst [vmem:[#allocation91_spill] sm:$0xff] %v15965_v5  ;;  %v9328_v60 = vsel %vm14386_vm3, %v9326_v21, %v9327_v13  ;;  %v8714_v36 = vunpack.c.l.b16 %v8069_v20 }
 0x778   :  { %v9526_v8 = vunpack.c.l.b16 %v9328_v60  ;;  %v8086_v35 = vrot.slane %v8084_v1, 4  ;;  %v7853_v60 = vld [vmem:[#allocation2 + $0x98] sm:$0x1] }
 0x77a   :  { %v5027_v57 = vpop.f32.mrf.mxu1 }
 0x77b   :  { %v5103_v41 = vadd.f32 %v5027_v57, %v15208_v49  ;;  %11908 = vmatmul.msk.bf16.gmra.mxu2 %vm395_vm1, %v9582_v29  ;;  %v8080_v57 = vshll.u32 %v7849_v61, 16  ;;  %v9325_v29 = vsel %vm14386_vm3, %v11861_v59, %v9324_v55  ;;  %v9331_v55 = vrot.slane %v7852_v51, 5 }
 0x77c   :  { %v9525_v19 = vunpack.c.l.b16 %v9325_v29  ;;  %v8090_v59 = vshll.u32 %v7850_v40, 16 }
 0x77d   :  { %v15972_v5 = vadd.f32 %v6349_v3, %v5103_v41  ;;  %11827 = vmatmul.msk.bf16.gmra.mxu1 %vm395_vm1, %v8771_v28  ;;  %v8059_v3 = vsel %vm14293_vm14, %v8054_v52, %v8058_v14  ;;  %v8076_v14 = vrot.slane %v8074_v39, 5  ;;  %v8082_v52 = vrot.slane %v8080_v57, 5  ;;  %v7851_v57 = vld [vmem:[#allocation2 + $0x90] sm:$0xf] }
 0x77e   :  { %v6354_v9 = vpop.f32.mrf.mxu2  ;;  %v8713_v28 = vunpack.c.l.b16 %v8059_v3  ;;  %v9583_v61 = vpack.c.b16 %v9526_v8, %v9525_v19  ;;  %v9333_v29 = vrot.slane %v9331_v55, 4  ;;  %v17754_v8 = vld [vmem:[#allocation45_spill] sm:$0xff] }
 0x77f   :  { %17749 = vst [vmem:[#allocation92_spill] sm:$0xff] %v15972_v5 }
 0x780   :  { %v8772_v13 = vpack.c.b16 %v8714_v36, %v8713_v28  ;;  %v8092_v28 = vrot.slane %v8090_v59, 5  ;;  %v11862_v36 = vrot.slane %v9159_v22, 9 }
 0x782   :  { %v5029_v49 = vpop.f32.mrf.mxu1 }
 0x783   :  { %v5104_v50 = vadd.f32 %v5029_v49, %v17750_v62  ;;  %v17752_v62 = vld [vmem:[#allocation43_spill] sm:$0xff] }
 0x785   :  { %v15983_v41 = vadd.f32 %v6351_v4, %v5104_v50  ;;  %v8077_v4 = vor.u32 %v8076_v14, %v8073_v24  ;;  %v8087_v50 = vor.u32 %v8086_v35, %v8082_v52  ;;  %v8095_v14 = vshrl.u32 %v7851_v57, 16 }
 0x786   :  { %v6356_v0 = vpop.f32.mrf.mxu2  ;;  %v8098_v35 = vshll.u32 %v7851_v57, 16 }
 0x787   :  { %17751 = vst [vmem:[#allocation25_spill] sm:$0xff] %v15983_v41  ;;  %v8078_v39 = vrot.slane %v8077_v4, 4  ;;  %v8088_v20 = vrot.slane %v8087_v50, 4  ;;  %v9332_v4 = vsel %vm14386_vm3, %v11862_v36, %v9331_v55  ;;  %v8097_v22 = vrot.slane %v8095_v14, 4  ;;  %v7856_v14 = vld [vmem:[#allocation2 + $0xa8] sm:$0x1] }
 0x788   :  { %v8100_v57 = vrot.slane %v8098_v35, 5  ;;  %v8114_v55 = vshll.u32 %v7853_v60, 16  ;;  %v9160_v35 = vld [vmem:[#allocation2 + $0xa0] sm:$0xe] }
 0x789   :  { %v8083_v19 = vsel %vm14293_vm14, %v8078_v39, %v8082_v52  ;;  %v8093_v40 = vsel %vm14293_vm14, %v8088_v20, %v8092_v28  ;;  %v9527_v28 = vunpack.c.l.b16 %v9332_v4 }
 0x78a   :  { %v5032_v49 = vpop.f32.mrf.mxu1  ;;  %v8715_v50 = vunpack.c.l.b16 %v8083_v19  ;;  %v8716_v59 = vunpack.c.l.b16 %v8093_v40  ;;  %v8116_v4 = vrot.slane %v8114_v55, 5 }
 0x78b   :  { %v5105_v21 = vadd.f32 %v5032_v49, %v17752_v62  ;;  %11909 = vmatmul.msk.bf16.gmra.mxu2 %vm395_vm1, %v9583_v61  ;;  %v8104_v62 = vshll.u32 %v7852_v51, 16 }
 0x78d   :  { %v15988_v3 = vadd.f32 %v6354_v9, %v5105_v21  ;;  %11828 = vmatmul.msk.bf16.gmra.mxu1 %vm395_vm1, %v8772_v13  ;;  %v9334_v9 = vrot.slane %v7853_v60, 5  ;;  %v8108_v21 = vshrl.u32 %v7852_v51, 16  ;;  %v17756_v51 = vld [vmem:[#allocation47_spill] sm:$0xff] }
 0x78e   :  { %v6359_v1 = vpop.f32.mrf.mxu2 }
 0x78f   :  { %17753 = vst [vmem:[#allocation43_spill] sm:$0xff] %v15988_v3  ;;  %v9335_v61 = vsel %vm14386_vm3, %v9333_v29, %v9334_v9  ;;  %v8110_v52 = vrot.slane %v8108_v21, 4  ;;  %v7855_v3 = vld [vmem:[#allocation2 + $0xa4] sm:$0xf] }
 0x790   :  { %v9338_v9 = vrot.slane %v7855_v3, 5 }
 0x792   :  { %v5034_v49 = vpop.f32.mrf.mxu1  ;;  %v9340_v40 = vrot.slane %v9338_v9, 4 }
 0x793   :  { %v5106_v24 = vadd.f32 %v5034_v49, %v17754_v8  ;;  %v9528_v49 = vunpack.c.l.b16 %v9335_v61  ;;  %v8106_v8 = vrot.slane %v8104_v62, 5  ;;  %v7854_v62 = vld [vmem:[#allocation2 + $0xa0] sm:$0xf] }
 0x795   :  { %v15997_v13 = vadd.f32 %v6356_v0, %v5106_v24  ;;  %v8773_v24 = vpack.c.b16 %v8716_v59, %v8715_v50  ;;  %v9584_v41 = vpack.c.b16 %v9528_v49, %v9527_v28  ;;  %v8111_v29 = vor.u32 %v8110_v52, %v8106_v8 }
 0x796   :  { %v6361_v39 = vpop.f32.mrf.mxu2  ;;  %v11863_v50 = vrot.slane %v9160_v35, 9  ;;  %v9341_v59 = vrot.slane %v7856_v14, 5  ;;  %v8119_v49 = vshrl.u32 %v7854_v62, 16  ;;  %v8122_v52 = vshll.u32 %v7854_v62, 16 }
 0x797   :  { %17755 = vst [vmem:[#allocation45_spill] sm:$0xff] %v15997_v13  ;;  %v8101_v13 = vor.u32 %v8100_v57, %v8097_v22  ;;  %v8112_v19 = vrot.slane %v8111_v29, 4  ;;  %v17758_v22 = vld [vmem:[#allocation49_spill] sm:$0xff] }
 0x798   :  { %v9342_v60 = vsel %vm14386_vm3, %v9340_v40, %v9341_v59  ;;  %v8121_v55 = vrot.slane %v8119_v49, 4 }
 0x799   :  { %v8102_v36 = vrot.slane %v8101_v13, 4  ;;  %v8128_v13 = vshll.u32 %v7855_v3, 16  ;;  %v9530_v29 = vunpack.c.l.b16 %v9342_v60  ;;  %v7857_v60 = vld [vmem:[#allocation2 + $0xb0] sm:$0xf] }
 0x79a   :  { %v5037_v20 = vpop.f32.mrf.mxu1 }
 0x79b   :  { %v5107_v0 = vadd.f32 %v5037_v20, %v17756_v51  ;;  %11910 = vmatmul.msk.bf16.gmra.mxu2 %vm395_vm1, %v9584_v41  ;;  %v8117_v41 = vsel %vm14293_vm14, %v8112_v19, %v8116_v4  ;;  %v8132_v20 = vshrl.u32 %v7855_v3, 16  ;;  %v7858_v4 = vld [vmem:[#allocation2 + $0xb4] sm:$0xf] }
 0x79d   :  { %v16004_v5 = vadd.f32 %v6359_v1, %v5107_v0  ;;  %11829 = vmatmul.msk.bf16.gmra.mxu1 %vm395_vm1, %v8773_v24  ;;  %v8107_v1 = vsel %vm14293_vm14, %v8102_v36, %v8106_v8  ;;  %v8718_v0 = vunpack.c.l.b16 %v8117_v41  ;;  %v9339_v24 = vsel %vm14386_vm3, %v11863_v50, %v9338_v9  ;;  %v7859_v41 = vld [vmem:[#allocation2 + $0xb8] sm:$0x1] }
 0x79e   :  { %v6364_v21 = vpop.f32.mrf.mxu2  ;;  %v8717_v51 = vunpack.c.l.b16 %v8107_v1  ;;  %v8124_v8 = vrot.slane %v8122_v52, 5  ;;  %v8130_v36 = vrot.slane %v8128_v13, 5  ;;  %v8134_v35 = vrot.slane %v8132_v20, 4  ;;  %v9161_v1 = vld [vmem:[#allocation2 + $0xb0] sm:$0xe] }
 0x79f   :  { %17757 = vst [vmem:[#allocation47_spill] sm:$0xff] %v16004_v5  ;;  %v9529_v19 = vunpack.c.l.b16 %v9339_v24  ;;  %v9345_v9 = vrot.slane %v7858_v4, 5  ;;  %v8138_v50 = vshll.u32 %v7856_v14, 16 }
 0x7a0   :  { %v8774_v59 = vpack.c.b16 %v8718_v0, %v8717_v51  ;;  %v11864_v0 = vrot.slane %v9161_v1, 9 }
 0x7a1   :  { %v9585_v3 = vpack.c.b16 %v9530_v29, %v9529_v19  ;;  %v9347_v20 = vrot.slane %v9345_v9, 4  ;;  %v8140_v51 = vrot.slane %v8138_v50, 5  ;;  %v8143_v29 = vshrl.u32 %v7857_v60, 16 }
 0x7a2   :  { %v5039_v61 = vpop.f32.mrf.mxu1 }
 0x7a3   :  { %v5108_v57 = vadd.f32 %v5039_v61, %v17758_v22  ;;  %v8135_v22 = vor.u32 %v8134_v35, %v8130_v36  ;;  %v8152_v35 = vshll.u32 %v7858_v4, 16 }
 0x7a5   :  { %v16015_v28 = vadd.f32 %v6361_v39, %v5108_v57  ;;  %v8125_v39 = vor.u32 %v8124_v8, %v8121_v55  ;;  %v8136_v52 = vrot.slane %v8135_v22, 4  ;;  %v8146_v55 = vshll.u32 %v7857_v60, 16 }
 0x7a6   :  { %v6366_v62 = vpop.f32.mrf.mxu2  ;;  %v8154_v1 = vrot.slane %v8152_v35, 5  ;;  %v7860_v35 = vld [vmem:[#allocation2 + $0xc0] sm:$0xf] }
 0x7a7   :  { %17759 = vst [vmem:[#allocation49_spill] sm:$0xff] %v16015_v28  ;;  %v8126_v49 = vrot.slane %v8125_v39, 4  ;;  %v8141_v14 = vsel %vm14293_vm14, %v8136_v52, %v8140_v51  ;;  %v8145_v39 = vrot.slane %v8143_v29, 4  ;;  %v8148_v22 = vrot.slane %v8146_v55, 5 }
 0x7a8   :  { %v8162_v29 = vshll.u32 %v7859_v41, 16 }
 0x7a9   :  { %v8131_v8 = vsel %vm14293_vm14, %v8126_v49, %v8130_v36  ;;  %v17762_v49 = vld [vmem:[#allocation35_spill] sm:$0xff] }
 0x7aa   :  { %v5042_v61 = vpop.f32.mrf.mxu1  ;;  %v7766_v52 = vadd.f32 %v17762_v49, %v15313_v33  ;;  %v8167_v49 = vshrl.u32 %v7860_v35, 16 }
 0x7ab   :  { %v5109_v40 = vadd.f32 %v5042_v61, %v15283_v45  ;;  %11911 = vmatmul.msk.bf16.gmra.mxu2 %vm395_vm1, %v9585_v3  ;;  %v8156_v61 = vshrl.u32 %v7858_v4, 16  ;;  %v8720_v3 = vunpack.c.l.b16 %v8141_v14  ;;  %v7862_v14 = vld [vmem:[#allocation2 + $0xc8] sm:$0x1] }
 0x7ad   :  { %v16020_v57 = vadd.f32 %v6364_v21, %v5109_v40  ;;  %11830 = vmatmul.msk.bf16.gmra.mxu1 %vm395_vm1, %v8774_v59  ;;  %v9348_v21 = vrot.slane %v7859_v41, 5  ;;  %v9346_v59 = vsel %vm14386_vm3, %v11864_v0, %v9345_v9  ;;  %v8158_v36 = vrot.slane %v8156_v61, 4  ;;  %v17763_v61 = vld [vmem:[#allocation18_spill] sm:$0xff] }
 0x7ae   :  { %v9738_v13 = vpop.f32.mrf.mxu2 }
 0x7af   :  { %17760 = vst [vmem:[#allocation93_spill] sm:$0xff] %v16020_v57  ;;  %v9349_v40 = vsel %vm14386_vm3, %v9347_v20, %v9348_v21  ;;  %v8149_v20 = vor.u32 %v8148_v22, %v8145_v39  ;;  %v8164_v39 = vrot.slane %v8162_v29, 5 }
 0x7b0   :  { %v9532_v50 = vunpack.c.l.b16 %v9349_v40  ;;  %v7767_v40 = vadd.f32 %v17763_v61, %v15328_v30 }
 0x7b1   :  { %v8150_v55 = vrot.slane %v8149_v20, 4 }
 0x7b2   :  { %v5044_v45 = vpop.f32.mrf.mxu1 }
 0x7b3   :  { %v5110_v24 = vadd.f32 %v5044_v45, %v15296_v44  ;;  %v8719_v44 = vunpack.c.l.b16 %v8131_v8  ;;  %v7861_v45 = vld [vmem:[#allocation2 + $0xc4] sm:$0xf]  ;;  %v9162_v8 = vld [vmem:[#allocation2 + $0xc0] sm:$0xe] }
 0x7b4   :  { %v9352_v0 = vrot.slane %v7861_v45, 5 }
 0x7b5   :  { %v16029_v19 = vadd.f32 %v6366_v62, %v5110_v24  ;;  %v9531_v62 = vunpack.c.l.b16 %v9346_v59  ;;  %v8775_v24 = vpack.c.b16 %v8720_v3, %v8719_v44 }
 0x7b6   :  { %v9740_v60 = vpop.f32.mrf.mxu2  ;;  %v9354_v44 = vrot.slane %v9352_v0, 4 }
 0x7b7   :  { %17761 = vst [vmem:[#allocation94_spill] sm:$0xff] %v16029_v19  ;;  %v9586_v21 = vpack.c.b16 %v9532_v50, %v9531_v62  ;;  %v8159_v19 = vor.u32 %v8158_v36, %v8154_v1  ;;  %v8155_v50 = vsel %vm14293_vm14, %v8150_v55, %v8154_v1  ;;  %v9355_v36 = vrot.slane %v7862_v14, 5 }
 0x7b9   :  { %v8160_v33 = vrot.slane %v8159_v19, 4  ;;  %v8170_v19 = vshll.u32 %v7860_v35, 16  ;;  %v9356_v30 = vsel %vm14386_vm3, %v9354_v44, %v9355_v36 }
 0x7ba   :  { %v8928_v4 = vpop.f32.mrf.mxu1  ;;  %v9534_v1 = vunpack.c.l.b16 %v9356_v30 }
 0x7bb   :  { %v9088_v51 = vadd.f32 %v8928_v4, %v7766_v52  ;;  %11912 = vmatmul.msk.bf16.gmra.mxu2 %vm395_vm1, %v9586_v21  ;;  %v8165_v41 = vsel %vm14293_vm14, %v8160_v33, %v8164_v39  ;;  %v8176_v52 = vshll.u32 %v7861_v45, 16  ;;  %v8180_v4 = vshrl.u32 %v7861_v45, 16  ;;  %v17764_v33 = vld [vmem:[#allocation23_spill] sm:$0xff] }
 0x7bc   :  { %v8169_v21 = vrot.slane %v8167_v49, 4  ;;  %v8172_v29 = vrot.slane %v8170_v19, 5  ;;  %v7768_v35 = vadd.f32 %v17764_v33, %v15338_v38  ;;  %v9163_v49 = vld [vmem:[#allocation2 + $0xd0] sm:$0xe]  ;;  %v7865_v19 = vld [vmem:[#allocation2 + $0xd8] sm:$0x1] }
 0x7bd   :  { %v16037_v9 = vadd.f32 %v9738_v13, %v9088_v51  ;;  %11831 = vmatmul.msk.bf16.gmra.mxu1 %vm395_vm1, %v8775_v24  ;;  %v11865_v13 = vrot.slane %v9162_v8, 9  ;;  %v8721_v51 = vunpack.c.l.b16 %v8155_v50  ;;  %v8722_v24 = vunpack.c.l.b16 %v8165_v41 }
 0x7be   :  { %v9743_v59 = vpop.f32.mrf.mxu2  ;;  %v8178_v55 = vrot.slane %v8176_v52, 5  ;;  %v8182_v8 = vrot.slane %v8180_v4, 4  ;;  %v7863_v52 = vld [vmem:[#allocation2 + $0xd0] sm:$0xf]  ;;  %v17765_v4 = vld [vmem:[#allocation24_spill] sm:$0xff] }
 0x7bf   :  { %v9353_v20 = vsel %vm14386_vm3, %v11865_v13, %v9352_v0  ;;  %v8776_v39 = vpack.c.b16 %v8722_v24, %v8721_v51  ;;  %v8186_v13 = vshll.u32 %v7862_v14, 16  ;;  %v7769_v30 = vadd.f32 %v17765_v4, %v15353_v56 }
 0x7c0   :  { %v8183_v50 = vor.u32 %v8182_v8, %v8178_v55  ;;  %v9362_v8 = vrot.slane %v7865_v19, 5  ;;  %v8191_v14 = vshrl.u32 %v7863_v52, 16  ;;  %v8194_v33 = vshll.u32 %v7863_v52, 16 }
 0x7c2   :  { %v8930_v3 = vpop.f32.mrf.mxu1  ;;  %v8184_v38 = vrot.slane %v8183_v50, 4 }
 0x7c3   :  { %v9089_v22 = vadd.f32 %v8930_v3, %v7767_v40  ;;  %v7864_v40 = vld [vmem:[#allocation2 + $0xd4] sm:$0xf] }
 0x7c4   :  { %v9359_v0 = vrot.slane %v7864_v40, 5  ;;  %v8200_v56 = vshll.u32 %v7864_v40, 16 }
 0x7c5   :  { %v16047_v62 = vadd.f32 %v9740_v60, %v9089_v22  ;;  %v9533_v60 = vunpack.c.l.b16 %v9353_v20  ;;  %v8173_v22 = vor.u32 %v8172_v29, %v8169_v21  ;;  %v8188_v21 = vrot.slane %v8186_v13, 5 }
 0x7c6   :  { %v9745_v61 = vpop.f32.mrf.mxu2  ;;  %v9361_v24 = vrot.slane %v9359_v0, 4  ;;  %v8193_v13 = vrot.slane %v8191_v14, 4  ;;  %v8210_v14 = vshll.u32 %v7865_v19, 16 }
 0x7c7   :  { %v9587_v44 = vpack.c.b16 %v9534_v1, %v9533_v60  ;;  %v8174_v41 = vrot.slane %v8173_v22, 4  ;;  %v12126_v1 = vld [vmem:[%s17274_s7 + $0x18] sm:$0xff]  ;;  %v8204_v60 = vshrl.u32 %v7864_v40, 16 }
 0x7c8   :  { %10678 = vmatpush.bf16.msra.mxu3 %v12126_v1 }
 0x7ca   :  { %v8933_v45 = vpop.f32.mrf.mxu1 }
 0x7cb   :  { %v9090_v3 = vadd.f32 %v8933_v45, %v7768_v35  ;;  %11913 = vmatmul.msk.bf16.gmra.mxu2 %vm395_vm1, %v9587_v44  ;;  %v8179_v35 = vsel %vm14293_vm14, %v8174_v41, %v8178_v55  ;;  %v8189_v45 = vsel %vm14293_vm14, %v8184_v38, %v8188_v21  ;;  %v8202_v55 = vrot.slane %v8200_v56, 5  ;;  %v17766_v38 = vld [vmem:[#allocation42_spill] sm:$0xff]  ;;  %v7866_v56 = vld [vmem:[#allocation2 + $0xe0] sm:$0xf] }
 0x7cc   :  { %v8723_v22 = vunpack.c.l.b16 %v8179_v35  ;;  %v8724_v50 = vunpack.c.l.b16 %v8189_v45  ;;  %v8206_v41 = vrot.slane %v8204_v60, 4  ;;  %v7770_v4 = vadd.f32 %v17766_v38, %v15365_v15  ;;  %v9164_v35 = vld [vmem:[#allocation2 + $0xe0] sm:$0xe]  ;;  %v7868_v45 = vld [vmem:[#allocation2 + $0xe8] sm:$0x1] }
 0x7cd   :  { %v16055_v36 = vadd.f32 %v9743_v59, %v9090_v3  ;;  %11832 = vmatmul.msk.bf16.gmra.mxu1 %vm395_vm1, %v8776_v39  ;;  %v11866_v59 = vrot.slane %v9163_v49, 9  ;;  %v9363_v39 = vsel %vm14386_vm3, %v9361_v24, %v9362_v8  ;;  %v8196_v49 = vrot.slane %v8194_v33, 5  ;;  %v17767_v60 = vld [vmem:[#allocation57_spill] sm:$0xff] }
 0x7ce   :  { %v9748_v51 = vpop.f32.mrf.mxu2  ;;  %v9536_v52 = vunpack.c.l.b16 %v9363_v39  ;;  %v8777_v1 = vpack.c.b16 %v8724_v50, %v8723_v22  ;;  %v8207_v8 = vor.u32 %v8206_v41, %v8202_v55  ;;  %v17768_v39 = vld [vmem:[#allocation44_spill] sm:$0xff]  ;;  %v9369_v38 = vrot.slane %v7868_v45, 5 }
 0x7cf   :  { %v9360_v44 = vsel %vm14386_vm3, %v11866_v59, %v9359_v0  ;;  %v8197_v24 = vor.u32 %v8196_v49, %v8193_v13  ;;  %v8212_v49 = vrot.slane %v8210_v14, 5 }
 0x7d0   :  { %v8208_v15 = vrot.slane %v8207_v8, 4 }
 0x7d1   :  { %v8198_v33 = vrot.slane %v8197_v24, 4 }
 0x7d2   :  { %v8935_v20 = vpop.f32.mrf.mxu1  ;;  %v8213_v19 = vsel %vm14293_vm14, %v8208_v15, %v8212_v49  ;;  %v17769_v15 = vld [vmem:[#allocation46_spill] sm:$0xff] }
 0x7d3   :  { %v9091_v29 = vadd.f32 %v8935_v20, %v7769_v30  ;;  %v7867_v20 = vld [vmem:[#allocation2 + $0xe4] sm:$0xf]  ;;  %v8203_v41 = vsel %vm14293_vm14, %v8198_v33, %v8202_v55  ;;  %v8726_v8 = vunpack.c.l.b16 %v8213_v19 }
 0x7d4   :  { %v9366_v59 = vrot.slane %v7867_v20, 5 }
 0x7d5   :  { %v16068_v3 = vadd.f32 %v9745_v61, %v9091_v29  ;;  %v9535_v61 = vunpack.c.l.b16 %v9360_v44  ;;  %v7771_v44 = vadd.f32 %v17768_v39, %v17767_v60 }
 0x7d6   :  { %v9750_v40 = vpop.f32.mrf.mxu2  ;;  %v9368_v50 = vrot.slane %v9366_v59, 4 }
 0x7d7   :  { %v9588_v29 = vpack.c.b16 %v9536_v52, %v9535_v61  ;;  %v8224_v61 = vshll.u32 %v7867_v20, 16 }
 0x7d8   :  { %v9370_v24 = vsel %vm14386_vm3, %v9368_v50, %v9369_v38 }
 0x7d9   :  { %v9538_v55 = vunpack.c.l.b16 %v9370_v24  ;;  %v8226_v60 = vrot.slane %v8224_v61, 5  ;;  %v7871_v61 = vld [vmem:[#allocation2 + $0xf8] sm:$0x1]  ;;  %v17770_v24 = vld [vmem:[#allocation48_spill] sm:$0xff] }
 0x7da   :  { %v8938_v30 = vpop.f32.mrf.mxu1 }
 0x7db   :  { %v9092_v21 = vadd.f32 %v8938_v30, %v7770_v4  ;;  %11914 = vmatmul.msk.bf16.gmra.mxu2 %vm395_vm1, %v9588_v29  ;;  %v8215_v4 = vshrl.u32 %v7866_v56, 16  ;;  %v8218_v30 = vshll.u32 %v7866_v56, 16  ;;  %v8725_v29 = vunpack.c.l.b16 %v8203_v41 }
 0x7dc   :  { %v7772_v56 = vadd.f32 %v17769_v15, %v15392_v17 }
 0x7dd   :  { %v16076_v0 = vadd.f32 %v9748_v51, %v9092_v21  ;;  %11833 = vmatmul.msk.bf16.gmra.mxu1 %vm395_vm1, %v8777_v1  ;;  %v11867_v51 = vrot.slane %v9164_v35, 9  ;;  %v8228_v21 = vshrl.u32 %v7867_v20, 16  ;;  %v8217_v35 = vrot.slane %v8215_v4, 4  ;;  %v9165_v4 = vld [vmem:[#allocation2 + $0xf0] sm:$0xe] }
 0x7de   :  { %v9753_v22 = vpop.f32.mrf.mxu2  ;;  %v8220_v33 = vrot.slane %v8218_v30, 5 }
 0x7df   :  { %v9367_v14 = vsel %vm14386_vm3, %v11867_v51, %v9366_v59  ;;  %v8230_v39 = vrot.slane %v8228_v21, 4  ;;  %v8234_v51 = vshll.u32 %v7868_v45, 16  ;;  %v7869_v21 = vld [vmem:[#allocation2 + $0xf0] sm:$0xf] }
 0x7e0   :  { %v8221_v41 = vor.u32 %v8220_v33, %v8217_v35  ;;  %v8239_v15 = vshrl.u32 %v7869_v21, 16 }
 0x7e1   :  { %v8231_v38 = vor.u32 %v8230_v39, %v8226_v60  ;;  %v9376_v39 = vrot.slane %v7871_v61, 5 }
 0x7e2   :  { %v8940_v13 = vpop.f32.mrf.mxu1  ;;  %v8222_v30 = vrot.slane %v8221_v41, 4 }
 0x7e3   :  { %v9093_v52 = vadd.f32 %v8940_v13, %v7771_v44  ;;  %v7870_v13 = vld [vmem:[#allocation2 + $0xf4] sm:$0xf]  ;;  %v8232_v17 = vrot.slane %v8231_v38, 4 }
 0x7e4   :  { %v9373_v59 = vrot.slane %v7870_v13, 5  ;;  %v8227_v45 = vsel %vm14293_vm14, %v8222_v30, %v8226_v60  ;;  %v17772_v30 = vld [vmem:[#allocation50_spill] sm:$0xff] }
 0x7e5   :  { %v16086_v1 = vadd.f32 %v9750_v40, %v9093_v52  ;;  %v9537_v40 = vunpack.c.l.b16 %v9367_v14  ;;  %v8778_v52 = vpack.c.b16 %v8726_v8, %v8725_v29  ;;  %v7773_v14 = vadd.f32 %v17770_v24, %v15405_v10 }
 0x7e6   :  { %v9755_v44 = vpop.f32.mrf.mxu2  ;;  %v9375_v8 = vrot.slane %v9373_v59, 4  ;;  %v8727_v41 = vunpack.c.l.b16 %v8227_v45  ;;  %v9166_v45 = vld [vmem:[#allocation2 + $0x100] sm:$0xe] }
 0x7e7   :  { %v9589_v50 = vpack.c.b16 %v9538_v55, %v9537_v40  ;;  %v8236_v55 = vrot.slane %v8234_v51, 5  ;;  %v8248_v40 = vshll.u32 %v7870_v13, 16  ;;  %v8241_v51 = vrot.slane %v8239_v15, 4 }
 0x7e8   :  { %v9377_v10 = vsel %vm14386_vm3, %v9375_v8, %v9376_v39  ;;  %v8258_v15 = vshll.u32 %v7871_v61, 16 }
 0x7e9   :  { %v8250_v24 = vrot.slane %v8248_v40, 5  ;;  %v7872_v40 = vld [vmem:[#allocation2 + $0x100] sm:$0xf] }
 0x7ea   :  { %v8943_v20 = vpop.f32.mrf.mxu1 }
 0x7eb   :  { %v9094_v49 = vadd.f32 %v8943_v20, %v7772_v56  ;;  %11915 = vmatmul.msk.bf16.gmra.mxu2 %vm395_vm1, %v9589_v50  ;;  %v8242_v56 = vshll.u32 %v7869_v21, 16  ;;  %v8237_v20 = vsel %vm14293_vm14, %v8232_v17, %v8236_v55  ;;  %v9540_v21 = vunpack.c.l.b16 %v9377_v10 }
 0x7ec   :  { %v8728_v38 = vunpack.c.l.b16 %v8237_v20  ;;  %v7774_v17 = vadd.f32 %v17772_v30, %v15417_v27  ;;  %v7874_v20 = vld [vmem:[#allocation2 + $0x108] sm:$0x1]  ;;  %v8263_v30 = vshrl.u32 %v7872_v40, 16 }
 0x7ed   :  { %v16094_v19 = vadd.f32 %v9753_v22, %v9094_v49  ;;  %11834 = vmatmul.msk.bf16.gmra.mxu1 %vm395_vm1, %v8778_v52  ;;  %v11868_v22 = vrot.slane %v9165_v4, 9  ;;  %v8252_v49 = vshrl.u32 %v7870_v13, 16  ;;  %v8244_v4 = vrot.slane %v8242_v56, 5 }
 0x7ee   :  { %v9758_v29 = vpop.f32.mrf.mxu2 }
 0x7ef   :  { %v9374_v50 = vsel %vm14386_vm3, %v11868_v22, %v9373_v59  ;;  %v8254_v60 = vrot.slane %v8252_v49, 4  ;;  %v8245_v8 = vor.u32 %v8244_v4, %v8241_v51  ;;  %v17774_v49 = vld [vmem:[#allocation51_spill] sm:$0xff]  ;;  %v8260_v51 = vrot.slane %v8258_v15, 5 }
 0x7f0   :  { %v7775_v10 = vadd.f32 %v17774_v49, %v15432_v16 }
 0x7f1   :  { %v8255_v57 = vor.u32 %v8254_v60, %v8250_v24  ;;  %v8246_v56 = vrot.slane %v8245_v8, 4  ;;  %v9383_v60 = vrot.slane %v7874_v20, 5 }
 0x7f2   :  { %v8945_v35 = vpop.f32.mrf.mxu1 }
 0x7f3   :  { %v9095_v33 = vadd.f32 %v8945_v35, %v7773_v14  ;;  %v7873_v35 = vld [vmem:[#allocation2 + $0x104] sm:$0xf]  ;;  %v8256_v27 = vrot.slane %v8255_v57, 4  ;;  %v8266_v57 = vshll.u32 %v7872_v40, 16 }
 0x7f4   :  { %v9380_v22 = vrot.slane %v7873_v35, 5 }
 0x7f5   :  { %v16104_v52 = vadd.f32 %v9755_v44, %v9095_v33  ;;  %v9539_v44 = vunpack.c.l.b16 %v9374_v50  ;;  %v8779_v33 = vpack.c.b16 %v8728_v38, %v8727_v41  ;;  %v8261_v61 = vsel %vm14293_vm14, %v8256_v27, %v8260_v51  ;;  %v17776_v27 = vld [vmem:[#allocation52_spill] sm:$0xff] }
 0x7f6   :  { %v9760_v14 = vpop.f32.mrf.mxu2  ;;  %v9382_v41 = vrot.slane %v9380_v22, 4  ;;  %v8268_v15 = vrot.slane %v8266_v57, 5  ;;  %v7776_v40 = vadd.f32 %v17776_v27, %v15444_v43 }
 0x7f7   :  { %17771 = vst [vmem:[#allocation35_spill] sm:$0xff] %v16104_v52  ;;  %v9590_v39 = vpack.c.b16 %v9540_v21, %v9539_v44  ;;  %v8251_v21 = vsel %vm14293_vm14, %v8246_v56, %v8250_v24 }
 0x7f8   :  { %v9384_v16 = vsel %vm14386_vm3, %v9382_v41, %v9383_v60  ;;  %v7877_v41 = vld [vmem:[#allocation2 + $0x118] sm:$0x1] }
 0x7f9   :  { %v9542_v24 = vunpack.c.l.b16 %v9384_v16 }
 0x7fa   :  { %v8948_v13 = vpop.f32.mrf.mxu1 }
 0x7fb   :  { %v9096_v55 = vadd.f32 %v8948_v13, %v7774_v17  ;;  %11916 = vmatmul.msk.bf16.gmra.mxu2 %vm395_vm1, %v9590_v39  ;;  %v8272_v17 = vshll.u32 %v7873_v35, 16  ;;  %v8276_v13 = vshrl.u32 %v7873_v35, 16  ;;  %v8265_v39 = vrot.slane %v8263_v30, 4 }
 0x7fc   :  { %v8282_v30 = vshll.u32 %v7874_v20, 16  ;;  %v7875_v20 = vld [vmem:[#allocation2 + $0x110] sm:$0xf] }
 0x7fd   :  { %v16112_v59 = vadd.f32 %v9758_v29, %v9096_v55  ;;  %11835 = vmatmul.msk.bf16.gmra.mxu1 %vm395_vm1, %v8779_v33  ;;  %v11869_v29 = vrot.slane %v9166_v45, 9  ;;  %v8729_v55 = vunpack.c.l.b16 %v8251_v21  ;;  %v8730_v33 = vunpack.c.l.b16 %v8261_v61 }
 0x7fe   :  { %v9763_v50 = vpop.f32.mrf.mxu2  ;;  %v8274_v56 = vrot.slane %v8272_v17, 5  ;;  %v8278_v45 = vrot.slane %v8276_v13, 4  ;;  %v8269_v61 = vor.u32 %v8268_v15, %v8265_v39  ;;  %v9390_v17 = vrot.slane %v7877_v41, 5 }
 0x7ff   :  { %17773 = vst [vmem:[#allocation18_spill] sm:$0xff] %v16112_v59  ;;  %v9381_v8 = vsel %vm14386_vm3, %v11869_v29, %v9380_v22  ;;  %v8780_v51 = vpack.c.b16 %v8730_v33, %v8729_v55  ;;  %v17778_v55 = vld [vmem:[#allocation53_spill] sm:$0xff]  ;;  %v8284_v27 = vrot.slane %v8282_v30, 5 }
 0x800   :  { %v8279_v22 = vor.u32 %v8278_v45, %v8274_v56  ;;  %v8270_v13 = vrot.slane %v8269_v61, 4  ;;  %v7777_v33 = vadd.f32 %v17778_v55, %v15459_v31 }
 0x802   :  { %v8950_v38 = vpop.f32.mrf.mxu1  ;;  %v8280_v16 = vrot.slane %v8279_v22, 4 }
 0x803   :  { %v9097_v4 = vadd.f32 %v8950_v38, %v7775_v10  ;;  %v7876_v10 = vld [vmem:[#allocation2 + $0x114] sm:$0xf] }
 0x804   :  { %v9387_v21 = vrot.slane %v7876_v10, 5  ;;  %v8296_v15 = vshll.u32 %v7876_v10, 16  ;;  %v8300_v45 = vshrl.u32 %v7876_v10, 16  ;;  %v8285_v31 = vsel %vm14293_vm14, %v8280_v16, %v8284_v27  ;;  %v17780_v10 = vld [vmem:[#allocation54_spill] sm:$0xff]  ;;  %v7879_v16 = vld [vmem:[#allocation2 + $0x144] sm:$0xf] }
 0x805   :  { %v16122_v44 = vadd.f32 %v9760_v14, %v9097_v4  ;;  %v9541_v14 = vunpack.c.l.b16 %v9381_v8  ;;  %v9167_v4 = vld [vmem:[#allocation2 + $0x110] sm:$0xe] }
 0x806   :  { %v9765_v49 = vpop.f32.mrf.mxu2  ;;  %v11870_v43 = vrot.slane %v9167_v4, 9  ;;  %v9389_v57 = vrot.slane %v9387_v21, 4  ;;  %v8298_v22 = vrot.slane %v8296_v15, 5  ;;  %v8302_v30 = vrot.slane %v8300_v45, 4 }
 0x807   :  { %17775 = vst [vmem:[#allocation23_spill] sm:$0xff] %v16122_v44  ;;  %v9591_v60 = vpack.c.b16 %v9542_v24, %v9541_v14  ;;  %v8290_v14 = vshll.u32 %v7875_v20, 16 }
 0x808   :  { %v9391_v39 = vsel %vm14386_vm3, %v9389_v57, %v9390_v17  ;;  %v8732_v57 = vunpack.c.l.b16 %v8285_v31  ;;  %v7778_v17 = vadd.f32 %v17780_v10, %v15469_v23  ;;  %v9168_v23 = vld [vmem:[#allocation2 + $0x140] sm:$0xe] }
 0x809   :  { %v8292_v61 = vrot.slane %v8290_v14, 5  ;;  %v7878_v14 = vld [vmem:[#allocation2 + $0x140] sm:$0xf] }
 0x80a   :  { %v8953_v35 = vpop.f32.mrf.mxu1  ;;  %v8314_v10 = vshll.u32 %v7878_v14, 16 }
 0x80b   :  { %v9098_v38 = vadd.f32 %v8953_v35, %v7776_v40  ;;  %11917 = vmatmul.msk.bf16.gmra.mxu2 %vm395_vm1, %v9591_v60  ;;  %v8287_v35 = vshrl.u32 %v7875_v20, 16  ;;  %v9544_v60 = vunpack.c.l.b16 %v9391_v39  ;;  %v8306_v20 = vshll.u32 %v7877_v41, 16 }
 0x80c   :  { %v9394_v39 = vrot.slane %v7879_v16, 5 }
 0x80d   :  { %v16130_v29 = vadd.f32 %v9763_v50, %v9098_v38  ;;  %11836 = vmatmul.msk.bf16.gmra.mxu1 %vm395_vm1, %v8780_v51  ;;  %v9388_v50 = vsel %vm14386_vm3, %v11870_v43, %v9387_v21  ;;  %v8275_v38 = vsel %vm14293_vm14, %v8270_v13, %v8274_v56  ;;  %v8289_v21 = vrot.slane %v8287_v35, 4  ;;  %v7880_v35 = vld [vmem:[#allocation2 + $0x148] sm:$0x1] }
 0x80e   :  { %v9768_v8 = vpop.f32.mrf.mxu2  ;;  %v9543_v4 = vunpack.c.l.b16 %v9388_v50  ;;  %v8731_v43 = vunpack.c.l.b16 %v8275_v38  ;;  %v8303_v13 = vor.u32 %v8302_v30, %v8298_v22  ;;  %v17782_v38 = vld [vmem:[#allocation55_spill] sm:$0xff] }
 0x80f   :  { %17777 = vst [vmem:[#allocation24_spill] sm:$0xff] %v16130_v29  ;;  %v8293_v56 = vor.u32 %v8292_v61, %v8289_v21  ;;  %v7779_v31 = vadd.f32 %v17782_v38, %v15484_v7  ;;  %v11871_v61 = vrot.slane %v9168_v23, 9 }
 0x810   :  { %v8781_v27 = vpack.c.b16 %v8732_v57, %v8731_v43  ;;  %v8304_v45 = vrot.slane %v8303_v13, 4  ;;  %v9397_v43 = vrot.slane %v7880_v35, 5  ;;  %v8311_v57 = vshrl.u32 %v7878_v14, 16 }
 0x811   :  { %v8294_v15 = vrot.slane %v8293_v56, 4 }
 0x812   :  { %v8955_v24 = vpop.f32.mrf.mxu1 }
 0x813   :  { %v9099_v40 = vadd.f32 %v8955_v24, %v7777_v33  ;;  %v9592_v24 = vpack.c.b16 %v9544_v60, %v9543_v4  ;;  %v9396_v4 = vrot.slane %v9394_v39, 4 }
 0x815   :  { %v16144_v51 = vadd.f32 %v9765_v49, %v9099_v40  ;;  %v8308_v40 = vrot.slane %v8306_v20, 5  ;;  %v9398_v13 = vsel %vm14386_vm3, %v9396_v4, %v9397_v43  ;;  %v8313_v20 = vrot.slane %v8311_v57, 4  ;;  %v7883_v57 = vld [vmem:[#allocation2 + $0x158] sm:$0x1] }
 0x816   :  { %v9770_v55 = vpop.f32.mrf.mxu2 }
 0x817   :  { %17779 = vst [vmem:[#allocation42_spill] sm:$0xff] %v16144_v51  ;;  %v8309_v21 = vsel %vm14293_vm14, %v8304_v45, %v8308_v40  ;;  %v17784_v40 = vld [vmem:[#allocation56_spill] sm:$0xff] }
 0x818   :  { %v8734_v7 = vunpack.c.l.b16 %v8309_v21  ;;  %v7780_v23 = vadd.f32 %v17784_v40, %v15496_v32  ;;  %v9169_v32 = vld [vmem:[#allocation2 + $0x150] sm:$0xe] }
 0x81a   :  { %v8958_v33 = vpop.f32.mrf.mxu1 }
 0x81b   :  { %v9100_v49 = vadd.f32 %v8958_v33, %v7778_v17  ;;  %11918 = vmatmul.msk.bf16.gmra.mxu2 %vm395_vm1, %v9592_v24  ;;  %v8320_v17 = vshll.u32 %v7879_v16, 16  ;;  %v8324_v33 = vshrl.u32 %v7879_v16, 16 }
 0x81d   :  { %v16148_v50 = vadd.f32 %v9768_v8, %v9100_v49  ;;  %11837 = vmatmul.msk.bf16.gmra.mxu1 %vm395_vm1, %v8781_v27  ;;  %v8299_v8 = vsel %vm14293_vm14, %v8294_v15, %v8298_v22  ;;  %v9395_v22 = vsel %vm14386_vm3, %v11871_v61, %v9394_v39  ;;  %v8316_v49 = vrot.slane %v8314_v10, 5 }
 0x81e   :  { %v9773_v41 = vpop.f32.mrf.mxu2  ;;  %v8733_v56 = vunpack.c.l.b16 %v8299_v8  ;;  %v9546_v27 = vunpack.c.l.b16 %v9398_v13  ;;  %v8322_v15 = vrot.slane %v8320_v17, 5  ;;  %v8326_v45 = vrot.slane %v8324_v33, 4  ;;  %v7881_v17 = vld [vmem:[#allocation2 + $0x150] sm:$0xf] }
 0x81f   :  { %17781 = vst [vmem:[#allocation57_spill] sm:$0xff] %v16148_v50  ;;  %v9545_v38 = vunpack.c.l.b16 %v9395_v22  ;;  %v8317_v8 = vor.u32 %v8316_v49, %v8313_v20  ;;  %v8330_v61 = vshll.u32 %v7880_v35, 16  ;;  %v17786_v33 = vld [vmem:[#allocation58_spill] sm:$0xff]  ;;  %v9404_v49 = vrot.slane %v7883_v57, 5 }
 0x820   :  { %v8782_v14 = vpack.c.b16 %v8734_v7, %v8733_v56  ;;  %v8327_v4 = vor.u32 %v8326_v45, %v8322_v15  ;;  %v7781_v56 = vadd.f32 %v17786_v33, %v15511_v26  ;;  %v8335_v40 = vshrl.u32 %v7881_v17, 16 }
 0x821   :  { %v9593_v21 = vpack.c.b16 %v9546_v27, %v9545_v38  ;;  %v8318_v43 = vrot.slane %v8317_v8, 4  ;;  %v8332_v20 = vrot.slane %v8330_v61, 5  ;;  %v8338_v35 = vshll.u32 %v7881_v17, 16  ;;  %v17788_v17 = vld [vmem:[#allocation59_spill] sm:$0xff] }
 0x822   :  { %v8960_v60 = vpop.f32.mrf.mxu1  ;;  %v8328_v10 = vrot.slane %v8327_v4, 4  ;;  %v8337_v4 = vrot.slane %v8335_v40, 4 }
 0x823   :  { %v9101_v30 = vadd.f32 %v8960_v60, %v7779_v31  ;;  %v7882_v31 = vld [vmem:[#allocation2 + $0x154] sm:$0xf]  ;;  %v8323_v45 = vsel %vm14293_vm14, %v8318_v43, %v8322_v15  ;;  %v8340_v61 = vrot.slane %v8338_v35, 5  ;;  %v7886_v35 = vld [vmem:[#allocation2 + $0x168] sm:$0x1] }
 0x824   :  { %v9401_v39 = vrot.slane %v7882_v31, 5 }
 0x825   :  { %v16158_v24 = vadd.f32 %v9770_v55, %v9101_v30 }
 0x826   :  { %v9775_v16 = vpop.f32.mrf.mxu2  ;;  %v9403_v13 = vrot.slane %v9401_v39, 4 }
 0x827   :  { %17783 = vst [vmem:[#allocation44_spill] sm:$0xff] %v16158_v24 }
 0x828   :  { %v9405_v26 = vsel %vm14386_vm3, %v9403_v13, %v9404_v49  ;;  %v8341_v13 = vor.u32 %v8340_v61, %v8337_v4 }
 0x829   :  { %v9548_v15 = vunpack.c.l.b16 %v9405_v26  ;;  %v17791_v26 = vld [vmem:[#allocation60_spill] sm:$0xff] }
 0x82a   :  { %v8963_v55 = vpop.f32.mrf.mxu1  ;;  %v8342_v40 = vrot.slane %v8341_v13, 4 }
 0x82b   :  { %v9102_v60 = vadd.f32 %v8963_v55, %v7780_v23  ;;  %11919 = vmatmul.msk.bf16.gmra.mxu2 %vm395_vm1, %v9593_v21  ;;  %v8333_v23 = vsel %vm14293_vm14, %v8328_v10, %v8332_v20  ;;  %v8348_v55 = vshrl.u32 %v7882_v31, 16  ;;  %v7782_v10 = vadd.f32 %v17788_v17, %v15523_v11  ;;  %v9170_v11 = vld [vmem:[#allocation2 + $0x160] sm:$0xe] }
 0x82c   :  { %v8736_v8 = vunpack.c.l.b16 %v8333_v23 }
 0x82d   :  { %v16166_v30 = vadd.f32 %v9773_v41, %v9102_v60  ;;  %11838 = vmatmul.msk.bf16.gmra.mxu1 %vm395_vm1, %v8782_v14  ;;  %v11872_v41 = vrot.slane %v9169_v32, 9  ;;  %v8344_v14 = vshll.u32 %v7882_v31, 16  ;;  %v8735_v60 = vunpack.c.l.b16 %v8323_v45 }
 0x82e   :  { %v9778_v7 = vpop.f32.mrf.mxu2  ;;  %v8350_v32 = vrot.slane %v8348_v55, 4  ;;  %v17790_v55 = vld [vmem:[#allocation67_spill] sm:$0xff] }
 0x82f   :  { %17785 = vst [vmem:[#allocation46_spill] sm:$0xff] %v16166_v30  ;;  %v9402_v21 = vsel %vm14386_vm3, %v11872_v41, %v9401_v39  ;;  %v8346_v43 = vrot.slane %v8344_v14, 5  ;;  %v8783_v20 = vpack.c.b16 %v8736_v8, %v8735_v60  ;;  %v8354_v41 = vshll.u32 %v7883_v57, 16  ;;  %v7884_v14 = vld [vmem:[#allocation2 + $0x160] sm:$0xf] }
 0x830   :  { %v8362_v57 = vshll.u32 %v7884_v14, 16 }
 0x831   :  { %v8356_v61 = vrot.slane %v8354_v41, 5  ;;  %v8347_v17 = vsel %vm14293_vm14, %v8342_v40, %v8346_v43 }
 0x832   :  { %v8965_v22 = vpop.f32.mrf.mxu1 }
 0x833   :  { %v9103_v27 = vadd.f32 %v8965_v22, %v7781_v56  ;;  %v7885_v56 = vld [vmem:[#allocation2 + $0x164] sm:$0xf] }
 0x834   :  { %v9408_v39 = vrot.slane %v7885_v56, 5 }
 0x835   :  { %v16176_v38 = vadd.f32 %v9775_v16, %v9103_v27  ;;  %v9547_v16 = vunpack.c.l.b16 %v9402_v21  ;;  %v8351_v27 = vor.u32 %v8350_v32, %v8346_v43  ;;  %v7783_v21 = vadd.f32 %v17791_v26, %v17790_v55  ;;  %v17793_v26 = vld [vmem:[#allocation69_spill] sm:$0xff] }
 0x836   :  { %v9780_v33 = vpop.f32.mrf.mxu2  ;;  %v9410_v8 = vrot.slane %v9408_v39, 4  ;;  %v8364_v55 = vrot.slane %v8362_v57, 5  ;;  %v7889_v57 = vld [vmem:[#allocation2 + $0x178] sm:$0x1] }
 0x837   :  { %17787 = vst [vmem:[#allocation48_spill] sm:$0xff] %v16176_v38  ;;  %v9594_v49 = vpack.c.b16 %v9548_v15, %v9547_v16  ;;  %v8352_v23 = vrot.slane %v8351_v27, 4  ;;  %v9411_v15 = vrot.slane %v7886_v35, 5  ;;  %v8368_v16 = vshll.u32 %v7885_v56, 16 }
 0x839   :  { %v9412_v13 = vsel %vm14386_vm3, %v9410_v8, %v9411_v15  ;;  %v8370_v40 = vrot.slane %v8368_v16, 5  ;;  %v9171_v16 = vld [vmem:[#allocation2 + $0x170] sm:$0xe] }
 0x83a   :  { %v8968_v31 = vpop.f32.mrf.mxu1  ;;  %v9550_v43 = vunpack.c.l.b16 %v9412_v13  ;;  %v7887_v13 = vld [vmem:[#allocation2 + $0x170] sm:$0xf] }
 0x83b   :  { %v9104_v22 = vadd.f32 %v8968_v31, %v7782_v10  ;;  %11920 = vmatmul.msk.bf16.gmra.mxu2 %vm395_vm1, %v9594_v49  ;;  %v8359_v10 = vshrl.u32 %v7884_v14, 16  ;;  %v8357_v31 = vsel %vm14293_vm14, %v8352_v23, %v8356_v61  ;;  %v8737_v49 = vunpack.c.l.b16 %v8347_v17  ;;  %v7888_v61 = vld [vmem:[#allocation2 + $0x174] sm:$0xf] }
 0x83c   :  { %v8738_v27 = vunpack.c.l.b16 %v8357_v31 }
 0x83d   :  { %v16184_v45 = vadd.f32 %v9778_v7, %v9104_v22  ;;  %11839 = vmatmul.msk.bf16.gmra.mxu1 %vm395_vm1, %v8783_v20  ;;  %v11873_v7 = vrot.slane %v9170_v11, 9  ;;  %v8372_v22 = vshrl.u32 %v7885_v56, 16  ;;  %v8361_v11 = vrot.slane %v8359_v10, 4 }
 0x83e   :  { %v9783_v60 = vpop.f32.mrf.mxu2  ;;  %v8784_v28 = vpack.c.b16 %v8738_v27, %v8737_v49 }
 0x83f   :  { %17789 = vst [vmem:[#allocation50_spill] sm:$0xff] %v16184_v45  ;;  %v9409_v41 = vsel %vm14386_vm3, %v11873_v7, %v9408_v39  ;;  %v8374_v14 = vrot.slane %v8372_v22, 4  ;;  %v8365_v8 = vor.u32 %v8364_v55, %v8361_v11  ;;  %v9415_v39 = vrot.slane %v7888_v61, 5 }
 0x840   :  { %v8378_v7 = vshll.u32 %v7886_v35, 16 }
 0x841   :  { %v8375_v17 = vor.u32 %v8374_v14, %v8370_v40  ;;  %v8366_v10 = vrot.slane %v8365_v8, 4  ;;  %v9417_v27 = vrot.slane %v9415_v39, 4  ;;  %v8396_v8 = vshrl.u32 %v7888_v61, 16 }
 0x842   :  { %v8970_v4 = vpop.f32.mrf.mxu1  ;;  %v8380_v55 = vrot.slane %v8378_v7, 5 }
 0x843   :  { %v9105_v32 = vadd.f32 %v8970_v4, %v7783_v21  ;;  %v17794_v21 = vld [vmem:[#allocation61_spill] sm:$0xff]  ;;  %v8376_v22 = vrot.slane %v8375_v17, 4  ;;  %v8371_v35 = vsel %vm14293_vm14, %v8366_v10, %v8370_v40 }
 0x844   :  { %v7784_v23 = vadd.f32 %v17794_v21, %v17793_v26  ;;  %v17797_v26 = vld [vmem:[#allocation62_spill] sm:$0xff]  ;;  %v8739_v7 = vunpack.c.l.b16 %v8371_v35 }
 0x845   :  { %v16194_v20 = vadd.f32 %v9780_v33, %v9105_v32  ;;  %v9549_v33 = vunpack.c.l.b16 %v9409_v41  ;;  %v17796_v41 = vld [vmem:[#allocation39_spill] sm:$0xff] }
 0x846   :  { %v9785_v4 = vpop.f32.mrf.mxu2  ;;  %v7785_v21 = vadd.f32 %v17797_v26, %v17796_v41 }
 0x847   :  { %17792 = vst [vmem:[#allocation51_spill] sm:$0xff] %v16194_v20  ;;  %v9595_v15 = vpack.c.b16 %v9550_v43, %v9549_v33  ;;  %v9418_v43 = vrot.slane %v7889_v57, 5  ;;  %v8381_v33 = vsel %vm14293_vm14, %v8376_v22, %v8380_v55  ;;  %v17800_v22 = vld [vmem:[#allocation63_spill] sm:$0xff] }
 0x849   :  { %v9419_v17 = vsel %vm14386_vm3, %v9417_v27, %v9418_v43 }
 0x84a   :  { %v8973_v56 = vpop.f32.mrf.mxu1  ;;  %v9552_v10 = vunpack.c.l.b16 %v9419_v17  ;;  %v7890_v17 = vld [vmem:[#allocation2 + $0x180] sm:$0xf] }
 0x84b   :  { %v9106_v32 = vadd.f32 %v8973_v56, %v7784_v23  ;;  %11921 = vmatmul.msk.bf16.gmra.mxu2 %vm395_vm1, %v9595_v15  ;;  %v8383_v23 = vshrl.u32 %v7887_v13, 16  ;;  %v8386_v56 = vshll.u32 %v7887_v13, 16 }
 0x84d   :  { %v16202_v31 = vadd.f32 %v9783_v60, %v9106_v32  ;;  %11840 = vmatmul.msk.bf16.gmra.mxu1 %vm395_vm1, %v8784_v28  ;;  %v11874_v60 = vrot.slane %v9171_v16, 9  ;;  %v12125_v28 = vld [vmem:[%s17274_s7 + $0x10] sm:$0xff]  ;;  %v8392_v32 = vshll.u32 %v7888_v61, 16  ;;  %v8740_v16 = vunpack.c.l.b16 %v8381_v33 }
 0x84e   :  { %v9788_v49 = vpop.f32.mrf.mxu2  ;;  %10679 = vmatpush.bf16.msra.mxu3 %v12125_v28  ;;  %v8385_v26 = vrot.slane %v8383_v23, 4  ;;  %v8388_v40 = vrot.slane %v8386_v56, 5  ;;  %v9172_v56 = vld [vmem:[#allocation2 + $0x180] sm:$0xe] }
 0x84f   :  { %17795 = vst [vmem:[#allocation52_spill] sm:$0xff] %v16202_v31  ;;  %v9416_v41 = vsel %vm14386_vm3, %v11874_v60, %v9415_v39  ;;  %v8394_v13 = vrot.slane %v8392_v32, 5  ;;  %v8785_v46 = vpack.c.b16 %v8740_v16, %v8739_v7  ;;  %v8402_v60 = vshll.u32 %v7889_v57, 16 }
 0x850   :  { %v8389_v27 = vor.u32 %v8388_v40, %v8385_v26 }
 0x851   :  { %v8404_v40 = vrot.slane %v8402_v60, 5 }
 0x852   :  { %v8975_v11 = vpop.f32.mrf.mxu1  ;;  %v8390_v23 = vrot.slane %v8389_v27, 4 }
 0x853   :  { %v9107_v14 = vadd.f32 %v8975_v11, %v7785_v21  ;;  %v8398_v21 = vrot.slane %v8396_v8, 4  ;;  %v17799_v11 = vld [vmem:[#allocation71_spill] sm:$0xff]  ;;  %v7892_v8 = vld [vmem:[#allocation2 + $0x188] sm:$0x1] }
 0x854   :  { %v7786_v55 = vadd.f32 %v17800_v22, %v17799_v11  ;;  %v17803_v11 = vld [vmem:[#allocation64_spill] sm:$0xff] }
 0x855   :  { %v16215_v15 = vadd.f32 %v9785_v4, %v9107_v14  ;;  %v9551_v4 = vunpack.c.l.b16 %v9416_v41  ;;  %v7891_v14 = vld [vmem:[#allocation2 + $0x184] sm:$0xf]  ;;  %v8399_v35 = vor.u32 %v8398_v21, %v8394_v13  ;;  %v8407_v21 = vshrl.u32 %v7890_v17, 16 }
 0x856   :  { %v9790_v61 = vpop.f32.mrf.mxu2  ;;  %v9422_v39 = vrot.slane %v7891_v14, 5  ;;  %v17802_v41 = vld [vmem:[#allocation72_spill] sm:$0xff] }
 0x857   :  { %17798 = vst [vmem:[#allocation53_spill] sm:$0xff] %v16215_v15  ;;  %v9596_v43 = vpack.c.b16 %v9552_v10, %v9551_v4  ;;  %v8400_v32 = vrot.slane %v8399_v35, 4  ;;  %v7787_v22 = vadd.f32 %v17803_v11, %v17802_v41  ;;  %v9425_v10 = vrot.slane %v7892_v8, 5 }
 0x858   :  { %v9424_v16 = vrot.slane %v9422_v39, 4  ;;  %v8420_v4 = vshrl.u32 %v7891_v14, 16  ;;  %v8409_v41 = vrot.slane %v8407_v21, 4  ;;  %v9173_v21 = vld [vmem:[#allocation2 + $0x190] sm:$0xe] }
 0x859   :  { %v8405_v57 = vsel %vm14293_vm14, %v8400_v32, %v8404_v40  ;;  %v17806_v32 = vld [vmem:[#allocation65_spill] sm:$0xff] }
 0x85a   :  { %v8978_v28 = vpop.f32.mrf.mxu1  ;;  %v8742_v60 = vunpack.c.l.b16 %v8405_v57 }
 0x85b   :  { %v9108_v5 = vadd.f32 %v8978_v28, %v7786_v55  ;;  %11922 = vmatmul.msk.bf16.gmra.mxu2 %vm395_vm1, %v9596_v43  ;;  %v8410_v55 = vshll.u32 %v7890_v17, 16  ;;  %v8416_v28 = vshll.u32 %v7891_v14, 16  ;;  %v9426_v43 = vsel %vm14386_vm3, %v9424_v16, %v9425_v10 }
 0x85d   :  { %v16223_v33 = vadd.f32 %v9788_v49, %v9108_v5  ;;  %11841 = vmatmul.msk.bf16.gmra.mxu1 %vm395_vm1, %v8785_v46  ;;  %v11875_v5 = vrot.slane %v9172_v56, 9  ;;  %v8395_v46 = vsel %vm14293_vm14, %v8390_v23, %v8394_v13  ;;  %v9554_v13 = vunpack.c.l.b16 %v9426_v43  ;;  %v7893_v43 = vld [vmem:[#allocation2 + $0x190] sm:$0xf] }
 0x85e   :  { %v9793_v7 = vpop.f32.mrf.mxu2  ;;  %v8741_v35 = vunpack.c.l.b16 %v8395_v46  ;;  %v8412_v23 = vrot.slane %v8410_v55, 5  ;;  %v8418_v11 = vrot.slane %v8416_v28, 5 }
 0x85f   :  { %17801 = vst [vmem:[#allocation54_spill] sm:$0xff] %v16223_v33  ;;  %v9423_v56 = vsel %vm14386_vm3, %v11875_v5, %v9422_v39  ;;  %v8426_v5 = vshll.u32 %v7892_v8, 16 }
 0x860   :  { %v8413_v46 = vor.u32 %v8412_v23, %v8409_v41 }
 0x862   :  { %v8980_v26 = vpop.f32.mrf.mxu1  ;;  %v8414_v55 = vrot.slane %v8413_v46, 4 }
 0x863   :  { %v9109_v49 = vadd.f32 %v8980_v26, %v7787_v22  ;;  %v8422_v22 = vrot.slane %v8420_v4, 4  ;;  %v17805_v26 = vld [vmem:[#allocation36_spill] sm:$0xff]  ;;  %v7895_v4 = vld [vmem:[#allocation2 + $0x198] sm:$0x1] }
 0x864   :  { %v7788_v17 = vadd.f32 %v17806_v32, %v17805_v26  ;;  %v17809_v26 = vld [vmem:[#allocation66_spill] sm:$0xff]  ;;  %v9432_v23 = vrot.slane %v7895_v4, 5  ;;  %v8419_v8 = vsel %vm14293_vm14, %v8414_v55, %v8418_v11  ;;  %v17811_v55 = vld [vmem:[#allocation28_spill] sm:$0xff] }
 0x865   :  { %v16233_v27 = vadd.f32 %v9790_v61, %v9109_v49  ;;  %v9553_v61 = vunpack.c.l.b16 %v9423_v56  ;;  %v7894_v49 = vld [vmem:[#allocation2 + $0x194] sm:$0xf]  ;;  %v8423_v10 = vor.u32 %v8422_v22, %v8418_v11  ;;  %v17808_v56 = vld [vmem:[#allocation27_spill] sm:$0xff]  ;;  %v8434_v22 = vshll.u32 %v7893_v43, 16 }
 0x866   :  { %v9795_v40 = vpop.f32.mrf.mxu2  ;;  %v9429_v39 = vrot.slane %v7894_v49, 5  ;;  %v7789_v32 = vadd.f32 %v17809_v26, %v17808_v56 }
 0x867   :  { %17804 = vst [vmem:[#allocation55_spill] sm:$0xff] %v16233_v27  ;;  %v8786_v27 = vpack.c.b16 %v8742_v60, %v8741_v35  ;;  %v9597_v16 = vpack.c.b16 %v9554_v13, %v9553_v61  ;;  %v8424_v28 = vrot.slane %v8423_v10, 4  ;;  %v8428_v13 = vrot.slane %v8426_v5, 5 }
 0x868   :  { %v9431_v60 = vrot.slane %v9429_v39, 4  ;;  %v8444_v61 = vshrl.u32 %v7894_v49, 16  ;;  %v8743_v5 = vunpack.c.l.b16 %v8419_v8  ;;  %v7898_v8 = vld [vmem:[#allocation2 + $0x1a8] sm:$0x1] }
 0x86a   :  { %v8983_v14 = vpop.f32.mrf.mxu1  ;;  %v9433_v46 = vsel %vm14386_vm3, %v9431_v60, %v9432_v23  ;;  %v8446_v11 = vrot.slane %v8444_v61, 4 }
 0x86b   :  { %v9110_v12 = vadd.f32 %v8983_v14, %v7788_v17  ;;  %11923 = vmatmul.msk.bf16.gmra.mxu2 %vm395_vm1, %v9597_v16  ;;  %v8429_v17 = vsel %vm14293_vm14, %v8424_v28, %v8428_v13  ;;  %v8440_v14 = vshll.u32 %v7894_v49, 16  ;;  %v9556_v26 = vunpack.c.l.b16 %v9433_v46  ;;  %v7897_v49 = vld [vmem:[#allocation2 + $0x1a4] sm:$0xf]  ;;  %v7896_v46 = vld [vmem:[#allocation2 + $0x1a0] sm:$0xf] }
 0x86d   :  { %v16241_v57 = vadd.f32 %v9793_v7, %v9110_v12  ;;  %11842 = vmatmul.msk.bf16.gmra.mxu1 %vm395_vm1, %v8786_v27  ;;  %v11876_v12 = vrot.slane %v9173_v21, 9  ;;  %v8431_v27 = vshrl.u32 %v7893_v43, 16  ;;  %v8744_v21 = vunpack.c.l.b16 %v8429_v17  ;;  %v9174_v17 = vld [vmem:[#allocation2 + $0x1a0] sm:$0xe] }
 0x86e   :  { %v9798_v35 = vpop.f32.mrf.mxu2  ;;  %v8436_v43 = vrot.slane %v8434_v22, 5 }
 0x86f   :  { %17807 = vst [vmem:[#allocation56_spill] sm:$0xff] %v16241_v57  ;;  %v9430_v10 = vsel %vm14386_vm3, %v11876_v12, %v9429_v39  ;;  %v8433_v56 = vrot.slane %v8431_v27, 4  ;;  %v8787_v57 = vpack.c.b16 %v8744_v21, %v8743_v5  ;;  %v9436_v39 = vrot.slane %v7897_v49, 5 }
 0x870   :  { %v8450_v27 = vshll.u32 %v7895_v4, 16  ;;  %v8458_v4 = vshll.u32 %v7896_v46, 16 }
 0x871   :  { %v8437_v60 = vor.u32 %v8436_v43, %v8433_v56  ;;  %v9438_v61 = vrot.slane %v9436_v39, 4 }
 0x872   :  { %v8985_v41 = vpop.f32.mrf.mxu1  ;;  %v8452_v43 = vrot.slane %v8450_v27, 5 }
 0x873   :  { %v9111_v7 = vadd.f32 %v8985_v41, %v7789_v32  ;;  %v8442_v32 = vrot.slane %v8440_v14, 5  ;;  %v17812_v41 = vld [vmem:[#allocation68_spill] sm:$0xff]  ;;  %v8438_v22 = vrot.slane %v8437_v60, 4 }
 0x874   :  { %v7790_v28 = vadd.f32 %v17812_v41, %v17811_v55  ;;  %v17815_v55 = vld [vmem:[#allocation70_spill] sm:$0xff] }
 0x875   :  { %v16251_v16 = vadd.f32 %v9795_v40, %v9111_v7  ;;  %v9555_v7 = vunpack.c.l.b16 %v9430_v10  ;;  %v8447_v33 = vor.u32 %v8446_v11, %v8442_v32  ;;  %v17814_v10 = vld [vmem:[#allocation75_spill] sm:$0xff]  ;;  %v8455_v11 = vshrl.u32 %v7896_v46, 16 }
 0x876   :  { %v9800_v13 = vpop.f32.mrf.mxu2  ;;  %v7791_v5 = vadd.f32 %v17815_v55, %v17814_v10  ;;  %v17817_v55 = vld [vmem:[#allocation76_spill] sm:$0xff] }
 0x877   :  { %17810 = vst [vmem:[#allocation58_spill] sm:$0xff] %v16251_v16  ;;  %v9598_v23 = vpack.c.b16 %v9556_v26, %v9555_v7  ;;  %v8448_v14 = vrot.slane %v8447_v33, 4  ;;  %v11877_v26 = vrot.slane %v9174_v17, 9  ;;  %v8457_v10 = vrot.slane %v8455_v11, 4  ;;  %v9175_v11 = vld [vmem:[#allocation2 + $0x1b0] sm:$0xe] }
 0x879   :  { %v8453_v41 = vsel %vm14293_vm14, %v8448_v14, %v8452_v43  ;;  %v9437_v27 = vsel %vm14386_vm3, %v11877_v26, %v9436_v39  ;;  %v8474_v26 = vshll.u32 %v7898_v8, 16 }
 0x87a   :  { %v8988_v40 = vpop.f32.mrf.mxu1 }
 0x87b   :  { %v9112_v16 = vadd.f32 %v8988_v40, %v7790_v28  ;;  %11924 = vmatmul.msk.bf16.gmra.mxu2 %vm395_vm1, %v9598_v23  ;;  %v8464_v28 = vshll.u32 %v7897_v49, 16  ;;  %v8468_v40 = vshrl.u32 %v7897_v49, 16  ;;  %v8746_v23 = vunpack.c.l.b16 %v8453_v41 }
 0x87d   :  { %v16259_v12 = vadd.f32 %v9798_v35, %v9112_v16  ;;  %11843 = vmatmul.msk.bf16.gmra.mxu1 %vm395_vm1, %v8787_v57  ;;  %v9439_v35 = vrot.slane %v7898_v8, 5  ;;  %v8443_v57 = vsel %vm14293_vm14, %v8438_v22, %v8442_v32  ;;  %v8460_v32 = vrot.slane %v8458_v4, 5 }
 0x87e   :  { %v9803_v21 = vpop.f32.mrf.mxu2  ;;  %v8745_v60 = vunpack.c.l.b16 %v8443_v57  ;;  %v8466_v22 = vrot.slane %v8464_v28, 5  ;;  %v8470_v46 = vrot.slane %v8468_v40, 4  ;;  %v7901_v28 = vld [vmem:[#allocation2 + $0x1b8] sm:$0x1]  ;;  %v7899_v40 = vld [vmem:[#allocation2 + $0x1b0] sm:$0xf] }
 0x87f   :  { %17813 = vst [vmem:[#allocation59_spill] sm:$0xff] %v16259_v12  ;;  %v9440_v33 = vsel %vm14386_vm3, %v9438_v61, %v9439_v35  ;;  %v9557_v61 = vunpack.c.l.b16 %v9437_v27  ;;  %v7900_v35 = vld [vmem:[#allocation2 + $0x1b4] sm:$0xf]  ;;  %v8461_v57 = vor.u32 %v8460_v32, %v8457_v10  ;;  %v17820_v27 = vld [vmem:[#allocation29_spill] sm:$0xff]  ;;  %v8476_v10 = vrot.slane %v8474_v26, 5 }
 0x880   :  { %v9558_v17 = vunpack.c.l.b16 %v9440_v33  ;;  %v8471_v41 = vor.u32 %v8470_v46, %v8466_v22  ;;  %v9443_v39 = vrot.slane %v7900_v35, 5  ;;  %v9446_v46 = vrot.slane %v7901_v28, 5 }
 0x881   :  { %v8462_v4 = vrot.slane %v8461_v57, 4 }
 0x882   :  { %v8990_v56 = vpop.f32.mrf.mxu1  ;;  %v8472_v33 = vrot.slane %v8471_v41, 4 }
 0x883   :  { %v9113_v16 = vadd.f32 %v8990_v56, %v7791_v5  ;;  %v17818_v5 = vld [vmem:[#allocation40_spill] sm:$0xff]  ;;  %v8467_v8 = vsel %vm14293_vm14, %v8462_v4, %v8466_v22 }
 0x884   :  { %v7792_v14 = vadd.f32 %v17818_v5, %v17817_v55  ;;  %v17821_v55 = vld [vmem:[#allocation20_spill] sm:$0xff]  ;;  %v8747_v41 = vunpack.c.l.b16 %v8467_v8 }
 0x885   :  { %v16271_v7 = vadd.f32 %v9800_v13, %v9113_v16  ;;  %v8788_v13 = vpack.c.b16 %v8746_v23, %v8745_v60  ;;  %v9599_v16 = vpack.c.b16 %v9558_v17, %v9557_v61  ;;  %v7793_v5 = vadd.f32 %v17821_v55, %v17820_v27  ;;  %v17823_v4 = vld [vmem:[#allocation12_spill] sm:$0xff] }
 0x886   :  { %v9805_v56 = vpop.f32.mrf.mxu2  ;;  %v9445_v23 = vrot.slane %v9443_v39, 4  ;;  %v8477_v61 = vsel %vm14293_vm14, %v8472_v33, %v8476_v10 }
 0x887   :  { %17816 = vst [vmem:[#allocation67_spill] sm:$0xff] %v16271_v7  ;;  %v8748_v26 = vunpack.c.l.b16 %v8477_v61 }
 0x888   :  { %v9447_v57 = vsel %vm14386_vm3, %v9445_v23, %v9446_v46 }
 0x88a   :  { %v8993_v43 = vpop.f32.mrf.mxu1 }
 0x88b   :  { %v9114_v49 = vadd.f32 %v8993_v43, %v7792_v14  ;;  %11925 = vmatmul.msk.bf16.gmra.mxu2 %vm395_vm1, %v9599_v16  ;;  %v8479_v14 = vshrl.u32 %v7899_v40, 16  ;;  %v8482_v43 = vshll.u32 %v7899_v40, 16  ;;  %v9560_v40 = vunpack.c.l.b16 %v9447_v57  ;;  %v7902_v57 = vld [vmem:[#allocation2 + $0x1c0] sm:$0xf] }
 0x88d   :  { %v16277_v7 = vadd.f32 %v9803_v21, %v9114_v49  ;;  %11844 = vmatmul.msk.bf16.gmra.mxu1 %vm395_vm1, %v8788_v13  ;;  %v11878_v21 = vrot.slane %v9175_v11, 9  ;;  %v8488_v49 = vshll.u32 %v7900_v35, 16  ;;  %v8492_v13 = vshrl.u32 %v7900_v35, 16 }
 0x88e   :  { %v9808_v60 = vpop.f32.mrf.mxu2  ;;  %v8481_v27 = vrot.slane %v8479_v14, 4  ;;  %v8484_v55 = vrot.slane %v8482_v43, 5  ;;  %v9176_v14 = vld [vmem:[#allocation2 + $0x1c0] sm:$0xe] }
 0x88f   :  { %17819 = vst [vmem:[#allocation60_spill] sm:$0xff] %v16277_v7  ;;  %v9444_v11 = vsel %vm14386_vm3, %v11878_v21, %v9443_v39  ;;  %v8494_v22 = vrot.slane %v8492_v13, 4  ;;  %v8789_v7 = vpack.c.b16 %v8748_v26, %v8747_v41  ;;  %v8498_v21 = vshll.u32 %v7901_v28, 16  ;;  %v7904_v13 = vld [vmem:[#allocation2 + $0x1c8] sm:$0x1] }
 0x890   :  { %v8485_v46 = vor.u32 %v8484_v55, %v8481_v27  ;;  %v9453_v55 = vrot.slane %v7904_v13, 5 }
 0x892   :  { %v8995_v17 = vpop.f32.mrf.mxu1  ;;  %v8486_v43 = vrot.slane %v8485_v46, 4 }
 0x893   :  { %v9115_v32 = vadd.f32 %v8995_v17, %v7793_v5  ;;  %v8490_v5 = vrot.slane %v8488_v49, 5  ;;  %v17824_v17 = vld [vmem:[#allocation73_spill] sm:$0xff] }
 0x894   :  { %v7794_v33 = vadd.f32 %v17824_v17, %v17823_v4  ;;  %v17827_v4 = vld [vmem:[#allocation74_spill] sm:$0xff] }
 0x895   :  { %v16287_v16 = vadd.f32 %v9805_v56, %v9115_v32  ;;  %v9559_v56 = vunpack.c.l.b16 %v9444_v11  ;;  %v7903_v32 = vld [vmem:[#allocation2 + $0x1c4] sm:$0xf]  ;;  %v8495_v8 = vor.u32 %v8494_v22, %v8490_v5  ;;  %v17826_v11 = vld [vmem:[#allocation37_spill] sm:$0xff]  ;;  %v8506_v22 = vshll.u32 %v7902_v57, 16 }
 0x896   :  { %v9810_v10 = vpop.f32.mrf.mxu2  ;;  %v9450_v39 = vrot.slane %v7903_v32, 5  ;;  %v7795_v17 = vadd.f32 %v17827_v4, %v17826_v11  ;;  %v8491_v28 = vsel %vm14293_vm14, %v8486_v43, %v8490_v5  ;;  %v17829_v43 = vld [vmem:[#allocation79_spill] sm:$0xff] }
 0x897   :  { %17822 = vst [vmem:[#allocation69_spill] sm:$0xff] %v16287_v16  ;;  %v9600_v23 = vpack.c.b16 %v9560_v40, %v9559_v56  ;;  %v8496_v49 = vrot.slane %v8495_v8, 4  ;;  %v8500_v40 = vrot.slane %v8498_v21, 5  ;;  %v8516_v56 = vshrl.u32 %v7903_v32, 16 }
 0x898   :  { %v9452_v26 = vrot.slane %v9450_v39, 4  ;;  %v8749_v8 = vunpack.c.l.b16 %v8491_v28  ;;  %v8508_v4 = vrot.slane %v8506_v22, 5 }
 0x899   :  { %v8518_v5 = vrot.slane %v8516_v56, 4  ;;  %v7907_v56 = vld [vmem:[#allocation2 + $0x1d8] sm:$0x1] }
 0x89a   :  { %v8998_v35 = vpop.f32.mrf.mxu1  ;;  %v9454_v46 = vsel %vm14386_vm3, %v9452_v26, %v9453_v55 }
 0x89b   :  { %v9116_v16 = vadd.f32 %v8998_v35, %v7794_v33  ;;  %11926 = vmatmul.msk.bf16.gmra.mxu2 %vm395_vm1, %v9600_v23  ;;  %v8501_v33 = vsel %vm14293_vm14, %v8496_v49, %v8500_v40  ;;  %v8512_v35 = vshll.u32 %v7903_v32, 16 }
 0x89c   :  { %v8750_v21 = vunpack.c.l.b16 %v8501_v33 }
 0x89d   :  { %v16295_v61 = vadd.f32 %v9808_v60, %v9116_v16  ;;  %11845 = vmatmul.msk.bf16.gmra.mxu1 %vm395_vm1, %v8789_v7  ;;  %v11879_v60 = vrot.slane %v9176_v14, 9  ;;  %v8503_v7 = vshrl.u32 %v7902_v57, 16  ;;  %v9562_v57 = vunpack.c.l.b16 %v9454_v46  ;;  %v7905_v46 = vld [vmem:[#allocation2 + $0x1d0] sm:$0xf] }
 0x89e   :  { %v9813_v41 = vpop.f32.mrf.mxu2 }
 0x89f   :  { %17825 = vst [vmem:[#allocation61_spill] sm:$0xff] %v16295_v61  ;;  %v9451_v14 = vsel %vm14386_vm3, %v11879_v60, %v9450_v39  ;;  %v8505_v11 = vrot.slane %v8503_v7, 4  ;;  %v8790_v61 = vpack.c.b16 %v8750_v21, %v8749_v8  ;;  %v8522_v60 = vshll.u32 %v7904_v13, 16  ;;  %v9177_v7 = vld [vmem:[#allocation2 + $0x1d0] sm:$0xe] }
 0x8a1   :  { %v8509_v55 = vor.u32 %v8508_v4, %v8505_v11  ;;  %v9460_v4 = vrot.slane %v7907_v56, 5 }
 0x8a2   :  { %v9000_v27 = vpop.f32.mrf.mxu1 }
 0x8a3   :  { %v9117_v16 = vadd.f32 %v9000_v27, %v7795_v17  ;;  %v8514_v17 = vrot.slane %v8512_v35, 5  ;;  %v17830_v27 = vld [vmem:[#allocation26_spill] sm:$0xff]  ;;  %v8510_v22 = vrot.slane %v8509_v55, 4 }
 0x8a4   :  { %v7796_v49 = vadd.f32 %v17830_v27, %v17829_v43  ;;  %v17833_v43 = vld [vmem:[#allocation41_spill] sm:$0xff] }
 0x8a5   :  { %v16305_v23 = vadd.f32 %v9810_v10, %v9117_v16  ;;  %v9561_v10 = vunpack.c.l.b16 %v9451_v14  ;;  %v7906_v16 = vld [vmem:[#allocation2 + $0x1d4] sm:$0xf]  ;;  %v8519_v28 = vor.u32 %v8518_v5, %v8514_v17  ;;  %v17832_v14 = vld [vmem:[#allocation80_spill] sm:$0xff]  ;;  %v8530_v5 = vshll.u32 %v7905_v46, 16 }
 0x8a6   :  { %v9815_v40 = vpop.f32.mrf.mxu2  ;;  %v9457_v39 = vrot.slane %v7906_v16, 5  ;;  %v7797_v27 = vadd.f32 %v17833_v43, %v17832_v14  ;;  %v8515_v13 = vsel %vm14293_vm14, %v8510_v22, %v8514_v17  ;;  %v17835_v22 = vld [vmem:[#allocation30_spill] sm:$0xff] }
 0x8a7   :  { %17828 = vst [vmem:[#allocation39_spill] sm:$0xff] %v16305_v23  ;;  %v9601_v26 = vpack.c.b16 %v9562_v57, %v9561_v10  ;;  %v8520_v35 = vrot.slane %v8519_v28, 4  ;;  %v8524_v57 = vrot.slane %v8522_v60, 5  ;;  %v8540_v10 = vshrl.u32 %v7906_v16, 16 }
 0x8a8   :  { %v9459_v21 = vrot.slane %v9457_v39, 4  ;;  %v8751_v60 = vunpack.c.l.b16 %v8515_v13  ;;  %v9178_v13 = vld [vmem:[#allocation2 + $0x1e0] sm:$0xe] }
 0x8a9   :  { %v8542_v17 = vrot.slane %v8540_v10, 4  ;;  %v7908_v10 = vld [vmem:[#allocation2 + $0x1e0] sm:$0xf] }
 0x8aa   :  { %v9003_v32 = vpop.f32.mrf.mxu1  ;;  %v9461_v55 = vsel %vm14386_vm3, %v9459_v21, %v9460_v4 }
 0x8ab   :  { %v9118_v23 = vadd.f32 %v9003_v32, %v7796_v49  ;;  %11927 = vmatmul.msk.bf16.gmra.mxu2 %vm395_vm1, %v9601_v26  ;;  %v8525_v49 = vsel %vm14293_vm14, %v8520_v35, %v8524_v57  ;;  %v8536_v32 = vshll.u32 %v7906_v16, 16  ;;  %v9564_v43 = vunpack.c.l.b16 %v9461_v55  ;;  %v16335_v55 = vpop.f32.mrf.mxu0 }
 0x8ad   :  { %v16313_v33 = vadd.f32 %v9813_v41, %v9118_v23  ;;  %11846 = vmatmul.msk.bf16.gmra.mxu1 %vm395_vm1, %v8790_v61  ;;  %v11880_v41 = vrot.slane %v9177_v7, 9  ;;  %v8527_v61 = vshrl.u32 %v7905_v46, 16  ;;  %v8752_v7 = vunpack.c.l.b16 %v8525_v49 }
 0x8ae   :  { %v9818_v8 = vpop.f32.mrf.mxu2  ;;  %v8532_v46 = vrot.slane %v8530_v5, 5 }
 0x8af   :  { %17831 = vst [vmem:[#allocation62_spill] sm:$0xff] %v16313_v33  ;;  %v9458_v28 = vsel %vm14386_vm3, %v11880_v41, %v9457_v39  ;;  %v8529_v14 = vrot.slane %v8527_v61, 4  ;;  %v8791_v33 = vpack.c.b16 %v8752_v7, %v8751_v60  ;;  %v8546_v61 = vshll.u32 %v7907_v56, 16  ;;  %v17839_v60 = vld [vmem:[#allocation78_spill] sm:$0xff] }
 0x8b1   :  { %v8533_v21 = vor.u32 %v8532_v46, %v8529_v14 }
 0x8b2   :  { %v9005_v11 = vpop.f32.mrf.mxu1 }
 0x8b3   :  { %v9119_v23 = vadd.f32 %v9005_v11, %v7797_v27  ;;  %v8538_v27 = vrot.slane %v8536_v32, 5  ;;  %v17836_v11 = vld [vmem:[#allocation77_spill] sm:$0xff]  ;;  %v8534_v5 = vrot.slane %v8533_v21, 4 }
 0x8b4   :  { %v7798_v35 = vadd.f32 %v17836_v11, %v17835_v22  ;;  %v7910_v32 = vld [vmem:[#allocation2 + $0x1e8] sm:$0x1]  ;;  %v8551_v22 = vshrl.u32 %v7908_v10, 16  ;;  %v8554_v11 = vshll.u32 %v7908_v10, 16 }
 0x8b5   :  { %v16323_v26 = vadd.f32 %v9815_v40, %v9119_v23  ;;  %v9563_v40 = vunpack.c.l.b16 %v9458_v28  ;;  %v7909_v23 = vld [vmem:[#allocation2 + $0x1e4] sm:$0xf]  ;;  %v8543_v12 = vor.u32 %v8542_v17, %v8538_v27  ;;  %v17838_v28 = vld [vmem:[#allocation33_spill] sm:$0xff]  ;;  %v8539_v17 = vsel %vm14293_vm14, %v8534_v5, %v8538_v27 }
 0x8b6   :  { %v9820_v57 = vpop.f32.mrf.mxu2  ;;  %v9464_v41 = vrot.slane %v7909_v23, 5  ;;  %v7799_v7 = vadd.f32 %v17839_v60, %v17838_v28  ;;  %v9467_v56 = vrot.slane %v7910_v32, 5  ;;  %v8553_v28 = vrot.slane %v8551_v22, 4 }
 0x8b7   :  { %17834 = vst [vmem:[#allocation71_spill] sm:$0xff] %v16323_v26  ;;  %v9602_v4 = vpack.c.b16 %v9564_v43, %v9563_v40  ;;  %v8544_v49 = vrot.slane %v8543_v12, 4  ;;  %v11881_v43 = vrot.slane %v9178_v13, 9  ;;  %v8556_v5 = vrot.slane %v8554_v11, 5  ;;  %v9179_v11 = vld [vmem:[#allocation2 + $0x1f0] sm:$0xe] }
 0x8b8   :  { %v9466_v46 = vrot.slane %v9464_v41, 4  ;;  %v8570_v22 = vshll.u32 %v7910_v32, 16 }
 0x8b9   :  { %v9465_v13 = vsel %vm14386_vm3, %v11881_v43, %v9464_v41 }
 0x8ba   :  { %v9008_v16 = vpop.f32.mrf.mxu1  ;;  %v9468_v21 = vsel %vm14386_vm3, %v9466_v46, %v9467_v56 }
 0x8bb   :  { %v9120_v26 = vadd.f32 %v9008_v16, %v7798_v35  ;;  %11928 = vmatmul.msk.bf16.gmra.mxu2 %vm395_vm1, %v9602_v4  ;;  %v8560_v35 = vshll.u32 %v7909_v23, 16  ;;  %v8564_v16 = vshrl.u32 %v7909_v23, 16  ;;  %v8753_v4 = vunpack.c.l.b16 %v8539_v17 }
 0x8bc   :  { %v9566_v27 = vunpack.c.l.b16 %v9468_v21  ;;  %v7913_v21 = vld [vmem:[#allocation2 + $0x1f8] sm:$0x1] }
 0x8bd   :  { %v16331_v39 = vadd.f32 %v9818_v8, %v9120_v26  ;;  %11847 = vmatmul.msk.bf16.gmra.mxu1 %vm395_vm1, %v8791_v33  ;;  %v8548_v26 = vrot.slane %v8546_v61, 5  ;;  %v8562_v60 = vrot.slane %v8560_v35, 5 }
 0x8be   :  { %v9823_v14 = vpop.f32.mrf.mxu2 }
 0x8bf   :  { %17837 = vst [vmem:[#allocation63_spill] sm:$0xff] %v16331_v39  ;;  %v8549_v12 = vsel %vm14293_vm14, %v8544_v49, %v8548_v26  ;;  %v17842_v49 = vld [vmem:[#allocation31_spill] sm:$0xff] }
 0x8c0   :  { %v8754_v61 = vunpack.c.l.b16 %v8549_v12  ;;  %v8557_v12 = vor.u32 %v8556_v5, %v8553_v28  ;;  %v12124_v5 = vld [vmem:[%s17274_s7 + $0x8] sm:$0xff] }
 0x8c1   :  { %10680 = vmatpush.bf16.msra.mxu3 %v12124_v5 }
 0x8c2   :  { %v9010_v8 = vpop.f32.mrf.mxu1  ;;  %v8792_v17 = vpack.c.b16 %v8754_v61, %v8753_v4  ;;  %v8558_v35 = vrot.slane %v8557_v12, 4 }
 0x8c3   :  { %v9121_v33 = vadd.f32 %v9010_v8, %v7799_v7  ;;  %v8566_v7 = vrot.slane %v8564_v16, 4  ;;  %v17841_v8 = vld [vmem:[#allocation21_spill] sm:$0xff] }
 0x8c4   :  { %v7800_v10 = vadd.f32 %v17842_v49, %v17841_v8  ;;  %v17844_v8 = vld [vmem:[#allocation13_spill] sm:$0xff]  ;;  %v17845_v49 = vld [vmem:[#allocation32_spill] sm:$0xff] }
 0x8c5   :  { %v16343_v40 = vadd.f32 %v9820_v57, %v9121_v33  ;;  %v9565_v57 = vunpack.c.l.b16 %v9465_v13  ;;  %v7912_v33 = vld [vmem:[#allocation2 + $0x1f4] sm:$0xf]  ;;  %v8567_v39 = vor.u32 %v8566_v7, %v8562_v60  ;;  %v7911_v13 = vld [vmem:[#allocation2 + $0x1f0] sm:$0xf] }
 0x8c6   :  { %v9825_v26 = vpop.f32.mrf.mxu2  ;;  %v9471_v43 = vrot.slane %v7912_v33, 5  ;;  %v8575_v32 = vshrl.u32 %v7911_v13, 16 }
 0x8c7   :  { %17840 = vst [vmem:[#allocation72_spill] sm:$0xff] %v16343_v40  ;;  %v16351_v40 = vpop.f32.mrf.mxu0  ;;  %v9603_v56 = vpack.c.b16 %v9566_v27, %v9565_v57  ;;  %v8568_v16 = vrot.slane %v8567_v39, 4  ;;  %v8572_v27 = vrot.slane %v8570_v22, 5  ;;  %v8578_v57 = vshll.u32 %v7911_v13, 16 }
 0x8c8   :  { %v9473_v61 = vrot.slane %v9471_v43, 4  ;;  %v8563_v39 = vsel %vm14293_vm14, %v8558_v35, %v8562_v60 }
 0x8c9   :  { %v8755_v13 = vunpack.c.l.b16 %v8563_v39  ;;  %v8580_v60 = vrot.slane %v8578_v57, 5 }
 0x8ca   :  { %v9013_v23 = vpop.f32.mrf.mxu1 }
 0x8cb   :  { %v9122_v46 = vadd.f32 %v9013_v23, %v7800_v10  ;;  %11929 = vmatmul.msk.bf16.gmra.mxu2 %vm395_vm1, %v9603_v56  ;;  %v7801_v10 = vadd.f32 %v17845_v49, %v17844_v8  ;;  %v9474_v23 = vrot.slane %v7913_v21, 5  ;;  %v8588_v56 = vshrl.u32 %v7912_v33, 16 }
 0x8cd   :  { %v16353_v41 = vadd.f32 %v9823_v14, %v9122_v46  ;;  %11848 = vmatmul.msk.bf16.gmra.mxu1 %vm395_vm1, %v8792_v17  ;;  %v11882_v14 = vrot.slane %v9179_v11, 9  ;;  %v8573_v46 = vsel %vm14293_vm14, %v8568_v16, %v8572_v27  ;;  %v8584_v17 = vshll.u32 %v7912_v33, 16  ;;  %v17847_v27 = vld [vmem:[#allocation19_spill] sm:$0xff]  ;;  %v17848_v33 = vld [vmem:[#allocation81_spill] sm:$0xff] }
 0x8ce   :  { %v9828_v4 = vpop.f32.mrf.mxu2  ;;  %v9475_v11 = vsel %vm14386_vm3, %v9473_v61, %v9474_v23  ;;  %v8756_v49 = vunpack.c.l.b16 %v8573_v46  ;;  %v8590_v16 = vrot.slane %v8588_v56, 4  ;;  %v7802_v5 = vadd.f32 %v17848_v33, %v17847_v27  ;;  %v9180_v46 = vld [vmem:[#allocation2 + $0x200] sm:$0xe]  ;;  %v7916_v56 = vld [vmem:[#allocation2 + $0x208] sm:$0x1] }
 0x8cf   :  { %17843 = vst [vmem:[#allocation64_spill] sm:$0xff] %v16353_v41  ;;  %v16366_v12 = vpop.f32.mrf.mxu0  ;;  %v9472_v8 = vsel %vm14386_vm3, %v11882_v14, %v9471_v43  ;;  %v9568_v35 = vunpack.c.l.b16 %v9475_v11  ;;  %v7914_v11 = vld [vmem:[#allocation2 + $0x200] sm:$0xf] }
 0x8d0   :  { %v8793_v31 = vpack.c.b16 %v8756_v49, %v8755_v13 }
 0x8d2   :  { %v9015_v28 = vpop.f32.mrf.mxu1 }
 0x8d3   :  { %v9123_v7 = vadd.f32 %v9015_v28, %v7801_v10  ;;  %v8577_v10 = vrot.slane %v8575_v32, 4  ;;  %v8586_v28 = vrot.slane %v8584_v17, 5  ;;  %v8594_v32 = vshll.u32 %v7913_v21, 16 }
 0x8d4   :  { %v9481_v21 = vrot.slane %v7916_v56, 5 }
 0x8d5   :  { %v16368_v22 = vadd.f32 %v9825_v26, %v9123_v7  ;;  %v9567_v26 = vunpack.c.l.b16 %v9472_v8  ;;  %v7915_v7 = vld [vmem:[#allocation2 + $0x204] sm:$0xf]  ;;  %v8581_v61 = vor.u32 %v8580_v60, %v8577_v10  ;;  %v8591_v20 = vor.u32 %v8590_v16, %v8586_v28  ;;  %v17851_v8 = vld [vmem:[#allocation82_spill] sm:$0xff] }
 0x8d6   :  { %v9830_v41 = vpop.f32.mrf.mxu2  ;;  %v9478_v14 = vrot.slane %v7915_v7, 5  ;;  %v11883_v60 = vrot.slane %v9180_v46, 9  ;;  %v8599_v16 = vshrl.u32 %v7914_v11, 16  ;;  %v8608_v33 = vshll.u32 %v7915_v7, 16 }
 0x8d7   :  { %17846 = vst [vmem:[#allocation36_spill] sm:$0xff] %v16368_v22  ;;  %v9604_v23 = vpack.c.b16 %v9568_v35, %v9567_v26  ;;  %v16380_v57 = vpop.f32.mrf.mxu0  ;;  %v8582_v39 = vrot.slane %v8581_v61, 4  ;;  %v8592_v17 = vrot.slane %v8591_v20, 4  ;;  %v8602_v20 = vshll.u32 %v7914_v11, 16 }
 0x8d8   :  { %v9480_v10 = vrot.slane %v9478_v14, 4  ;;  %v9479_v46 = vsel %vm14386_vm3, %v11883_v60, %v9478_v14 }
 0x8d9   :  { %v8587_v35 = vsel %vm14293_vm14, %v8582_v39, %v8586_v28  ;;  %v8604_v39 = vrot.slane %v8602_v20, 5  ;;  %v9569_v11 = vunpack.c.l.b16 %v9479_v46  ;;  %v9181_v20 = vld [vmem:[#allocation2 + $0x210] sm:$0xe] }
 0x8da   :  { %v9018_v15 = vpop.f32.mrf.mxu1  ;;  %v9482_v61 = vsel %vm14386_vm3, %v9480_v10, %v9481_v21 }
 0x8db   :  { %v9124_v22 = vadd.f32 %v9018_v15, %v7802_v5  ;;  %11930 = vmatmul.msk.bf16.gmra.mxu2 %vm395_vm1, %v9604_v23  ;;  %v17850_v15 = vld [vmem:[#allocation14_spill] sm:$0xff]  ;;  %v8612_v5 = vshrl.u32 %v7915_v7, 16  ;;  %v8757_v23 = vunpack.c.l.b16 %v8587_v35  ;;  %v9570_v28 = vunpack.c.l.b16 %v9482_v61 }
 0x8dc   :  { %v7803_v13 = vadd.f32 %v17851_v8, %v17850_v15  ;;  %v8601_v15 = vrot.slane %v8599_v16, 4  ;;  %v8610_v8 = vrot.slane %v8608_v33, 5  ;;  %v7804_v7 = vadd.f32 %v15841_v53, %v15802_v2  ;;  %v7919_v53 = vld [vmem:[#allocation2 + $0x218] sm:$0x1]  ;;  %v17854_v61 = vld [vmem:[#allocation38_spill] sm:$0xff] }
 0x8dd   :  { %v16376_v43 = vadd.f32 %v9828_v4, %v9124_v22  ;;  %11849 = vmatmul.msk.bf16.gmra.mxu1 %vm395_vm1, %v8793_v31  ;;  %v8596_v22 = vrot.slane %v8594_v32, 5  ;;  %v9605_v35 = vpack.c.b16 %v9570_v28, %v9569_v11  ;;  %v8618_v16 = vshll.u32 %v7916_v56, 16 }
 0x8de   :  { %v9833_v49 = vpop.f32.mrf.mxu2  ;;  %v8605_v21 = vor.u32 %v8604_v39, %v8601_v15  ;;  %v7805_v46 = vadd.f32 %v15856_v63, %v17854_v61 }
 0x8df   :  { %17849 = vst [vmem:[#allocation65_spill] sm:$0xff] %v16376_v43  ;;  %v8597_v27 = vsel %vm14293_vm14, %v8592_v17, %v8596_v22  ;;  %v7918_v22 = vld [vmem:[#allocation2 + $0x214] sm:$0xf]  ;;  %v8620_v28 = vrot.slane %v8618_v16, 5 }
 0x8e0   :  { %v8758_v32 = vunpack.c.l.b16 %v8597_v27  ;;  %v9485_v60 = vrot.slane %v7918_v22, 5  ;;  %v8606_v33 = vrot.slane %v8605_v21, 4 }
 0x8e2   :  { %v9020_v4 = vpop.f32.mrf.mxu1  ;;  %v8611_v56 = vsel %vm14293_vm14, %v8606_v33, %v8610_v8  ;;  %v7806_v33 = vadd.f32 %v16335_v55, %v15824_v6  ;;  %v8642_v6 = vshll.u32 %v7919_v53, 16 }
 0x8e3   :  { %v9125_v31 = vadd.f32 %v9020_v4, %v7803_v13  ;;  %v8614_v13 = vrot.slane %v8612_v5, 4  ;;  %v16394_v4 = vpop.f32.mrf.mxu0  ;;  %v7917_v5 = vld [vmem:[#allocation2 + $0x210] sm:$0xf]  ;;  %v8759_v16 = vunpack.c.l.b16 %v8611_v56 }
 0x8e4   :  { %v8626_v11 = vshll.u32 %v7917_v5, 16 }
 0x8e5   :  { %v16388_v26 = vadd.f32 %v9830_v41, %v9125_v31  ;;  %v8794_v31 = vpack.c.b16 %v8758_v32, %v8757_v23  ;;  %v8615_v27 = vor.u32 %v8614_v13, %v8610_v8  ;;  %v9487_v32 = vrot.slane %v9485_v60, 4 }
 0x8e6   :  { %v9835_v41 = vpop.f32.mrf.mxu2 }
 0x8e7   :  { %17852 = vst [vmem:[#allocation27_spill] sm:$0xff] %v16388_v26  ;;  %v8616_v2 = vrot.slane %v8615_v27, 4 }
 0x8ea   :  { %v9023_v17 = vpop.f32.mrf.mxu1 }
 0x8eb   :  { %v9126_v10 = vadd.f32 %v9023_v17, %v7804_v7  ;;  %11931 = vmatmul.msk.bf16.gmra.mxu2 %vm395_vm1, %v9605_v35  ;;  %v16404_v39 = vpop.f32.mrf.mxu0  ;;  %v9488_v7 = vrot.slane %v7919_v53, 5  ;;  %v8623_v17 = vshrl.u32 %v7917_v5, 16  ;;  %v8636_v35 = vshrl.u32 %v7918_v22, 16 }
 0x8ec   :  { %v8628_v5 = vrot.slane %v8626_v11, 5 }
 0x8ed   :  { %v16398_v14 = vadd.f32 %v9833_v49, %v9126_v10  ;;  %11850 = vmatmul.msk.bf16.gmra.mxu1 %vm395_vm1, %v8794_v31  ;;  %v11884_v49 = vrot.slane %v9181_v20, 9  ;;  %v8621_v10 = vsel %vm14293_vm14, %v8616_v2, %v8620_v28  ;;  %v8632_v31 = vshll.u32 %v7918_v22, 16  ;;  %v7921_v28 = vld [vmem:[#allocation2 + $0x224] sm:$0xf] }
 0x8ee   :  { %v9838_v23 = vpop.f32.mrf.mxu2  ;;  %v9489_v21 = vsel %vm14386_vm3, %v9487_v32, %v9488_v7  ;;  %v8760_v20 = vunpack.c.l.b16 %v8621_v10  ;;  %v8625_v61 = vrot.slane %v8623_v17, 4  ;;  %v8638_v8 = vrot.slane %v8636_v35, 4  ;;  %v17857_v17 = vld [vmem:[#allocation15_spill] sm:$0xff] }
 0x8ef   :  { %17853 = vst [vmem:[#allocation66_spill] sm:$0xff] %v16398_v14  ;;  %v9486_v27 = vsel %vm14386_vm3, %v11884_v49, %v9485_v60  ;;  %v17856_v49 = vld [vmem:[#allocation16_spill] sm:$0xff]  ;;  %v9492_v10 = vrot.slane %v7921_v28, 5 }
 0x8f0   :  { %v8629_v32 = vor.u32 %v8628_v5, %v8625_v61  ;;  %v7220_v11 = vadd.f32 %v17857_v17, %v17856_v49 }
 0x8f1   :  { %v9494_v61 = vrot.slane %v9492_v10, 4 }
 0x8f2   :  { %v9025_v15 = vpop.f32.mrf.mxu1  ;;  %v8630_v55 = vrot.slane %v8629_v32, 4 }
 0x8f3   :  { %v9127_v13 = vadd.f32 %v9025_v15, %v7805_v46  ;;  %v9572_v46 = vunpack.c.l.b16 %v9489_v21  ;;  %v8634_v15 = vrot.slane %v8632_v31, 5  ;;  %v16418_v60 = vpop.f32.mrf.mxu0  ;;  %v9182_v31 = vld [vmem:[#allocation2 + $0x220] sm:$0xe]  ;;  %v7922_v21 = vld [vmem:[#allocation2 + $0x228] sm:$0x1] }
 0x8f5   :  { %v16410_v63 = vadd.f32 %v9835_v41, %v9127_v13  ;;  %v9571_v41 = vunpack.c.l.b16 %v9486_v27  ;;  %v8639_v14 = vor.u32 %v8638_v8, %v8634_v15  ;;  %v7920_v27 = vld [vmem:[#allocation2 + $0x220] sm:$0xf]  ;;  %v11885_v8 = vrot.slane %v9182_v31, 9 }
 0x8f6   :  { %v9840_v2 = vpop.f32.mrf.mxu2 }
 0x8f7   :  { %17855 = vst [vmem:[#allocation28_spill] sm:$0xff] %v16410_v63  ;;  %v8795_v63 = vpack.c.b16 %v8760_v20, %v8759_v16  ;;  %v9606_v7 = vpack.c.b16 %v9572_v46, %v9571_v41  ;;  %v8640_v35 = vrot.slane %v8639_v14, 4  ;;  %v7807_v16 = vadd.f32 %v16351_v40, %v7220_v11 }
 0x8f8   :  { %v8644_v46 = vrot.slane %v8642_v6, 5  ;;  %v8650_v41 = vshll.u32 %v7920_v27, 16  ;;  %v8656_v14 = vshll.u32 %v7921_v28, 16 }
 0x8fa   :  { %v9028_v22 = vpop.f32.mrf.mxu1  ;;  %v8645_v53 = vsel %vm14293_vm14, %v8640_v35, %v8644_v46  ;;  %v8658_v31 = vrot.slane %v8656_v14, 5 }
 0x8fb   :  { %v9128_v13 = vadd.f32 %v9028_v22, %v7806_v33  ;;  %11932 = vmatmul.msk.bf16.gmra.mxu2 %vm395_vm1, %v9606_v7  ;;  %v9495_v33 = vrot.slane %v7922_v21, 5  ;;  %v8647_v22 = vshrl.u32 %v7920_v27, 16  ;;  %v16435_v7 = vpop.f32.mrf.mxu0  ;;  %v8762_v17 = vunpack.c.l.b16 %v8645_v53 }
 0x8fd   :  { %v16422_v56 = vadd.f32 %v9838_v23, %v9128_v13  ;;  %11851 = vmatmul.msk.bf16.gmra.mxu1 %vm395_vm1, %v8795_v63  ;;  %v8635_v63 = vsel %vm14293_vm14, %v8630_v55, %v8634_v15  ;;  %v8660_v13 = vshrl.u32 %v7921_v28, 16  ;;  %v9496_v40 = vsel %vm14386_vm3, %v9494_v61, %v9495_v33 }
 0x8fe   :  { %v9843_v20 = vpop.f32.mrf.mxu2  ;;  %v8761_v49 = vunpack.c.l.b16 %v8635_v63  ;;  %v9493_v15 = vsel %vm14386_vm3, %v11885_v8, %v9492_v10  ;;  %v8649_v11 = vrot.slane %v8647_v22, 4  ;;  %v9574_v6 = vunpack.c.l.b16 %v9496_v40  ;;  %v9183_v63 = vld [vmem:[#allocation2 + $0x230] sm:$0xe]  ;;  %v17860_v8 = vld [vmem:[#allocation17_spill] sm:$0xff] }
 0x8ff   :  { %17858 = vst [vmem:[#allocation68_spill] sm:$0xff] %v16422_v56  ;;  %v8652_v55 = vrot.slane %v8650_v41, 5  ;;  %v8662_v35 = vrot.slane %v8660_v13, 4  ;;  %v7808_v28 = vadd.f32 %v16366_v12, %v15850_v58  ;;  %v7222_v22 = vadd.f32 %v17860_v8, %v15858_v42 }
 0x900   :  { %v8796_v46 = vpack.c.b16 %v8762_v17, %v8761_v49  ;;  %v8666_v58 = vshll.u32 %v7922_v21, 16  ;;  %v11886_v12 = vrot.slane %v9183_v63, 9 }
 0x901   :  { %v8663_v10 = vor.u32 %v8662_v35, %v8658_v31 }
 0x902   :  { %v9030_v5 = vpop.f32.mrf.mxu1 }
 0x903   :  { %v9129_v23 = vadd.f32 %v9030_v5, %v7807_v16  ;;  %v9573_v16 = vunpack.c.l.b16 %v9493_v15  ;;  %v7924_v5 = vld [vmem:[#allocation2 + $0x234] sm:$0xf]  ;;  %v8664_v49 = vrot.slane %v8663_v10, 4  ;;  %v16447_v17 = vpop.f32.mrf.mxu0  ;;  %v7809_v15 = vadd.f32 %v16380_v57, %v7222_v22 }
 0x904   :  { %v9499_v33 = vrot.slane %v7924_v5, 5  ;;  %v8680_v35 = vshll.u32 %v7924_v5, 16 }
 0x905   :  { %v16431_v32 = vadd.f32 %v9840_v2, %v9129_v23  ;;  %v7925_v23 = vld [vmem:[#allocation2 + $0x238] sm:$0x1]  ;;  %v9607_v53 = vpack.c.b16 %v9574_v6, %v9573_v16  ;;  %v8668_v6 = vrot.slane %v8666_v58, 5 }
 0x906   :  { %v9845_v2 = vpop.f32.mrf.mxu2  ;;  %v9501_v14 = vrot.slane %v9499_v33, 4  ;;  %v9502_v13 = vrot.slane %v7925_v23, 5  ;;  %v9500_v42 = vsel %vm14386_vm3, %v11886_v12, %v9499_v33  ;;  %v8682_v47 = vrot.slane %v8680_v35, 5 }
 0x907   :  { %17859 = vst [vmem:[#allocation75_spill] sm:$0xff] %v16431_v32  ;;  %v8653_v32 = vor.u32 %v8652_v55, %v8649_v11  ;;  %v8669_v57 = vsel %vm14293_vm14, %v8664_v49, %v8668_v6  ;;  %v9575_v63 = vunpack.c.l.b16 %v9500_v42  ;;  %v17864_v42 = vld [vmem:[#allocation83_spill] sm:$0xff] }
 0x908   :  { %v9503_v21 = vsel %vm14386_vm3, %v9501_v14, %v9502_v13  ;;  %v8764_v58 = vunpack.c.l.b16 %v8669_v57 }
 0x909   :  { %v8654_v40 = vrot.slane %v8653_v32, 4 }
 0x90a   :  { %v9033_v27 = vpop.f32.mrf.mxu1 }
 0x90b   :  { %v9130_v61 = vadd.f32 %v9033_v27, %v7808_v28  ;;  %11933 = vmatmul.msk.bf16.gmra.mxu2 %vm395_vm1, %v9607_v53  ;;  %v8684_v28 = vshrl.u32 %v7924_v5, 16  ;;  %v9576_v53 = vunpack.c.l.b16 %v9503_v21  ;;  %v17863_v5 = vld [vmem:[#allocation22_spill] sm:$0xff]  ;;  %v16462_v49 = vpop.f32.mrf.mxu0 }
 0x90c   :  { %v7810_v12 = vadd.f32 %v16394_v4, %v17863_v5  ;;  %v17865_v21 = vld [vmem:[#allocation34_spill] sm:$0xff] }
 0x90d   :  { %v16443_v41 = vadd.f32 %v9843_v20, %v9130_v61  ;;  %11852 = vmatmul.msk.bf16.gmra.mxu1 %vm395_vm1, %v8796_v46  ;;  %v7923_v20 = vld [vmem:[#allocation2 + $0x230] sm:$0xf]  ;;  %v8659_v61 = vsel %vm14293_vm14, %v8654_v40, %v8658_v31  ;;  %v8686_v8 = vrot.slane %v8684_v28, 4 }
 0x90e   :  { %v9848_v11 = vpop.f32.mrf.mxu2  ;;  %v8671_v16 = vshrl.u32 %v7923_v20, 16  ;;  %v8674_v32 = vshll.u32 %v7923_v20, 16  ;;  %v8763_v22 = vunpack.c.l.b16 %v8659_v61  ;;  %v7224_v20 = vadd.f32 %v17865_v21, %v17864_v42 }
 0x90f   :  { %17861 = vst [vmem:[#allocation70_spill] sm:$0xff] %v16443_v41  ;;  %v8687_v40 = vor.u32 %v8686_v8, %v8682_v47  ;;  %v17868_v8 = vld [vmem:[#allocation84_spill] sm:$0xff]  ;;  %v10095_v42 = vmul.f32 %v16037_v9, %v16037_v9  ;;  %v10097_v21 = vmul.f32 %v16055_v36, %v16055_v36 }
 0x910   :  { %v8673_v33 = vrot.slane %v8671_v16, 4  ;;  %v8676_v10 = vrot.slane %v8674_v32, 5  ;;  %v8797_v6 = vpack.c.b16 %v8764_v58, %v8763_v22  ;;  %v7811_v16 = vadd.f32 %v16404_v39, %v7224_v20 }
 0x911   :  { %v8688_v28 = vrot.slane %v8687_v40, 4  ;;  %v7812_v22 = vadd.f32 %v16418_v60, %v17868_v8  ;;  %v10096_v60 = vmul.f32 %v16047_v62, %v16047_v62  ;;  %v9963_v20 = vsel %vm395_vm1, %v16047_v62, 0.0 }
 0x912   :  { %v9035_v55 = vpop.f32.mrf.mxu1  ;;  %v8677_v31 = vor.u32 %v8676_v10, %v8673_v33  ;;  %v10099_v8 = vmul.f32 %v16076_v0, %v16076_v0 }
 0x913   :  { %v9131_v27 = vadd.f32 %v9035_v55, %v7809_v15  ;;  %v9608_v15 = vpack.c.b16 %v9576_v53, %v9575_v63  ;;  %v8690_v55 = vshll.u32 %v7925_v23, 16 }
 0x914   :  { %v8678_v4 = vrot.slane %v8677_v31, 4 }
 0x915   :  { %v16458_v46 = vadd.f32 %v9845_v2, %v9131_v27  ;;  %v8692_v27 = vrot.slane %v8690_v55, 5 }
 0x916   :  { %v9850_v14 = vpop.f32.mrf.mxu2  ;;  %v8683_v61 = vsel %vm14293_vm14, %v8678_v4, %v8682_v47 }
 0x917   :  { %17862 = vst [vmem:[#allocation76_spill] sm:$0xff] %v16458_v46  ;;  %v8693_v57 = vsel %vm14293_vm14, %v8688_v28, %v8692_v27  ;;  %v8765_v33 = vunpack.c.l.b16 %v8683_v61  ;;  %v10098_v28 = vmul.f32 %v16068_v3, %v16068_v3  ;;  %v7814_v27 = vadd.f32 %v16447_v17, %v15906_v54  ;;  %v17872_v17 = vld [vmem:[#allocation87_spill] sm:$0xff] }
 0x918   :  { %v8766_v10 = vunpack.c.l.b16 %v8693_v57  ;;  %v9965_v61 = vsel %vm395_vm1, %v16055_v36, 0.0 }
 0x91a   :  { %v9038_v13 = vpop.f32.mrf.mxu1  ;;  %v8798_v58 = vpack.c.b16 %v8766_v10, %v8765_v33  ;;  %v10162_v10 = vsel %vm395_vm1, %v10097_v21, 0.0 }
 0x91b   :  { %v9132_v2 = vadd.f32 %v9038_v13, %v7810_v12  ;;  %11934 = vmatmul.msk.bf16.gmra.mxu2 %vm395_vm1, %v9608_v15  ;;  %v17869_v13 = vld [vmem:[#allocation86_spill] sm:$0xff]  ;;  %v17870_v15 = vld [vmem:[#allocation85_spill] sm:$0xff] }
 0x91c   :  { %v7226_v47 = vadd.f32 %v17870_v15, %v17869_v13 }
 0x91d   :  { %v16466_v35 = vadd.f32 %v9848_v11, %v9132_v2  ;;  %11853 = vmatmul.msk.bf16.gmra.mxu1 %vm395_vm1, %v8797_v6  ;;  %v16475_v11 = vpop.f32.mrf.mxu0 }
 0x91e   :  { %v9853_v32 = vpop.f32.mrf.mxu2 }
 0x91f   :  { %17866 = vst [vmem:[#allocation40_spill] sm:$0xff] %v16466_v35 }
 0x922   :  { %v9040_v23 = vpop.f32.mrf.mxu1 }
 0x923   :  { %v9133_v63 = vadd.f32 %v9040_v23, %v7811_v16  ;;  %v10159_v23 = vsel %vm395_vm1, %v10095_v42, 0.0 }
 0x925   :  { %v16477_v53 = vadd.f32 %v9850_v14, %v9133_v63  ;;  %v16486_v18 = vpop.f32.mrf.mxu0  ;;  %v7813_v14 = vadd.f32 %v16435_v7, %v7226_v47  ;;  %v10160_v7 = vsel %vm395_vm1, %v10096_v60, 0.0  ;;  %v9969_v47 = vsel %vm395_vm1, %v16076_v0, 0.0 }
 0x926   :  { %v9855_v39 = vpop.f32.mrf.mxu2  ;;  %v9971_v60 = vsel %vm395_vm1, %v16086_v1, 0.0 }
 0x927   :  { %17867 = vst [vmem:[#allocation29_spill] sm:$0xff] %v16477_v53 }
 0x92a   :  { %v9043_v5 = vpop.f32.mrf.mxu1 }
 0x92b   :  { %v9134_v12 = vadd.f32 %v9043_v5, %v7812_v22  ;;  %v7228_v22 = vadd.f32 %v17872_v17, %v15915_v34  ;;  %v10101_v34 = vmul.f32 %v16094_v19, %v16094_v19  ;;  %v10104_v17 = vmul.f32 %v16122_v44, %v16122_v44 }
 0x92d   :  { %v16483_v31 = vadd.f32 %v9853_v32, %v9134_v12  ;;  %11854 = vmatmul.msk.bf16.gmra.mxu1 %vm395_vm1, %v8798_v58  ;;  %v7736_v4 = vpop.f32.mrf.mxu0  ;;  %v9962_v32 = vsel %vm395_vm1, %v16037_v9, 0.0  ;;  %v10161_v58 = vadd.f32 %v10160_v7, %v10159_v23  ;;  %v10164_v12 = vsel %vm395_vm1, %v10098_v28, 0.0  ;;  %v16535_v7 = vpop.f32.mrf.mxu3 }
 0x92e   :  { %v9858_v40 = vpop.f32.mrf.mxu2  ;;  %v16510_v63 = vadd.f32 %v7736_v4, %v15942_v25  ;;  %v9964_v33 = vadd.f32 %v9963_v20, %v9962_v32  ;;  %v10100_v25 = vmul.f32 %v16086_v1, %v16086_v1  ;;  %v7815_v20 = vadd.f32 %v16462_v49, %v7228_v22 }
 0x92f   :  { %17871 = vst [vmem:[#allocation20_spill] sm:$0xff] %v16483_v31  ;;  %v10163_v15 = vadd.f32 %v10162_v10, %v10161_v58 }
 0x930   :  { %v9966_v5 = vadd.f32 %v9965_v61, %v9964_v33  ;;  %v10168_v21 = vsel %vm395_vm1, %v10100_v25, 0.0  ;;  %v10170_v61 = vsel %vm395_vm1, %v10101_v34, 0.0  ;;  %v10105_v25 = vmul.f32 %v16130_v29, %v16130_v29 }
 0x931   :  { %v7816_v34 = vadd.f32 %v16475_v11, %v15924_v37  ;;  %v9983_v11 = vsel %vm395_vm1, %v16144_v51, 0.0 }
 0x932   :  { %v9045_v55 = vpop.f32.mrf.mxu1 }
 0x933   :  { %v9135_v2 = vadd.f32 %v9045_v55, %v7813_v14  ;;  %v10166_v55 = vsel %vm395_vm1, %v10099_v8, 0.0  ;;  %v9975_v8 = vsel %vm395_vm1, %v16104_v52, 0.0 }
 0x935   :  { %v16491_v6 = vadd.f32 %v9855_v39, %v9135_v2  ;;  %v9967_v39 = vsel %vm395_vm1, %v16068_v3, 0.0  ;;  %v10165_v2 = vadd.f32 %v10164_v12, %v10163_v15 }
 0x936   :  { %v9860_v16 = vpop.f32.mrf.mxu2  ;;  %v9968_v14 = vadd.f32 %v9967_v39, %v9966_v5  ;;  %v9977_v39 = vsel %vm395_vm1, %v16112_v59, 0.0 }
 0x937   :  { %v10167_v28 = vadd.f32 %v10166_v55, %v10165_v2  ;;  %v10176_v55 = vsel %vm395_vm1, %v10104_v17, 0.0  ;;  %v9985_v17 = vsel %vm395_vm1, %v16148_v50, 0.0 }
 0x938   :  { %v9970_v42 = vadd.f32 %v9969_v47, %v9968_v14  ;;  %v9979_v47 = vsel %vm395_vm1, %v16122_v44, 0.0 }
 0x939   :  { %v10169_v10 = vadd.f32 %v10168_v21, %v10167_v28  ;;  %v10178_v28 = vsel %vm395_vm1, %v10105_v25, 0.0 }
 0x93a   :  { %v9048_v57 = vpop.f32.mrf.mxu1  ;;  %v9972_v23 = vadd.f32 %v9971_v60, %v9970_v42  ;;  %v9981_v42 = vsel %vm395_vm1, %v16130_v29, 0.0  ;;  %v17894_v29 = vld [vmem:[#allocation28_spill] sm:$0xff] }
 0x93b   :  { %v9136_v54 = vadd.f32 %v9048_v57, %v7814_v27  ;;  %v9973_v27 = vsel %vm395_vm1, %v16094_v19, 0.0  ;;  %v10103_v57 = vmul.f32 %v16112_v59, %v16112_v59  ;;  %v10171_v58 = vadd.f32 %v10170_v61, %v10169_v10 }
 0x93c   :  { %v9974_v49 = vadd.f32 %v9973_v27, %v9972_v23  ;;  %v10107_v27 = vmul.f32 %v16148_v50, %v16148_v50  ;;  %v17873_v23 = vld [vmem:[#allocation88_spill] sm:$0xff]  ;;  %v10134_v44 = vmul.f32 %v17894_v29, %v17894_v29 }
 0x93d   :  { %v16522_v13 = vadd.f32 %v9858_v40, %v9136_v54  ;;  %v10102_v40 = vmul.f32 %v16104_v52, %v16104_v52  ;;  %v10174_v12 = vsel %vm395_vm1, %v10103_v57, 0.0  ;;  %v7230_v61 = vadd.f32 %v17873_v23, %v15933_v48  ;;  %v16570_v57 = vpop.f32.mrf.mxu3  ;;  %v17891_v50 = vld [vmem:[#allocation64_spill] sm:$0xff] }
 0x93e   :  { %v9863_v4 = vpop.f32.mrf.mxu2  ;;  %v9976_v5 = vadd.f32 %v9975_v8, %v9974_v49  ;;  %v10108_v8 = vmul.f32 %v16158_v24, %v16158_v24  ;;  %v10182_v48 = vsel %vm395_vm1, %v10107_v27, 0.0 }
 0x93f   :  { %v10172_v54 = vsel %vm395_vm1, %v10102_v40, 0.0  ;;  %v16563_v40 = vpop.f32.mrf.mxu0 }
 0x940   :  { %v10173_v15 = vadd.f32 %v10172_v54, %v10171_v58  ;;  %v9978_v14 = vadd.f32 %v9977_v39, %v9976_v5  ;;  %v10109_v39 = vmul.f32 %v16166_v30, %v16166_v30 }
 0x942   :  { %v9050_v32 = vpop.f32.mrf.mxu1  ;;  %v10175_v60 = vadd.f32 %v10174_v12, %v10173_v15  ;;  %v9987_v12 = vsel %vm395_vm1, %v16158_v24, 0.0  ;;  %v10184_v15 = vsel %vm395_vm1, %v10108_v8, 0.0 }
 0x943   :  { %v9137_v33 = vadd.f32 %v9050_v32, %v7815_v20  ;;  %v9980_v20 = vadd.f32 %v9979_v47, %v9978_v14  ;;  %v7817_v47 = vadd.f32 %v16486_v18, %v7230_v61  ;;  %v9991_v18 = vsel %vm395_vm1, %v16176_v38, 0.0 }
 0x944   :  { %v10177_v37 = vadd.f32 %v10176_v55, %v10175_v60  ;;  %v12123_v60 = vld [vmem:[%s17274_s7] sm:$0xff] }
 0x945   :  { %v16547_v22 = vadd.f32 %v9860_v16, %v9137_v33  ;;  %v10106_v16 = vmul.f32 %v16144_v51, %v16144_v51  ;;  %v9982_v33 = vadd.f32 %v9981_v42, %v9980_v20  ;;  %v10111_v20 = vmul.f32 %v16184_v45, %v16184_v45  ;;  %10681 = vmatpush.bf16.msra.mxu3 %v12123_v60 }
 0x946   :  { %v9865_v2 = vpop.f32.mrf.mxu2  ;;  %v10179_v54 = vadd.f32 %v10178_v28, %v10177_v37  ;;  %v17874_v37 = vld [vmem:[#allocation51_spill] sm:$0xff]  ;;  %v10129_v51 = vmul.f32 %v17891_v50, %v17891_v50 }
 0x947   :  { %v10180_v10 = vsel %vm395_vm1, %v10106_v16, 0.0  ;;  %v9984_v58 = vadd.f32 %v9983_v11, %v9982_v33  ;;  %v9989_v16 = vsel %vm395_vm1, %v16166_v30, 0.0  ;;  %v10112_v11 = vmul.f32 %v17874_v37, %v17874_v37 }
 0x948   :  { %v10181_v5 = vadd.f32 %v10180_v10, %v10179_v54  ;;  %v16607_v10 = vpop.f32.mrf.mxu3  ;;  %v9993_v54 = vsel %vm395_vm1, %v16184_v45, 0.0  ;;  %v17886_v45 = vld [vmem:[#allocation39_spill] sm:$0xff]  ;;  %v10144_v52 = vmul.f32 %v16547_v22, %v16547_v22 }
 0x949   :  { %v9986_v25 = vadd.f32 %v9985_v17, %v9984_v58  ;;  %v10190_v58 = vsel %vm395_vm1, %v10111_v20, 0.0 }
 0x94a   :  { %v9053_v21 = vpop.f32.mrf.mxu1  ;;  %v10183_v55 = vadd.f32 %v10182_v48, %v10181_v5  ;;  %v17875_v48 = vld [vmem:[#allocation52_spill] sm:$0xff] }
 0x94b   :  { %v9138_v32 = vadd.f32 %v9053_v21, %v7816_v34  ;;  %v9988_v42 = vadd.f32 %v9987_v12, %v9986_v25  ;;  %v10186_v21 = vsel %vm395_vm1, %v10109_v39, 0.0  ;;  %v10113_v39 = vmul.f32 %v17875_v48, %v17875_v48 }
 0x94c   :  { %v10185_v27 = vadd.f32 %v10184_v15, %v10183_v55  ;;  %v9995_v12 = vsel %vm395_vm1, %v17874_v37, 0.0  ;;  %v17876_v15 = vld [vmem:[#allocation53_spill] sm:$0xff] }
 0x94d   :  { %v16577_v49 = vadd.f32 %v9863_v4, %v9138_v32  ;;  %v10110_v4 = vmul.f32 %v16176_v38, %v16176_v38  ;;  %v16600_v32 = vpop.f32.mrf.mxu0  ;;  %v9990_v23 = vadd.f32 %v9989_v16, %v9988_v42  ;;  %v9997_v16 = vsel %vm395_vm1, %v17875_v48, 0.0 }
 0x94e   :  { %v9868_v14 = vpop.f32.mrf.mxu2  ;;  %v10187_v8 = vadd.f32 %v10186_v21, %v10185_v27  ;;  %v10194_v42 = vsel %vm395_vm1, %v10113_v39, 0.0  ;;  %v17877_v21 = vld [vmem:[#allocation54_spill] sm:$0xff] }
 0x94f   :  { %v10188_v61 = vsel %vm395_vm1, %v10110_v4, 0.0  ;;  %v9992_v17 = vadd.f32 %v9991_v18, %v9990_v23  ;;  %v10114_v4 = vmul.f32 %v17876_v15, %v17876_v15  ;;  %v10115_v20 = vmul.f32 %v17877_v21, %v17877_v21 }
 0x950   :  { %v10189_v5 = vadd.f32 %v10188_v61, %v10187_v8  ;;  %v9999_v18 = vsel %vm395_vm1, %v17876_v15, 0.0 }
 0x951   :  { %v9994_v25 = vadd.f32 %v9993_v54, %v9992_v17  ;;  %v10196_v61 = vsel %vm395_vm1, %v10114_v4, 0.0 }
 0x952   :  { %v9055_v34 = vpop.f32.mrf.mxu1  ;;  %v10191_v55 = vadd.f32 %v10190_v58, %v10189_v5  ;;  %v10001_v58 = vsel %vm395_vm1, %v17877_v21, 0.0  ;;  %v17882_v21 = vld [vmem:[#allocation67_spill] sm:$0xff] }
 0x953   :  { %v9139_v28 = vadd.f32 %v9055_v34, %v7817_v47  ;;  %v9996_v60 = vadd.f32 %v9995_v12, %v9994_v25  ;;  %v17879_v12 = vld [vmem:[#allocation56_spill] sm:$0xff] }
 0x954   :  { %v10117_v25 = vmul.f32 %v17879_v12, %v17879_v12 }
 0x955   :  { %v16605_v33 = vadd.f32 %v9865_v2, %v9139_v28  ;;  %v10192_v2 = vsel %vm395_vm1, %v10112_v11, 0.0  ;;  %v9998_v23 = vadd.f32 %v9997_v16, %v9996_v60  ;;  %v17878_v11 = vld [vmem:[#allocation55_spill] sm:$0xff]  ;;  %v16636_v39 = vpop.f32.mrf.mxu0 }
 0x956   :  { %v16619_v47 = vpop.f32.mrf.mxu2  ;;  %v10193_v27 = vadd.f32 %v10192_v2, %v10191_v55  ;;  %v10116_v8 = vmul.f32 %v17878_v11, %v17878_v11  ;;  %v16641_v2 = vpop.f32.mrf.mxu3  ;;  %v10003_v55 = vsel %vm395_vm1, %v17878_v11, 0.0 }
 0x957   :  { %v10000_v5 = vadd.f32 %v9999_v18, %v9998_v23  ;;  %v10202_v23 = vsel %vm395_vm1, %v10117_v25, 0.0 }
 0x958   :  { %v10195_v17 = vadd.f32 %v10194_v42, %v10193_v27  ;;  %v10200_v16 = vsel %vm395_vm1, %v10116_v8, 0.0 }
 0x95a   :  { %v9058_v34 = vpop.f32.mrf.mxu1  ;;  %v10197_v4 = vadd.f32 %v10196_v61, %v10195_v17  ;;  %v17881_v61 = vld [vmem:[#allocation59_spill] sm:$0xff] }
 0x95b   :  { %v9140_v28 = vadd.f32 %v9058_v34, %v16510_v63  ;;  %v10198_v63 = vsel %vm395_vm1, %v10115_v20, 0.0  ;;  %v17880_v34 = vld [vmem:[#allocation58_spill] sm:$0xff]  ;;  %v10005_v20 = vsel %vm395_vm1, %v17879_v12, 0.0  ;;  %v10119_v17 = vmul.f32 %v17881_v61, %v17881_v61 }
 0x95c   :  { %v10118_v60 = vmul.f32 %v17880_v34, %v17880_v34  ;;  %v10007_v8 = vsel %vm395_vm1, %v17880_v34, 0.0  ;;  %v10009_v12 = vsel %vm395_vm1, %v17881_v61, 0.0  ;;  %v17884_v34 = vld [vmem:[#allocation69_spill] sm:$0xff] }
 0x95d   :  { %v16632_v54 = vadd.f32 %v9868_v14, %v9140_v28  ;;  %v10002_v14 = vadd.f32 %v10001_v58, %v10000_v5  ;;  %v10199_v28 = vadd.f32 %v10198_v63, %v10197_v4  ;;  %v10120_v63 = vmul.f32 %v17882_v21, %v17882_v21  ;;  %v17885_v61 = vld [vmem:[#allocation61_spill] sm:$0xff] }
 0x95e   :  { %v16648_v42 = vpop.f32.mrf.mxu2  ;;  %v10204_v11 = vsel %vm395_vm1, %v10118_v60, 0.0  ;;  %v10206_v25 = vsel %vm395_vm1, %v10119_v17, 0.0 }
 0x95f   :  { %v10004_v18 = vadd.f32 %v10003_v55, %v10002_v14  ;;  %v10201_v58 = vadd.f32 %v10200_v16, %v10199_v28  ;;  %v17883_v14 = vld [vmem:[#allocation60_spill] sm:$0xff]  ;;  %v10011_v28 = vsel %vm395_vm1, %v17882_v21, 0.0 }
 0x960   :  { %v10121_v15 = vmul.f32 %v17883_v14, %v17883_v14 }
 0x961   :  { %v10006_v5 = vadd.f32 %v10005_v20, %v10004_v18  ;;  %v10203_v4 = vadd.f32 %v10202_v23, %v10201_v58  ;;  %v16669_v20 = vpop.f32.mrf.mxu0  ;;  %v10208_v18 = vsel %vm395_vm1, %v10120_v63, 0.0  ;;  %v10122_v23 = vmul.f32 %v17884_v34, %v17884_v34 }
 0x962   :  { %v16652_v27 = vpop.f32.mrf.mxu1  ;;  %v10210_v21 = vsel %vm395_vm1, %v10121_v15, 0.0 }
 0x963   :  { %v10008_v55 = vadd.f32 %v10007_v8, %v10006_v5  ;;  %v10205_v16 = vadd.f32 %v10204_v11, %v10203_v4  ;;  %v16676_v8 = vpop.f32.mrf.mxu3  ;;  %v10013_v5 = vsel %vm395_vm1, %v17883_v14, 0.0  ;;  %v10212_v37 = vsel %vm395_vm1, %v10122_v23, 0.0 }
 0x964   :  { %v10017_v14 = vsel %vm395_vm1, %v17885_v61, 0.0 }
 0x965   :  { %v10010_v60 = vadd.f32 %v10009_v12, %v10008_v55  ;;  %v10207_v17 = vadd.f32 %v10206_v25, %v10205_v16  ;;  %v10123_v12 = vmul.f32 %v17885_v61, %v17885_v61  ;;  %v10015_v55 = vsel %vm395_vm1, %v17884_v34, 0.0 }
 0x966   :  { %v16674_v58 = vpop.f32.mrf.mxu2  ;;  %v10124_v25 = vmul.f32 %v17886_v45, %v17886_v45 }
 0x967   :  { %v10012_v4 = vadd.f32 %v10011_v28, %v10010_v60  ;;  %v10209_v63 = vadd.f32 %v10208_v18, %v10207_v17  ;;  %v10214_v15 = vsel %vm395_vm1, %v10123_v12, 0.0  ;;  %v17887_v60 = vld [vmem:[#allocation62_spill] sm:$0xff]  ;;  %v10019_v17 = vsel %vm395_vm1, %v17886_v45, 0.0  ;;  %v17889_v45 = vld [vmem:[#allocation63_spill] sm:$0xff] }
 0x968   :  { %v10125_v38 = vmul.f32 %v17887_v60, %v17887_v60  ;;  %v10216_v23 = vsel %vm395_vm1, %v10124_v25, 0.0 }
 0x969   :  { %v10014_v48 = vadd.f32 %v10013_v5, %v10012_v4  ;;  %v10211_v16 = vadd.f32 %v10210_v21, %v10209_v63  ;;  %v17888_v4 = vld [vmem:[#allocation71_spill] sm:$0xff] }
 0x96a   :  { %v16680_v11 = vpop.f32.mrf.mxu1  ;;  %v10126_v34 = vmul.f32 %v17888_v4, %v17888_v4  ;;  %v10023_v61 = vsel %vm395_vm1, %v17888_v4, 0.0 }
 0x96b   :  { %v10016_v28 = vadd.f32 %v10015_v55, %v10014_v48  ;;  %v10213_v18 = vadd.f32 %v10212_v37, %v10211_v16  ;;  %v10021_v48 = vsel %vm395_vm1, %v17887_v60, 0.0  ;;  %v16706_v55 = vpop.f32.mrf.mxu0  ;;  %v10218_v16 = vsel %vm395_vm1, %v10125_v38, 0.0  ;;  %v16711_v25 = vpop.f32.mrf.mxu3  ;;  %v17890_v60 = vld [vmem:[#allocation72_spill] sm:$0xff] }
 0x96c   :  { %v10128_v30 = vmul.f32 %v17890_v60, %v17890_v60 }
 0x96d   :  { %v10018_v5 = vadd.f32 %v10017_v14, %v10016_v28  ;;  %v10215_v63 = vadd.f32 %v10214_v15, %v10213_v18  ;;  %v10127_v14 = vmul.f32 %v17889_v45, %v17889_v45  ;;  %v10220_v18 = vsel %vm395_vm1, %v10126_v34, 0.0 }
 0x96e   :  { %v16700_v21 = vpop.f32.mrf.mxu2  ;;  %v10224_v34 = vsel %vm395_vm1, %v10128_v30, 0.0 }
 0x96f   :  { %v10020_v37 = vadd.f32 %v10019_v17, %v10018_v5  ;;  %v10217_v28 = vadd.f32 %v10216_v23, %v10215_v63  ;;  %v10025_v17 = vsel %vm395_vm1, %v17889_v45, 0.0  ;;  %v10222_v5 = vsel %vm395_vm1, %v10127_v14, 0.0 }
 0x970   :  { %v10027_v63 = vsel %vm395_vm1, %v17890_v60, 0.0 }
 0x971   :  { %v10022_v15 = vadd.f32 %v10021_v48, %v10020_v37  ;;  %v10219_v24 = vadd.f32 %v10218_v16, %v10217_v28  ;;  %v17892_v37 = vld [vmem:[#allocation36_spill] sm:$0xff] }
 0x972   :  { %v16704_v12 = vpop.f32.mrf.mxu1  ;;  %v10130_v4 = vmul.f32 %v17892_v37, %v17892_v37  ;;  %v10031_v30 = vsel %vm395_vm1, %v17892_v37, 0.0 }
 0x973   :  { %v10024_v38 = vadd.f32 %v10023_v61, %v10022_v15  ;;  %v10221_v23 = vadd.f32 %v10220_v18, %v10219_v24  ;;  %v10029_v61 = vsel %vm395_vm1, %v17891_v50, 0.0  ;;  %v10226_v24 = vsel %vm395_vm1, %v10129_v51, 0.0  ;;  %v16744_v50 = vpop.f32.mrf.mxu3 }
 0x974   :  { %v10131_v18 = vmul.f32 %v16376_v43, %v16376_v43  ;;  %v10033_v51 = vsel %vm395_vm1, %v16376_v43, 0.0  ;;  %v10041_v43 = vsel %vm395_vm1, %v16422_v56, 0.0 }
 0x975   :  { %v10026_v48 = vadd.f32 %v10025_v17, %v10024_v38  ;;  %v10223_v28 = vadd.f32 %v10222_v5, %v10221_v23  ;;  %v16739_v38 = vpop.f32.mrf.mxu0  ;;  %v10228_v5 = vsel %vm395_vm1, %v10130_v4, 0.0  ;;  %v10132_v23 = vmul.f32 %v16388_v26, %v16388_v26 }
 0x976   :  { %v16728_v16 = vpop.f32.mrf.mxu2 }
 0x977   :  { %v10028_v15 = vadd.f32 %v10027_v63, %v10026_v48  ;;  %v10225_v17 = vadd.f32 %v10224_v34, %v10223_v28  ;;  %v10230_v34 = vsel %vm395_vm1, %v10131_v18, 0.0  ;;  %v17893_v28 = vld [vmem:[#allocation66_spill] sm:$0xff] }
 0x978   :  { %v10133_v37 = vmul.f32 %v17893_v28, %v17893_v28 }
 0x979   :  { %v10030_v60 = vadd.f32 %v10029_v61, %v10028_v15  ;;  %v10227_v63 = vadd.f32 %v10226_v24, %v10225_v17  ;;  %v10035_v61 = vsel %vm395_vm1, %v16388_v26, 0.0  ;;  %v10232_v15 = vsel %vm395_vm1, %v10132_v23, 0.0 }
 0x97a   :  { %v16732_v14 = vpop.f32.mrf.mxu1  ;;  %v10037_v17 = vsel %vm395_vm1, %v17893_v28, 0.0  ;;  %v10039_v23 = vsel %vm395_vm1, %v17894_v29, 0.0 }
 0x97b   :  { %v10032_v48 = vadd.f32 %v10031_v30, %v10030_v60  ;;  %v10229_v45 = vadd.f32 %v10228_v5, %v10227_v63  ;;  %v10234_v5 = vsel %vm395_vm1, %v10133_v37, 0.0  ;;  %v10135_v63 = vmul.f32 %v16422_v56, %v16422_v56 }
 0x97d   :  { %v10034_v4 = vadd.f32 %v10033_v51, %v10032_v48  ;;  %v10231_v24 = vadd.f32 %v10230_v34, %v10229_v45  ;;  %v10236_v45 = vsel %vm395_vm1, %v10134_v44, 0.0  ;;  %v17895_v34 = vld [vmem:[#allocation75_spill] sm:$0xff] }
 0x97e   :  { %v16760_v18 = vpop.f32.mrf.mxu2  ;;  %v10136_v28 = vmul.f32 %v17895_v34, %v17895_v34  ;;  %v10043_v44 = vsel %vm395_vm1, %v17895_v34, 0.0 }
 0x97f   :  { %v10036_v30 = vadd.f32 %v10035_v61, %v10034_v4  ;;  %v10233_v51 = vadd.f32 %v10232_v15, %v10231_v24  ;;  %v16772_v61 = vpop.f32.mrf.mxu0  ;;  %v10238_v4 = vsel %vm395_vm1, %v10135_v63, 0.0  ;;  %v10137_v15 = vmul.f32 %v16443_v41, %v16443_v41  ;;  %v7169_v24 = vpop.f32.mrf.mxu3 }
 0x981   :  { %v10038_v48 = vadd.f32 %v10037_v17, %v10036_v30  ;;  %v10235_v26 = vadd.f32 %v10234_v5, %v10233_v51  ;;  %v10240_v30 = vsel %vm395_vm1, %v10136_v28, 0.0  ;;  %v10138_v5 = vmul.f32 %v16458_v46, %v16458_v46 }
 0x982   :  { %v16758_v60 = vpop.f32.mrf.mxu1  ;;  %v10242_v56 = vsel %vm395_vm1, %v10137_v15, 0.0 }
 0x983   :  { %v10040_v37 = vadd.f32 %v10039_v23, %v10038_v48  ;;  %v10237_v29 = vadd.f32 %v10236_v45, %v10235_v26  ;;  %v10045_v23 = vsel %vm395_vm1, %v16443_v41, 0.0  ;;  %v10139_v26 = vmul.f32 %v16466_v35, %v16466_v35 }
 0x985   :  { %v10042_v17 = vadd.f32 %v10041_v43, %v10040_v37  ;;  %v10239_v51 = vadd.f32 %v10238_v4, %v10237_v29  ;;  %v10047_v43 = vsel %vm395_vm1, %v16458_v46, 0.0  ;;  %v10244_v29 = vsel %vm395_vm1, %v10138_v5, 0.0 }
 0x986   :  { %v16791_v28 = vpop.f32.mrf.mxu2  ;;  %v10140_v4 = vmul.f32 %v16477_v53, %v16477_v53  ;;  %v10051_v5 = vsel %vm395_vm1, %v16477_v53, 0.0  ;;  %v17899_v53 = vld [vmem:[#allocation92_spill] sm:$0xff] }
 0x987   :  { %v10044_v63 = vadd.f32 %v10043_v44, %v10042_v17  ;;  %v10241_v45 = vadd.f32 %v10240_v30, %v10239_v51  ;;  %v10049_v44 = vsel %vm395_vm1, %v16466_v35, 0.0  ;;  %v10246_v17 = vsel %vm395_vm1, %v10139_v26, 0.0  ;;  %v17896_v51 = vld [vmem:[#allocation89_spill] sm:$0xff] }
 0x988   :  { %v10141_v30 = vmul.f32 %v16483_v31, %v16483_v31  ;;  %v7232_v46 = vadd.f32 %v16535_v7, %v17896_v51  ;;  %v10053_v7 = vsel %vm395_vm1, %v16483_v31, 0.0  ;;  %v7235_v59 = vadd.f32 %v16641_v2, %v17899_v53  ;;  %v17902_v2 = vld [vmem:[#allocation45_spill] sm:$0xff] }
 0x989   :  { %v10046_v37 = vadd.f32 %v10045_v23, %v10044_v63  ;;  %v10243_v41 = vadd.f32 %v10242_v56, %v10241_v45  ;;  %v16805_v23 = vpop.f32.mrf.mxu0  ;;  %v10248_v56 = vsel %vm395_vm1, %v10140_v4, 0.0  ;;  %v10142_v45 = vmul.f32 %v16491_v6, %v16491_v6  ;;  %v17898_v4 = vld [vmem:[#allocation91_spill] sm:$0xff] }
 0x98a   :  { %v16784_v48 = vpop.f32.mrf.mxu1  ;;  %v10250_v51 = vsel %vm395_vm1, %v10141_v30, 0.0 }
 0x98b   :  { %v10048_v15 = vadd.f32 %v10047_v43, %v10046_v37  ;;  %v10245_v34 = vadd.f32 %v10244_v29, %v10243_v41  ;;  %v17897_v43 = vld [vmem:[#allocation90_spill] sm:$0xff]  ;;  %v7171_v37 = vpop.f32.mrf.mxu3  ;;  %v10252_v30 = vsel %vm395_vm1, %v10142_v45, 0.0 }
 0x98c   :  { %v7233_v26 = vadd.f32 %v16570_v57, %v17897_v43 }
 0x98d   :  { %v10050_v63 = vadd.f32 %v10049_v44, %v10048_v15  ;;  %v10247_v35 = vadd.f32 %v10246_v17, %v10245_v34  ;;  %v10143_v44 = vmul.f32 %v16522_v13, %v16522_v13  ;;  %v7234_v15 = vadd.f32 %v16607_v10, %v17898_v4  ;;  %v17900_v17 = vld [vmem:[#allocation25_spill] sm:$0xff] }
 0x98e   :  { %v7819_v34 = vadd.f32 %v16563_v40, %v7232_v46  ;;  %v7236_v43 = vadd.f32 %v16676_v8, %v17900_v17  ;;  %v7820_v53 = vadd.f32 %v16600_v32, %v7233_v26  ;;  %v17901_v46 = vld [vmem:[#allocation43_spill] sm:$0xff]  ;;  %v7238_v8 = vadd.f32 %v16744_v50, %v17902_v2  ;;  %v17904_v32 = vld [vmem:[#allocation49_spill] sm:$0xff] }
 0x98f   :  { %v10052_v29 = vadd.f32 %v10051_v5, %v10050_v63  ;;  %v10249_v57 = vadd.f32 %v10248_v56, %v10247_v35  ;;  %v10055_v5 = vsel %vm395_vm1, %v16491_v6, 0.0  ;;  %v16833_v35 = vpop.f32.mrf.mxu2  ;;  %v7237_v40 = vadd.f32 %v16711_v25, %v17901_v46 }
 0x990   :  { %v9141_v10 = vadd.f32 %v16652_v27, %v7819_v34  ;;  %v10057_v56 = vsel %vm395_vm1, %v16522_v13, 0.0  ;;  %v10254_v45 = vsel %vm395_vm1, %v10143_v44, 0.0  ;;  %v9142_v27 = vadd.f32 %v16680_v11, %v7820_v53  ;;  %v17905_v53 = vld [vmem:[#allocation93_spill] sm:$0xff] }
 0x991   :  { %v10054_v31 = vadd.f32 %v10053_v7, %v10052_v29  ;;  %v10251_v63 = vadd.f32 %v10250_v51, %v10249_v57  ;;  %v17903_v7 = vld [vmem:[#allocation47_spill] sm:$0xff]  ;;  %v7240_v26 = vadd.f32 %v7171_v37, %v17904_v32  ;;  %v10059_v57 = vsel %vm395_vm1, %v16547_v22, 0.0 }
 0x992   :  { %v16814_v41 = vpop.f32.mrf.mxu1  ;;  %v7239_v29 = vadd.f32 %v7169_v24, %v17903_v7  ;;  %v10145_v25 = vmul.f32 %v16577_v49, %v16577_v49  ;;  %v7821_v50 = vadd.f32 %v16636_v39, %v7234_v15  ;;  %v10256_v44 = vsel %vm395_vm1, %v10144_v52, 0.0 }
 0x993   :  { %v10056_v51 = vadd.f32 %v10055_v5, %v10054_v31  ;;  %v10253_v4 = vadd.f32 %v10252_v30, %v10251_v63  ;;  %v16852_v24 = vadd.f32 %v16619_v47, %v9141_v10  ;;  %v10061_v11 = vsel %vm395_vm1, %v16577_v49, 0.0  ;;  %v7758_v63 = vpop.f32.mrf.mxu0  ;;  %v7174_v39 = vpop.f32.mrf.mxu3 }
 0x994   :  { %v10146_v37 = vmul.f32 %v16605_v33, %v16605_v33  ;;  %v9143_v5 = vadd.f32 %v16704_v12, %v7821_v50  ;;  %v7822_v30 = vadd.f32 %v16669_v20, %v7235_v59  ;;  %v10147_v52 = vmul.f32 %v16632_v54, %v16632_v54 }
 0x995   :  { %v10058_v34 = vadd.f32 %v10057_v56, %v10056_v51  ;;  %v10255_v17 = vadd.f32 %v10254_v45, %v10253_v4  ;;  %v16863_v47 = vadd.f32 %v16648_v42, %v9142_v27  ;;  %v7823_v10 = vadd.f32 %v16706_v55, %v7236_v43 }
 0x996   :  { %v7241_v46 = vadd.f32 %v7174_v39, %v17905_v53  ;;  %v10258_v2 = vsel %vm395_vm1, %v10145_v25, 0.0  ;;  %v10063_v12 = vsel %vm395_vm1, %v16605_v33, 0.0  ;;  %v9144_v59 = vadd.f32 %v16732_v14, %v7822_v30 }
 0x997   :  { %v10060_v15 = vadd.f32 %v10059_v57, %v10058_v34  ;;  %v10257_v20 = vadd.f32 %v10256_v44, %v10255_v17  ;;  %v10148_v45 = vmul.f32 %v16852_v24, %v16852_v24  ;;  %v9145_v7 = vadd.f32 %v16758_v60, %v7823_v10  ;;  %v9890_v57 = vpop.f32.mrf.mxu2 }
 0x998   :  { %v10260_v42 = vsel %vm395_vm1, %v10146_v37, 0.0  ;;  %v10065_v55 = vsel %vm395_vm1, %v16632_v54, 0.0  ;;  %v16878_v43 = vadd.f32 %v16674_v58, %v9143_v5  ;;  %v7824_v51 = vadd.f32 %v16739_v38, %v7237_v40 }
 0x999   :  { %v10062_v56 = vadd.f32 %v10061_v11, %v10060_v15  ;;  %v10259_v4 = vadd.f32 %v10258_v2, %v10257_v20  ;;  %v10262_v14 = vsel %vm395_vm1, %v10147_v52, 0.0  ;;  %v10149_v32 = vmul.f32 %v16863_v47, %v16863_v47 }
 0x99a   :  { %v9078_v31 = vpop.f32.mrf.mxu1  ;;  %v10067_v60 = vsel %vm395_vm1, %v16852_v24, 0.0  ;;  %v16887_v25 = vadd.f32 %v16700_v21, %v9144_v59  ;;  %v9146_v50 = vadd.f32 %v16784_v48, %v7824_v51  ;;  %v7825_v58 = vadd.f32 %v16772_v61, %v7238_v8 }
 0x99b   :  { %v10064_v27 = vadd.f32 %v10063_v12, %v10062_v56  ;;  %v10261_v34 = vadd.f32 %v10260_v42, %v10259_v4  ;;  %v10264_v40 = vsel %vm395_vm1, %v10148_v45, 0.0  ;;  %v16893_v17 = vadd.f32 %v16728_v16, %v9145_v7  ;;  %v7761_v5 = vpop.f32.mrf.mxu0 }
 0x99c   :  { %v10069_v11 = vsel %vm395_vm1, %v16863_v47, 0.0  ;;  %v10150_v37 = vmul.f32 %v16878_v43, %v16878_v43  ;;  %v9147_v21 = vadd.f32 %v16814_v41, %v7825_v58  ;;  %v7826_v48 = vadd.f32 %v16805_v23, %v7239_v29 }
 0x99d   :  { %v10066_v38 = vadd.f32 %v10065_v55, %v10064_v27  ;;  %v10263_v61 = vadd.f32 %v10262_v14, %v10261_v34  ;;  %v10266_v30 = vsel %vm395_vm1, %v10149_v32, 0.0  ;;  %v10071_v16 = vsel %vm395_vm1, %v16878_v43, 0.0 }
 0x99e   :  { %v10151_v39 = vmul.f32 %v16887_v25, %v16887_v25  ;;  %v16907_v15 = vadd.f32 %v16760_v18, %v9146_v50  ;;  %v9148_v52 = vadd.f32 %v9078_v31, %v7826_v48  ;;  %v7827_v10 = vadd.f32 %v7758_v63, %v7240_v26 }
 0x99f   :  { %v10068_v8 = vadd.f32 %v10067_v60, %v10066_v38  ;;  %v10265_v53 = vadd.f32 %v10264_v40, %v10263_v61  ;;  %v10152_v23 = vmul.f32 %v16893_v17, %v16893_v17  ;;  %v10268_v29 = vsel %vm395_vm1, %v10150_v37, 0.0  ;;  %v9893_v55 = vpop.f32.mrf.mxu2  ;;  %v17906_v60 = vld [vmem:[#allocation94_spill] sm:$0xff] }
 0x9a0   :  { %v10073_v2 = vsel %vm395_vm1, %v16887_v25, 0.0  ;;  %v16915_v12 = vadd.f32 %v16791_v28, %v9147_v21  ;;  %v7828_v20 = vadd.f32 %v7761_v5, %v7241_v46  ;;  %v10270_v31 = vsel %vm395_vm1, %v10151_v39, 0.0  ;;  %v7176_v46 = vpop.f32.mrf.mxu3 }
 0x9a1   :  { %v10070_v41 = vadd.f32 %v10069_v11, %v10068_v8  ;;  %v10267_v56 = vadd.f32 %v10266_v30, %v10265_v53  ;;  %v10075_v26 = vsel %vm395_vm1, %v16893_v17, 0.0  ;;  %v10153_v63 = vmul.f32 %v16907_v15, %v16907_v15 }
 0x9a2   :  { %v9080_v44 = vpop.f32.mrf.mxu1  ;;  %v16923_v45 = vadd.f32 %v16833_v35, %v9148_v52  ;;  %v10272_v28 = vsel %vm395_vm1, %v10152_v23, 0.0  ;;  %v10077_v4 = vsel %vm395_vm1, %v16907_v15, 0.0  ;;  %v10154_v27 = vmul.f32 %v16915_v12, %v16915_v12 }
 0x9a3   :  { %v9149_v59 = vadd.f32 %v9080_v44, %v7827_v10  ;;  %v10072_v18 = vadd.f32 %v10071_v16, %v10070_v41  ;;  %v10269_v7 = vadd.f32 %v10268_v29, %v10267_v56  ;;  %v7242_v50 = vadd.f32 %v7176_v46, %v17906_v60  ;;  %v7763_v11 = vpop.f32.mrf.mxu0 }
 0x9a4   :  { %v10274_v34 = vsel %vm395_vm1, %v10153_v63, 0.0  ;;  %v10079_v38 = vsel %vm395_vm1, %v16915_v12, 0.0  ;;  %v10155_v40 = vmul.f32 %v16923_v45, %v16923_v45  ;;  %v10081_v48 = vsel %vm395_vm1, %v16923_v45, 0.0 }
 0x9a5   :  { %v10074_v42 = vadd.f32 %v10073_v2, %v10072_v18  ;;  %v16930_v14 = vadd.f32 %v9890_v57, %v9149_v59  ;;  %v10271_v35 = vadd.f32 %v10270_v31, %v10269_v7  ;;  %v10276_v57 = vsel %vm395_vm1, %v10154_v27, 0.0 }
 0x9a6   :  { %v7829_v30 = vadd.f32 %v7763_v11, %v7242_v50  ;;  %v10278_v16 = vsel %vm395_vm1, %v10155_v40, 0.0 }
 0x9a7   :  { %v10076_v58 = vadd.f32 %v10075_v26, %v10074_v42  ;;  %v10273_v37 = vadd.f32 %v10272_v28, %v10271_v35  ;;  %v10156_v5 = vmul.f32 %v16930_v14, %v16930_v14  ;;  %v10083_v39 = vsel %vm395_vm1, %v16930_v14, 0.0  ;;  %v9895_v56 = vpop.f32.mrf.mxu2 }
 0x9a9   :  { %v10078_v21 = vadd.f32 %v10077_v4, %v10076_v58  ;;  %v10275_v61 = vadd.f32 %v10274_v34, %v10273_v37  ;;  %v10280_v23 = vsel %vm395_vm1, %v10156_v5, 0.0 }
 0x9aa   :  { %v9083_v51 = vpop.f32.mrf.mxu1 }
 0x9ab   :  { %v9150_v32 = vadd.f32 %v9083_v51, %v7828_v20  ;;  %v10080_v8 = vadd.f32 %v10079_v38, %v10078_v21  ;;  %v10277_v10 = vadd.f32 %v10276_v57, %v10275_v61 }
 0x9ad   :  { %v16938_v44 = vadd.f32 %v9893_v55, %v9150_v32  ;;  %v10082_v53 = vadd.f32 %v10081_v48, %v10080_v8  ;;  %v10279_v59 = vadd.f32 %v10278_v16, %v10277_v10  ;;  %v10296_v10 = vld [vmem:[%s17272_s5] sm:$0x1] }
 0x9af   :  { %v10157_v52 = vmul.f32 %v16938_v44, %v16938_v44  ;;  %v10085_v29 = vsel %vm395_vm1, %v16938_v44, 0.0  ;;  %v10084_v20 = vadd.f32 %v10083_v39, %v10082_v53  ;;  %v10281_v26 = vadd.f32 %v10280_v23, %v10279_v59 }
 0x9b1   :  { %v10282_v18 = vsel %vm395_vm1, %v10157_v52, 0.0  ;;  %v10086_v63 = vadd.f32 %v10085_v29, %v10084_v20  ;;  %v10376_v20 = vld [vmem:[%s17273_s6] sm:$0x1] }
 0x9b2   :  { %v9085_v41 = vpop.f32.mrf.mxu1  ;;  %v10283_v28 = vadd.f32 %v10282_v18, %v10281_v26 }
 0x9b3   :  { %v9151_v2 = vadd.f32 %v9085_v41, %v7829_v30 }
 0x9b5   :  { %v9961_v31 = vadd.f32 %v9895_v56, %v9151_v2 }
 0x9b7   :  { %v10087_v7 = vsel %vm395_vm1, %v9961_v31, 0.0  ;;  %v10158_v42 = vmul.f32 %v9961_v31, %v9961_v31 }
 0x9b8   :  { %v10088_v55 = vadd.f32 %v10087_v7, %v10086_v63 }
 0x9b9   :  { %v10284_v51 = vsel %vm395_vm1, %v10158_v42, 0.0 }
 0x9ba   :  { %v10089_v46 = vrot.slane %v10088_v55, 4  ;;  %v10285_v4 = vadd.f32 %v10284_v51, %v10283_v28 }
 0x9bc   :  { %v10090_v27 = vadd.f32 %v10089_v46, %v10088_v55  ;;  %v10286_v32 = vrot.slane %v10285_v4, 4 }
 0x9be   :  { %v10091_v60 = vrot.slane %v10090_v27, 2  ;;  %v10287_v50 = vadd.f32 %v10286_v32, %v10285_v4 }
 0x9c0   :  { %v10092_v35 = vadd.f32 %v10091_v60, %v10090_v27  ;;  %v10288_v58 = vrot.slane %v10287_v50, 2 }
 0x9c2   :  { %v10093_v34 = vrot.slane %v10092_v35, 1  ;;  %v10289_v38 = vadd.f32 %v10288_v58, %v10287_v50 }
 0x9c4   :  { %v10094_v40 = vadd.f32 %v10093_v34, %v10092_v35  ;;  %v10290_v11 = vrot.slane %v10289_v38, 1 }
 0x9c6   :  { %v10291_v37 = vadd.f32 %v10290_v11, %v10289_v38  ;;  %v10292_v21 = vmul.f32 0.001953125, %v10094_v40  ;;  %v17907_v40 = vld [vmem:[#allocation35_spill] sm:$0xff] }
 0x9c8   :  { %v10293_v57 = vmul.f32 0.001953125, %v10291_v37  ;;  %v10294_v48 = vmul.f32 %v10292_v21, %v10292_v21 }
 0x9ca   :  { %v10295_v5 = vsub.f32 %v10293_v57, %v10294_v48  ;;  %v17908_v48 = vld [vmem:[#allocation18_spill] sm:$0xff] }
 0x9cc   :  { %v10297_v61 = vadd.f32 1e-05, %v10295_v5 }
 0x9ce   :  { %12150 = vrsqrt.f32 %v10297_v61  ;;  %vm10304_vm4 = vweird.f32 %v10297_v61 }
 0x9d4   :  { %v12151_v8 = vpop.eup %12150 }
 0x9d5   :  { %v10299_v30 = vmul.f32 %v12151_v8, %v10297_v61  ;;  %vm10305_vm0 = vweird.f32 %v12151_v8  ;;  %v17909_v61 = vld [vmem:[#allocation23_spill] sm:$0xff] }
 0x9d6   :  { %vm10306_vm5 = vmor %vm10304_vm4, %vm10305_vm0 }
 0x9d7   :  { %v10300_v16 = vmul.f32 %v12151_v8, %v10299_v30 }
 0x9d9   :  { %v10301_v39 = vmul.f32 0.5, %v10300_v16 }
 0x9db   :  { %v10302_v52 = vsub.f32 1.5, %v10301_v39 }
 0x9dd   :  { %v10303_v53 = vmul.f32 %v12151_v8, %v10302_v52 }
 0x9df   :  { %v10307_v41 = vsel %vm10306_vm5, %v12151_v8, %v10303_v53 }
 0x9e0   :  { %v10308_v23 = vmul.f32 %v10307_v41, %v10296_v10  ;;  %v17910_v10 = vld [vmem:[#allocation24_spill] sm:$0xff]  ;;  %v17911_v41 = vld [vmem:[#allocation42_spill] sm:$0xff] }
 0x9e2   :  { %v16959_v29 = vperm.slane %v10308_v23, 0  ;;  %v10377_v59 = vmul.f32 %v10308_v23, %v10292_v21 }
 0x9e4   :  { %v16962_v2 = vmul.f32 %v16959_v29, %v9961_v31  ;;  %v10378_v56 = vsub.f32 %v10376_v20, %v10377_v59  ;;  %v10312_v26 = vmul.f32 %v16959_v29, %v16037_v9  ;;  %v10313_v63 = vmul.f32 %v16959_v29, %v16047_v62 }
 0x9e5   :  { %v10314_v51 = vmul.f32 %v16959_v29, %v16055_v36  ;;  %v10315_v46 = vmul.f32 %v16959_v29, %v16068_v3  ;;  %v10316_v60 = vmul.f32 %v16959_v29, %v16076_v0  ;;  %v10317_v50 = vmul.f32 %v16959_v29, %v16086_v1 }
 0x9e6   :  { %v16967_v18 = vperm.slane %v10378_v56, 0  ;;  %v10318_v38 = vmul.f32 %v16959_v29, %v16094_v19  ;;  %v10319_v11 = vmul.f32 %v16959_v29, %v17907_v40  ;;  %v10320_v5 = vmul.f32 %v16959_v29, %v17908_v48  ;;  %v17917_v40 = vld [vmem:[#allocation51_spill] sm:$0xff]  ;;  %v17035_v48 = vld [vmem:[%s17275_s8] ss:$0 sm:$0xff]  ;;  %s12315_s8 = smov [#allocation8]  }
 0x9e7   :  { %v10321_v8 = vmul.f32 %v16959_v29, %v17909_v61  ;;  %v10322_v53 = vmul.f32 %v16959_v29, %v17910_v10  ;;  %v10323_v23 = vmul.f32 %v16959_v29, %v17911_v41  ;;  %v17918_v61 = vld [vmem:[#allocation52_spill] sm:$0xff]  ;;  %s10975_s28 = sshll.u32 %s12315_s8, 4  ;;  %s10976_s28 = int_to_ptr.vmem [resolvable:$true] %s10975_s28 }
 0x9e8   :  { %v10382_v7 = vadd.f32 %v16967_v18, %v10312_v26  ;;  %v10383_v42 = vadd.f32 %v16967_v18, %v10313_v63  ;;  %v10384_v9 = vadd.f32 %v16967_v18, %v10314_v51  ;;  %v10385_v4 = vadd.f32 %v16967_v18, %v10315_v46 }
 0x9e9   :  { %v10386_v36 = vadd.f32 %v16967_v18, %v10316_v60  ;;  %v10387_v35 = vadd.f32 %v16967_v18, %v10317_v50  ;;  %v10388_v0 = vadd.f32 %v16967_v18, %v10318_v38  ;;  %v10389_v37 = vadd.f32 %v16967_v18, %v10319_v11 }
 0x9ea   :  { %v10446_v31 = vmax.f32 %v10382_v7, 0.0  ;;  %v10447_v28 = vmax.f32 %v10383_v42, 0.0  ;;  %v10448_v62 = vmax.f32 %v10384_v9, 0.0  ;;  %v10449_v27 = vmax.f32 %v10385_v4, 0.0  ;;  %v17912_v7 = vld [vmem:[#allocation57_spill] sm:$0xff] }
 0x9eb   :  { %v10450_v3 = vmax.f32 %v10386_v36, 0.0  ;;  %v10451_v58 = vmax.f32 %v10387_v35, 0.0  ;;  %v10452_v1 = vmax.f32 %v10388_v0, 0.0  ;;  %v10453_v21 = vmax.f32 %v10389_v37, 0.0 }
 0x9ec   :  { %v10510_v55 = vpack.c.bf16 %v10447_v28, %v10446_v31  ;;  %v10511_v32 = vpack.c.bf16 %v10449_v27, %v10448_v62  ;;  %v10390_v19 = vadd.f32 %v16967_v18, %v10320_v5  ;;  %v10391_v30 = vadd.f32 %v16967_v18, %v10321_v8  ;;  %v17913_v31 = vld [vmem:[#allocation44_spill] sm:$0xff]  ;;  %v17914_v62 = vld [vmem:[#allocation46_spill] sm:$0xff] }
 0x9ed   :  { %v10512_v34 = vpack.c.bf16 %v10451_v58, %v10450_v3  ;;  %v10513_v57 = vpack.c.bf16 %v10453_v21, %v10452_v1  ;;  %v10392_v59 = vadd.f32 %v16967_v18, %v10322_v53  ;;  %v10393_v20 = vadd.f32 %v16967_v18, %v10323_v23 }
 0x9ee   :  { %11951 = vmatmul.msk.bf16.vlgmr.msra.gmra.mxu3 %vm395_vm1, %v10510_v55  ;;  %v10454_v16 = vmax.f32 %v10390_v19, 0.0  ;;  %v10455_v39 = vmax.f32 %v10391_v30, 0.0  ;;  %v10324_v42 = vmul.f32 %v16959_v29, %v17912_v7  ;;  %v10325_v28 = vmul.f32 %v16959_v29, %v17913_v31  ;;  %v17919_v19 = vld [vmem:[#allocation53_spill] sm:$0xff] }
 0x9ef   :  { %v10456_v56 = vmax.f32 %v10392_v59, 0.0  ;;  %v10457_v26 = vmax.f32 %v10393_v20, 0.0  ;;  %v10326_v27 = vmul.f32 %v16959_v29, %v17914_v62  ;;  %v10329_v11 = vmul.f32 %v16959_v29, %v17917_v40  ;;  %v17923_v40 = vld [vmem:[#allocation58_spill] sm:$0xff] }
 0x9f0   :  { %v10514_v52 = vpack.c.bf16 %v10455_v39, %v10454_v16  ;;  %v10394_v55 = vadd.f32 %v16967_v18, %v10324_v42  ;;  %v10395_v51 = vadd.f32 %v16967_v18, %v10325_v28  ;;  %v10330_v8 = vmul.f32 %v16959_v29, %v17918_v61  ;;  %v17920_v42 = vld [vmem:[#allocation54_spill] sm:$0xff]  ;;  %v17921_v28 = vld [vmem:[#allocation55_spill] sm:$0xff] }
 0x9f1   :  { %v10515_v63 = vpack.c.bf16 %v10457_v26, %v10456_v56  ;;  %v10396_v50 = vadd.f32 %v16967_v18, %v10326_v27  ;;  %v10399_v37 = vadd.f32 %v16967_v18, %v10329_v11  ;;  %v10331_v30 = vmul.f32 %v16959_v29, %v17919_v19  ;;  %v12167_v56 = vld [vmem:[#allocation3 + $0x8] sm:$0xff] }
 0x9f2   :  { %v10458_v46 = vmax.f32 %v10394_v55, 0.0  ;;  %v10459_v9 = vmax.f32 %v10395_v51, 0.0  ;;  %v10400_v39 = vadd.f32 %v16967_v18, %v10330_v8  ;;  %v10332_v31 = vmul.f32 %v16959_v29, %v17920_v42 }
 0x9f3   :  { %v10460_v35 = vmax.f32 %v10396_v50, 0.0  ;;  %v10463_v21 = vmax.f32 %v10399_v37, 0.0  ;;  %v10401_v53 = vadd.f32 %v16967_v18, %v10331_v30  ;;  %v10333_v55 = vmul.f32 %v16959_v29, %v17921_v28  ;;  %v12171_v30 = vld [vmem:[#allocation3 + $0x28] sm:$0xff] }
 0x9f4   :  { %v10516_v4 = vpack.c.bf16 %v10459_v9, %v10458_v46  ;;  %v10464_v41 = vmax.f32 %v10400_v39, 0.0  ;;  %v10402_v46 = vadd.f32 %v16967_v18, %v10332_v31  ;;  %v12168_v9 = vld [vmem:[#allocation3 + $0x10] sm:$0xff]  ;;  %v10335_v11 = vmul.f32 %v16959_v29, %v17923_v40 }
 0x9f5   :  { %v10465_v23 = vmax.f32 %v10401_v53, 0.0  ;;  %v10403_v62 = vadd.f32 %v16967_v18, %v10333_v55  ;;  %v12173_v55 = vld [vmem:[#allocation3 + $0x38] sm:$0xff] }
 0x9f6   :  { %v10466_v27 = vmax.f32 %v10402_v46, 0.0 }
 0x9fe   :  { %11952 = vmatmul.msk.bf16.gmra.mxu3 %vm395_vm1, %v10511_v32  ;;  %v17915_v32 = vld [vmem:[#allocation48_spill] sm:$0xff] }
 0x9ff   :  { %v10327_v60 = vmul.f32 %v16959_v29, %v17915_v32  ;;  %v10467_v32 = vmax.f32 %v10403_v62, 0.0 }
 0xa01   :  { %v10397_v36 = vadd.f32 %v16967_v18, %v10327_v60 }
 0xa03   :  { %v10461_v3 = vmax.f32 %v10397_v36, 0.0  ;;  %v12169_v36 = vld [vmem:[#allocation3 + $0x18] sm:$0xff] }
 0xa05   :  { %v10517_v58 = vpack.c.bf16 %v10461_v3, %v10460_v35  ;;  %v10520_v3 = vpack.c.bf16 %v10467_v32, %v10466_v27  ;;  %v17927_v27 = vld [vmem:[#allocation69_spill] sm:$0xff] }
 0xa06   :  { %v10339_v32 = vmul.f32 %v16959_v29, %v17927_v27 }
 0xa0e   :  { %11953 = vmatmul.msk.bf16.gmra.mxu3 %vm395_vm1, %v10512_v34  ;;  %v17916_v34 = vld [vmem:[#allocation50_spill] sm:$0xff] }
 0xa0f   :  { %v10328_v38 = vmul.f32 %v16959_v29, %v17916_v34  ;;  %v17922_v34 = vld [vmem:[#allocation56_spill] sm:$0xff] }
 0xa11   :  { %v10398_v0 = vadd.f32 %v16967_v18, %v10328_v38  ;;  %v10334_v38 = vmul.f32 %v16959_v29, %v17922_v34 }
 0xa13   :  { %v10462_v1 = vmax.f32 %v10398_v0, 0.0  ;;  %v10404_v37 = vadd.f32 %v16967_v18, %v10334_v38 }
 0xa1e   :  { %11954 = vmatmul.msk.bf16.gmra.mxu3 %vm395_vm1, %v10513_v57  ;;  %v10518_v57 = vpack.c.bf16 %v10463_v21, %v10462_v1  ;;  %v12170_v1 = vld [vmem:[#allocation3 + $0x20] sm:$0xff] }
 0xa2e   :  { %11955 = vmatmul.msk.bf16.gmra.mxu3 %vm395_vm1, %v10514_v52  ;;  %v12166_v52 = vld [vmem:[#allocation3] sm:$0xff] }
 0xa3e   :  { %11956 = vmatmul.msk.bf16.gmra.mxu3 %vm395_vm1, %v10515_v63  ;;  %v10519_v63 = vpack.c.bf16 %v10465_v23, %v10464_v41  ;;  %v17925_v41 = vld [vmem:[#allocation67_spill] sm:$0xff] }
 0xa3f   :  { %v10337_v23 = vmul.f32 %v16959_v29, %v17925_v41 }
 0xa4e   :  { %11957 = vmatmul.msk.bf16.gmra.mxu3 %vm395_vm1, %v10516_v4 }
 0xa5e   :  { %11958 = vmatmul.msk.bf16.gmra.mxu3 %vm395_vm1, %v10517_v58 }
 0xa6e   :  { %11959 = vmatmul.msk.bf16.gmra.mxu3 %vm395_vm1, %v10518_v57  ;;  %v10405_v57 = vadd.f32 %v16967_v18, %v10335_v11  ;;  %v12175_v11 = vld [vmem:[#allocation3 + $0x48] sm:$0xff] }
 0xa70   :  { %v10469_v61 = vmax.f32 %v10405_v57, 0.0 }
 0xa71   :  { %v10683_v5 = vpop.f32.mrf.mxu3 }
 0xa72   :  { %v10684_v16 = vadd.f32 %v17035_v48, %v10683_v5  ;;  %v10468_v5 = vmax.f32 %v10404_v37, 0.0 }
 0xa74   :  { %v10843_v10 = vadd.f32 %v12166_v52, %v10684_v16  ;;  %v10521_v39 = vpack.c.bf16 %v10469_v61, %v10468_v5  ;;  %v17929_v5 = vld [vmem:[#allocation39_spill] sm:$0xff] }
 0xa75   :  { %v10341_v61 = vmul.f32 %v16959_v29, %v17929_v5 }
 0xa76   :  { %10907 = vst [vmem:[#allocation8] sm:$0xff] %v10843_v10  ;;  %v17924_v10 = vld [vmem:[#allocation59_spill] sm:$0xff] }
 0xa77   :  { %v10336_v53 = vmul.f32 %v16959_v29, %v17924_v10 }
 0xa79   :  { %v10685_v59 = vpop.f32.mrf.mxu3 }
 0xa7a   :  { %v10686_v20 = vadd.f32 %v17035_v48, %v10685_v59 }
 0xa7c   :  { %v10844_v26 = vadd.f32 %v12167_v56, %v10686_v20  ;;  %v10406_v20 = vadd.f32 %v16967_v18, %v10336_v53  ;;  %v12172_v56 = vld [vmem:[#allocation3 + $0x30] sm:$0xff] }
 0xa7e   :  { %10908 = vst [vmem:[#allocation8 + $0x8] sm:$0xff] %v10844_v26  ;;  %11960 = vmatmul.msk.bf16.gmra.mxu3 %vm395_vm1, %v10519_v63  ;;  %v10407_v63 = vadd.f32 %v16967_v18, %v10337_v23  ;;  %v12177_v23 = vld [vmem:[#allocation3 + $0x58] sm:$0xff] }
 0xa80   :  { %v10471_v42 = vmax.f32 %v10407_v63, 0.0 }
 0xa81   :  { %v10688_v7 = vpop.f32.mrf.mxu3 }
 0xa82   :  { %v10689_v51 = vadd.f32 %v17035_v48, %v10688_v7  ;;  %v10470_v7 = vmax.f32 %v10406_v20, 0.0 }
 0xa84   :  { %v10845_v4 = vadd.f32 %v12168_v9, %v10689_v51  ;;  %v10522_v46 = vpack.c.bf16 %v10471_v42, %v10470_v7  ;;  %v17931_v7 = vld [vmem:[#allocation71_spill] sm:$0xff] }
 0xa85   :  { %v10343_v42 = vmul.f32 %v16959_v29, %v17931_v7 }
 0xa86   :  { %10909 = vst [vmem:[#allocation8 + $0x10] sm:$0xff] %v10845_v4  ;;  %v17926_v4 = vld [vmem:[#allocation60_spill] sm:$0xff] }
 0xa87   :  { %v10338_v62 = vmul.f32 %v16959_v29, %v17926_v4 }
 0xa89   :  { %v10690_v60 = vpop.f32.mrf.mxu3 }
 0xa8a   :  { %v10691_v50 = vadd.f32 %v17035_v48, %v10690_v60 }
 0xa8c   :  { %v10846_v35 = vadd.f32 %v12169_v36, %v10691_v50  ;;  %v10408_v50 = vadd.f32 %v16967_v18, %v10338_v62  ;;  %v12174_v36 = vld [vmem:[#allocation3 + $0x40] sm:$0xff] }
 0xa8e   :  { %10910 = vst [vmem:[#allocation8 + $0x18] sm:$0xff] %v10846_v35  ;;  %11961 = vmatmul.msk.bf16.gmra.mxu3 %vm395_vm1, %v10520_v3  ;;  %v10409_v3 = vadd.f32 %v16967_v18, %v10339_v32  ;;  %v12179_v32 = vld [vmem:[#allocation3 + $0x68] sm:$0xff] }
 0xa90   :  { %v10473_v34 = vmax.f32 %v10409_v3, 0.0 }
 0xa91   :  { %v10693_v58 = vpop.f32.mrf.mxu3 }
 0xa92   :  { %v10694_v0 = vadd.f32 %v17035_v48, %v10693_v58  ;;  %v10472_v58 = vmax.f32 %v10408_v50, 0.0 }
 0xa94   :  { %v10847_v21 = vadd.f32 %v12170_v1, %v10694_v0  ;;  %v10523_v37 = vpack.c.bf16 %v10473_v34, %v10472_v58  ;;  %v17933_v58 = vld [vmem:[#allocation72_spill] sm:$0xff] }
 0xa95   :  { %v10345_v34 = vmul.f32 %v16959_v29, %v17933_v58 }
 0xa96   :  { %10911 = vst [vmem:[#allocation8 + $0x20] sm:$0xff] %v10847_v21  ;;  %v17928_v21 = vld [vmem:[#allocation61_spill] sm:$0xff] }
 0xa97   :  { %v10340_v57 = vmul.f32 %v16959_v29, %v17928_v21 }
 0xa99   :  { %v10695_v8 = vpop.f32.mrf.mxu3 }
 0xa9a   :  { %v10696_v19 = vadd.f32 %v17035_v48, %v10695_v8 }
 0xa9c   :  { %v10848_v16 = vadd.f32 %v12171_v30, %v10696_v19  ;;  %v10410_v19 = vadd.f32 %v16967_v18, %v10340_v57  ;;  %v12176_v30 = vld [vmem:[#allocation3 + $0x50] sm:$0xff] }
 0xa9e   :  { %10912 = vst [vmem:[#allocation8 + $0x28] sm:$0xff] %v10848_v16  ;;  %11962 = vmatmul.msk.bf16.gmra.mxu3 %vm395_vm1, %v10521_v39  ;;  %v10411_v39 = vadd.f32 %v16967_v18, %v10341_v61  ;;  %v12181_v61 = vld [vmem:[#allocation3 + $0x78] sm:$0xff] }
 0xaa0   :  { %v10475_v10 = vmax.f32 %v10411_v39, 0.0 }
 0xaa1   :  { %v10698_v52 = vpop.f32.mrf.mxu3 }
 0xaa2   :  { %v10699_v59 = vadd.f32 %v17035_v48, %v10698_v52  ;;  %v10474_v52 = vmax.f32 %v10410_v19, 0.0 }
 0xaa4   :  { %v10849_v26 = vadd.f32 %v12172_v56, %v10699_v59  ;;  %v10524_v20 = vpack.c.bf16 %v10475_v10, %v10474_v52  ;;  %v17935_v52 = vld [vmem:[#allocation36_spill] sm:$0xff] }
 0xaa5   :  { %v10347_v10 = vmul.f32 %v16959_v29, %v17935_v52 }
 0xaa6   :  { %10913 = vst [vmem:[#allocation8 + $0x30] sm:$0xff] %v10849_v26  ;;  %v17930_v26 = vld [vmem:[#allocation62_spill] sm:$0xff] }
 0xaa7   :  { %v10342_v63 = vmul.f32 %v16959_v29, %v17930_v26 }
 0xaa9   :  { %v10700_v31 = vpop.f32.mrf.mxu3 }
 0xaaa   :  { %v10701_v28 = vadd.f32 %v17035_v48, %v10700_v31 }
 0xaac   :  { %v10850_v51 = vadd.f32 %v12173_v55, %v10701_v28  ;;  %v10412_v28 = vadd.f32 %v16967_v18, %v10342_v63  ;;  %v12178_v55 = vld [vmem:[#allocation3 + $0x60] sm:$0xff] }
 0xaae   :  { %10914 = vst [vmem:[#allocation8 + $0x38] sm:$0xff] %v10850_v51  ;;  %11963 = vmatmul.msk.bf16.gmra.mxu3 %vm395_vm1, %v10522_v46  ;;  %v10413_v46 = vadd.f32 %v16967_v18, %v10343_v42  ;;  %v12183_v42 = vld [vmem:[#allocation3 + $0x88] sm:$0xff] }
 0xab0   :  { %v10477_v4 = vmax.f32 %v10413_v46, 0.0 }
 0xab1   :  { %v10703_v9 = vpop.f32.mrf.mxu3 }
 0xab2   :  { %v10704_v60 = vadd.f32 %v17035_v48, %v10703_v9  ;;  %v10476_v9 = vmax.f32 %v10412_v28, 0.0 }
 0xab4   :  { %v10851_v35 = vadd.f32 %v12174_v36, %v10704_v60  ;;  %v10525_v50 = vpack.c.bf16 %v10477_v4, %v10476_v9  ;;  %v17937_v9 = vld [vmem:[#allocation27_spill] sm:$0xff] }
 0xab5   :  { %v10349_v4 = vmul.f32 %v16959_v29, %v17937_v9 }
 0xab6   :  { %10915 = vst [vmem:[#allocation8 + $0x40] sm:$0xff] %v10851_v35  ;;  %v17932_v35 = vld [vmem:[#allocation63_spill] sm:$0xff] }
 0xab7   :  { %v10344_v3 = vmul.f32 %v16959_v29, %v17932_v35 }
 0xab9   :  { %v10705_v38 = vpop.f32.mrf.mxu3 }
 0xaba   :  { %v10706_v40 = vadd.f32 %v17035_v48, %v10705_v38 }
 0xabc   :  { %v10852_v0 = vadd.f32 %v12175_v11, %v10706_v40  ;;  %v10414_v40 = vadd.f32 %v16967_v18, %v10344_v3  ;;  %v12180_v11 = vld [vmem:[#allocation3 + $0x70] sm:$0xff] }
 0xabe   :  { %10916 = vst [vmem:[#allocation8 + $0x48] sm:$0xff] %v10852_v0  ;;  %11964 = vmatmul.msk.bf16.gmra.mxu3 %vm395_vm1, %v10523_v37  ;;  %v10415_v37 = vadd.f32 %v16967_v18, %v10345_v34  ;;  %v12185_v34 = vld [vmem:[#allocation3 + $0x98] sm:$0xff] }
 0xac0   :  { %v10479_v21 = vmax.f32 %v10415_v37, 0.0 }
 0xac1   :  { %v10708_v1 = vpop.f32.mrf.mxu3 }
 0xac2   :  { %v10709_v8 = vadd.f32 %v17035_v48, %v10708_v1  ;;  %v10478_v1 = vmax.f32 %v10414_v40, 0.0 }
 0xac4   :  { %v10853_v16 = vadd.f32 %v12176_v30, %v10709_v8  ;;  %v10526_v19 = vpack.c.bf16 %v10479_v21, %v10478_v1  ;;  %v17939_v1 = vld [vmem:[#allocation28_spill] sm:$0xff] }
 0xac5   :  { %v10351_v21 = vmul.f32 %v16959_v29, %v17939_v1 }
 0xac6   :  { %10917 = vst [vmem:[#allocation8 + $0x50] sm:$0xff] %v10853_v16  ;;  %v17934_v16 = vld [vmem:[#allocation64_spill] sm:$0xff] }
 0xac7   :  { %v10346_v39 = vmul.f32 %v16959_v29, %v17934_v16 }
 0xac9   :  { %v10710_v53 = vpop.f32.mrf.mxu3 }
 0xaca   :  { %v10711_v41 = vadd.f32 %v17035_v48, %v10710_v53 }
 0xacc   :  { %v10854_v59 = vadd.f32 %v12177_v23, %v10711_v41  ;;  %v10416_v41 = vadd.f32 %v16967_v18, %v10346_v39  ;;  %v12182_v23 = vld [vmem:[#allocation3 + $0x80] sm:$0xff] }
 0xace   :  { %10918 = vst [vmem:[#allocation8 + $0x58] sm:$0xff] %v10854_v59  ;;  %11965 = vmatmul.msk.bf16.gmra.mxu3 %vm395_vm1, %v10524_v20  ;;  %v10417_v20 = vadd.f32 %v16967_v18, %v10347_v10  ;;  %v12187_v10 = vld [vmem:[#allocation3 + $0xa8] sm:$0xff] }
 0xad0   :  { %v10481_v26 = vmax.f32 %v10417_v20, 0.0 }
 0xad1   :  { %v10713_v56 = vpop.f32.mrf.mxu3 }
 0xad2   :  { %v10714_v31 = vadd.f32 %v17035_v48, %v10713_v56  ;;  %v10480_v56 = vmax.f32 %v10416_v41, 0.0 }
 0xad4   :  { %v10855_v51 = vadd.f32 %v12178_v55, %v10714_v31  ;;  %v10527_v28 = vpack.c.bf16 %v10481_v26, %v10480_v56  ;;  %v17941_v56 = vld [vmem:[#allocation75_spill] sm:$0xff] }
 0xad5   :  { %v10353_v26 = vmul.f32 %v16959_v29, %v17941_v56 }
 0xad6   :  { %10919 = vst [vmem:[#allocation8 + $0x60] sm:$0xff] %v10855_v51  ;;  %v17936_v51 = vld [vmem:[#allocation65_spill] sm:$0xff] }
 0xad7   :  { %v10348_v46 = vmul.f32 %v16959_v29, %v17936_v51 }
 0xad9   :  { %v10715_v62 = vpop.f32.mrf.mxu3 }
 0xada   :  { %v10716_v27 = vadd.f32 %v17035_v48, %v10715_v62 }
 0xadc   :  { %v10856_v60 = vadd.f32 %v12179_v32, %v10716_v27  ;;  %v10418_v27 = vadd.f32 %v16967_v18, %v10348_v46  ;;  %v12184_v32 = vld [vmem:[#allocation3 + $0x90] sm:$0xff] }
 0xade   :  { %10920 = vst [vmem:[#allocation8 + $0x68] sm:$0xff] %v10856_v60  ;;  %11966 = vmatmul.msk.bf16.gmra.mxu3 %vm395_vm1, %v10525_v50  ;;  %v10419_v50 = vadd.f32 %v16967_v18, %v10349_v4  ;;  %v12189_v4 = vld [vmem:[#allocation3 + $0xb8] sm:$0xff] }
 0xae0   :  { %v10483_v35 = vmax.f32 %v10419_v50, 0.0 }
 0xae1   :  { %v10718_v36 = vpop.f32.mrf.mxu3 }
 0xae2   :  { %v10719_v38 = vadd.f32 %v17035_v48, %v10718_v36  ;;  %v10482_v36 = vmax.f32 %v10418_v27, 0.0 }
 0xae4   :  { %v10857_v0 = vadd.f32 %v12180_v11, %v10719_v38  ;;  %v10528_v40 = vpack.c.bf16 %v10483_v35, %v10482_v36  ;;  %v17943_v36 = vld [vmem:[#allocation76_spill] sm:$0xff] }
 0xae5   :  { %v10355_v35 = vmul.f32 %v16959_v29, %v17943_v36  ;;  %v12195_v36 = vld [vmem:[#allocation3 + $0xe8] sm:$0xff] }
 0xae6   :  { %10921 = vst [vmem:[#allocation8 + $0x70] sm:$0xff] %v10857_v0  ;;  %v17938_v0 = vld [vmem:[#allocation66_spill] sm:$0xff] }
 0xae7   :  { %v10350_v37 = vmul.f32 %v16959_v29, %v17938_v0 }
 0xae9   :  { %v10720_v57 = vpop.f32.mrf.mxu3 }
 0xaea   :  { %v10721_v5 = vadd.f32 %v17035_v48, %v10720_v57 }
 0xaec   :  { %v10858_v8 = vadd.f32 %v12181_v61, %v10721_v5  ;;  %v10420_v5 = vadd.f32 %v16967_v18, %v10350_v37  ;;  %v12186_v61 = vld [vmem:[#allocation3 + $0xa0] sm:$0xff] }
 0xaee   :  { %10922 = vst [vmem:[#allocation8 + $0x78] sm:$0xff] %v10858_v8  ;;  %11967 = vmatmul.msk.bf16.gmra.mxu3 %vm395_vm1, %v10526_v19  ;;  %v10421_v19 = vadd.f32 %v16967_v18, %v10351_v21  ;;  %v12191_v21 = vld [vmem:[#allocation3 + $0xc8] sm:$0xff] }
 0xaf0   :  { %v10485_v16 = vmax.f32 %v10421_v19, 0.0 }
 0xaf1   :  { %v10723_v30 = vpop.f32.mrf.mxu3 }
 0xaf2   :  { %v10724_v53 = vadd.f32 %v17035_v48, %v10723_v30  ;;  %v10484_v30 = vmax.f32 %v10420_v5, 0.0 }
 0xaf4   :  { %v10859_v59 = vadd.f32 %v12182_v23, %v10724_v53  ;;  %v10529_v41 = vpack.c.bf16 %v10485_v16, %v10484_v30  ;;  %v17945_v30 = vld [vmem:[#allocation29_spill] sm:$0xff] }
 0xaf5   :  { %v10357_v16 = vmul.f32 %v16959_v29, %v17945_v30  ;;  %v10363_v30 = vmul.f32 %v16959_v29, %v16605_v33 }
 0xaf6   :  { %10923 = vst [vmem:[#allocation8 + $0x80] sm:$0xff] %v10859_v59  ;;  %v17940_v59 = vld [vmem:[#allocation68_spill] sm:$0xff] }
 0xaf7   :  { %v10352_v20 = vmul.f32 %v16959_v29, %v17940_v59 }
 0xaf9   :  { %v10725_v63 = vpop.f32.mrf.mxu3 }
 0xafa   :  { %v10726_v7 = vadd.f32 %v17035_v48, %v10725_v63 }
 0xafc   :  { %v10860_v31 = vadd.f32 %v12183_v42, %v10726_v7  ;;  %v10422_v7 = vadd.f32 %v16967_v18, %v10352_v20  ;;  %v10423_v42 = vadd.f32 %v16967_v18, %v10353_v26  ;;  %v12193_v26 = vld [vmem:[#allocation3 + $0xd8] sm:$0xff] }
 0xafe   :  { %10924 = vst [vmem:[#allocation8 + $0x88] sm:$0xff] %v10860_v31  ;;  %11968 = vmatmul.msk.bf16.gmra.mxu3 %vm395_vm1, %v10527_v28  ;;  %v12188_v31 = vld [vmem:[#allocation3 + $0xb0] sm:$0xff]  ;;  %v10487_v51 = vmax.f32 %v10423_v42, 0.0 }
 0xb01   :  { %v10728_v55 = vpop.f32.mrf.mxu3 }
 0xb02   :  { %v10729_v62 = vadd.f32 %v17035_v48, %v10728_v55  ;;  %v10486_v55 = vmax.f32 %v10422_v7, 0.0 }
 0xb04   :  { %v10861_v60 = vadd.f32 %v12184_v32, %v10729_v62  ;;  %v10530_v27 = vpack.c.bf16 %v10487_v51, %v10486_v55  ;;  %v10359_v55 = vmul.f32 %v16959_v29, %v16491_v6 }
 0xb06   :  { %10925 = vst [vmem:[#allocation8 + $0x90] sm:$0xff] %v10861_v60  ;;  %v17942_v60 = vld [vmem:[#allocation70_spill] sm:$0xff] }
 0xb07   :  { %v10354_v50 = vmul.f32 %v16959_v29, %v17942_v60 }
 0xb09   :  { %v10730_v3 = vpop.f32.mrf.mxu3 }
 0xb0a   :  { %v10731_v58 = vadd.f32 %v17035_v48, %v10730_v3 }
 0xb0c   :  { %v10862_v38 = vadd.f32 %v12185_v34, %v10731_v58  ;;  %v10424_v58 = vadd.f32 %v16967_v18, %v10354_v50  ;;  %v10425_v34 = vadd.f32 %v16967_v18, %v10355_v35 }
 0xb0e   :  { %10926 = vst [vmem:[#allocation8 + $0x98] sm:$0xff] %v10862_v38  ;;  %11969 = vmatmul.msk.bf16.gmra.mxu3 %vm395_vm1, %v10528_v40  ;;  %v12190_v38 = vld [vmem:[#allocation3 + $0xc0] sm:$0xff]  ;;  %v10489_v0 = vmax.f32 %v10425_v34, 0.0  ;;  %v10361_v34 = vmul.f32 %v16959_v29, %v16547_v22 }
 0xb11   :  { %v10733_v11 = vpop.f32.mrf.mxu3 }
 0xb12   :  { %v10734_v57 = vadd.f32 %v17035_v48, %v10733_v11  ;;  %v10488_v11 = vmax.f32 %v10424_v58, 0.0  ;;  %v10360_v58 = vmul.f32 %v16959_v29, %v16522_v13 }
 0xb14   :  { %v10863_v8 = vadd.f32 %v12186_v61, %v10734_v57  ;;  %v10531_v5 = vpack.c.bf16 %v10489_v0, %v10488_v11  ;;  %v10431_v11 = vadd.f32 %v16967_v18, %v10361_v34  ;;  %v12196_v0 = vld [vmem:[#allocation3 + $0xf0] sm:$0xff] }
 0xb16   :  { %10927 = vst [vmem:[#allocation8 + $0xa0] sm:$0xff] %v10863_v8  ;;  %v17944_v8 = vld [vmem:[#allocation40_spill] sm:$0xff] }
 0xb17   :  { %v10356_v19 = vmul.f32 %v16959_v29, %v17944_v8 }
 0xb19   :  { %v10735_v39 = vpop.f32.mrf.mxu3 }
 0xb1a   :  { %v10736_v52 = vadd.f32 %v17035_v48, %v10735_v39 }
 0xb1c   :  { %v10864_v53 = vadd.f32 %v12187_v10, %v10736_v52  ;;  %v10426_v52 = vadd.f32 %v16967_v18, %v10356_v19  ;;  %v10427_v10 = vadd.f32 %v16967_v18, %v10357_v16  ;;  %v10362_v19 = vmul.f32 %v16959_v29, %v16577_v49 }
 0xb1e   :  { %10928 = vst [vmem:[#allocation8 + $0xa8] sm:$0xff] %v10864_v53  ;;  %11970 = vmatmul.msk.bf16.gmra.mxu3 %vm395_vm1, %v10529_v41  ;;  %v12192_v53 = vld [vmem:[#allocation3 + $0xd0] sm:$0xff]  ;;  %v10491_v59 = vmax.f32 %v10427_v10, 0.0  ;;  %v12198_v10 = vld [vmem:[#allocation3 + $0x100] sm:$0xff] }
 0xb21   :  { %v10738_v23 = vpop.f32.mrf.mxu3 }
 0xb22   :  { %v10739_v63 = vadd.f32 %v17035_v48, %v10738_v23  ;;  %v10490_v23 = vmax.f32 %v10426_v52, 0.0  ;;  %v10433_v52 = vadd.f32 %v16967_v18, %v10363_v30 }
 0xb24   :  { %v10865_v28 = vadd.f32 %v12188_v31, %v10739_v63  ;;  %v10532_v7 = vpack.c.bf16 %v10491_v59, %v10490_v23  ;;  %v17946_v31 = vld [vmem:[#allocation20_spill] sm:$0xff]  ;;  %v10497_v23 = vmax.f32 %v10433_v52, 0.0 }
 0xb26   :  { %10929 = vst [vmem:[#allocation8 + $0xb0] sm:$0xff] %v10865_v28  ;;  %v10358_v28 = vmul.f32 %v16959_v29, %v17946_v31 }
 0xb29   :  { %v10740_v46 = vpop.f32.mrf.mxu3 }
 0xb2a   :  { %v10741_v9 = vadd.f32 %v17035_v48, %v10740_v46  ;;  %v10428_v46 = vadd.f32 %v16967_v18, %v10358_v28 }
 0xb2c   :  { %v10866_v62 = vadd.f32 %v12189_v4, %v10741_v9  ;;  %v10429_v9 = vadd.f32 %v16967_v18, %v10359_v55  ;;  %v12194_v4 = vld [vmem:[#allocation3 + $0xe0] sm:$0xff]  ;;  %v12200_v55 = vld [vmem:[#allocation3 + $0x110] sm:$0xff] }
 0xb2e   :  { %10930 = vst [vmem:[#allocation8 + $0xb8] sm:$0xff] %v10866_v62  ;;  %11971 = vmatmul.msk.bf16.gmra.mxu3 %vm395_vm1, %v10530_v27  ;;  %v10492_v27 = vmax.f32 %v10428_v46, 0.0 }
 0xb31   :  { %v10743_v32 = vpop.f32.mrf.mxu3 }
 0xb32   :  { %v10744_v3 = vadd.f32 %v17035_v48, %v10743_v32  ;;  %v10493_v32 = vmax.f32 %v10429_v9, 0.0 }
 0xb34   :  { %v10867_v40 = vadd.f32 %v12190_v38, %v10744_v3  ;;  %v10533_v3 = vpack.c.bf16 %v10493_v32, %v10492_v27  ;;  %v12201_v27 = vld [vmem:[#allocation3 + $0x118] sm:$0xff] }
 0xb36   :  { %10931 = vst [vmem:[#allocation8 + $0xc0] sm:$0xff] %v10867_v40  ;;  %v10430_v40 = vadd.f32 %v16967_v18, %v10360_v58 }
 0xb39   :  { %v10745_v37 = vpop.f32.mrf.mxu3 }
 0xb3a   :  { %v10746_v1 = vadd.f32 %v17035_v48, %v10745_v37 }
 0xb3c   :  { %v10868_v57 = vadd.f32 %v12191_v21, %v10746_v1  ;;  %v10494_v1 = vmax.f32 %v10430_v40, 0.0  ;;  %v10495_v21 = vmax.f32 %v10431_v11, 0.0 }
 0xb3e   :  { %10932 = vst [vmem:[#allocation8 + $0xc8] sm:$0xff] %v10868_v57  ;;  %11972 = vmatmul.msk.bf16.gmra.mxu3 %vm395_vm1, %v10531_v5  ;;  %v10534_v13 = vpack.c.bf16 %v10495_v21, %v10494_v1  ;;  %v10368_v1 = vmul.f32 %v16959_v29, %v16887_v25  ;;  %v10369_v21 = vmul.f32 %v16959_v29, %v16893_v17 }
 0xb41   :  { %v10748_v61 = vpop.f32.mrf.mxu3 }
 0xb42   :  { %v10749_v39 = vadd.f32 %v17035_v48, %v10748_v61  ;;  %v12197_v61 = vld [vmem:[#allocation3 + $0xf8] sm:$0xff] }
 0xb44   :  { %v10869_v41 = vadd.f32 %v12192_v53, %v10749_v39  ;;  %v10432_v39 = vadd.f32 %v16967_v18, %v10362_v19 }
 0xb46   :  { %10933 = vst [vmem:[#allocation8 + $0xd0] sm:$0xff] %v10869_v41  ;;  %v10496_v41 = vmax.f32 %v10432_v39, 0.0  ;;  %v12205_v39 = vld [vmem:[#allocation3 + $0x138] sm:$0xff] }
 0xb48   :  { %v10535_v49 = vpack.c.bf16 %v10497_v23, %v10496_v41 }
 0xb49   :  { %v10750_v20 = vpop.f32.mrf.mxu3 }
 0xb4a   :  { %v10751_v56 = vadd.f32 %v17035_v48, %v10750_v20 }
 0xb4c   :  { %v10870_v63 = vadd.f32 %v12193_v26, %v10751_v56  ;;  %v12199_v56 = vld [vmem:[#allocation3 + $0x108] sm:$0xff] }
 0xb4e   :  { %10934 = vst [vmem:[#allocation8 + $0xd8] sm:$0xff] %v10870_v63  ;;  %11973 = vmatmul.msk.bf16.gmra.mxu3 %vm395_vm1, %v10532_v7  ;;  %v10364_v63 = vmul.f32 %v16959_v29, %v16632_v54  ;;  %v10365_v7 = vmul.f32 %v16959_v29, %v16852_v24 }
 0xb50   :  { %v10434_v31 = vadd.f32 %v16967_v18, %v10364_v63  ;;  %v10435_v28 = vadd.f32 %v16967_v18, %v10365_v7 }
 0xb51   :  { %v10753_v42 = vpop.f32.mrf.mxu3 }
 0xb52   :  { %v10754_v51 = vadd.f32 %v17035_v48, %v10753_v42  ;;  %v10498_v46 = vmax.f32 %v10434_v31, 0.0  ;;  %v10499_v9 = vmax.f32 %v10435_v28, 0.0 }
 0xb54   :  { %v10871_v62 = vadd.f32 %v12194_v4, %v10754_v51  ;;  %v10536_v54 = vpack.c.bf16 %v10499_v9, %v10498_v46  ;;  %v10372_v9 = vmul.f32 %v16959_v29, %v16923_v45 }
 0xb56   :  { %10935 = vst [vmem:[#allocation8 + $0xe0] sm:$0xff] %v10871_v62 }
 0xb59   :  { %v10755_v60 = vpop.f32.mrf.mxu3 }
 0xb5a   :  { %v10756_v50 = vadd.f32 %v17035_v48, %v10755_v60  ;;  %v10366_v60 = vmul.f32 %v16959_v29, %v16863_v47 }
 0xb5c   :  { %v10872_v35 = vadd.f32 %v12195_v36, %v10756_v50  ;;  %v10367_v50 = vmul.f32 %v16959_v29, %v16878_v43 }
 0xb5e   :  { %10936 = vst [vmem:[#allocation8 + $0xe8] sm:$0xff] %v10872_v35  ;;  %11974 = vmatmul.msk.bf16.gmra.mxu3 %vm395_vm1, %v10533_v3  ;;  %v10436_v35 = vadd.f32 %v16967_v18, %v10366_v60  ;;  %v10437_v3 = vadd.f32 %v16967_v18, %v10367_v50 }
 0xb60   :  { %v10500_v34 = vmax.f32 %v10436_v35, 0.0  ;;  %v12209_v35 = vld [vmem:[#allocation3 + $0x158] sm:$0xff] }
 0xb61   :  { %v10758_v6 = vpop.f32.mrf.mxu3 }
 0xb62   :  { %v10759_v38 = vadd.f32 %v17035_v48, %v10758_v6  ;;  %v12202_v6 = vld [vmem:[#allocation3 + $0x120] sm:$0xff] }
 0xb64   :  { %v10873_v37 = vadd.f32 %v12196_v0, %v10759_v38  ;;  %v10501_v38 = vmax.f32 %v10437_v3, 0.0  ;;  %v12203_v0 = vld [vmem:[#allocation3 + $0x128] sm:$0xff] }
 0xb66   :  { %10937 = vst [vmem:[#allocation8 + $0xf0] sm:$0xff] %v10873_v37  ;;  %v10537_v47 = vpack.c.bf16 %v10501_v38, %v10500_v34  ;;  %v12211_v38 = vld [vmem:[#allocation3 + $0x168] sm:$0xff] }
 0xb69   :  { %v10760_v57 = vpop.f32.mrf.mxu3 }
 0xb6a   :  { %v10761_v5 = vadd.f32 %v17035_v48, %v10760_v57 }
 0xb6c   :  { %v10874_v8 = vadd.f32 %v12197_v61, %v10761_v5  ;;  %v10438_v5 = vadd.f32 %v16967_v18, %v10368_v1  ;;  %v10439_v61 = vadd.f32 %v16967_v18, %v10369_v21  ;;  %v12213_v21 = vld [vmem:[#allocation3 + $0x178] sm:$0xff] }
 0xb6e   :  { %10938 = vst [vmem:[#allocation8 + $0xf8] sm:$0xff] %v10874_v8  ;;  %11975 = vmatmul.msk.bf16.gmra.mxu3 %vm395_vm1, %v10534_v13  ;;  %v12204_v8 = vld [vmem:[#allocation3 + $0x130] sm:$0xff]  ;;  %v10503_v19 = vmax.f32 %v10439_v61, 0.0 }
 0xb71   :  { %v10763_v22 = vpop.f32.mrf.mxu3 }
 0xb72   :  { %v10764_v16 = vadd.f32 %v17035_v48, %v10763_v22  ;;  %v10502_v22 = vmax.f32 %v10438_v5, 0.0 }
 0xb74   :  { %v10875_v53 = vadd.f32 %v12198_v10, %v10764_v16  ;;  %v10538_v25 = vpack.c.bf16 %v10503_v19, %v10502_v22  ;;  %v10370_v10 = vmul.f32 %v16959_v29, %v16907_v15  ;;  %v10445_v15 = vadd.f32 %v16967_v18, %v16962_v2 }
 0xb75   :  { %v10373_v2 = vmul.f32 %v16959_v29, %v16930_v14 }
 0xb76   :  { %10939 = vst [vmem:[#allocation8 + $0x100] sm:$0xff] %v10875_v53  ;;  %v10371_v53 = vmul.f32 %v16959_v29, %v16915_v12  ;;  %v10440_v23 = vadd.f32 %v16967_v18, %v10370_v10 }
 0xb79   :  { %v10765_v59 = vpop.f32.mrf.mxu3 }
 0xb7a   :  { %v10766_v20 = vadd.f32 %v17035_v48, %v10765_v59  ;;  %v10441_v59 = vadd.f32 %v16967_v18, %v10371_v53 }
 0xb7c   :  { %v10876_v26 = vadd.f32 %v12199_v56, %v10766_v20  ;;  %v12206_v20 = vld [vmem:[#allocation3 + $0x140] sm:$0xff] }
 0xb7e   :  { %10940 = vst [vmem:[#allocation8 + $0x108] sm:$0xff] %v10876_v26  ;;  %11976 = vmatmul.msk.bf16.gmra.mxu3 %vm395_vm1, %v10535_v49  ;;  %v10374_v26 = vmul.f32 %v16959_v29, %v16938_v44  ;;  %v10504_v49 = vmax.f32 %v10440_v23, 0.0 }
 0xb80   :  { %v10444_v12 = vadd.f32 %v16967_v18, %v10374_v26 }
 0xb81   :  { %v10768_v33 = vpop.f32.mrf.mxu3 }
 0xb82   :  { %v10769_v42 = vadd.f32 %v17035_v48, %v10768_v33  ;;  %v10505_v33 = vmax.f32 %v10441_v59, 0.0 }
 0xb84   :  { %v10877_v51 = vadd.f32 %v12200_v55, %v10769_v42  ;;  %v12207_v42 = vld [vmem:[#allocation3 + $0x148] sm:$0xff]  ;;  %v10539_v28 = vpack.c.bf16 %v10505_v33, %v10504_v49  ;;  %v10508_v55 = vmax.f32 %v10444_v12, 0.0 }
 0xb86   :  { %10941 = vst [vmem:[#allocation8 + $0x110] sm:$0xff] %v10877_v51  ;;  %v10509_v51 = vmax.f32 %v10445_v15, 0.0 }
 0xb88   :  { %v10541_v46 = vpack.c.bf16 %v10509_v51, %v10508_v55  ;;  %v12221_v51 = vld [vmem:[#allocation3 + $0x1b8] sm:$0xff] }
 0xb89   :  { %v10770_v4 = vpop.f32.mrf.mxu3 }
 0xb8a   :  { %v10771_v62 = vadd.f32 %v17035_v48, %v10770_v4 }
 0xb8c   :  { %v10878_v32 = vadd.f32 %v12201_v27, %v10771_v62  ;;  %v10442_v62 = vadd.f32 %v16967_v18, %v10372_v9  ;;  %v10443_v27 = vadd.f32 %v16967_v18, %v10373_v2  ;;  %v12222_v2 = vld [vmem:[#allocation3 + $0x1c0] sm:$0xff] }
 0xb8e   :  { %10942 = vst [vmem:[#allocation8 + $0x118] sm:$0xff] %v10878_v32  ;;  %11977 = vmatmul.msk.bf16.gmra.mxu3 %vm395_vm1, %v10536_v54  ;;  %v12208_v32 = vld [vmem:[#allocation3 + $0x150] sm:$0xff]  ;;  %v10507_v60 = vmax.f32 %v10443_v27, 0.0 }
 0xb91   :  { %v10773_v24 = vpop.f32.mrf.mxu3 }
 0xb92   :  { %v10774_v36 = vadd.f32 %v17035_v48, %v10773_v24  ;;  %v10506_v24 = vmax.f32 %v10442_v62, 0.0 }
 0xb94   :  { %v10879_v58 = vadd.f32 %v12202_v6, %v10774_v36  ;;  %v10540_v45 = vpack.c.bf16 %v10507_v60, %v10506_v24  ;;  %v12210_v6 = vld [vmem:[#allocation3 + $0x160] sm:$0xff] }
 0xb96   :  { %10943 = vst [vmem:[#allocation8 + $0x120] sm:$0xff] %v10879_v58 }
 0xb99   :  { %v10775_v40 = vpop.f32.mrf.mxu3 }
 0xb9a   :  { %v10776_v11 = vadd.f32 %v17035_v48, %v10775_v40 }
 0xb9c   :  { %v10880_v37 = vadd.f32 %v12203_v0, %v10776_v11 }
 0xb9e   :  { %10944 = vst [vmem:[#allocation8 + $0x128] sm:$0xff] %v10880_v37  ;;  %11978 = vmatmul.msk.bf16.gmra.mxu3 %vm395_vm1, %v10537_v47  ;;  %v12212_v37 = vld [vmem:[#allocation3 + $0x170] sm:$0xff] }
 0xba1   :  { %v10778_v43 = vpop.f32.mrf.mxu3 }
 0xba2   :  { %v10779_v57 = vadd.f32 %v17035_v48, %v10778_v43 }
 0xba4   :  { %v10881_v13 = vadd.f32 %v12204_v8, %v10779_v57  ;;  %v12214_v8 = vld [vmem:[#allocation3 + $0x180] sm:$0xff] }
 0xba6   :  { %10945 = vst [vmem:[#allocation8 + $0x130] sm:$0xff] %v10881_v13 }
 0xba9   :  { %v10780_v30 = vpop.f32.mrf.mxu3 }
 0xbaa   :  { %v10781_v16 = vadd.f32 %v17035_v48, %v10780_v30  ;;  %v12215_v30 = vld [vmem:[#allocation3 + $0x188] sm:$0xff] }
 0xbac   :  { %v10882_v52 = vadd.f32 %v12205_v39, %v10781_v16 }
 0xbae   :  { %10946 = vst [vmem:[#allocation8 + $0x138] sm:$0xff] %v10882_v52  ;;  %11979 = vmatmul.msk.bf16.gmra.mxu3 %vm395_vm1, %v10538_v25  ;;  %v12216_v25 = vld [vmem:[#allocation3 + $0x190] sm:$0xff] }
 0xbb1   :  { %v10783_v17 = vpop.f32.mrf.mxu3 }
 0xbb2   :  { %v10784_v41 = vadd.f32 %v17035_v48, %v10783_v17 }
 0xbb4   :  { %v10883_v56 = vadd.f32 %v12206_v20, %v10784_v41  ;;  %v12217_v41 = vld [vmem:[#allocation3 + $0x198] sm:$0xff] }
 0xbb6   :  { %10947 = vst [vmem:[#allocation8 + $0x140] sm:$0xff] %v10883_v56  ;;  %v12218_v56 = vld [vmem:[#allocation3 + $0x1a0] sm:$0xff] }
 0xbb9   :  { %v10785_v63 = vpop.f32.mrf.mxu3 }
 0xbba   :  { %v10786_v7 = vadd.f32 %v17035_v48, %v10785_v63  ;;  %v12219_v63 = vld [vmem:[#allocation3 + $0x1a8] sm:$0xff] }
 0xbbc   :  { %v10884_v31 = vadd.f32 %v12207_v42, %v10786_v7  ;;  %v12220_v42 = vld [vmem:[#allocation3 + $0x1b0] sm:$0xff] }
 0xbbe   :  { %10948 = vst [vmem:[#allocation8 + $0x148] sm:$0xff] %v10884_v31  ;;  %11980 = vmatmul.msk.bf16.gmra.mxu3 %vm395_vm1, %v10539_v28 }
 0xbc1   :  { %v10788_v44 = vpop.f32.mrf.mxu3 }
 0xbc2   :  { %v10789_v4 = vadd.f32 %v17035_v48, %v10788_v44 }
 0xbc4   :  { %v10885_v54 = vadd.f32 %v12208_v32, %v10789_v4  ;;  %v12223_v32 = vld [vmem:[#allocation3 + $0x1c8] sm:$0xff] }
 0xbc6   :  { %10949 = vst [vmem:[#allocation8 + $0x150] sm:$0xff] %v10885_v54 }
 0xbc9   :  { %v10790_v50 = vpop.f32.mrf.mxu3 }
 0xbca   :  { %v10791_v36 = vadd.f32 %v17035_v48, %v10790_v50  ;;  %v12224_v50 = vld [vmem:[#allocation3 + $0x1d0] sm:$0xff] }
 0xbcc   :  { %v10886_v3 = vadd.f32 %v12209_v35, %v10791_v36 }
 0xbce   :  { %10950 = vst [vmem:[#allocation8 + $0x158] sm:$0xff] %v10886_v3  ;;  %11981 = vmatmul.msk.bf16.gmra.mxu3 %vm395_vm1, %v10540_v45  ;;  %v12225_v45 = vld [vmem:[#allocation3 + $0x1d8] sm:$0xff] }
 0xbd1   :  { %v10793_v14 = vpop.f32.mrf.mxu3 }
 0xbd2   :  { %v10794_v29 = vadd.f32 %v17035_v48, %v10793_v14 }
 0xbd4   :  { %v10887_v58 = vadd.f32 %v12210_v6, %v10794_v29 }
 0xbd6   :  { %10951 = vst [vmem:[#allocation8 + $0x160] sm:$0xff] %v10887_v58  ;;  %v12226_v58 = vld [vmem:[#allocation3 + $0x1e0] sm:$0xff] }
 0xbd9   :  { %v10795_v18 = vpop.f32.mrf.mxu3 }
 0xbda   :  { %v10796_v34 = vadd.f32 %v17035_v48, %v10795_v18 }
 0xbdc   :  { %v10888_v40 = vadd.f32 %v12211_v38, %v10796_v34 }
 0xbde   :  { %10952 = vst [vmem:[#allocation8 + $0x168] sm:$0xff] %v10888_v40  ;;  %11982 = vmatmul.msk.bf16.gmra.mxu3 %vm395_vm1, %v10541_v46  ;;  %v12227_v40 = vld [vmem:[#allocation3 + $0x1e8] sm:$0xff] }
 0xbe1   :  { %v10798_v11 = vpop.f32.mrf.mxu3 }
 0xbe2   :  { %v10799_v0 = vadd.f32 %v17035_v48, %v10798_v11 }
 0xbe4   :  { %v10889_v47 = vadd.f32 %v12212_v37, %v10799_v0 }
 0xbe6   :  { %10953 = vst [vmem:[#allocation8 + $0x170] sm:$0xff] %v10889_v47  ;;  %v12228_v47 = vld [vmem:[#allocation3 + $0x1f0] sm:$0xff] }
 0xbe9   :  { %v10800_v43 = vpop.f32.mrf.mxu3 }
 0xbea   :  { %v10801_v1 = vadd.f32 %v17035_v48, %v10800_v43 }
 0xbec   :  { %v10890_v57 = vadd.f32 %v12213_v21, %v10801_v1 }
 0xbee   :  { %10954 = vst [vmem:[#allocation8 + $0x178] sm:$0xff] %v10890_v57  ;;  %v12229_v57 = vld [vmem:[#allocation3 + $0x1f8] sm:$0xff] }
 0xbf1   :  { %v10803_v5 = vpop.f32.mrf.mxu3 }
 0xbf2   :  { %v10804_v61 = vadd.f32 %v17035_v48, %v10803_v5 }
 0xbf4   :  { %v10891_v13 = vadd.f32 %v12214_v8, %v10804_v61 }
 0xbf6   :  { %10955 = vst [vmem:[#allocation8 + $0x180] sm:$0xff] %v10891_v13 }
 0xbf9   :  { %v10805_v22 = vpop.f32.mrf.mxu3 }
 0xbfa   :  { %v10806_v19 = vadd.f32 %v17035_v48, %v10805_v22 }
 0xbfc   :  { %v10892_v16 = vadd.f32 %v12215_v30, %v10806_v19 }
 0xbfe   :  { %10956 = vst [vmem:[#allocation8 + $0x188] sm:$0xff] %v10892_v16 }
 0xc01   :  { %v10808_v39 = vpop.f32.mrf.mxu3 }
 0xc02   :  { %v10809_v52 = vadd.f32 %v17035_v48, %v10808_v39 }
 0xc04   :  { %v10893_v17 = vadd.f32 %v12216_v25, %v10809_v52 }
 0xc06   :  { %10957 = vst [vmem:[#allocation8 + $0x190] sm:$0xff] %v10893_v17 }
 0xc09   :  { %v10810_v10 = vpop.f32.mrf.mxu3 }
 0xc0a   :  { %v10811_v53 = vadd.f32 %v17035_v48, %v10810_v10 }
 0xc0c   :  { %v10894_v23 = vadd.f32 %v12217_v41, %v10811_v53 }
 0xc0e   :  { %10958 = vst [vmem:[#allocation8 + $0x198] sm:$0xff] %v10894_v23 }
 0xc11   :  { %v10813_v59 = vpop.f32.mrf.mxu3 }
 0xc12   :  { %v10814_v20 = vadd.f32 %v17035_v48, %v10813_v59 }
 0xc14   :  { %v10895_v26 = vadd.f32 %v12218_v56, %v10814_v20 }
 0xc16   :  { %10959 = vst [vmem:[#allocation8 + $0x1a0] sm:$0xff] %v10895_v26 }
 0xc19   :  { %v10815_v49 = vpop.f32.mrf.mxu3 }
 0xc1a   :  { %v10816_v33 = vadd.f32 %v17035_v48, %v10815_v49 }
 0xc1c   :  { %v10896_v15 = vadd.f32 %v12219_v63, %v10816_v33 }
 0xc1e   :  { %10960 = vst [vmem:[#allocation8 + $0x1a8] sm:$0xff] %v10896_v15 }
 0xc21   :  { %v10818_v12 = vpop.f32.mrf.mxu3 }
 0xc22   :  { %v10819_v7 = vadd.f32 %v17035_v48, %v10818_v12 }
 0xc24   :  { %v10897_v31 = vadd.f32 %v12220_v42, %v10819_v7 }
 0xc26   :  { %10961 = vst [vmem:[#allocation8 + $0x1b0] sm:$0xff] %v10897_v31 }
 0xc29   :  { %v10820_v28 = vpop.f32.mrf.mxu3 }
 0xc2a   :  { %v10821_v55 = vadd.f32 %v17035_v48, %v10820_v28 }
 0xc2c   :  { %v10898_v46 = vadd.f32 %v12221_v51, %v10821_v55 }
 0xc2e   :  { %10962 = vst [vmem:[#allocation8 + $0x1b8] sm:$0xff] %v10898_v46 }
 0xc31   :  { %v10823_v44 = vpop.f32.mrf.mxu3 }
 0xc32   :  { %v10824_v9 = vadd.f32 %v17035_v48, %v10823_v44 }
 0xc34   :  { %v10899_v4 = vadd.f32 %v12222_v2, %v10824_v9 }
 0xc36   :  { %10963 = vst [vmem:[#allocation8 + $0x1c0] sm:$0xff] %v10899_v4 }
 0xc39   :  { %v10825_v62 = vpop.f32.mrf.mxu3 }
 0xc3a   :  { %v10826_v27 = vadd.f32 %v17035_v48, %v10825_v62 }
 0xc3c   :  { %v10900_v54 = vadd.f32 %v12223_v32, %v10826_v27 }
 0xc3e   :  { %10964 = vst [vmem:[#allocation8 + $0x1c8] sm:$0xff] %v10900_v54 }
 0xc41   :  { %v10828_v24 = vpop.f32.mrf.mxu3 }
 0xc42   :  { %v10829_v60 = vadd.f32 %v17035_v48, %v10828_v24 }
 0xc44   :  { %v10901_v36 = vadd.f32 %v12224_v50, %v10829_v60 }
 0xc46   :  { %10965 = vst [vmem:[#allocation8 + $0x1d0] sm:$0xff] %v10901_v36 }
 0xc49   :  { %v10830_v35 = vpop.f32.mrf.mxu3 }
 0xc4a   :  { %v10831_v3 = vadd.f32 %v17035_v48, %v10830_v35 }
 0xc4c   :  { %v10902_v14 = vadd.f32 %v12225_v45, %v10831_v3 }
 0xc4e   :  { %10966 = vst [vmem:[#allocation8 + $0x1d8] sm:$0xff] %v10902_v14 }
 0xc51   :  { %v10833_v29 = vpop.f32.mrf.mxu3 }
 0xc52   :  { %v10834_v6 = vadd.f32 %v17035_v48, %v10833_v29 }
 0xc54   :  { %v10903_v18 = vadd.f32 %v12226_v58, %v10834_v6 }
 0xc56   :  { %10967 = vst [vmem:[#allocation8 + $0x1e0] sm:$0xff] %v10903_v18 }
 0xc59   :  { %v10835_v34 = vpop.f32.mrf.mxu3 }
 0xc5a   :  { %v10836_v38 = vadd.f32 %v17035_v48, %v10835_v34 }
 0xc5c   :  { %v10904_v11 = vadd.f32 %v12227_v40, %v10836_v38 }
 0xc5e   :  { %10968 = vst [vmem:[#allocation8 + $0x1e8] sm:$0xff] %v10904_v11 }
 0xc61   :  { %v10838_v0 = vpop.f32.mrf.mxu3 }
 0xc62   :  { %v10839_v37 = vadd.f32 %v17035_v48, %v10838_v0 }
 0xc64   :  { %v10905_v43 = vadd.f32 %v12228_v47, %v10839_v37 }
 0xc66   :  { %10969 = vst [vmem:[#allocation8 + $0x1f0] sm:$0xff] %v10905_v43 }
 0xc69   :  { %v10840_v1 = vpop.f32.mrf.mxu3 }
 0xc6a   :  { %v10841_v21 = vadd.f32 %v17035_v48, %v10840_v1 }
 0xc6c   :  { %v10906_v5 = vadd.f32 %v12229_v57, %v10841_v21 }
 0xc6e   :  { %10970 = vst [vmem:[#allocation8 + $0x1f8] sm:$0xff] %v10906_v5 }
 0xc6f   :  { %10983 = dma.vmem_to_hbm [thread:$0]  %s10976_s28, 8192, %s10978_s10, [#allocation5], %s12309_s17, %s12309_s17, %s12310_s18  }
 0xc70   :  { %12306 = dma.done.wait [#allocation5], 8192  }
 0xc71   :  { %12307 = vsyncadd [#allocation5], 4294959104 }
 0xc72   :  { %10988 = vsyncpa [#allocation4], 1 }
 0xc73   :  { %10989 = vsyncpa [#allocation7], 1 }
 0xc74   :  { %10990 = vsyncpa [#allocation5], 1 }

</bundles_post_ra>
